<compile_context>
chip_gen: v6e
topology: v6e:2x2x1
jax: 0.10.0
libtpu: 0.0.40
codegen_flags: <defaults>
</compile_context>

<pallas_src>
import functools

import jax
import jax.numpy as jnp
from jax import lax
from jax.experimental import pallas as pl
from jax.experimental.pallas import tpu as pltpu

BN_EPS = 1e-5
LANE = 128


def _round_up(x, m):
    return (x + m - 1) // m * m


def _vmem_capacity_bytes():
    try:
        info = pltpu.get_tpu_info()
        cap = getattr(info, "vmem_capacity_bytes", None)
        if cap:
            return int(cap)
    except Exception:
        pass
    return 128 * 1024 * 1024  # v5e / v6e


_VMEM_CAP = _vmem_capacity_bytes()
# v7x has 64 MiB VMEM per TensorCore -> halve the M-tile target and keep the
# scoped-VMEM limit modest; v5e/v6e (128 MiB) get bigger tiles and a 64 MiB
# scoped limit (above the 16/32 MiB defaults).
_TARGET_TILE_ROWS = 256 if _VMEM_CAP <= 64 * 1024 * 1024 else 512
_VMEM_LIMIT = int(min(_VMEM_CAP // 2, 64 * 1024 * 1024))


def _pick_tile_rows(h, w, target_rows):
    """Largest divisor TH of h with TH*w <= target_rows (>=1)."""
    th = 1
    for d in range(1, h + 1):
        if h % d == 0 and d * w <= target_rows:
            th = d
    return th


# --------------------------- Pallas kernels --------------------------------
def _conv_stats_kernel(x_ref, w_ref, out_ref, stats_ref, *, th, w, cin_p, cout_p):
    """One (b, h-tile) grid step: 3x3 conv as an im2col matmul + BN-stat accum.

    x_ref:     (th+2, w+2, cin_p)  bf16  halo'd input row-tile
    w_ref:     (9*cin_p, cout_p)   bf16  grid-invariant weight matrix
    out_ref:   (th*w, cout_p)      f32   pre-BN conv output tile (lane-dense)
    stats_ref: (8, cout_p)         f32   row0 = sum, row1 = sum-of-squares,
                                         accumulated over the h-tile axis
    """
    @pl.when(pl.program_id(1) == 0)
    def _init():
        stats_ref[...] = jnp.zeros_like(stats_ref)

    # Build the (th*w, 9*cin_p) patch matrix in VMEM from the halo'd tile
    # (no 9x im2col in HBM).  Assembly in f32 for layout robustness; the MXU
    # operands are bf16 with an f32 accumulator.
    x = x_ref[...].astype(jnp.float32)
    pieces = [x[dh:dh + th, dw:dw + w, :] for dh in range(3) for dw in range(3)]
    patches = jnp.concatenate(pieces, axis=-1)              # (th, w, 9*cin_p)
    patches = patches.reshape(th * w, 9 * cin_p).astype(jnp.bfloat16)

    acc = jnp.dot(patches, w_ref[...], preferred_element_type=jnp.float32)
    out_ref[...] = acc

    # Per-channel partial sums for training-mode BatchNorm (E[x], E[x^2]).
    tile_sum = jnp.sum(acc, axis=0, keepdims=True)
    tile_ssq = jnp.sum(acc * acc, axis=0, keepdims=True)
    upd = jnp.concatenate(
        [tile_sum, tile_ssq, jnp.zeros((6, cout_p), jnp.float32)], axis=0)
    stats_ref[...] += upd


def _bn_prelu_kernel(y_ref, p_ref, o_ref):
    """y * scale + shift then PReLU.  p_ref rows: 0=scale, 1=shift, 2=alpha."""
    y = y_ref[...]
    scale = p_ref[0:1, :]
    shift = p_ref[1:2, :]
    alpha = p_ref[2:3, :]
    z = y * scale + shift
    o_ref[...] = jnp.where(z >= 0.0, z, alpha * z)


# ------------------------------ wrappers ------------------------------------
def conv_bn_prelu_stage(x_nhwc, w_hwio, gamma, beta, alpha):
    """Conv3x3(pad=1, no bias) -> BatchNorm2d(batch stats) -> PReLU, NHWC."""
    B, H, W, Cin = x_nhwc.shape
    Cout = w_hwio.shape[-1]
    cin_p = _round_up(Cin, 8)          # sublane-tidy input channels
    cout_p = _round_up(Cout, LANE)     # lane-dense (unmasked) output stores
    th = _pick_tile_rows(H, W, _TARGET_TILE_ROWS)
    n_h = H // th
    thw = th * W

    # --- plain-JAX glue: channel pad + 1-pixel spatial halo + per-tile halo
    # view ((th+2)/th duplication only, instead of a 9x im2col in HBM).
    x = jnp.pad(x_nhwc, ((0, 0), (0, 0), (0, 0), (0, cin_p - Cin)))
    xp = jnp.pad(x, ((0, 0), (1, 1), (1, 1), (0, 0)))
    x_tiles = jnp.stack(
        [xp[:, t * th:t * th + th + 2] for t in range(n_h)], axis=1)
    x_tiles = x_tiles.reshape(B * n_h, th + 2, W + 2, cin_p).astype(jnp.bfloat16)

    wp = jnp.zeros((3, 3, cin_p, cout_p), jnp.float32)
    wp = wp.at[:, :, :Cin, :Cout].set(w_hwio)
    wmat = wp.reshape(9 * cin_p, cout_p).astype(jnp.bfloat16)

    kern = functools.partial(
        _conv_stats_kernel, th=th, w=W, cin_p=cin_p, cout_p=cout_p)

    # Pass 1: conv matmul per tile + per-image sum / sumsq accumulation.
    conv_out, stats = pl.pallas_call(
        kern,
        grid=(B, n_h),
        in_specs=[
            pl.BlockSpec((None, th + 2, W + 2, cin_p),
                         lambda b, h: (b * n_h + h, 0, 0, 0)),
            pl.BlockSpec((9 * cin_p, cout_p), lambda b, h: (0, 0)),
        ],
        out_specs=[
            pl.BlockSpec((None, thw, cout_p), lambda b, h: (b * n_h + h, 0, 0)),
            pl.BlockSpec((None, 8, cout_p), lambda b, h: (b, 0, 0)),
        ],
        out_shape=[
            jax.ShapeDtypeStruct((B * n_h, thw, cout_p), jnp.float32),
            jax.ShapeDtypeStruct((B, 8, cout_p), jnp.float32),
        ],
        compiler_params=pltpu.CompilerParams(
            dimension_semantics=("parallel", "arbitrary"),
            vmem_limit_bytes=_VMEM_LIMIT),
    )(x_tiles, wmat)

    # --- tiny O(Cout) BN finalize in plain JAX: fold mean/var/gamma/beta into
    # one scale/shift pair (biased variance via E[x^2] - mean^2, eps=1e-5).
    tot = jnp.sum(stats, axis=0)                         # (8, cout_p)
    count = jnp.float32(B * H * W)
    mean = tot[0] / count
    var = jnp.maximum(tot[1] / count - mean * mean, 0.0)
    inv = lax.rsqrt(var + BN_EPS)
    gamma_p = jnp.zeros((cout_p,), jnp.float32).at[:Cout].set(gamma)
    beta_p = jnp.zeros((cout_p,), jnp.float32).at[:Cout].set(beta)
    scale = gamma_p * inv
    shift = beta_p - mean * scale
    alpha_row = jnp.broadcast_to(jnp.asarray(alpha, jnp.float32), (cout_p,))
    packed = jnp.zeros((8, cout_p), jnp.float32)
    packed = packed.at[0].set(scale).at[1].set(shift).at[2].set(alpha_row)

    # Pass 2: normalize + PReLU, fully parallel over tiles.
    act = pl.pallas_call(
        _bn_prelu_kernel,
        grid=(B * n_h,),
        in_specs=[
            pl.BlockSpec((None, thw, cout_p), lambda i: (i, 0, 0)),
            pl.BlockSpec((8, cout_p), lambda i: (0, 0)),
        ],
        out_specs=pl.BlockSpec((None, thw, cout_p), lambda i: (i, 0, 0)),
        out_shape=jax.ShapeDtypeStruct((B * n_h, thw, cout_p), jnp.float32),
        compiler_params=pltpu.CompilerParams(
            dimension_semantics=("parallel",),
            vmem_limit_bytes=_VMEM_LIMIT),
    )(conv_out, packed)

    act = act.reshape(B, n_h, th, W, cout_p).reshape(B, H, W, cout_p)
    return act[..., :Cout]


def double_conv(x_nchw, params):
    """DoubleConv forward, NCHW in / NCHW out.

    Conv biases are accepted in `params` but not used: under training-mode
    BatchNorm a per-channel bias is exactly cancelled by the mean subtraction
    (perf review item: dead compute + dead input).
    """
    (w1, _b1, g1, be1, a1), (w2, _b2, g2, be2, a2) = params
    x = jnp.transpose(x_nchw, (0, 2, 3, 1))            # NCHW -> NHWC
    y = conv_bn_prelu_stage(x, w1, g1, be1, a1)
    y = conv_bn_prelu_stage(y, w2, g2, be2, a2)
    return jnp.transpose(y, (0, 3, 1, 2))              # NHWC -> NCHW


# ---------------- pure-JAX reference (for correctness check) ----------------
# Mirrors the bf16 MXU operands / f32 accumulation, and KEEPS the conv bias to
# validate that dropping it in the kernel is semantics-preserving under BN.
def _ref_stage(x, w, b, gamma, beta, alpha):
    y = lax.conv_general_dilated(
        x.astype(jnp.bfloat16), w.astype(jnp.bfloat16), (1, 1), "SAME",
        dimension_numbers=("NHWC", "HWIO", "NHWC"),
        preferred_element_type=jnp.float32) + b
    mean = y.mean(axis=(0, 1, 2))
    var = ((y - mean) ** 2).mean(axis=(0, 1, 2))       # biased variance
    y = (y - mean) * lax.rsqrt(var + BN_EPS) * gamma + beta
    return jnp.where(y >= 0.0, y, alpha * y)


def double_conv_ref(x_nchw, params):
    (w1, b1, g1, be1, a1), (w2, b2, g2, be2, a2) = params
    x = jnp.transpose(x_nchw, (0, 2, 3, 1))
    y = _ref_stage(x, w1, b1, g1, be1, a1)
    y = _ref_stage(y, w2, b2, g2, be2, a2)
    return jnp.transpose(y, (0, 3, 1, 2))


if __name__ == "__main__":
    B, Cin, H, W = 2, 4, 32, 32
    num_feature = 32   # UNet_res's (undefined) `num_feature` global: small demo value

    key = jax.random.PRNGKey(0)
    k1, k2, k3, k4, kx = jax.random.split(key, 5)

    # Deterministic synthetic parameters (shapes from the module __init__).
    w1 = jax.random.normal(k1, (3, 3, Cin, num_feature), jnp.float32) * 0.1   # HWIO
    b1 = jax.random.normal(k2, (num_feature,), jnp.float32) * 0.1
    w2 = jax.random.normal(k3, (3, 3, num_feature, num_feature), jnp.float32) * 0.1
    b2 = jax.random.normal(k4, (num_feature,), jnp.float32) * 0.1
    g1 = jnp.ones((num_feature,), jnp.float32)
    be1 = jnp.zeros((num_feature,), jnp.float32)
    g2 = jnp.ones((num_feature,), jnp.float32)
    be2 = jnp.zeros((num_feature,), jnp.float32)
    a1 = jnp.float32(0.25)   # nn.PReLU() default single alpha
    a2 = jnp.float32(0.25)

    params = ((w1, b1, g1, be1, a1), (w2, b2, g2, be2, a2))
    x = jax.random.normal(kx, (B, Cin, H, W), jnp.float32)   # PyTorch NCHW

    out = jax.block_until_ready(jax.jit(double_conv)(x, params))
    ref = jax.block_until_ready(jax.jit(double_conv_ref)(x, params))

    assert out.shape == (B, num_feature, H, W), out.shape
    assert bool(jnp.all(jnp.isfinite(out)))
    err = float(jnp.max(jnp.abs(out - ref)))
    assert err < 5e-3, err

    print("KERNEL_OK")
</pallas_src>

<mosaic_0001>
module attributes {stable_mosaic.version = 11 : i64} {
  func.func @_conv_stats_kernel(%arg0: i32, %arg1: i32, %arg2: memref<1x18x34x8xbf16, #tpu.memory_space<vmem>>, %arg3: memref<72x128xbf16, #tpu.memory_space<vmem>>, %arg4: memref<1x512x128xf32, #tpu.memory_space<vmem>>, %arg5: memref<1x8x128xf32, #tpu.memory_space<vmem>>) attributes {dimension_semantics = [#tpu.dimension_semantics<parallel>, #tpu.dimension_semantics<arbitrary>], iteration_bounds = array<i64: 2, 2>, scalar_prefetch = 0 : i64, scratch_operands = 0 : i64, tpu.core_type = #tpu.core_type<tc>, window_params = [{transform_indices = @transform_0, window_bounds = array<i64: 1, 18, 34, 8>}, {pipeline_mode = #tpu.pipeline_mode<synchronous>, transform_indices = @transform_1, window_bounds = array<i64: 72, 128>}, {transform_indices = @transform_2, window_bounds = array<i64: 1, 512, 128>}, {transform_indices = @transform_3, window_bounds = array<i64: 1, 8, 128>}]} {
    %c0_i32 = arith.constant 0 : i32
    %0 = arith.cmpi eq, %arg1, %c0_i32 : i32
    %1 = arith.extui %0 : i1 to i32
    %c0_i32_0 = arith.constant 0 : i32
    %2 = arith.cmpi ne, %1, %c0_i32_0 : i32
    scf.if %2 {
      %cst_18 = arith.constant 0.000000e+00 : f32
      %36 = vector.broadcast %cst_18 : f32 to vector<8x128xf32>
      %c0_19 = arith.constant 0 : index
      %c0_20 = arith.constant 0 : index
      %c0_21 = arith.constant 0 : index
      %37 = vector.load %arg5[%c0_19, %c0_20, %c0_21] : memref<1x8x128xf32, #tpu.memory_space<vmem>>, vector<1x8x128xf32>
      %38 = vector.shape_cast %37 : vector<1x8x128xf32> to vector<8x128xf32>
      %39 = vector.shape_cast %36 : vector<8x128xf32> to vector<1x8x128xf32>
      tpu.vector_store %arg5[%c0_19, %c0_20, %c0_21], %39 {strides = array<i32>} : memref<1x8x128xf32, #tpu.memory_space<vmem>>, vector<1x8x128xf32>,
    } else {
    }
    %c0 = arith.constant 0 : index
    %c0_1 = arith.constant 0 : index
    %c0_2 = arith.constant 0 : index
    %c0_3 = arith.constant 0 : index
    %3 = vector.load %arg2[%c0, %c0_1, %c0_2, %c0_3] : memref<1x18x34x8xbf16, #tpu.memory_space<vmem>>, vector<1x18x34x8xbf16>
    %4 = vector.shape_cast %3 : vector<1x18x34x8xbf16> to vector<18x34x8xbf16>
    %5 = arith.extf %4 : vector<18x34x8xbf16> to vector<18x34x8xf32>
    %6 = vector.extract_strided_slice %5 {offsets = [0, 0, 0], sizes = [16, 32, 8], strides = [1, 1, 1]} : vector<18x34x8xf32> to vector<16x32x8xf32>
    %7 = vector.extract_strided_slice %5 {offsets = [0, 1, 0], sizes = [16, 32, 8], strides = [1, 1, 1]} : vector<18x34x8xf32> to vector<16x32x8xf32>
    %8 = vector.extract_strided_slice %5 {offsets = [0, 2, 0], sizes = [16, 32, 8], strides = [1, 1, 1]} : vector<18x34x8xf32> to vector<16x32x8xf32>
    %9 = vector.extract_strided_slice %5 {offsets = [1, 0, 0], sizes = [16, 32, 8], strides = [1, 1, 1]} : vector<18x34x8xf32> to vector<16x32x8xf32>
    %10 = vector.extract_strided_slice %5 {offsets = [1, 1, 0], sizes = [16, 32, 8], strides = [1, 1, 1]} : vector<18x34x8xf32> to vector<16x32x8xf32>
    %11 = vector.extract_strided_slice %5 {offsets = [1, 2, 0], sizes = [16, 32, 8], strides = [1, 1, 1]} : vector<18x34x8xf32> to vector<16x32x8xf32>
    %12 = vector.extract_strided_slice %5 {offsets = [2, 0, 0], sizes = [16, 32, 8], strides = [1, 1, 1]} : vector<18x34x8xf32> to vector<16x32x8xf32>
    %13 = vector.extract_strided_slice %5 {offsets = [2, 1, 0], sizes = [16, 32, 8], strides = [1, 1, 1]} : vector<18x34x8xf32> to vector<16x32x8xf32>
    %14 = vector.extract_strided_slice %5 {offsets = [2, 2, 0], sizes = [16, 32, 8], strides = [1, 1, 1]} : vector<18x34x8xf32> to vector<16x32x8xf32>
    %15 = tpu.concatenate %6, %7, %8, %9, %10, %11, %12, %13, %14 in 2 : vector<16x32x8xf32>, vector<16x32x8xf32>, vector<16x32x8xf32>, vector<16x32x8xf32>, vector<16x32x8xf32>, vector<16x32x8xf32>, vector<16x32x8xf32>, vector<16x32x8xf32>, vector<16x32x8xf32> -> vector<16x32x72xf32>
    %16 = vector.shape_cast %15 : vector<16x32x72xf32> to vector<512x72xf32>
    %17 = arith.truncf %16 : vector<512x72xf32> to vector<512x72xbf16>
    %c0_4 = arith.constant 0 : index
    %c0_5 = arith.constant 0 : index
    %18 = vector.load %arg3[%c0_4, %c0_5] : memref<72x128xbf16, #tpu.memory_space<vmem>>, vector<72x128xbf16>
    %cst = arith.constant dense<0.000000e+00> : vector<512x128xf32>
    %19 = tpu.matmul %17, %18, %cst {dimension_numbers = #tpu.dot_dimension_numbers<[1], [0], [0], [1], [0, 0, 1, 1], [], []>} : vector<512x72xbf16>, vector<72x128xbf16>, vector<512x128xf32> -> vector<512x128xf32>
    %c0_6 = arith.constant 0 : index
    %c0_7 = arith.constant 0 : index
    %c0_8 = arith.constant 0 : index
    %20 = vector.load %arg4[%c0_6, %c0_7, %c0_8] : memref<1x512x128xf32, #tpu.memory_space<vmem>>, vector<1x512x128xf32>
    %21 = vector.shape_cast %20 : vector<1x512x128xf32> to vector<512x128xf32>
    %22 = vector.shape_cast %19 : vector<512x128xf32> to vector<1x512x128xf32>
    tpu.vector_store %arg4[%c0_6, %c0_7, %c0_8], %22 {strides = array<i32>} : memref<1x512x128xf32, #tpu.memory_space<vmem>>, vector<1x512x128xf32>,
    %cst_9 = arith.constant dense<0.000000e+00> : vector<128xf32>
    %23 = vector.multi_reduction <add>, %19, %cst_9 [0] : vector<512x128xf32> to vector<128xf32>
    %24 = vector.shape_cast %23 : vector<128xf32> to vector<1x128xf32>
    %25 = arith.mulf %19, %19 : vector<512x128xf32>
    %cst_10 = arith.constant dense<0.000000e+00> : vector<128xf32>
    %26 = vector.multi_reduction <add>, %25, %cst_10 [0] : vector<512x128xf32> to vector<128xf32>
    %27 = vector.shape_cast %26 : vector<128xf32> to vector<1x128xf32>
    %cst_11 = arith.constant 0.000000e+00 : f32
    %28 = vector.broadcast %cst_11 : f32 to vector<6x128xf32>
    %29 = tpu.concatenate %24, %27, %28 in 0 : vector<1x128xf32>, vector<1x128xf32>, vector<6x128xf32> -> vector<8x128xf32>
    %c0_12 = arith.constant 0 : index
    %c0_13 = arith.constant 0 : index
    %c0_14 = arith.constant 0 : index
    %30 = vector.load %arg5[%c0_12, %c0_13, %c0_14] : memref<1x8x128xf32, #tpu.memory_space<vmem>>, vector<1x8x128xf32>
    %31 = vector.shape_cast %30 : vector<1x8x128xf32> to vector<8x128xf32>
    %32 = arith.addf %31, %29 : vector<8x128xf32>
    %c0_15 = arith.constant 0 : index
    %c0_16 = arith.constant 0 : index
    %c0_17 = arith.constant 0 : index
    %33 = vector.load %arg5[%c0_15, %c0_16, %c0_17] : memref<1x8x128xf32, #tpu.memory_space<vmem>>, vector<1x8x128xf32>
    %34 = vector.shape_cast %33 : vector<1x8x128xf32> to vector<8x128xf32>
    %35 = vector.shape_cast %32 : vector<8x128xf32> to vector<1x8x128xf32>
    tpu.vector_store %arg5[%c0_15, %c0_16, %c0_17], %35 {strides = array<i32>} : memref<1x8x128xf32, #tpu.memory_space<vmem>>, vector<1x8x128xf32>,
    return
  }
  func.func @transform_0(%arg0: i32, %arg1: i32) -> (i32, i32, i32, i32) {
    %c2_i32 = arith.constant 2 : i32
    %0 = arith.muli %arg0, %c2_i32 : i32
    %1 = arith.addi %0, %arg1 : i32
    %c0_i32 = arith.constant 0 : i32
    %c0_i32_0 = arith.constant 0 : i32
    %c0_i32_1 = arith.constant 0 : i32
    %c0_i32_2 = arith.constant 0 : i32
    return %1, %c0_i32, %c0_i32_0, %c0_i32_1 : i32, i32, i32, i32
  }
  func.func @transform_1(%arg0: i32, %arg1: i32) -> (i32, i32) {
    %c0_i32 = arith.constant 0 : i32
    %c0_i32_0 = arith.constant 0 : i32
    %c0_i32_1 = arith.constant 0 : i32
    return %c0_i32, %c0_i32_0 : i32, i32
  }
  func.func @transform_2(%arg0: i32, %arg1: i32) -> (i32, i32, i32) {
    %c2_i32 = arith.constant 2 : i32
    %0 = arith.muli %arg0, %c2_i32 : i32
    %1 = arith.addi %0, %arg1 : i32
    %c0_i32 = arith.constant 0 : i32
    %c0_i32_0 = arith.constant 0 : i32
    %c0_i32_1 = arith.constant 0 : i32
    return %1, %c0_i32, %c0_i32_0 : i32, i32, i32
  }
  func.func @transform_3(%arg0: i32, %arg1: i32) -> (i32, i32, i32) {
    %c0_i32 = arith.constant 0 : i32
    %c0_i32_0 = arith.constant 0 : i32
    %c0_i32_1 = arith.constant 0 : i32
    return %arg0, %c0_i32, %c0_i32_0 : i32, i32, i32
  }
}

module attributes {stable_mosaic.version = 11 : i64} {
  func.func @_bn_prelu_kernel(%arg0: i32, %arg1: memref<1x512x128xf32, #tpu.memory_space<vmem>>, %arg2: memref<8x128xf32, #tpu.memory_space<vmem>>, %arg3: memref<1x512x128xf32, #tpu.memory_space<vmem>>) attributes {dimension_semantics = [#tpu.dimension_semantics<parallel>], iteration_bounds = array<i64: 4>, scalar_prefetch = 0 : i64, scratch_operands = 0 : i64, tpu.core_type = #tpu.core_type<tc>, window_params = [{transform_indices = @transform_0, window_bounds = array<i64: 1, 512, 128>}, {pipeline_mode = #tpu.pipeline_mode<synchronous>, transform_indices = @transform_1, window_bounds = array<i64: 8, 128>}, {transform_indices = @transform_2, window_bounds = array<i64: 1, 512, 128>}]} {
    %c0 = arith.constant 0 : index
    %c0_0 = arith.constant 0 : index
    %c0_1 = arith.constant 0 : index
    %0 = vector.load %arg1[%c0, %c0_0, %c0_1] : memref<1x512x128xf32, #tpu.memory_space<vmem>>, vector<1x512x128xf32>
    %1 = vector.shape_cast %0 : vector<1x512x128xf32> to vector<512x128xf32>
    %c0_2 = arith.constant 0 : index
    %c0_3 = arith.constant 0 : index
    %2 = vector.load %arg2[%c0_2, %c0_3] : memref<8x128xf32, #tpu.memory_space<vmem>>, vector<1x128xf32>
    %c1 = arith.constant 1 : index
    %c0_4 = arith.constant 0 : index
    %3 = vector.load %arg2[%c1, %c0_4] : memref<8x128xf32, #tpu.memory_space<vmem>>, vector<1x128xf32>
    %c2 = arith.constant 2 : index
    %c0_5 = arith.constant 0 : index
    %4 = vector.load %arg2[%c2, %c0_5] : memref<8x128xf32, #tpu.memory_space<vmem>>, vector<1x128xf32>
    %5 = vector.broadcast %2 : vector<1x128xf32> to vector<512x128xf32>
    %6 = arith.mulf %1, %5 : vector<512x128xf32>
    %7 = vector.broadcast %3 : vector<1x128xf32> to vector<512x128xf32>
    %8 = arith.addf %6, %7 : vector<512x128xf32>
    %cst = arith.constant 0.000000e+00 : f32
    %9 = vector.broadcast %cst : f32 to vector<512x128xf32>
    %10 = arith.cmpf oge, %8, %9 : vector<512x128xf32>
    %11 = vector.broadcast %4 : vector<1x128xf32> to vector<512x128xf32>
    %12 = arith.mulf %11, %8 : vector<512x128xf32>
    %13 = arith.select %10, %8, %12 : vector<512x128xi1>, vector<512x128xf32>
    %c0_6 = arith.constant 0 : index
    %c0_7 = arith.constant 0 : index
    %c0_8 = arith.constant 0 : index
    %14 = vector.load %arg3[%c0_6, %c0_7, %c0_8] : memref<1x512x128xf32, #tpu.memory_space<vmem>>, vector<1x512x128xf32>
    %15 = vector.shape_cast %14 : vector<1x512x128xf32> to vector<512x128xf32>
    %16 = vector.shape_cast %13 : vector<512x128xf32> to vector<1x512x128xf32>
    tpu.vector_store %arg3[%c0_6, %c0_7, %c0_8], %16 {strides = array<i32>} : memref<1x512x128xf32, #tpu.memory_space<vmem>>, vector<1x512x128xf32>,
    return
  }
  func.func @transform_0(%arg0: i32) -> (i32, i32, i32) {
    %c0_i32 = arith.constant 0 : i32
    %c0_i32_0 = arith.constant 0 : i32
    %c0_i32_1 = arith.constant 0 : i32
    return %arg0, %c0_i32, %c0_i32_0 : i32, i32, i32
  }
  func.func @transform_1(%arg0: i32) -> (i32, i32) {
    %c0_i32 = arith.constant 0 : i32
    %c0_i32_0 = arith.constant 0 : i32
    %c0_i32_1 = arith.constant 0 : i32
    return %c0_i32, %c0_i32_0 : i32, i32
  }
  func.func @transform_2(%arg0: i32) -> (i32, i32, i32) {
    %c0_i32 = arith.constant 0 : i32
    %c0_i32_0 = arith.constant 0 : i32
    %c0_i32_1 = arith.constant 0 : i32
    return %arg0, %c0_i32, %c0_i32_0 : i32, i32, i32
  }
}

module attributes {stable_mosaic.version = 11 : i64} {
  func.func @_conv_stats_kernel(%arg0: i32, %arg1: i32, %arg2: memref<1x18x34x32xbf16, #tpu.memory_space<vmem>>, %arg3: memref<288x128xbf16, #tpu.memory_space<vmem>>, %arg4: memref<1x512x128xf32, #tpu.memory_space<vmem>>, %arg5: memref<1x8x128xf32, #tpu.memory_space<vmem>>) attributes {dimension_semantics = [#tpu.dimension_semantics<parallel>, #tpu.dimension_semantics<arbitrary>], iteration_bounds = array<i64: 2, 2>, scalar_prefetch = 0 : i64, scratch_operands = 0 : i64, tpu.core_type = #tpu.core_type<tc>, window_params = [{transform_indices = @transform_0, window_bounds = array<i64: 1, 18, 34, 32>}, {pipeline_mode = #tpu.pipeline_mode<synchronous>, transform_indices = @transform_1, window_bounds = array<i64: 288, 128>}, {transform_indices = @transform_2, window_bounds = array<i64: 1, 512, 128>}, {transform_indices = @transform_3, window_bounds = array<i64: 1, 8, 128>}]} {
    %c0_i32 = arith.constant 0 : i32
    %0 = arith.cmpi eq, %arg1, %c0_i32 : i32
    %1 = arith.extui %0 : i1 to i32
    %c0_i32_0 = arith.constant 0 : i32
    %2 = arith.cmpi ne, %1, %c0_i32_0 : i32
    scf.if %2 {
      %cst_18 = arith.constant 0.000000e+00 : f32
      %36 = vector.broadcast %cst_18 : f32 to vector<8x128xf32>
      %c0_19 = arith.constant 0 : index
      %c0_20 = arith.constant 0 : index
      %c0_21 = arith.constant 0 : index
      %37 = vector.load %arg5[%c0_19, %c0_20, %c0_21] : memref<1x8x128xf32, #tpu.memory_space<vmem>>, vector<1x8x128xf32>
      %38 = vector.shape_cast %37 : vector<1x8x128xf32> to vector<8x128xf32>
      %39 = vector.shape_cast %36 : vector<8x128xf32> to vector<1x8x128xf32>
      tpu.vector_store %arg5[%c0_19, %c0_20, %c0_21], %39 {strides = array<i32>} : memref<1x8x128xf32, #tpu.memory_space<vmem>>, vector<1x8x128xf32>,
    } else {
    }
    %c0 = arith.constant 0 : index
    %c0_1 = arith.constant 0 : index
    %c0_2 = arith.constant 0 : index
    %c0_3 = arith.constant 0 : index
    %3 = vector.load %arg2[%c0, %c0_1, %c0_2, %c0_3] : memref<1x18x34x32xbf16, #tpu.memory_space<vmem>>, vector<1x18x34x32xbf16>
    %4 = vector.shape_cast %3 : vector<1x18x34x32xbf16> to vector<18x34x32xbf16>
    %5 = arith.extf %4 : vector<18x34x32xbf16> to vector<18x34x32xf32>
    %6 = vector.extract_strided_slice %5 {offsets = [0, 0, 0], sizes = [16, 32, 32], strides = [1, 1, 1]} : vector<18x34x32xf32> to vector<16x32x32xf32>
    %7 = vector.extract_strided_slice %5 {offsets = [0, 1, 0], sizes = [16, 32, 32], strides = [1, 1, 1]} : vector<18x34x32xf32> to vector<16x32x32xf32>
    %8 = vector.extract_strided_slice %5 {offsets = [0, 2, 0], sizes = [16, 32, 32], strides = [1, 1, 1]} : vector<18x34x32xf32> to vector<16x32x32xf32>
    %9 = vector.extract_strided_slice %5 {offsets = [1, 0, 0], sizes = [16, 32, 32], strides = [1, 1, 1]} : vector<18x34x32xf32> to vector<16x32x32xf32>
    %10 = vector.extract_strided_slice %5 {offsets = [1, 1, 0], sizes = [16, 32, 32], strides = [1, 1, 1]} : vector<18x34x32xf32> to vector<16x32x32xf32>
    %11 = vector.extract_strided_slice %5 {offsets = [1, 2, 0], sizes = [16, 32, 32], strides = [1, 1, 1]} : vector<18x34x32xf32> to vector<16x32x32xf32>
    %12 = vector.extract_strided_slice %5 {offsets = [2, 0, 0], sizes = [16, 32, 32], strides = [1, 1, 1]} : vector<18x34x32xf32> to vector<16x32x32xf32>
    %13 = vector.extract_strided_slice %5 {offsets = [2, 1, 0], sizes = [16, 32, 32], strides = [1, 1, 1]} : vector<18x34x32xf32> to vector<16x32x32xf32>
    %14 = vector.extract_strided_slice %5 {offsets = [2, 2, 0], sizes = [16, 32, 32], strides = [1, 1, 1]} : vector<18x34x32xf32> to vector<16x32x32xf32>
    %15 = tpu.concatenate %6, %7, %8, %9, %10, %11, %12, %13, %14 in 2 : vector<16x32x32xf32>, vector<16x32x32xf32>, vector<16x32x32xf32>, vector<16x32x32xf32>, vector<16x32x32xf32>, vector<16x32x32xf32>, vector<16x32x32xf32>, vector<16x32x32xf32>, vector<16x32x32xf32> -> vector<16x32x288xf32>
    %16 = vector.shape_cast %15 : vector<16x32x288xf32> to vector<512x288xf32>
    %17 = arith.truncf %16 : vector<512x288xf32> to vector<512x288xbf16>
    %c0_4 = arith.constant 0 : index
    %c0_5 = arith.constant 0 : index
    %18 = vector.load %arg3[%c0_4, %c0_5] : memref<288x128xbf16, #tpu.memory_space<vmem>>, vector<288x128xbf16>
    %cst = arith.constant dense<0.000000e+00> : vector<512x128xf32>
    %19 = tpu.matmul %17, %18, %cst {dimension_numbers = #tpu.dot_dimension_numbers<[1], [0], [0], [1], [0, 0, 1, 1], [], []>} : vector<512x288xbf16>, vector<288x128xbf16>, vector<512x128xf32> -> vector<512x128xf32>
    %c0_6 = arith.constant 0 : index
    %c0_7 = arith.constant 0 : index
    %c0_8 = arith.constant 0 : index
    %20 = vector.load %arg4[%c0_6, %c0_7, %c0_8] : memref<1x512x128xf32, #tpu.memory_space<vmem>>, vector<1x512x128xf32>
    %21 = vector.shape_cast %20 : vector<1x512x128xf32> to vector<512x128xf32>
    %22 = vector.shape_cast %19 : vector<512x128xf32> to vector<1x512x128xf32>
    tpu.vector_store %arg4[%c0_6, %c0_7, %c0_8], %22 {strides = array<i32>} : memref<1x512x128xf32, #tpu.memory_space<vmem>>, vector<1x512x128xf32>,
    %cst_9 = arith.constant dense<0.000000e+00> : vector<128xf32>
    %23 = vector.multi_reduction <add>, %19, %cst_9 [0] : vector<512x128xf32> to vector<128xf32>
    %24 = vector.shape_cast %23 : vector<128xf32> to vector<1x128xf32>
    %25 = arith.mulf %19, %19 : vector<512x128xf32>
    %cst_10 = arith.constant dense<0.000000e+00> : vector<128xf32>
    %26 = vector.multi_reduction <add>, %25, %cst_10 [0] : vector<512x128xf32> to vector<128xf32>
    %27 = vector.shape_cast %26 : vector<128xf32> to vector<1x128xf32>
    %cst_11 = arith.constant 0.000000e+00 : f32
    %28 = vector.broadcast %cst_11 : f32 to vector<6x128xf32>
    %29 = tpu.concatenate %24, %27, %28 in 0 : vector<1x128xf32>, vector<1x128xf32>, vector<6x128xf32> -> vector<8x128xf32>
    %c0_12 = arith.constant 0 : index
    %c0_13 = arith.constant 0 : index
    %c0_14 = arith.constant 0 : index
    %30 = vector.load %arg5[%c0_12, %c0_13, %c0_14] : memref<1x8x128xf32, #tpu.memory_space<vmem>>, vector<1x8x128xf32>
    %31 = vector.shape_cast %30 : vector<1x8x128xf32> to vector<8x128xf32>
    %32 = arith.addf %31, %29 : vector<8x128xf32>
    %c0_15 = arith.constant 0 : index
    %c0_16 = arith.constant 0 : index
    %c0_17 = arith.constant 0 : index
    %33 = vector.load %arg5[%c0_15, %c0_16, %c0_17] : memref<1x8x128xf32, #tpu.memory_space<vmem>>, vector<1x8x128xf32>
    %34 = vector.shape_cast %33 : vector<1x8x128xf32> to vector<8x128xf32>
    %35 = vector.shape_cast %32 : vector<8x128xf32> to vector<1x8x128xf32>
    tpu.vector_store %arg5[%c0_15, %c0_16, %c0_17], %35 {strides = array<i32>} : memref<1x8x128xf32, #tpu.memory_space<vmem>>, vector<1x8x128xf32>,
    return
  }
  func.func @transform_0(%arg0: i32, %arg1: i32) -> (i32, i32, i32, i32) {
    %c2_i32 = arith.constant 2 : i32
    %0 = arith.muli %arg0, %c2_i32 : i32
    %1 = arith.addi %0, %arg1 : i32
    %c0_i32 = arith.constant 0 : i32
    %c0_i32_0 = arith.constant 0 : i32
    %c0_i32_1 = arith.constant 0 : i32
    %c0_i32_2 = arith.constant 0 : i32
    return %1, %c0_i32, %c0_i32_0, %c0_i32_1 : i32, i32, i32, i32
  }
  func.func @transform_1(%arg0: i32, %arg1: i32) -> (i32, i32) {
    %c0_i32 = arith.constant 0 : i32
    %c0_i32_0 = arith.constant 0 : i32
    %c0_i32_1 = arith.constant 0 : i32
    return %c0_i32, %c0_i32_0 : i32, i32
  }
  func.func @transform_2(%arg0: i32, %arg1: i32) -> (i32, i32, i32) {
    %c2_i32 = arith.constant 2 : i32
    %0 = arith.muli %arg0, %c2_i32 : i32
    %1 = arith.addi %0, %arg1 : i32
    %c0_i32 = arith.constant 0 : i32
    %c0_i32_0 = arith.constant 0 : i32
    %c0_i32_1 = arith.constant 0 : i32
    return %1, %c0_i32, %c0_i32_0 : i32, i32, i32
  }
  func.func @transform_3(%arg0: i32, %arg1: i32) -> (i32, i32, i32) {
    %c0_i32 = arith.constant 0 : i32
    %c0_i32_0 = arith.constant 0 : i32
    %c0_i32_1 = arith.constant 0 : i32
    return %arg0, %c0_i32, %c0_i32_0 : i32, i32, i32
  }
}

</mosaic_0001>

<bundles_post_ra>
// kernel: double_conv.5
= control target key start
LH: loop header
LB: loop body
LE: loop exit
PB: predicated region body
PF: predicated region fallthrough
CT: control target
= control target key end

     0   :  { %s709_s9 = smov 0   ;;  %s1068_s0 = inlined_call_operand.vmem [shape: f32[4,512,128], index: 0, kind: input, shape index: {}]   ;;  %s1069_s1 = inlined_call_operand.vmem [shape: f32[8,128], index: 1, kind: input, shape index: {}]   ;;  %s1070_s2 = inlined_call_operand.vmem [shape: f32[4,512,128], index: 2, kind: output, shape index: {}]  }
   0x1 LB: > { %s662_s10 = sadd.s32 4294967295, %s692_s9   ;;  %p666_p0 = scmp.ge.s32.totalorder %s692_s9, 1  ;;  %s692_s9 = sphi %s709_s9, %s12_s9  }
   0x2   : > { %p112_p1 = scmp.lt.s32.totalorder %s692_s9, 5 }
   0x4   : > { %p113_p2 = pnand %p666_p0, %p112_p1 }
   0x5   : > { %p134_p3 = scmp.lt.s32.totalorder (!%p113_p2), %s662_s10, 3 }
   0x6   : > { %116 = sbr.rel (%p113_p2) target bundleno = 100 (0x64), region = 28 }
   0xb   : > { %s1072_s10 = smov (!%p134_p3, %s662_s10), 3  ;;  %v723_v0 = vld [vmem:[%s1069_s1] ss:$0 sm:$0xff]  ;;  %v733_v1 = vld [vmem:[%s1069_s1 + $0x1] ss:$0 sm:$0xff] }
   0xc   : > { %s676_s11 = sshll.u32 %s1072_s10, 9  ;;  %v747_v11 = vld [vmem:[%s1069_s1 + $0x2] ss:$0 sm:$0xff] }
   0xd   : > { %s728_s16 = scalar_lea.vmem %s1068_s0, %s676_s11  ;;  %s765_s23 = scalar_lea.vmem %s1070_s2, %s676_s11 }
   0xe   : > { %v144_v2 = vld [vmem:[%s728_s16] sm:$0xff]  ;;  %v145_v3 = vld [vmem:[%s728_s16 + $0x8] sm:$0xff]  ;;  %v146_v4 = vld [vmem:[%s728_s16 + $0x10] sm:$0xff] }
   0xf   : > { %v215_v5 = vmul.f32 %v723_v0, %v144_v2  ;;  %v216_v6 = vmul.f32 %v723_v0, %v145_v3  ;;  %v217_v7 = vmul.f32 %v723_v0, %v146_v4  ;;  %v147_v8 = vld [vmem:[%s728_s16 + $0x18] sm:$0xff]  ;;  %v148_v9 = vld [vmem:[%s728_s16 + $0x20] sm:$0xff]  ;;  %v149_v10 = vld [vmem:[%s728_s16 + $0x28] sm:$0xff] }
  0x10   : > { %v218_v12 = vmul.f32 %v723_v0, %v147_v8  ;;  %v219_v13 = vmul.f32 %v723_v0, %v148_v9  ;;  %v220_v14 = vmul.f32 %v723_v0, %v149_v10  ;;  %v150_v15 = vld [vmem:[%s728_s16 + $0x30] sm:$0xff]  ;;  %v151_v16 = vld [vmem:[%s728_s16 + $0x38] sm:$0xff]  ;;  %v152_v29 = vld [vmem:[%s728_s16 + $0x40] sm:$0xff] }
  0x11   : > { %v283_v17 = vadd.f32 %v733_v1, %v215_v5  ;;  %v284_v18 = vadd.f32 %v733_v1, %v216_v6  ;;  %v285_v19 = vadd.f32 %v733_v1, %v217_v7  ;;  %v221_v20 = vmul.f32 %v723_v0, %v150_v15  ;;  %v153_v33 = vld [vmem:[%s728_s16 + $0x48] sm:$0xff]  ;;  %v154_v34 = vld [vmem:[%s728_s16 + $0x50] sm:$0xff]  ;;  %v155_v35 = vld [vmem:[%s728_s16 + $0x58] sm:$0xff] }
  0x12   : > { %v286_v21 = vadd.f32 %v733_v1, %v218_v12  ;;  %v287_v22 = vadd.f32 %v733_v1, %v219_v13  ;;  %v288_v23 = vadd.f32 %v733_v1, %v220_v14  ;;  %v222_v24 = vmul.f32 %v723_v0, %v151_v16  ;;  %v156_v47 = vld [vmem:[%s728_s16 + $0x60] sm:$0xff]  ;;  %v157_v48 = vld [vmem:[%s728_s16 + $0x68] sm:$0xff]  ;;  %v158_v61 = vld [vmem:[%s728_s16 + $0x70] sm:$0xff] }
  0x13   : > { %vm347_vm0 = vcmp.ge.f32.partialorder %v283_v17, 0.0  ;;  %v415_v25 = vmul.f32 %v747_v11, %v283_v17  ;;  %vm348_vm1 = vcmp.ge.f32.partialorder %v284_v18, 0.0  ;;  %v416_v26 = vmul.f32 %v747_v11, %v284_v18  ;;  %v159_v62 = vld [vmem:[%s728_s16 + $0x78] sm:$0xff]  ;;  %v160_v7 = vld [vmem:[%s728_s16 + $0x80] sm:$0xff]  ;;  %v161_v8 = vld [vmem:[%s728_s16 + $0x88] sm:$0xff] }
  0x14   : > { %vm349_vm2 = vcmp.ge.f32.partialorder %v285_v19, 0.0  ;;  %v417_v27 = vmul.f32 %v747_v11, %v285_v19  ;;  %vm350_vm3 = vcmp.ge.f32.partialorder %v286_v21, 0.0  ;;  %v418_v28 = vmul.f32 %v747_v11, %v286_v21  ;;  %v162_v14 = vld [vmem:[%s728_s16 + $0x90] sm:$0xff]  ;;  %v163_v15 = vld [vmem:[%s728_s16 + $0x98] sm:$0xff] }
  0x15   : > { %v479_v30 = vsel %vm347_vm0, %v283_v17, %v415_v25  ;;  %v480_v31 = vsel %vm348_vm1, %v284_v18, %v416_v26  ;;  %vm351_vm4 = vcmp.ge.f32.partialorder %v287_v22, 0.0  ;;  %v419_v32 = vmul.f32 %v747_v11, %v287_v22  ;;  %v164_v26 = vld [vmem:[%s728_s16 + $0xa0] sm:$0xff] }
  0x16   : > { %543 = vst [vmem:[%s765_s23] sm:$0xff] %v479_v30  ;;  %544 = vst [vmem:[%s765_s23 + $0x8] sm:$0xff] %v480_v31  ;;  %v481_v36 = vsel %vm349_vm2, %v285_v19, %v417_v27  ;;  %v482_v37 = vsel %vm350_vm3, %v286_v21, %v418_v28  ;;  %vm352_vm5 = vcmp.ge.f32.partialorder %v288_v23, 0.0  ;;  %v420_v38 = vmul.f32 %v747_v11, %v288_v23  ;;  %v165_v27 = vld [vmem:[%s728_s16 + $0xa8] sm:$0xff] }
  0x17   : > { %545 = vst [vmem:[%s765_s23 + $0x10] sm:$0xff] %v481_v36  ;;  %546 = vst [vmem:[%s765_s23 + $0x18] sm:$0xff] %v482_v37  ;;  %v483_v39 = vsel %vm351_vm4, %v287_v22, %v419_v32  ;;  %v289_v40 = vadd.f32 %v733_v1, %v221_v20  ;;  %v290_v41 = vadd.f32 %v733_v1, %v222_v24 }
  0x18   : > { %v223_v42 = vmul.f32 %v723_v0, %v152_v29  ;;  %547 = vst [vmem:[%s765_s23 + $0x20] sm:$0xff] %v483_v39  ;;  %v484_v43 = vsel %vm352_vm5, %v288_v23, %v420_v38  ;;  %v224_v44 = vmul.f32 %v723_v0, %v153_v33  ;;  %v225_v45 = vmul.f32 %v723_v0, %v154_v34 }
  0x19   : > { %v226_v46 = vmul.f32 %v723_v0, %v155_v35  ;;  %548 = vst [vmem:[%s765_s23 + $0x28] sm:$0xff] %v484_v43  ;;  %vm353_vm6 = vcmp.ge.f32.partialorder %v289_v40, 0.0  ;;  %v421_v49 = vmul.f32 %v747_v11, %v289_v40  ;;  %vm354_vm7 = vcmp.ge.f32.partialorder %v290_v41, 0.0 }
  0x1a   : > { %v422_v50 = vmul.f32 %v747_v11, %v290_v41  ;;  %v291_v51 = vadd.f32 %v733_v1, %v223_v42  ;;  %v292_v52 = vadd.f32 %v733_v1, %v224_v44  ;;  %v293_v53 = vadd.f32 %v733_v1, %v225_v45 }
  0x1b   : > { %v294_v54 = vadd.f32 %v733_v1, %v226_v46  ;;  %v485_v55 = vsel %vm353_vm6, %v289_v40, %v421_v49  ;;  %v227_v57 = vmul.f32 %v723_v0, %v156_v47  ;;  %v228_v58 = vmul.f32 %v723_v0, %v157_v48  ;;  %v166_v40 = vld [vmem:[%s728_s16 + $0xb0] sm:$0xff]  ;;  %v168_v48 = vld [vmem:[%s728_s16 + $0xc0] sm:$0xff]  ;;  %v169_v49 = vld [vmem:[%s728_s16 + $0xc8] sm:$0xff] }
  0x1c   : > { %v486_v56 = vsel %vm354_vm7, %v290_v41, %v422_v50  ;;  %549 = vst [vmem:[%s765_s23 + $0x30] sm:$0xff] %v485_v55  ;;  %vm355_vm8 = vcmp.ge.f32.partialorder %v291_v51, 0.0  ;;  %v423_v59 = vmul.f32 %v747_v11, %v291_v51  ;;  %vm356_vm9 = vcmp.ge.f32.partialorder %v292_v52, 0.0  ;;  %v167_v41 = vld [vmem:[%s728_s16 + $0xb8] sm:$0xff] }
  0x1d   : > { %550 = vst [vmem:[%s765_s23 + $0x38] sm:$0xff] %v486_v56  ;;  %v424_v60 = vmul.f32 %v747_v11, %v292_v52  ;;  %vm357_vm10 = vcmp.ge.f32.partialorder %v293_v53, 0.0  ;;  %v425_v63 = vmul.f32 %v747_v11, %v293_v53  ;;  %vm358_vm11 = vcmp.ge.f32.partialorder %v294_v54, 0.0  ;;  %v171_v55 = vld [vmem:[%s728_s16 + $0xd8] sm:$0xff] }
  0x1e   : > { %v426_v2 = vmul.f32 %v747_v11, %v294_v54  ;;  %v487_v3 = vsel %vm355_vm8, %v291_v51, %v423_v59  ;;  %v295_v5 = vadd.f32 %v733_v1, %v227_v57  ;;  %v296_v6 = vadd.f32 %v733_v1, %v228_v58 }
  0x1f   : > { %v488_v4 = vsel %vm356_vm9, %v292_v52, %v424_v60  ;;  %551 = vst [vmem:[%s765_s23 + $0x40] sm:$0xff] %v487_v3  ;;  %v489_v9 = vsel %vm357_vm10, %v293_v53, %v425_v63  ;;  %v229_v12 = vmul.f32 %v723_v0, %v158_v61  ;;  %v230_v13 = vmul.f32 %v723_v0, %v159_v62 }
  0x20   : > { %552 = vst [vmem:[%s765_s23 + $0x48] sm:$0xff] %v488_v4  ;;  %v490_v10 = vsel %vm358_vm11, %v294_v54, %v426_v2  ;;  %553 = vst [vmem:[%s765_s23 + $0x50] sm:$0xff] %v489_v9  ;;  %vm359_vm12 = vcmp.ge.f32.partialorder %v295_v5, 0.0  ;;  %v427_v16 = vmul.f32 %v747_v11, %v295_v5  ;;  %vm360_vm13 = vcmp.ge.f32.partialorder %v296_v6, 0.0  ;;  %v170_v54 = vld [vmem:[%s728_s16 + $0xd0] sm:$0xff]  ;;  %v172_v4 = vld [vmem:[%s728_s16 + $0xe0] sm:$0xff] }
  0x21   : > { %554 = vst [vmem:[%s765_s23 + $0x58] sm:$0xff] %v490_v10  ;;  %v428_v17 = vmul.f32 %v747_v11, %v296_v6  ;;  %v297_v18 = vadd.f32 %v733_v1, %v229_v12  ;;  %v298_v19 = vadd.f32 %v733_v1, %v230_v13  ;;  %v231_v20 = vmul.f32 %v723_v0, %v160_v7 }
  0x22   : > { %v232_v21 = vmul.f32 %v723_v0, %v161_v8  ;;  %v491_v22 = vsel %vm359_vm12, %v295_v5, %v427_v16  ;;  %v233_v24 = vmul.f32 %v723_v0, %v162_v14  ;;  %v234_v25 = vmul.f32 %v723_v0, %v163_v15  ;;  %v173_v5 = vld [vmem:[%s728_s16 + $0xe8] sm:$0xff] }
  0x23   : > { %v492_v23 = vsel %vm360_vm13, %v296_v6, %v428_v17  ;;  %555 = vst [vmem:[%s765_s23 + $0x60] sm:$0xff] %v491_v22  ;;  %vm361_vm14 = vcmp.ge.f32.partialorder %v297_v18, 0.0  ;;  %v429_v28 = vmul.f32 %v747_v11, %v297_v18  ;;  %vm362_vm15 = vcmp.ge.f32.partialorder %v298_v19, 0.0 }
  0x24   : > { %556 = vst [vmem:[%s765_s23 + $0x68] sm:$0xff] %v492_v23  ;;  %v430_v29 = vmul.f32 %v747_v11, %v298_v19  ;;  %v299_v30 = vadd.f32 %v733_v1, %v231_v20  ;;  %v300_v31 = vadd.f32 %v733_v1, %v232_v21  ;;  %v301_v32 = vadd.f32 %v733_v1, %v233_v24  ;;  %v175_v20 = vld [vmem:[%s728_s16 + $0xf8] sm:$0xff] }
  0x25   : > { %v302_v33 = vadd.f32 %v733_v1, %v234_v25  ;;  %v493_v34 = vsel %vm361_vm14, %v297_v18, %v429_v28  ;;  %v235_v36 = vmul.f32 %v723_v0, %v164_v26  ;;  %v236_v37 = vmul.f32 %v723_v0, %v165_v27  ;;  %v176_v27 = vld [vmem:[%s728_s16 + $0x100] sm:$0xff]  ;;  %v177_v28 = vld [vmem:[%s728_s16 + $0x108] sm:$0xff] }
  0x26   : > { %v494_v35 = vsel %vm362_vm15, %v298_v19, %v430_v29  ;;  %557 = vst [vmem:[%s765_s23 + $0x70] sm:$0xff] %v493_v34  ;;  %vm363_vm0 = vcmp.ge.f32.partialorder %v299_v30, 0.0  ;;  %v431_v38 = vmul.f32 %v747_v11, %v299_v30  ;;  %vm364_vm1 = vcmp.ge.f32.partialorder %v300_v31, 0.0  ;;  %v174_v19 = vld [vmem:[%s728_s16 + $0xf0] sm:$0xff]  ;;  %v179_v34 = vld [vmem:[%s728_s16 + $0x118] sm:$0xff] }
  0x27   : > { %558 = vst [vmem:[%s765_s23 + $0x78] sm:$0xff] %v494_v35  ;;  %v432_v39 = vmul.f32 %v747_v11, %v300_v31  ;;  %vm365_vm2 = vcmp.ge.f32.partialorder %v301_v32, 0.0  ;;  %v433_v42 = vmul.f32 %v747_v11, %v301_v32  ;;  %vm366_vm3 = vcmp.ge.f32.partialorder %v302_v33, 0.0 }
  0x28   : > { %v434_v43 = vmul.f32 %v747_v11, %v302_v33  ;;  %v495_v44 = vsel %vm363_vm0, %v299_v30, %v431_v38  ;;  %v303_v46 = vadd.f32 %v733_v1, %v235_v36  ;;  %v304_v47 = vadd.f32 %v733_v1, %v236_v37 }
  0x29   : > { %v496_v45 = vsel %vm364_vm1, %v300_v31, %v432_v39  ;;  %559 = vst [vmem:[%s765_s23 + $0x80] sm:$0xff] %v495_v44  ;;  %v497_v50 = vsel %vm365_vm2, %v301_v32, %v433_v42  ;;  %v237_v52 = vmul.f32 %v723_v0, %v166_v40  ;;  %v238_v53 = vmul.f32 %v723_v0, %v167_v41 }
  0x2a   : > { %560 = vst [vmem:[%s765_s23 + $0x88] sm:$0xff] %v496_v45  ;;  %v498_v51 = vsel %vm366_vm3, %v302_v33, %v434_v43  ;;  %561 = vst [vmem:[%s765_s23 + $0x90] sm:$0xff] %v497_v50  ;;  %vm367_vm4 = vcmp.ge.f32.partialorder %v303_v46, 0.0  ;;  %v435_v56 = vmul.f32 %v747_v11, %v303_v46  ;;  %vm368_vm5 = vcmp.ge.f32.partialorder %v304_v47, 0.0  ;;  %v178_v33 = vld [vmem:[%s728_s16 + $0x110] sm:$0xff]  ;;  %v180_v45 = vld [vmem:[%s728_s16 + $0x120] sm:$0xff] }
  0x2b   : > { %562 = vst [vmem:[%s765_s23 + $0x98] sm:$0xff] %v498_v51  ;;  %v436_v57 = vmul.f32 %v747_v11, %v304_v47  ;;  %v305_v58 = vadd.f32 %v733_v1, %v237_v52  ;;  %v306_v59 = vadd.f32 %v733_v1, %v238_v53  ;;  %v239_v60 = vmul.f32 %v723_v0, %v168_v48 }
  0x2c   : > { %v240_v61 = vmul.f32 %v723_v0, %v169_v49  ;;  %v499_v62 = vsel %vm367_vm4, %v303_v46, %v435_v56  ;;  %v241_v2 = vmul.f32 %v723_v0, %v170_v54  ;;  %v242_v3 = vmul.f32 %v723_v0, %v171_v55  ;;  %v181_v46 = vld [vmem:[%s728_s16 + $0x128] sm:$0xff] }
  0x2d   : > { %v500_v63 = vsel %vm368_vm5, %v304_v47, %v436_v57  ;;  %563 = vst [vmem:[%s765_s23 + $0xa0] sm:$0xff] %v499_v62  ;;  %vm369_vm6 = vcmp.ge.f32.partialorder %v305_v58, 0.0  ;;  %v437_v6 = vmul.f32 %v747_v11, %v305_v58  ;;  %vm370_vm7 = vcmp.ge.f32.partialorder %v306_v59, 0.0 }
  0x2e   : > { %564 = vst [vmem:[%s765_s23 + $0xa8] sm:$0xff] %v500_v63  ;;  %v438_v7 = vmul.f32 %v747_v11, %v306_v59  ;;  %v307_v8 = vadd.f32 %v733_v1, %v239_v60  ;;  %v308_v9 = vadd.f32 %v733_v1, %v240_v61  ;;  %v309_v10 = vadd.f32 %v733_v1, %v241_v2  ;;  %v183_v60 = vld [vmem:[%s728_s16 + $0x138] sm:$0xff] }
  0x2f   : > { %v310_v12 = vadd.f32 %v733_v1, %v242_v3  ;;  %v501_v13 = vsel %vm369_vm6, %v305_v58, %v437_v6  ;;  %v243_v15 = vmul.f32 %v723_v0, %v172_v4  ;;  %v244_v16 = vmul.f32 %v723_v0, %v173_v5  ;;  %v184_v5 = vld [vmem:[%s728_s16 + $0x140] sm:$0xff]  ;;  %v185_v6 = vld [vmem:[%s728_s16 + $0x148] sm:$0xff] }
  0x30   : > { %v502_v14 = vsel %vm370_vm7, %v306_v59, %v438_v7  ;;  %565 = vst [vmem:[%s765_s23 + $0xb0] sm:$0xff] %v501_v13  ;;  %vm371_vm8 = vcmp.ge.f32.partialorder %v307_v8, 0.0  ;;  %v439_v17 = vmul.f32 %v747_v11, %v307_v8  ;;  %vm372_vm9 = vcmp.ge.f32.partialorder %v308_v9, 0.0  ;;  %v182_v59 = vld [vmem:[%s728_s16 + $0x130] sm:$0xff]  ;;  %v187_v13 = vld [vmem:[%s728_s16 + $0x158] sm:$0xff] }
  0x31   : > { %566 = vst [vmem:[%s765_s23 + $0xb8] sm:$0xff] %v502_v14  ;;  %v440_v18 = vmul.f32 %v747_v11, %v308_v9  ;;  %vm373_vm10 = vcmp.ge.f32.partialorder %v309_v10, 0.0  ;;  %v441_v21 = vmul.f32 %v747_v11, %v309_v10  ;;  %vm374_vm11 = vcmp.ge.f32.partialorder %v310_v12, 0.0 }
  0x32   : > { %v442_v22 = vmul.f32 %v747_v11, %v310_v12  ;;  %v503_v23 = vsel %vm371_vm8, %v307_v8, %v439_v17  ;;  %v311_v25 = vadd.f32 %v733_v1, %v243_v15  ;;  %v312_v26 = vadd.f32 %v733_v1, %v244_v16 }
  0x33   : > { %v504_v24 = vsel %vm372_vm9, %v308_v9, %v440_v18  ;;  %567 = vst [vmem:[%s765_s23 + $0xc0] sm:$0xff] %v503_v23  ;;  %v505_v29 = vsel %vm373_vm10, %v309_v10, %v441_v21  ;;  %v245_v31 = vmul.f32 %v723_v0, %v174_v19  ;;  %v246_v32 = vmul.f32 %v723_v0, %v175_v20 }
  0x34   : > { %568 = vst [vmem:[%s765_s23 + $0xc8] sm:$0xff] %v504_v24  ;;  %v506_v30 = vsel %vm374_vm11, %v310_v12, %v442_v22  ;;  %569 = vst [vmem:[%s765_s23 + $0xd0] sm:$0xff] %v505_v29  ;;  %vm375_vm12 = vcmp.ge.f32.partialorder %v311_v25, 0.0  ;;  %v443_v35 = vmul.f32 %v747_v11, %v311_v25  ;;  %vm376_vm13 = vcmp.ge.f32.partialorder %v312_v26, 0.0  ;;  %v186_v12 = vld [vmem:[%s728_s16 + $0x150] sm:$0xff]  ;;  %v188_v24 = vld [vmem:[%s728_s16 + $0x160] sm:$0xff] }
  0x35   : > { %570 = vst [vmem:[%s765_s23 + $0xd8] sm:$0xff] %v506_v30  ;;  %v444_v36 = vmul.f32 %v747_v11, %v312_v26  ;;  %v313_v37 = vadd.f32 %v733_v1, %v245_v31  ;;  %v314_v38 = vadd.f32 %v733_v1, %v246_v32  ;;  %v247_v39 = vmul.f32 %v723_v0, %v176_v27 }
  0x36   : > { %v248_v40 = vmul.f32 %v723_v0, %v177_v28  ;;  %v507_v41 = vsel %vm375_vm12, %v311_v25, %v443_v35  ;;  %v249_v43 = vmul.f32 %v723_v0, %v178_v33  ;;  %v250_v44 = vmul.f32 %v723_v0, %v179_v34  ;;  %v189_v25 = vld [vmem:[%s728_s16 + $0x168] sm:$0xff] }
  0x37   : > { %v508_v42 = vsel %vm376_vm13, %v312_v26, %v444_v36  ;;  %571 = vst [vmem:[%s765_s23 + $0xe0] sm:$0xff] %v507_v41  ;;  %vm377_vm14 = vcmp.ge.f32.partialorder %v313_v37, 0.0  ;;  %v445_v47 = vmul.f32 %v747_v11, %v313_v37  ;;  %vm378_vm15 = vcmp.ge.f32.partialorder %v314_v38, 0.0 }
  0x38   : > { %572 = vst [vmem:[%s765_s23 + $0xe8] sm:$0xff] %v508_v42  ;;  %v446_v48 = vmul.f32 %v747_v11, %v314_v38  ;;  %v315_v49 = vadd.f32 %v733_v1, %v247_v39  ;;  %v316_v50 = vadd.f32 %v733_v1, %v248_v40  ;;  %v317_v51 = vadd.f32 %v733_v1, %v249_v43  ;;  %v191_v39 = vld [vmem:[%s728_s16 + $0x178] sm:$0xff] }
  0x39   : > { %v318_v52 = vadd.f32 %v733_v1, %v250_v44  ;;  %v509_v53 = vsel %vm377_vm14, %v313_v37, %v445_v47  ;;  %v251_v55 = vmul.f32 %v723_v0, %v180_v45  ;;  %v252_v56 = vmul.f32 %v723_v0, %v181_v46  ;;  %v192_v46 = vld [vmem:[%s728_s16 + $0x180] sm:$0xff]  ;;  %v193_v47 = vld [vmem:[%s728_s16 + $0x188] sm:$0xff] }
  0x3a   : > { %v510_v54 = vsel %vm378_vm15, %v314_v38, %v446_v48  ;;  %573 = vst [vmem:[%s765_s23 + $0xf0] sm:$0xff] %v509_v53  ;;  %vm379_vm0 = vcmp.ge.f32.partialorder %v315_v49, 0.0  ;;  %v447_v57 = vmul.f32 %v747_v11, %v315_v49  ;;  %vm380_vm1 = vcmp.ge.f32.partialorder %v316_v50, 0.0  ;;  %v190_v38 = vld [vmem:[%s728_s16 + $0x170] sm:$0xff]  ;;  %v195_v53 = vld [vmem:[%s728_s16 + $0x198] sm:$0xff] }
  0x3b   : > { %574 = vst [vmem:[%s765_s23 + $0xf8] sm:$0xff] %v510_v54  ;;  %v448_v58 = vmul.f32 %v747_v11, %v316_v50  ;;  %vm381_vm2 = vcmp.ge.f32.partialorder %v317_v51, 0.0  ;;  %v449_v61 = vmul.f32 %v747_v11, %v317_v51  ;;  %vm382_vm3 = vcmp.ge.f32.partialorder %v318_v52, 0.0 }
  0x3c   : > { %v450_v62 = vmul.f32 %v747_v11, %v318_v52  ;;  %v511_v63 = vsel %vm379_vm0, %v315_v49, %v447_v57  ;;  %v319_v3 = vadd.f32 %v733_v1, %v251_v55  ;;  %v320_v4 = vadd.f32 %v733_v1, %v252_v56 }
  0x3d   : > { %v512_v2 = vsel %vm380_vm1, %v316_v50, %v448_v58  ;;  %575 = vst [vmem:[%s765_s23 + $0x100] sm:$0xff] %v511_v63  ;;  %v513_v7 = vsel %vm381_vm2, %v317_v51, %v449_v61  ;;  %v253_v9 = vmul.f32 %v723_v0, %v182_v59  ;;  %v254_v10 = vmul.f32 %v723_v0, %v183_v60 }
  0x3e   : > { %576 = vst [vmem:[%s765_s23 + $0x108] sm:$0xff] %v512_v2  ;;  %v514_v8 = vsel %vm382_vm3, %v318_v52, %v450_v62  ;;  %577 = vst [vmem:[%s765_s23 + $0x110] sm:$0xff] %v513_v7  ;;  %vm383_vm4 = vcmp.ge.f32.partialorder %v319_v3, 0.0  ;;  %v451_v14 = vmul.f32 %v747_v11, %v319_v3  ;;  %vm384_vm5 = vcmp.ge.f32.partialorder %v320_v4, 0.0  ;;  %v194_v52 = vld [vmem:[%s728_s16 + $0x190] sm:$0xff]  ;;  %v196_v2 = vld [vmem:[%s728_s16 + $0x1a0] sm:$0xff] }
  0x3f   : > { %578 = vst [vmem:[%s765_s23 + $0x118] sm:$0xff] %v514_v8  ;;  %v452_v15 = vmul.f32 %v747_v11, %v320_v4  ;;  %v321_v16 = vadd.f32 %v733_v1, %v253_v9  ;;  %v322_v17 = vadd.f32 %v733_v1, %v254_v10  ;;  %v255_v18 = vmul.f32 %v723_v0, %v184_v5 }
  0x40   : > { %v256_v19 = vmul.f32 %v723_v0, %v185_v6  ;;  %v515_v20 = vsel %vm383_vm4, %v319_v3, %v451_v14  ;;  %v257_v22 = vmul.f32 %v723_v0, %v186_v12  ;;  %v258_v23 = vmul.f32 %v723_v0, %v187_v13  ;;  %v197_v3 = vld [vmem:[%s728_s16 + $0x1a8] sm:$0xff] }
  0x41   : > { %v516_v21 = vsel %vm384_vm5, %v320_v4, %v452_v15  ;;  %579 = vst [vmem:[%s765_s23 + $0x120] sm:$0xff] %v515_v20  ;;  %vm385_vm6 = vcmp.ge.f32.partialorder %v321_v16, 0.0  ;;  %v453_v26 = vmul.f32 %v747_v11, %v321_v16  ;;  %vm386_vm7 = vcmp.ge.f32.partialorder %v322_v17, 0.0 }
  0x42   : > { %580 = vst [vmem:[%s765_s23 + $0x128] sm:$0xff] %v516_v21  ;;  %v454_v27 = vmul.f32 %v747_v11, %v322_v17  ;;  %v323_v28 = vadd.f32 %v733_v1, %v255_v18  ;;  %v324_v29 = vadd.f32 %v733_v1, %v256_v19  ;;  %v325_v30 = vadd.f32 %v733_v1, %v257_v22  ;;  %v199_v18 = vld [vmem:[%s728_s16 + $0x1b8] sm:$0xff] }
  0x43   : > { %v326_v31 = vadd.f32 %v733_v1, %v258_v23  ;;  %v517_v32 = vsel %vm385_vm6, %v321_v16, %v453_v26  ;;  %v259_v34 = vmul.f32 %v723_v0, %v188_v24  ;;  %v260_v35 = vmul.f32 %v723_v0, %v189_v25  ;;  %v200_v25 = vld [vmem:[%s728_s16 + $0x1c0] sm:$0xff]  ;;  %v201_v26 = vld [vmem:[%s728_s16 + $0x1c8] sm:$0xff] }
  0x44   : > { %v518_v33 = vsel %vm386_vm7, %v322_v17, %v454_v27  ;;  %581 = vst [vmem:[%s765_s23 + $0x130] sm:$0xff] %v517_v32  ;;  %vm387_vm8 = vcmp.ge.f32.partialorder %v323_v28, 0.0  ;;  %v455_v36 = vmul.f32 %v747_v11, %v323_v28  ;;  %vm388_vm9 = vcmp.ge.f32.partialorder %v324_v29, 0.0  ;;  %v198_v17 = vld [vmem:[%s728_s16 + $0x1b0] sm:$0xff]  ;;  %v203_v32 = vld [vmem:[%s728_s16 + $0x1d8] sm:$0xff] }
  0x45   : > { %582 = vst [vmem:[%s765_s23 + $0x138] sm:$0xff] %v518_v33  ;;  %v456_v37 = vmul.f32 %v747_v11, %v324_v29  ;;  %vm389_vm10 = vcmp.ge.f32.partialorder %v325_v30, 0.0  ;;  %v457_v40 = vmul.f32 %v747_v11, %v325_v30  ;;  %vm390_vm11 = vcmp.ge.f32.partialorder %v326_v31, 0.0 }
  0x46   : > { %v458_v41 = vmul.f32 %v747_v11, %v326_v31  ;;  %v519_v42 = vsel %vm387_vm8, %v323_v28, %v455_v36  ;;  %v327_v44 = vadd.f32 %v733_v1, %v259_v34  ;;  %v328_v45 = vadd.f32 %v733_v1, %v260_v35 }
  0x47   : > { %v520_v43 = vsel %vm388_vm9, %v324_v29, %v456_v37  ;;  %583 = vst [vmem:[%s765_s23 + $0x140] sm:$0xff] %v519_v42  ;;  %v521_v48 = vsel %vm389_vm10, %v325_v30, %v457_v40  ;;  %v261_v50 = vmul.f32 %v723_v0, %v190_v38  ;;  %v262_v51 = vmul.f32 %v723_v0, %v191_v39 }
  0x48   : > { %584 = vst [vmem:[%s765_s23 + $0x148] sm:$0xff] %v520_v43  ;;  %v522_v49 = vsel %vm390_vm11, %v326_v31, %v458_v41  ;;  %585 = vst [vmem:[%s765_s23 + $0x150] sm:$0xff] %v521_v48  ;;  %vm391_vm12 = vcmp.ge.f32.partialorder %v327_v44, 0.0  ;;  %v459_v54 = vmul.f32 %v747_v11, %v327_v44  ;;  %vm392_vm13 = vcmp.ge.f32.partialorder %v328_v45, 0.0  ;;  %v202_v31 = vld [vmem:[%s728_s16 + $0x1d0] sm:$0xff]  ;;  %v204_v43 = vld [vmem:[%s728_s16 + $0x1e0] sm:$0xff] }
  0x49   : > { %586 = vst [vmem:[%s765_s23 + $0x158] sm:$0xff] %v522_v49  ;;  %v460_v55 = vmul.f32 %v747_v11, %v328_v45  ;;  %v329_v56 = vadd.f32 %v733_v1, %v261_v50  ;;  %v330_v57 = vadd.f32 %v733_v1, %v262_v51  ;;  %v263_v58 = vmul.f32 %v723_v0, %v192_v46 }
  0x4a   : > { %v264_v59 = vmul.f32 %v723_v0, %v193_v47  ;;  %v523_v60 = vsel %vm391_vm12, %v327_v44, %v459_v54  ;;  %v265_v62 = vmul.f32 %v723_v0, %v194_v52  ;;  %v266_v63 = vmul.f32 %v723_v0, %v195_v53  ;;  %v205_v44 = vld [vmem:[%s728_s16 + $0x1e8] sm:$0xff] }
  0x4b   : > { %v524_v61 = vsel %vm392_vm13, %v328_v45, %v460_v55  ;;  %587 = vst [vmem:[%s765_s23 + $0x160] sm:$0xff] %v523_v60  ;;  %vm393_vm14 = vcmp.ge.f32.partialorder %v329_v56, 0.0  ;;  %v461_v4 = vmul.f32 %v747_v11, %v329_v56  ;;  %vm394_vm15 = vcmp.ge.f32.partialorder %v330_v57, 0.0 }
  0x4c   : > { %588 = vst [vmem:[%s765_s23 + $0x168] sm:$0xff] %v524_v61  ;;  %v462_v5 = vmul.f32 %v747_v11, %v330_v57  ;;  %v331_v6 = vadd.f32 %v733_v1, %v263_v58  ;;  %v332_v7 = vadd.f32 %v733_v1, %v264_v59  ;;  %v333_v8 = vadd.f32 %v733_v1, %v265_v62  ;;  %v207_v58 = vld [vmem:[%s728_s16 + $0x1f8] sm:$0xff] }
  0x4d   : > { %v334_v9 = vadd.f32 %v733_v1, %v266_v63  ;;  %v525_v10 = vsel %vm393_vm14, %v329_v56, %v461_v4  ;;  %v267_v13 = vmul.f32 %v723_v0, %v196_v2  ;;  %v268_v14 = vmul.f32 %v723_v0, %v197_v3 }
  0x4e   : > { %v526_v12 = vsel %vm394_vm15, %v330_v57, %v462_v5  ;;  %589 = vst [vmem:[%s765_s23 + $0x170] sm:$0xff] %v525_v10  ;;  %vm395_vm0 = vcmp.ge.f32.partialorder %v331_v6, 0.0  ;;  %v463_v15 = vmul.f32 %v747_v11, %v331_v6  ;;  %vm396_vm1 = vcmp.ge.f32.partialorder %v332_v7, 0.0  ;;  %v206_v57 = vld [vmem:[%s728_s16 + $0x1f0] sm:$0xff] }
  0x4f   : > { %590 = vst [vmem:[%s765_s23 + $0x178] sm:$0xff] %v526_v12  ;;  %v464_v16 = vmul.f32 %v747_v11, %v332_v7  ;;  %vm397_vm2 = vcmp.ge.f32.partialorder %v333_v8, 0.0  ;;  %v465_v19 = vmul.f32 %v747_v11, %v333_v8  ;;  %vm398_vm3 = vcmp.ge.f32.partialorder %v334_v9, 0.0 }
  0x50   : > { %v466_v20 = vmul.f32 %v747_v11, %v334_v9  ;;  %v527_v21 = vsel %vm395_vm0, %v331_v6, %v463_v15  ;;  %v335_v23 = vadd.f32 %v733_v1, %v267_v13  ;;  %v336_v24 = vadd.f32 %v733_v1, %v268_v14 }
  0x51   : > { %v528_v22 = vsel %vm396_vm1, %v332_v7, %v464_v16  ;;  %591 = vst [vmem:[%s765_s23 + $0x180] sm:$0xff] %v527_v21  ;;  %v529_v27 = vsel %vm397_vm2, %v333_v8, %v465_v19  ;;  %v269_v29 = vmul.f32 %v723_v0, %v198_v17  ;;  %v270_v30 = vmul.f32 %v723_v0, %v199_v18 }
  0x52   : > { %592 = vst [vmem:[%s765_s23 + $0x188] sm:$0xff] %v528_v22  ;;  %v530_v28 = vsel %vm398_vm3, %v334_v9, %v466_v20  ;;  %593 = vst [vmem:[%s765_s23 + $0x190] sm:$0xff] %v529_v27  ;;  %vm399_vm4 = vcmp.ge.f32.partialorder %v335_v23, 0.0  ;;  %v467_v33 = vmul.f32 %v747_v11, %v335_v23  ;;  %vm400_vm5 = vcmp.ge.f32.partialorder %v336_v24, 0.0 }
  0x53   : > { %594 = vst [vmem:[%s765_s23 + $0x198] sm:$0xff] %v530_v28  ;;  %v468_v34 = vmul.f32 %v747_v11, %v336_v24  ;;  %v337_v35 = vadd.f32 %v733_v1, %v269_v29  ;;  %v338_v36 = vadd.f32 %v733_v1, %v270_v30  ;;  %v271_v37 = vmul.f32 %v723_v0, %v200_v25 }
  0x54   : > { %v272_v38 = vmul.f32 %v723_v0, %v201_v26  ;;  %v531_v39 = vsel %vm399_vm4, %v335_v23, %v467_v33  ;;  %v273_v41 = vmul.f32 %v723_v0, %v202_v31  ;;  %v274_v42 = vmul.f32 %v723_v0, %v203_v32 }
  0x55   : > { %v532_v40 = vsel %vm400_vm5, %v336_v24, %v468_v34  ;;  %595 = vst [vmem:[%s765_s23 + $0x1a0] sm:$0xff] %v531_v39  ;;  %vm401_vm6 = vcmp.ge.f32.partialorder %v337_v35, 0.0  ;;  %v469_v45 = vmul.f32 %v747_v11, %v337_v35  ;;  %vm402_vm7 = vcmp.ge.f32.partialorder %v338_v36, 0.0 }
  0x56   : > { %596 = vst [vmem:[%s765_s23 + $0x1a8] sm:$0xff] %v532_v40  ;;  %v470_v46 = vmul.f32 %v747_v11, %v338_v36  ;;  %v339_v47 = vadd.f32 %v733_v1, %v271_v37  ;;  %v340_v48 = vadd.f32 %v733_v1, %v272_v38  ;;  %v341_v49 = vadd.f32 %v733_v1, %v273_v41 }
  0x57   : > { %v342_v50 = vadd.f32 %v733_v1, %v274_v42  ;;  %v533_v51 = vsel %vm401_vm6, %v337_v35, %v469_v45  ;;  %v275_v53 = vmul.f32 %v723_v0, %v204_v43  ;;  %v276_v54 = vmul.f32 %v723_v0, %v205_v44 }
  0x58   : > { %v534_v52 = vsel %vm402_vm7, %v338_v36, %v470_v46  ;;  %597 = vst [vmem:[%s765_s23 + $0x1b0] sm:$0xff] %v533_v51  ;;  %vm403_vm8 = vcmp.ge.f32.partialorder %v339_v47, 0.0  ;;  %v471_v55 = vmul.f32 %v747_v11, %v339_v47  ;;  %vm404_vm9 = vcmp.ge.f32.partialorder %v340_v48, 0.0 }
  0x59   : > { %598 = vst [vmem:[%s765_s23 + $0x1b8] sm:$0xff] %v534_v52  ;;  %v472_v56 = vmul.f32 %v747_v11, %v340_v48  ;;  %vm405_vm10 = vcmp.ge.f32.partialorder %v341_v49, 0.0  ;;  %v473_v59 = vmul.f32 %v747_v11, %v341_v49  ;;  %vm406_vm11 = vcmp.ge.f32.partialorder %v342_v50, 0.0 }
  0x5a   : > { %v474_v60 = vmul.f32 %v747_v11, %v342_v50  ;;  %v535_v61 = vsel %vm403_vm8, %v339_v47, %v471_v55  ;;  %v343_v63 = vadd.f32 %v733_v1, %v275_v53  ;;  %v344_v2 = vadd.f32 %v733_v1, %v276_v54 }
  0x5b   : > { %v536_v62 = vsel %vm404_vm9, %v340_v48, %v472_v56  ;;  %599 = vst [vmem:[%s765_s23 + $0x1c0] sm:$0xff] %v535_v61  ;;  %v537_v3 = vsel %vm405_vm10, %v341_v49, %v473_v59  ;;  %v277_v5 = vmul.f32 %v723_v0, %v206_v57  ;;  %v278_v6 = vmul.f32 %v723_v0, %v207_v58 }
  0x5c   : > { %600 = vst [vmem:[%s765_s23 + $0x1c8] sm:$0xff] %v536_v62  ;;  %v538_v4 = vsel %vm406_vm11, %v342_v50, %v474_v60  ;;  %601 = vst [vmem:[%s765_s23 + $0x1d0] sm:$0xff] %v537_v3  ;;  %vm407_vm12 = vcmp.ge.f32.partialorder %v343_v63, 0.0  ;;  %v475_v7 = vmul.f32 %v747_v11, %v343_v63  ;;  %vm408_vm13 = vcmp.ge.f32.partialorder %v344_v2, 0.0 }
  0x5d   : > { %602 = vst [vmem:[%s765_s23 + $0x1d8] sm:$0xff] %v538_v4  ;;  %v476_v8 = vmul.f32 %v747_v11, %v344_v2  ;;  %v345_v9 = vadd.f32 %v733_v1, %v277_v5  ;;  %v346_v10 = vadd.f32 %v733_v1, %v278_v6 }
  0x5e   : > { %v539_v12 = vsel %vm407_vm12, %v343_v63, %v475_v7 }
  0x5f   : > { %v540_v13 = vsel %vm408_vm13, %v344_v2, %v476_v8  ;;  %603 = vst [vmem:[%s765_s23 + $0x1e0] sm:$0xff] %v539_v12  ;;  %vm409_vm14 = vcmp.ge.f32.partialorder %v345_v9, 0.0  ;;  %v477_v0 = vmul.f32 %v747_v11, %v345_v9  ;;  %vm410_vm15 = vcmp.ge.f32.partialorder %v346_v10, 0.0 }
  0x60   : > { %604 = vst [vmem:[%s765_s23 + $0x1e8] sm:$0xff] %v540_v13  ;;  %v478_v14 = vmul.f32 %v747_v11, %v346_v10 }
  0x61   : > { %v541_v15 = vsel %vm409_vm14, %v345_v9, %v477_v0 }
  0x62   : > { %v542_v16 = vsel %vm410_vm15, %v346_v10, %v478_v14  ;;  %605 = vst [vmem:[%s765_s23 + $0x1f0] sm:$0xff] %v541_v15 }
  0x63   : > { %606 = vst [vmem:[%s765_s23 + $0x1f8] sm:$0xff] %v542_v16 }
  0x64 PF: > { %s12_s9 = sadd.s32 1, %s692_s9  }
  0x65   : > { %p9_p4 = scmp.ge.s32.totalorder %s12_s9, 6  }
  0x67   :  { %11 = sbr.rel (!%p9_p4) target bundleno = 1 (0x1), region = 58 }

// kernel: double_conv.4
= control target key start
LH: loop header
LB: loop body
LE: loop exit
PB: predicated region body
PF: predicated region fallthrough
CT: control target
= control target key end

     0   :  { %s5428_s12 = smov 0   ;;  %s5430_s13 = smov 0   ;;  %s8473_s0 = inlined_call_operand.vmem [shape: bf16[4,18,34,8], index: 0, kind: input, shape index: {}]   ;;  %s8474_s1 = inlined_call_operand.vmem [shape: bf16[72,128], index: 1, kind: input, shape index: {}]   ;;  %s8475_s2 = inlined_call_operand.vmem [shape: f32[4,512,128], index: 2, kind: output, shape index: {0}]   ;;  %s8476_s3 = inlined_call_operand.vmem [shape: f32[2,8,128], index: 3, kind: output, shape index: {1}]  }
   0x1   :  { %s5432_s14 = smov 0   ;;  %s5434_s15 = smov 0  }
   0x2   :  { %s5436_s16 = smov 0  }
   0x3 LB: > { %s23_s17 = sadd.s32 1, %s5389_s14  ;;  %s26_s18 = sadd.s32 1, %s5393_s15  ;;  %s5397_s16 = sphi %s5436_s16, %s14_s16   ;;  %s5393_s15 = sphi %s5434_s15, %s9385_s15   ;;  %s5389_s14 = sphi %s5432_s14, %s9384_s14   ;;  %s5385_s13 = sphi %s5430_s13, %s9383_s13   ;;  %s5381_s12 = sphi %s5428_s12, %s9382_s12  }
   0x4   : > { %p24_p0 = scmp.ge.s32.totalorder %s23_s17, 2  ;;  %p3719_p1 = scmp.ge.s32.totalorder %s5397_s16, 1 }
   0x5   : > { %p164_p2 = scmp.lt.s32.totalorder %s5397_s16, 5 }
   0x6   : > { %s9387_s17 = smov (%p24_p0, %s23_s17), 0  ;;  %s9389_s18 = smov (!%p24_p0, %s26_s18), %s5393_s15 }
   0x7   : > { %p165_p3 = pnand %p3719_p1, %p164_p2  ;;  %p28_p4 = scmp.ge.s32.totalorder %s9389_s18, 2 }
   0x9   : > { %s9391_s18 = smov (%p28_p4, %s9389_s18), 0  ;;  %168 = sbr.rel (%p165_p3) target bundleno = 887 (0x377), region = 28 }
   0xe   : > { %s3720_s19 = sshll.u32 %s5385_s13, 1  ;;  %p214_p5 = scmp.lt.s32.totalorder %s5385_s13, 1 }
   0xf   : > { %s197_s20 = sadd.s32 %s5381_s12, %s3720_s19  ;;  %p3726_p7 = scmp.ne.s32.totalorder %s5381_s12, 0 }
  0x10   : > { %p198_p6 = scmp.lt.s32.totalorder %s197_s20, 3  ;;  %s9393_s13 = smov (!%p214_p5, %s5385_s13), 1 }
  0x11   : > { %s3725_s21 = sshll.u32 %s9393_s13, 3  ;;  %222 = sbr.rel (%p3726_p7) target bundleno = 24 (0x18), region = 32 }
  0x12   : > { %s9395_s20 = smov (!%p198_p6, %s197_s20), 3  ;;  %s5466_s29 = scalar_lea.vmem %s8476_s3, %s3725_s21 }
  0x13   : > { %s4024_s22 = smul.u32 360, %s9395_s20  ;;  %s3766_s23 = sshll.u32 %s9395_s20, 9 }
  0x14   : > { %s5461_s26 = scalar_lea.vmem %s8475_s2, %s3766_s23 }
  0x15   : > { %s5471_s5 = scalar_lea.vmem %s8473_s0, %s4024_s22 }
  0x16   : > { %v5399_v0 = vmov 0.0  }
  0x17   : > { %223 = vst [vmem:[%s5466_s29] sm:$0xff] %v5399_v0 }
  0x18 PF: > { %v229_v1 = vld [vmem:[%s5471_s5 + $0x14] ss:$12 sps:$4 sm:$0xff]   ;;  %v3876_v2 = vld [vmem:[%s5471_s5 + $0x18] sm:$0xff]   ;;  %vm484_vm0 = vcmask 1046528   ;;  %v3875_v8 = vld [vmem:[%s5471_s5 + $0x8] sm:$0xff]   ;;  %s5400_s6 = smov 8  }
  0x19   : > { %v3768_v3 = vld [vmem:[%s5471_s5] sm:$0xff]   ;;  %v5477_v4 = vunpack.c.l.bf16 %v3876_v2  ;;  %v5479_v5 = vunpack.c.h.bf16 %v3876_v2  ;;  %v5481_v6 = vunpack.c.l.bf16 %v229_v1  ;;  %v5491_v11 = vunpack.c.l.bf16 %v3875_v8  ;;  %v5498_v14 = vld [vmem:[%s5471_s5 + $0x10] sm:$0x1]  ;;  %v5514_v28 = vld [vmem:[%s5471_s5 + $0x38] sm:$0x1]  ;;  %s5401_s7 = smov 16  }
  0x1a   : > { %v5483_v7 = vunpack.c.l.bf16 %v3768_v3  ;;  %v5487_v9 = vld [vmem:[%s5471_s5 + $0x24] sm:$0x1]  ;;  %v5489_v10 = vunpack.c.h.bf16 %v3768_v3  ;;  %v5493_v12 = vunpack.c.h.bf16 %v3875_v8  ;;  %v5495_v13 = vunpack.c.h.bf16 %v229_v1  ;;  %v3878_v27 = vld [vmem:[%s5471_s5 + $0x30] sm:$0xff]   ;;  %v3877_v32 = vld [vmem:[%s5471_s5 + $0x28] sm:$0xff]   ;;  %s5402_s8 = smov 24   ;;  %s5403_s9 = smov 32  }
  0x1b   : > { %8787 = vst [vmem:[#allocation2_spill] sm:$0xff] %v5477_v4  ;;  %8788 = vst [vmem:[#allocation3_spill] sm:$0xff] %v5479_v5  ;;  %v494_v15 = vrot.slane %v5481_v6, 1  ;;  %v495_v16 = vrot.slane %v5477_v4, 1  ;;  %v497_v17 = vrot.slane %v5479_v5, 1  ;;  %v488_v20 = vrot.slane %v5491_v11, 1 }
  0x1c   : > { %8789 = vst [vmem:[#allocation4_spill] sm:$0xff] %v5481_v6  ;;  %8790 = vst [vmem:[#allocation5_spill] sm:$0xff] %v5483_v7  ;;  %v485_v18 = vrot.slane %v5483_v7, 1  ;;  %v486_v19 = vrot.slane %v5489_v10, 1  ;;  %v8482_v21 = vunpack.c.l.bf16 %v5487_v9  ;;  %v499_v22 = vrot.slane %v5495_v13, 1  ;;  %v3879_v33 = vld [vmem:[%s5471_s5 + $0x40] sm:$0xff]  }
  0x1d   : > { %8791 = vst [vmem:[#allocation6_spill] sm:$0xff] %v5489_v10  ;;  %8792 = vst [vmem:[#allocation7_spill] sm:$0xff] %v5491_v11  ;;  %v496_v23 = vsel %vm484_vm0, %v494_v15, %v495_v16  ;;  %v498_v24 = vsel %vm484_vm0, %v495_v16, %v497_v17  ;;  %v8483_v25 = vunpack.c.l.bf16 %v5498_v14  ;;  %v490_v26 = vrot.slane %v5493_v12, 1  ;;  %v242_v46 = vld [vmem:[%s5471_s5 + $0x3c] ss:$12 sps:$4 sm:$0xff]   ;;  %v3880_v2 = vld [vmem:[%s5471_s5 + $0x50] sm:$0xff]  }
  0x1e   : > { %8793 = vst [vmem:[#allocation8_spill] sm:$0xff] %v5493_v12  ;;  %8794 = vst [vmem:[#allocation9_spill] sm:$0xff] %v5495_v13  ;;  %v5516_v29 = vpack.i.bf16 %v498_v24, %v496_v23  ;;  %v487_v30 = vsel %vm484_vm0, %v485_v18, %v486_v19  ;;  %v489_v31 = vsel %vm484_vm0, %v486_v19, %v488_v20  ;;  %v501_v36 = vrot.slane %v8482_v21, 1  ;;  %v5545_v47 = vld [vmem:[%s5471_s5 + $0x4c] sm:$0x1]  ;;  %v3881_v60 = vld [vmem:[%s5471_s5 + $0x58] sm:$0xff]  }
  0x1f   : > { %v4074_v34 = vpack.i.bf16 %v489_v31, %v487_v30  ;;  %v500_v35 = vsel %vm484_vm0, %v497_v17, %v499_v22  ;;  %v491_v37 = vsel %vm484_vm0, %v488_v20, %v490_v26  ;;  %v492_v38 = vrot.slane %v8483_v25, 1  ;;  %v5571_v1 = vld [vmem:[%s5471_s5 + $0x60] sm:$0x1]  ;;  %v252_v30 = vld [vmem:[%s5471_s5 + $0x64] ss:$12 sps:$4 sm:$0xff]   ;;  %s5404_s10 = smov 40  }
  0x20   : > { %8795 = vst [vmem:[#allocation10_spill] sm:$0xff] %v5516_v29  ;;  %4085 = vrot.lane.b32.xlu1 %v5516_v29, %s5400_s6  ;;  %v5530_v39 = vunpack.c.l.bf16 %v3878_v27  ;;  %v5532_v40 = vunpack.c.h.bf16 %v3878_v27  ;;  %v8481_v41 = vunpack.c.l.bf16 %v5514_v28  ;;  %v502_v42 = vsel %vm484_vm0, %v499_v22, %v501_v36  ;;  %v3882_v27 = vld [vmem:[%s5471_s5 + $0x68] sm:$0xff]   ;;  %v5598_v31 = vld [vmem:[%s5471_s5 + $0x74] sm:$0x1]  ;;  %v5697_v25 = vld [vmem:[%s5471_s5 + $0xb0] sm:$0x1] }
  0x21   : > { %4075 = vrot.lane.b32.xlu0 %v4074_v34, %s5400_s6  ;;  %v5537_v43 = vunpack.c.l.bf16 %v3877_v32  ;;  %v5539_v44 = vunpack.c.h.bf16 %v3877_v32  ;;  %v5541_v45 = vunpack.c.h.bf16 %v3879_v33  ;;  %v5547_v48 = vpack.i.bf16 %v502_v42, %v500_v35  ;;  %8819 = vst [vmem:[#allocation34_spill] sm:$0xff] %v5697_v25  ;;  %s5405_s24 = smov 48   ;;  %s5406_s28 = smov 56  }
  0x22   : > { %8796 = vst [vmem:[#allocation11_spill] sm:$0xff] %v5530_v39  ;;  %8797 = vst [vmem:[#allocation12_spill] sm:$0xff] %v5532_v40  ;;  %v493_v49 = vsel %vm484_vm0, %v490_v26, %v492_v38  ;;  %v506_v50 = vrot.slane %v5530_v39, 1  ;;  %v508_v51 = vrot.slane %v5532_v40, 1  ;;  %v510_v53 = vrot.slane %v8481_v41, 1  ;;  %s5407_s30 = smov 64  }
  0x23   : > { %8798 = vst [vmem:[#allocation13_spill] sm:$0xff] %v5537_v43  ;;  %8799 = vst [vmem:[#allocation14_spill] sm:$0xff] %v5539_v44  ;;  %v4079_v52 = vpack.i.bf16 %v493_v49, %v491_v37  ;;  %v503_v54 = vrot.slane %v5537_v43, 1  ;;  %v504_v55 = vrot.slane %v5539_v44, 1  ;;  %v5559_v57 = vunpack.c.h.bf16 %v242_v46 }
  0x24   : > { %8800 = vst [vmem:[#allocation15_spill] sm:$0xff] %v5541_v45  ;;  %8801 = vst [vmem:[#allocation16_spill] sm:$0xff] %v5547_v48  ;;  %4090 = vrot.lane.b32.xlu1 %v5547_v48, %s5400_s6  ;;  %v509_v56 = vsel %vm484_vm0, %v506_v50, %v508_v51  ;;  %v8479_v58 = vunpack.c.l.bf16 %v5545_v47  ;;  %v515_v59 = vrot.slane %v5541_v45, 1  ;;  %v511_v61 = vsel %vm484_vm0, %v508_v51, %v510_v53 }
  0x25   : > { %8802 = vst [vmem:[#allocation17_spill] sm:$0xff] %v5559_v57  ;;  %4080 = vrot.lane.b32.xlu0 %v4079_v52, %s5400_s6  ;;  %v505_v62 = vsel %vm484_vm0, %v503_v54, %v504_v55  ;;  %v507_v63 = vsel %vm484_vm0, %v504_v55, %v506_v50  ;;  %v5568_v0 = vunpack.c.l.bf16 %v3879_v33  ;;  %v5574_v3 = vpack.i.bf16 %v511_v61, %v509_v56  ;;  %v3884_v56 = vld [vmem:[%s5471_s5 + $0x80] sm:$0xff]  }
  0x26   : > { %v5576_v8 = vpack.i.bf16 %v507_v63, %v505_v62  ;;  %v517_v15 = vrot.slane %v5559_v57, 1  ;;  %v519_v16 = vrot.slane %v8479_v58, 1  ;;  %v5581_v17 = vunpack.c.l.bf16 %v242_v46 }
  0x27   : > { %8803 = vst [vmem:[#allocation18_spill] sm:$0xff] %v5568_v0  ;;  %8804 = vst [vmem:[#allocation19_spill] sm:$0xff] %v5574_v3  ;;  %v513_v18 = vrot.slane %v5568_v0, 1  ;;  %v5584_v19 = vunpack.c.l.bf16 %v3881_v60  ;;  %v5586_v20 = vunpack.c.h.bf16 %v3881_v60  ;;  %v8478_v24 = vunpack.c.l.bf16 %v5571_v1 }
  0x28   : > { %8805 = vst [vmem:[#allocation20_spill] sm:$0xff] %v5576_v8  ;;  %8806 = vst [vmem:[#allocation21_spill] sm:$0xff] %v5581_v17  ;;  %4100 = vrot.lane.b32.xlu1 %v5574_v3, %s5400_s6  ;;  %v518_v22 = vsel %vm484_vm0, %v515_v59, %v517_v15  ;;  %v520_v23 = vsel %vm484_vm0, %v517_v15, %v519_v16  ;;  %v5593_v26 = vunpack.c.l.bf16 %v3880_v2  ;;  %v512_v33 = vrot.slane %v5581_v17, 1 }
  0x29   : > { %8807 = vst [vmem:[#allocation22_spill] sm:$0xff] %v5584_v19  ;;  %8808 = vst [vmem:[#allocation23_spill] sm:$0xff] %v5586_v20  ;;  %4095 = vrot.lane.b32.xlu0 %v5576_v8, %s5400_s6  ;;  %v5602_v32 = vpack.i.bf16 %v520_v23, %v518_v22  ;;  %v516_v34 = vsel %vm484_vm0, %v513_v18, %v515_v59  ;;  %v524_v35 = vrot.slane %v5584_v19, 1  ;;  %v526_v36 = vrot.slane %v5586_v20, 1  ;;  %v3883_v22 = vld [vmem:[%s5471_s5 + $0x78] sm:$0xff]  }
  0x2a   : > { %8809 = vst [vmem:[#allocation24_spill] sm:$0xff] %v5593_v26  ;;  %v528_v37 = vrot.slane %v8478_v24, 1  ;;  %v5610_v38 = vunpack.c.h.bf16 %v3880_v2  ;;  %v521_v42 = vrot.slane %v5593_v26, 1  ;;  %v514_v46 = vsel %vm484_vm0, %v512_v33, %v513_v18  ;;  %v5642_v18 = vld [vmem:[%s5471_s5 + $0x88] sm:$0x1] }
  0x2b   : > { %8810 = vst [vmem:[#allocation25_spill] sm:$0xff] %v5602_v32  ;;  %v5614_v49 = vunpack.c.h.bf16 %v3882_v27  ;;  %v5616_v50 = vunpack.c.h.bf16 %v252_v30  ;;  %v8477_v51 = vunpack.c.l.bf16 %v5598_v31  ;;  %v5621_v52 = vpack.i.bf16 %v516_v34, %v514_v46 }
  0x2c   : > { %8811 = vst [vmem:[#allocation26_spill] sm:$0xff] %v5610_v38  ;;  %4110 = vrot.lane.b32.xlu1 %v5602_v32, %s5400_s6  ;;  %v527_v53 = vsel %vm484_vm0, %v524_v35, %v526_v36  ;;  %v529_v54 = vsel %vm484_vm0, %v526_v36, %v528_v37  ;;  %v522_v55 = vrot.slane %v5610_v38, 1  ;;  %v5637_v15 = vunpack.c.l.bf16 %v3882_v27  ;;  %v3885_v37 = vld [vmem:[%s5471_s5 + $0x90] sm:$0xff]  }
  0x2d   : > { %8812 = vst [vmem:[#allocation27_spill] sm:$0xff] %v5621_v52  ;;  %v5627_v59 = vpack.i.bf16 %v529_v54, %v527_v53  ;;  %v533_v60 = vrot.slane %v5614_v49, 1  ;;  %v535_v61 = vrot.slane %v5616_v50, 1  ;;  %v537_v62 = vrot.slane %v8477_v51, 1  ;;  %4105 = vrot.lane.b32.xlu0 %v5621_v52, %s5400_s6 }
  0x2e   : > { %v523_v63 = vsel %vm484_vm0, %v521_v42, %v522_v55  ;;  %v525_v2 = vsel %vm484_vm0, %v522_v55, %v524_v35  ;;  %8814 = vst [vmem:[#allocation29_spill] sm:$0xff] %v5637_v15  ;;  %v5639_v16 = vunpack.c.l.bf16 %v252_v30  ;;  %v5649_v36 = vunpack.c.l.bf16 %v3884_v56 }
  0x2f   : > { %8813 = vst [vmem:[#allocation28_spill] sm:$0xff] %v5627_v59  ;;  %v5645_v23 = vpack.i.bf16 %v525_v2, %v523_v63  ;;  %v536_v33 = vsel %vm484_vm0, %v533_v60, %v535_v61  ;;  %v538_v34 = vsel %vm484_vm0, %v535_v61, %v537_v62  ;;  %v531_v35 = vrot.slane %v5637_v15, 1  ;;  %v262_v61 = vld [vmem:[%s5471_s5 + $0x8c] ss:$12 sps:$4 sm:$0xff]   ;;  %v5668_v62 = vld [vmem:[%s5471_s5 + $0x9c] sm:$0x1] }
  0x30   : > { %8815 = vst [vmem:[#allocation30_spill] sm:$0xff] %v5639_v16  ;;  %4120 = vrot.lane.b32.xlu1 %v5627_v59, %s5400_s6  ;;  %v5654_v27 = vpack.i.bf16 %v538_v34, %v536_v33  ;;  %v530_v30 = vrot.slane %v5639_v16, 1  ;;  %v5658_v42 = vunpack.c.h.bf16 %v3884_v56  ;;  %v8480_v46 = vunpack.c.l.bf16 %v5642_v18 }
  0x31   : > { %8816 = vst [vmem:[#allocation31_spill] sm:$0xff] %v5645_v23  ;;  %v542_v53 = vrot.slane %v5649_v36, 1  ;;  %v5662_v54 = vunpack.c.l.bf16 %v3883_v22  ;;  %v5664_v55 = vunpack.c.h.bf16 %v3883_v22  ;;  %4115 = vrot.lane.b32.xlu0 %v5645_v23, %s5400_s6  ;;  %v534_v56 = vsel %vm484_vm0, %v531_v35, %v533_v60 }
  0x32   : > { %8817 = vst [vmem:[#allocation32_spill] sm:$0xff] %v5654_v27  ;;  %v532_v63 = vsel %vm484_vm0, %v530_v30, %v531_v35  ;;  %v544_v2 = vrot.slane %v5658_v42, 1  ;;  %v5675_v33 = vunpack.c.h.bf16 %v3885_v37  ;;  %v546_v22 = vrot.slane %v8480_v46, 1 }
  0x33   : > { %v5677_v34 = vpack.i.bf16 %v534_v56, %v532_v63  ;;  %v539_v51 = vrot.slane %v5662_v54, 1  ;;  %v540_v24 = vrot.slane %v5664_v55, 1  ;;  %v5686_v30 = vunpack.c.h.bf16 %v262_v61  ;;  %v3887_v63 = vld [vmem:[%s5471_s5 + $0xa8] sm:$0xff]  }
  0x34   : > { %4130 = vrot.lane.b32.xlu1 %v5654_v27, %s5400_s6  ;;  %v545_v60 = vsel %vm484_vm0, %v542_v53, %v544_v2  ;;  %v551_v58 = vrot.slane %v5675_v33, 1  ;;  %v547_v56 = vsel %vm484_vm0, %v544_v2, %v546_v22  ;;  %v5694_v21 = vunpack.c.l.bf16 %v3885_v37  ;;  %v3886_v27 = vld [vmem:[%s5471_s5 + $0xa0] sm:$0xff]  }
  0x35   : > { %8818 = vst [vmem:[#allocation33_spill] sm:$0xff] %v5677_v34  ;;  %v541_v46 = vsel %vm484_vm0, %v539_v51, %v540_v24  ;;  %v543_v41 = vsel %vm484_vm0, %v540_v24, %v542_v53  ;;  %4125 = vrot.lane.b32.xlu0 %v5677_v34, %s5400_s6  ;;  %v5702_v35 = vpack.i.bf16 %v547_v56, %v545_v60  ;;  %v553_v2 = vrot.slane %v5686_v30, 1  ;;  %v5726_v34 = vld [vmem:[%s5471_s5 + $0xc4] sm:$0x1] }
  0x36   : > { %v5704_v23 = vpack.i.bf16 %v543_v41, %v541_v46  ;;  %v8822_v51 = vunpack.c.l.bf16 %v5668_v62  ;;  %v5709_v37 = vunpack.c.l.bf16 %v262_v61  ;;  %v549_v53 = vrot.slane %v5694_v21, 1  ;;  %v272_v61 = vld [vmem:[%s5471_s5 + $0xb4] ss:$12 sps:$4 sm:$0xff]   ;;  %8824 = vst [vmem:[#allocation38_spill] sm:$0xff] %v5726_v34 }
  0x37   : > { %8820 = vst [vmem:[#allocation35_spill] sm:$0xff] %v5702_v35  ;;  %v5712_v22 = vunpack.c.l.bf16 %v3887_v63  ;;  %v5714_v59 = vunpack.c.h.bf16 %v3887_v63  ;;  %v554_v60 = vsel %vm484_vm0, %v551_v58, %v553_v2  ;;  %v8505_v46 = vunpack.c.l.bf16 %v5697_v25 }
  0x38   : > { %8821 = vst [vmem:[#allocation36_spill] sm:$0xff] %v5704_v23  ;;  %v555_v24 = vrot.slane %v8822_v51, 1  ;;  %4140 = vrot.lane.b32.xlu1 %v5702_v35, %s5400_s6  ;;  %v5721_v56 = vunpack.c.l.bf16 %v3886_v27  ;;  %v3888_v51 = vld [vmem:[%s5471_s5 + $0xb8] sm:$0xff]   ;;  %v548_v63 = vrot.slane %v5709_v37, 1  ;;  %v552_v32 = vsel %vm484_vm0, %v549_v53, %v551_v58 }
  0x39   : > { %v560_v35 = vrot.slane %v5712_v22, 1  ;;  %4135 = vrot.lane.b32.xlu0 %v5704_v23, %s5400_s6  ;;  %v5738_v8 = vunpack.c.h.bf16 %v3886_v27  ;;  %v5742_v3 = vunpack.c.h.bf16 %v3888_v51  ;;  %v5744_v58 = vunpack.c.h.bf16 %v272_v61 }
  0x3a   : > { %v556_v41 = vsel %vm484_vm0, %v553_v2, %v555_v24  ;;  %8823 = vst [vmem:[#allocation37_spill] sm:$0xff] %v5721_v56  ;;  %v562_v2 = vrot.slane %v5714_v59, 1  ;;  %v564_v24 = vrot.slane %v8505_v46, 1  ;;  %v8831_v25 = vunpack.c.l.bf16 %v5726_v34 }
  0x3b   : > { %v5728_v52 = vpack.i.bf16 %v556_v41, %v554_v60  ;;  %8826 = vst [vmem:[#allocation40_spill] sm:$0xff] %v5738_v8  ;;  %v557_v60 = vrot.slane %v5721_v56, 1  ;;  %v550_v41 = vsel %vm484_vm0, %v548_v63, %v549_v53  ;;  %8827 = vst [vmem:[#allocation41_spill] sm:$0xff] %v5742_v3  ;;  %v558_v48 = vrot.slane %v5738_v8, 1  ;;  %v3890_v53 = vld [vmem:[%s5471_s5 + $0xd0] sm:$0xff]  }
  0x3c   : > { %8828 = vst [vmem:[#allocation42_spill] sm:$0xff] %v5744_v58  ;;  %v5749_v23 = vpack.i.bf16 %v552_v32, %v550_v41  ;;  %v563_v27 = vsel %vm484_vm0, %v560_v35, %v562_v2  ;;  %v565_v46 = vsel %vm484_vm0, %v562_v2, %v564_v24  ;;  %v569_v56 = vrot.slane %v5742_v3, 1  ;;  %v5796_v8 = vld [vmem:[%s5471_s5 + $0xec] sm:$0x1] }
  0x3d   : > { %8825 = vst [vmem:[#allocation39_spill] sm:$0xff] %v5728_v52  ;;  %4150 = vrot.lane.b32.xlu1 %v5728_v52, %s5400_s6  ;;  %v5755_v63 = vpack.i.bf16 %v565_v46, %v563_v27  ;;  %v571_v29 = vrot.slane %v5744_v58, 1  ;;  %v573_v52 = vrot.slane %v8831_v25, 1  ;;  %v559_v32 = vsel %vm484_vm0, %v557_v60, %v558_v48  ;;  %v5770_v46 = vld [vmem:[%s5471_s5 + $0xd8] sm:$0x1]  ;;  %v3889_v27 = vld [vmem:[%s5471_s5 + $0xc8] sm:$0xff]  }
  0x3e   : > { %8829 = vst [vmem:[#allocation43_spill] sm:$0xff] %v5749_v23  ;;  %4145 = vrot.lane.b32.xlu0 %v5749_v23, %s5400_s6  ;;  %v561_v2 = vsel %vm484_vm0, %v558_v48, %v560_v35  ;;  %v5765_v24 = vunpack.c.l.bf16 %v3888_v51  ;;  %v5767_v41 = vunpack.c.l.bf16 %v272_v61  ;;  %8834 = vst [vmem:[#allocation47_spill] sm:$0xff] %v5770_v46  ;;  %v5777_v23 = vunpack.c.l.bf16 %v3890_v53  ;;  %v3891_v60 = vld [vmem:[%s5471_s5 + $0xe0] sm:$0xff]  }
  0x3f   : > { %8830 = vst [vmem:[#allocation44_spill] sm:$0xff] %v5755_v63  ;;  %v5773_v58 = vpack.i.bf16 %v561_v2, %v559_v32  ;;  %v572_v25 = vsel %vm484_vm0, %v569_v56, %v571_v29  ;;  %v574_v34 = vsel %vm484_vm0, %v571_v29, %v573_v52  ;;  %v5786_v61 = vunpack.c.h.bf16 %v3890_v53  ;;  %v282_v52 = vld [vmem:[%s5471_s5 + $0xdc] ss:$12 sps:$4 sm:$0xff]   ;;  %8841 = vst [vmem:[#allocation54_spill] sm:$0xff] %v5796_v8 }
  0x40   : > { %8832 = vst [vmem:[#allocation45_spill] sm:$0xff] %v5765_v24  ;;  %8833 = vst [vmem:[#allocation46_spill] sm:$0xff] %v5767_v41  ;;  %v5782_v48 = vpack.i.bf16 %v574_v34, %v572_v25  ;;  %v566_v35 = vrot.slane %v5767_v41, 1  ;;  %v567_v51 = vrot.slane %v5765_v24, 1  ;;  %v578_v2 = vrot.slane %v5777_v23, 1 }
  0x41   : > { %8835 = vst [vmem:[#allocation48_spill] sm:$0xff] %v5773_v58  ;;  %8836 = vst [vmem:[#allocation49_spill] sm:$0xff] %v5777_v23  ;;  %4160 = vrot.lane.b32.xlu1 %v5755_v63, %s5400_s6  ;;  %v5790_v3 = vunpack.c.l.bf16 %v3889_v27  ;;  %v5792_v29 = vunpack.c.h.bf16 %v3889_v27  ;;  %v580_v25 = vrot.slane %v5786_v61, 1  ;;  %v5803_v32 = vunpack.c.h.bf16 %v3891_v60 }
  0x42   : > { %8837 = vst [vmem:[#allocation50_spill] sm:$0xff] %v5782_v48  ;;  %8838 = vst [vmem:[#allocation51_spill] sm:$0xff] %v5786_v61  ;;  %4155 = vrot.lane.b32.xlu0 %v5773_v58, %s5400_s6  ;;  %v568_v34 = vsel %vm484_vm0, %v566_v35, %v567_v51  ;;  %v570_v53 = vsel %vm484_vm0, %v567_v51, %v569_v56  ;;  %v8844_v27 = vunpack.c.l.bf16 %v5770_v46  ;;  %v5814_v35 = vunpack.c.h.bf16 %v282_v52 }
  0x43   : > { %8839 = vst [vmem:[#allocation52_spill] sm:$0xff] %v5790_v3  ;;  %8840 = vst [vmem:[#allocation53_spill] sm:$0xff] %v5792_v29  ;;  %v5805_v63 = vpack.i.bf16 %v570_v53, %v568_v34  ;;  %v575_v24 = vrot.slane %v5790_v3, 1  ;;  %v576_v41 = vrot.slane %v5792_v29, 1  ;;  %v581_v56 = vsel %vm484_vm0, %v578_v2, %v580_v25  ;;  %v3893_v34 = vld [vmem:[%s5471_s5 + $0xf8] sm:$0xff]  }
  0x44   : > { %8842 = vst [vmem:[#allocation55_spill] sm:$0xff] %v5803_v32  ;;  %v582_v23 = vrot.slane %v8844_v27, 1  ;;  %8845 = vst [vmem:[#allocation57_spill] sm:$0xff] %v5814_v35  ;;  %v587_v58 = vrot.slane %v5803_v32, 1  ;;  %v5822_v46 = vunpack.c.l.bf16 %v3891_v60  ;;  %v5825_v29 = vld [vmem:[%s5471_s5 + $0x100] sm:$0x1]  ;;  %v5837_v60 = vunpack.c.l.bf16 %v282_v52 }
  0x45   : > { %8843 = vst [vmem:[#allocation56_spill] sm:$0xff] %v5805_v63  ;;  %4170 = vrot.lane.b32.xlu1 %v5782_v48, %s5400_s6  ;;  %v577_v27 = vsel %vm484_vm0, %v575_v24, %v576_v41  ;;  %v579_v3 = vsel %vm484_vm0, %v576_v41, %v578_v2  ;;  %8847 = vst [vmem:[#allocation59_spill] sm:$0xff] %v5825_v29  ;;  %v3892_v48 = vld [vmem:[%s5471_s5 + $0xf0] sm:$0xff]   ;;  %v8850_v24 = vunpack.c.l.bf16 %v5796_v8  ;;  %v5842_v61 = vunpack.c.h.bf16 %v3893_v34 }
  0x46   : > { %v583_v53 = vsel %vm484_vm0, %v580_v25, %v582_v23  ;;  %8846 = vst [vmem:[#allocation58_spill] sm:$0xff] %v5822_v46  ;;  %4165 = vrot.lane.b32.xlu0 %v5805_v63, %s5400_s6  ;;  %v5832_v32 = vpack.i.bf16 %v579_v3, %v577_v27  ;;  %v589_v23 = vrot.slane %v5814_v35, 1  ;;  %8851 = vst [vmem:[#allocation62_spill] sm:$0xff] %v5837_v60  ;;  %v585_v2 = vrot.slane %v5822_v46, 1  ;;  %v292_v52 = vld [vmem:[%s5471_s5 + $0x104] ss:$12 sps:$4 sm:$0xff]  }
  0x47   : > { %v5830_v51 = vpack.i.bf16 %v583_v53, %v581_v56  ;;  %v591_v41 = vrot.slane %v8850_v24, 1  ;;  %v5840_v25 = vunpack.c.l.bf16 %v3893_v34  ;;  %8853 = vst [vmem:[#allocation64_spill] sm:$0xff] %v5842_v61  ;;  %v8557_v53 = vunpack.c.l.bf16 %v5825_v29  ;;  %v3894_v24 = vld [vmem:[%s5471_s5 + $0x108] sm:$0xff]   ;;  %v5854_v63 = vld [vmem:[%s5471_s5 + $0x114] sm:$0x1] }
  0x48   : > { %8849 = vst [vmem:[#allocation61_spill] sm:$0xff] %v5832_v32  ;;  %v590_v56 = vsel %vm484_vm0, %v587_v58, %v589_v23  ;;  %v5849_v27 = vunpack.c.l.bf16 %v3892_v48  ;;  %8855 = vst [vmem:[#allocation66_spill] sm:$0xff] %v5854_v63  ;;  %v584_v34 = vrot.slane %v5837_v60, 1  ;;  %v588_v8 = vsel %vm484_vm0, %v585_v2, %v587_v58 }
  0x49   : > { %8848 = vst [vmem:[#allocation60_spill] sm:$0xff] %v5830_v51  ;;  %8852 = vst [vmem:[#allocation63_spill] sm:$0xff] %v5840_v25  ;;  %4180 = vrot.lane.b32.xlu1 %v5830_v51, %s5400_s6  ;;  %v592_v3 = vsel %vm484_vm0, %v589_v23, %v591_v41  ;;  %v596_v51 = vrot.slane %v5840_v25, 1  ;;  %v598_v23 = vrot.slane %v5842_v61, 1  ;;  %v600_v41 = vrot.slane %v8557_v53, 1 }
  0x4a   : > { %8854 = vst [vmem:[#allocation65_spill] sm:$0xff] %v5849_v27  ;;  %v5856_v46 = vpack.i.bf16 %v592_v3, %v590_v56  ;;  %4175 = vrot.lane.b32.xlu0 %v5832_v32, %s5400_s6  ;;  %v5866_v35 = vunpack.c.h.bf16 %v3892_v48  ;;  %v593_v56 = vrot.slane %v5849_v27, 1  ;;  %v586_v3 = vsel %vm484_vm0, %v584_v34, %v585_v2  ;;  %v3896_v2 = vld [vmem:[%s5471_s5 + $0x120] sm:$0xff]  }
  0x4b   : > { %v5870_v60 = vunpack.c.h.bf16 %v3894_v24  ;;  %v5872_v58 = vunpack.c.h.bf16 %v292_v52  ;;  %v5877_v32 = vpack.i.bf16 %v588_v8, %v586_v3  ;;  %v599_v48 = vsel %vm484_vm0, %v596_v51, %v598_v23 }
  0x4c   : > { %8856 = vst [vmem:[#allocation67_spill] sm:$0xff] %v5856_v46  ;;  %8857 = vst [vmem:[#allocation68_spill] sm:$0xff] %v5866_v35  ;;  %v601_v53 = vsel %vm484_vm0, %v598_v23, %v600_v41  ;;  %v594_v27 = vrot.slane %v5866_v35, 1  ;;  %v8862_v61 = vunpack.c.l.bf16 %v5854_v63  ;;  %v5893_v41 = vunpack.c.l.bf16 %v3894_v24  ;;  %v5924_v35 = vld [vmem:[%s5471_s5 + $0x13c] sm:$0x1] }
  0x4d   : > { %8858 = vst [vmem:[#allocation69_spill] sm:$0xff] %v5870_v60  ;;  %8859 = vst [vmem:[#allocation70_spill] sm:$0xff] %v5872_v58  ;;  %4190 = vrot.lane.b32.xlu1 %v5856_v46, %s5400_s6  ;;  %v5883_v34 = vpack.i.bf16 %v601_v53, %v599_v48  ;;  %v605_v29 = vrot.slane %v5870_v60, 1  ;;  %v607_v25 = vrot.slane %v5872_v58, 1  ;;  %v5895_v3 = vunpack.c.l.bf16 %v292_v52  ;;  %v5898_v53 = vld [vmem:[%s5471_s5 + $0x128] sm:$0x1] }
  0x4e   : > { %8860 = vst [vmem:[#allocation71_spill] sm:$0xff] %v5877_v32  ;;  %v609_v46 = vrot.slane %v8862_v61, 1  ;;  %4185 = vrot.lane.b32.xlu0 %v5877_v32, %s5400_s6  ;;  %v595_v8 = vsel %vm484_vm0, %v593_v56, %v594_v27  ;;  %v597_v23 = vsel %vm484_vm0, %v594_v27, %v596_v51  ;;  %8863 = vst [vmem:[#allocation73_spill] sm:$0xff] %v5893_v41  ;;  %v3895_v48 = vld [vmem:[%s5471_s5 + $0x118] sm:$0xff]   ;;  %v5905_v32 = vunpack.c.l.bf16 %v3896_v2  ;;  %v3897_v56 = vld [vmem:[%s5471_s5 + $0x130] sm:$0xff]  }
  0x4f   : > { %8861 = vst [vmem:[#allocation72_spill] sm:$0xff] %v5883_v34  ;;  %8864 = vst [vmem:[#allocation74_spill] sm:$0xff] %v5895_v3  ;;  %v5901_v58 = vpack.i.bf16 %v597_v23, %v595_v8  ;;  %v608_v61 = vsel %vm484_vm0, %v605_v29, %v607_v25  ;;  %v602_v27 = vrot.slane %v5895_v3, 1  ;;  %v603_v24 = vrot.slane %v5893_v41, 1 }
  0x50   : > { %8865 = vst [vmem:[#allocation75_spill] sm:$0xff] %v5898_v53  ;;  %v610_v63 = vsel %vm484_vm0, %v607_v25, %v609_v46  ;;  %8867 = vst [vmem:[#allocation77_spill] sm:$0xff] %v5905_v32  ;;  %v5914_v52 = vunpack.c.h.bf16 %v3896_v2  ;;  %v614_v23 = vrot.slane %v5905_v32, 1  ;;  %v5918_v60 = vunpack.c.l.bf16 %v3895_v48  ;;  %v302_v25 = vld [vmem:[%s5471_s5 + $0x12c] ss:$12 sps:$4 sm:$0xff]  }
  0x51   : > { %8866 = vst [vmem:[#allocation76_spill] sm:$0xff] %v5901_v58  ;;  %4200 = vrot.lane.b32.xlu1 %v5883_v34, %s5400_s6  ;;  %v5910_v51 = vpack.i.bf16 %v610_v63, %v608_v61  ;;  %v5920_v46 = vunpack.c.h.bf16 %v3895_v48  ;;  %v604_v63 = vsel %vm484_vm0, %v602_v27, %v603_v24  ;;  %v606_v61 = vsel %vm484_vm0, %v603_v24, %v605_v29 }
  0x52   : > { %8869 = vst [vmem:[#allocation79_spill] sm:$0xff] %v5914_v52  ;;  %8870 = vst [vmem:[#allocation80_spill] sm:$0xff] %v5918_v60  ;;  %4195 = vrot.lane.b32.xlu0 %v5901_v58, %s5400_s6  ;;  %v616_v2 = vrot.slane %v5914_v52, 1  ;;  %v5931_v34 = vunpack.c.h.bf16 %v3897_v56  ;;  %v5933_v8 = vpack.i.bf16 %v606_v61, %v604_v63  ;;  %v8874_v32 = vunpack.c.l.bf16 %v5898_v53 }
  0x53   : > { %8868 = vst [vmem:[#allocation78_spill] sm:$0xff] %v5910_v51  ;;  %8871 = vst [vmem:[#allocation81_spill] sm:$0xff] %v5920_v46  ;;  %v611_v41 = vrot.slane %v5918_v60, 1  ;;  %v612_v3 = vrot.slane %v5920_v46, 1  ;;  %v5942_v58 = vunpack.c.h.bf16 %v302_v25  ;;  %v8595_v29 = vunpack.c.l.bf16 %v5924_v35 }
  0x54   : > { %8872 = vst [vmem:[#allocation82_spill] sm:$0xff] %v5931_v34  ;;  %8873 = vst [vmem:[#allocation83_spill] sm:$0xff] %v5933_v8  ;;  %v618_v48 = vrot.slane %v8874_v32, 1  ;;  %v617_v27 = vsel %vm484_vm0, %v614_v23, %v616_v2  ;;  %v623_v24 = vrot.slane %v5931_v34, 1  ;;  %v5949_v60 = vunpack.c.l.bf16 %v3897_v56 }
  0x55   : > { %4210 = vrot.lane.b32.xlu1 %v5910_v51, %s5400_s6  ;;  %v613_v61 = vsel %vm484_vm0, %v611_v41, %v612_v3  ;;  %v615_v32 = vsel %vm484_vm0, %v612_v3, %v614_v23  ;;  %v625_v53 = vrot.slane %v5942_v58, 1  ;;  %v627_v34 = vrot.slane %v8595_v29, 1 }
  0x56   : > { %v619_v63 = vsel %vm484_vm0, %v616_v2, %v618_v48  ;;  %8875 = vst [vmem:[#allocation84_spill] sm:$0xff] %v5949_v60  ;;  %4205 = vrot.lane.b32.xlu0 %v5933_v8, %s5400_s6  ;;  %v5955_v46 = vpack.i.bf16 %v615_v32, %v613_v61  ;;  %v5960_v52 = vunpack.c.l.bf16 %v302_v25  ;;  %v621_v41 = vrot.slane %v5949_v60, 1  ;;  %v8920_v8 = vld [vmem:[#allocation53_spill] sm:$0xff] }
  0x57   : > { %v5953_v51 = vpack.i.bf16 %v619_v63, %v617_v27  ;;  %vm821_vm1 = vcmask 1045504   ;;  %v825_v3 = vrot.slane %v5491_v11, 2  ;;  %v626_v56 = vsel %vm484_vm0, %v623_v24, %v625_v53 }
  0x58   : > { %8877 = vst [vmem:[#allocation86_spill] sm:$0xff] %v5955_v46  ;;  %8878 = vst [vmem:[#allocation87_spill] sm:$0xff] %v5960_v52  ;;  %v628_v23 = vsel %vm484_vm0, %v625_v53, %v627_v34  ;;  %v827_v2 = vrot.slane %v5493_v12, 2  ;;  %v8879_v48 = vunpack.c.l.bf16 %v5498_v14  ;;  %v620_v25 = vrot.slane %v5960_v52, 1 }
  0x59   : > { %8876 = vst [vmem:[#allocation85_spill] sm:$0xff] %v5953_v51  ;;  %4220 = vrot.lane.b32.xlu1 %v5953_v51, %s5400_s6  ;;  %v5971_v63 = vpack.i.bf16 %v628_v23, %v626_v56  ;;  %v624_v61 = vsel %vm484_vm0, %v621_v41, %v623_v24  ;;  %v822_v32 = vrot.slane %v5483_v7, 2  ;;  %v823_v53 = vrot.slane %v5489_v10, 2 }
  0x5a   : > { %v829_v27 = vrot.slane %v8879_v48, 2  ;;  %4215 = vrot.lane.b32.xlu0 %v5955_v46, %s5400_s6  ;;  %v828_v29 = vsel %vm821_vm1, %v825_v3, %v827_v2  ;;  %v834_v14 = vrot.slane %v5479_v5, 2  ;;  %v622_v56 = vsel %vm484_vm0, %v620_v25, %v621_v41 }
  0x5b   : > { %8880 = vst [vmem:[#allocation88_spill] sm:$0xff] %v5971_v63  ;;  %v836_v48 = vrot.slane %v5495_v13, 2  ;;  %v8881_v24 = vunpack.c.l.bf16 %v5487_v9  ;;  %v5988_v12 = vpack.i.bf16 %v624_v61, %v622_v56  ;;  %v824_v7 = vsel %vm821_vm1, %v822_v32, %v823_v53 }
  0x5c   : > { %v830_v34 = vsel %vm821_vm1, %v827_v2, %v829_v27  ;;  %v826_v2 = vsel %vm821_vm1, %v823_v53, %v825_v3  ;;  %v831_v27 = vrot.slane %v5481_v6, 2  ;;  %v832_v41 = vrot.slane %v5477_v4, 2 }
  0x5d   : > { %v4239_v23 = vpack.i.bf16 %v830_v34, %v828_v29  ;;  %v838_v11 = vrot.slane %v8881_v24, 2  ;;  %4230 = vrot.lane.b32.xlu1 %v5971_v63, %s5400_s6  ;;  %8882 = vst [vmem:[#allocation89_spill] sm:$0xff] %v5988_v12  ;;  %v837_v10 = vsel %vm821_vm1, %v834_v14, %v836_v48  ;;  %v4234_v9 = vpack.i.bf16 %v826_v2, %v824_v7 }
  0x5e   : > { %4225 = vrot.lane.b32.xlu0 %v5988_v12, %s5400_s6  ;;  %v843_v61 = vrot.slane %v5530_v39, 2  ;;  %v845_v32 = vrot.slane %v5532_v40, 2  ;;  %v833_v3 = vsel %vm821_vm1, %v831_v27, %v832_v41  ;;  %v835_v34 = vsel %vm821_vm1, %v832_v41, %v834_v14  ;;  %v8912_v12 = vld [vmem:[#allocation45_spill] sm:$0xff] }
  0x5f   : > { %v839_v29 = vsel %vm821_vm1, %v836_v48, %v838_v11  ;;  %v8884_v53 = vunpack.c.l.bf16 %v5514_v28  ;;  %v840_v11 = vrot.slane %v5537_v43, 2  ;;  %v6008_v48 = vpack.i.bf16 %v835_v34, %v833_v3 }
  0x60   : > { %v5998_v25 = vpack.i.bf16 %v839_v29, %v837_v10  ;;  %v846_v7 = vsel %vm821_vm1, %v843_v61, %v845_v32  ;;  %v841_v10 = vrot.slane %v5539_v44, 2  ;;  %v852_v2 = vrot.slane %v5541_v45, 2 }
  0x61   : > { %v847_v56 = vrot.slane %v8884_v53, 2  ;;  %4240 = vrot.lane.b32.xlu1 %v4239_v23, %s5401_s7  ;;  %8885 = vst [vmem:[#allocation91_spill] sm:$0xff] %v6008_v48  ;;  %v854_v14 = vrot.slane %v5559_v57, 2  ;;  %v8886_v28 = vunpack.c.l.bf16 %v5545_v47  ;;  %v849_v41 = vrot.slane %v5581_v17, 2 }
  0x62   : > { %8883 = vst [vmem:[#allocation90_spill] sm:$0xff] %v5998_v25  ;;  %4235 = vrot.lane.b32.xlu0 %v4234_v9, %s5401_s7  ;;  %v842_v29 = vsel %vm821_vm1, %v840_v11, %v841_v10  ;;  %v844_v23 = vsel %vm821_vm1, %v841_v10, %v843_v61  ;;  %v850_v3 = vrot.slane %v5568_v0, 2  ;;  %v861_v34 = vrot.slane %v5584_v19, 2 }
  0x63   : > { %v848_v24 = vsel %vm821_vm1, %v845_v32, %v847_v56  ;;  %v856_v27 = vrot.slane %v8886_v28, 2  ;;  %v863_v47 = vrot.slane %v5586_v20, 2  ;;  %v855_v53 = vsel %vm821_vm1, %v852_v2, %v854_v14 }
  0x64   : > { %v6024_v32 = vpack.i.bf16 %v848_v24, %v846_v7  ;;  %v8888_v56 = vunpack.c.l.bf16 %v5571_v1  ;;  %v6034_v11 = vpack.i.bf16 %v844_v23, %v842_v29  ;;  %v851_v10 = vsel %vm821_vm1, %v849_v41, %v850_v3 }
  0x65   : > { %4250 = vrot.lane.b32.xlu1 %v5998_v25, %s5401_s7  ;;  %v857_v9 = vsel %vm821_vm1, %v854_v14, %v856_v27  ;;  %v853_v7 = vsel %vm821_vm1, %v850_v3, %v852_v2  ;;  %v858_v24 = vrot.slane %v5593_v26, 2  ;;  %v859_v28 = vrot.slane %v5610_v38, 2 }
  0x66   : > { %8887 = vst [vmem:[#allocation92_spill] sm:$0xff] %v6024_v32  ;;  %v865_v61 = vrot.slane %v8888_v56, 2  ;;  %4245 = vrot.lane.b32.xlu0 %v6008_v48, %s5401_s7  ;;  %8889 = vst [vmem:[#allocation93_spill] sm:$0xff] %v6034_v11  ;;  %v6042_v14 = vpack.i.bf16 %v857_v9, %v855_v53  ;;  %v864_v1 = vsel %vm821_vm1, %v861_v34, %v863_v47  ;;  %v870_v29 = vrot.slane %v5614_v49, 2 }
  0x67   : > { %v872_v23 = vrot.slane %v5616_v50, 2  ;;  %v8891_v41 = vunpack.c.l.bf16 %v5598_v31  ;;  %v6052_v3 = vpack.i.bf16 %v853_v7, %v851_v10  ;;  %v860_v56 = vsel %vm821_vm1, %v858_v24, %v859_v28 }
  0x68   : > { %8890 = vst [vmem:[#allocation94_spill] sm:$0xff] %v6042_v14  ;;  %v866_v27 = vsel %vm821_vm1, %v863_v47, %v865_v61  ;;  %v862_v53 = vsel %vm821_vm1, %v859_v28, %v861_v34  ;;  %v867_v9 = vrot.slane %v5639_v16, 2  ;;  %v868_v47 = vrot.slane %v5637_v15, 2 }
  0x69   : > { %4260 = vrot.lane.b32.xlu1 %v6024_v32, %s5401_s7  ;;  %v874_v2 = vrot.slane %v8891_v41, 2  ;;  %8892 = vst [vmem:[#allocation95_spill] sm:$0xff] %v6052_v3  ;;  %v6060_v61 = vpack.i.bf16 %v866_v27, %v864_v1  ;;  %v879_v31 = vrot.slane %v5649_v36, 2  ;;  %v881_v41 = vrot.slane %v5658_v42, 2 }
  0x6a   : > { %4255 = vrot.lane.b32.xlu0 %v6034_v11, %s5401_s7  ;;  %v873_v10 = vsel %vm821_vm1, %v870_v29, %v872_v23  ;;  %v8894_v24 = vunpack.c.l.bf16 %v5642_v18  ;;  %v6070_v28 = vpack.i.bf16 %v862_v53, %v860_v56  ;;  %v871_v1 = vsel %vm821_vm1, %v868_v47, %v870_v29 }
  0x6b   : > { %8893 = vst [vmem:[#allocation96_spill] sm:$0xff] %v6060_v61  ;;  %v875_v7 = vsel %vm821_vm1, %v872_v23, %v874_v2  ;;  %v876_v27 = vrot.slane %v5662_v54, 2  ;;  %v877_v11 = vrot.slane %v5664_v55, 2  ;;  %v882_v18 = vsel %vm821_vm1, %v879_v31, %v881_v41 }
  0x6c   : > { %v883_v34 = vrot.slane %v8894_v24, 2  ;;  %8895 = vst [vmem:[#allocation97_spill] sm:$0xff] %v6070_v28  ;;  %v6078_v23 = vpack.i.bf16 %v875_v7, %v873_v10  ;;  %v888_v56 = vrot.slane %v5675_v33, 2  ;;  %v890_v53 = vrot.slane %v5686_v30, 2 }
  0x6d   : > { %4270 = vrot.lane.b32.xlu1 %v6042_v14, %s5401_s7  ;;  %v869_v14 = vsel %vm821_vm1, %v867_v9, %v868_v47  ;;  %v8897_v9 = vunpack.c.l.bf16 %v5668_v62  ;;  %v878_v24 = vsel %vm821_vm1, %v876_v27, %v877_v11  ;;  %v880_v10 = vsel %vm821_vm1, %v877_v11, %v879_v31  ;;  %v8900_v27 = vld [vmem:[#allocation34_spill] sm:$0xff] }
  0x6e   : > { %4265 = vrot.lane.b32.xlu0 %v6052_v3, %s5401_s7  ;;  %8896 = vst [vmem:[#allocation98_spill] sm:$0xff] %v6078_v23  ;;  %v884_v2 = vsel %vm821_vm1, %v881_v41, %v883_v34  ;;  %v6088_v47 = vpack.i.bf16 %v871_v1, %v869_v14  ;;  %v885_v7 = vrot.slane %v5709_v37, 2  ;;  %v886_v41 = vrot.slane %v5694_v21, 2  ;;  %v8904_v3 = vld [vmem:[#allocation40_spill] sm:$0xff] }
  0x6f   : > { %v892_v29 = vrot.slane %v8897_v9, 2  ;;  %v6096_v34 = vpack.i.bf16 %v884_v2, %v882_v18  ;;  %v897_v62 = vrot.slane %v5712_v22, 2  ;;  %v891_v9 = vsel %vm821_vm1, %v888_v56, %v890_v53  ;;  %v8903_v2 = vld [vmem:[#allocation37_spill] sm:$0xff] }
  0x70   : > { %8898 = vst [vmem:[#allocation99_spill] sm:$0xff] %v6088_v47  ;;  %v899_v1 = vrot.slane %v5714_v59, 2  ;;  %v6106_v31 = vpack.i.bf16 %v880_v10, %v878_v24  ;;  %v889_v18 = vsel %vm821_vm1, %v886_v41, %v888_v56  ;;  %v895_v32 = vrot.slane %v8904_v3, 2 }
  0x71   : > { %4280 = vrot.lane.b32.xlu1 %v6060_v61, %s5401_s7  ;;  %8899 = vst [vmem:[#allocation100_spill] sm:$0xff] %v6096_v34  ;;  %v893_v14 = vsel %vm821_vm1, %v890_v53, %v892_v29  ;;  %v894_v61 = vrot.slane %v8903_v2, 2  ;;  %v8906_v29 = vld [vmem:[#allocation41_spill] sm:$0xff]  ;;  %v904_v63 = vrot.slane %v8912_v12, 2  ;;  %vm2356_vm2 = vcmask 64512  }
  0x72   : > { %4275 = vrot.lane.b32.xlu0 %v6070_v28, %s5401_s7  ;;  %v8901_v28 = vunpack.c.l.bf16 %v8900_v27  ;;  %8902 = vst [vmem:[#allocation34_spill] sm:$0xff] %v6106_v31  ;;  %v6114_v53 = vpack.i.bf16 %v893_v14, %v891_v9  ;;  %v8907_v27 = vld [vmem:[#allocation42_spill] sm:$0xff]  ;;  %v900_v24 = vsel %vm821_vm1, %v897_v62, %v899_v1  ;;  %v898_v9 = vsel %vm821_vm1, %v895_v32, %v897_v62 }
  0x73   : > { %v908_v48 = vrot.slane %v8907_v27, 2  ;;  %v8911_v14 = vld [vmem:[#allocation46_spill] sm:$0xff]  ;;  %vm2421_vm3 = vcmask 130048   ;;  %vm2486_vm4 = vcmask 195584   ;;  %vm3041_vm5 = vcmask 1043456  }
  0x74   : > { %v901_v11 = vrot.slane %v8901_v28, 2  ;;  %8905 = vst [vmem:[#allocation37_spill] sm:$0xff] %v6114_v53  ;;  %v906_v28 = vrot.slane %v8906_v29, 2  ;;  %v903_v25 = vrot.slane %v8911_v14, 2  ;;  %vm2551_vm6 = vcmask 261120  }
  0x75   : > { %4290 = vrot.lane.b32.xlu1 %v6078_v23, %s5401_s7  ;;  %v887_v23 = vsel %vm821_vm1, %v885_v7, %v886_v41  ;;  %v8908_v7 = vld [vmem:[#allocation38_spill] sm:$0xff]  ;;  %vm2616_vm7 = vcmask 326656   ;;  %vm2681_vm8 = vcmask 392192   ;;  %vm2746_vm9 = vcmask 457728  }
  0x76   : > { %4285 = vrot.lane.b32.xlu0 %v6088_v47, %s5401_s7  ;;  %v902_v10 = vsel %vm821_vm1, %v899_v1, %v901_v11  ;;  %v8909_v47 = vunpack.c.l.bf16 %v8908_v7  ;;  %v6124_v41 = vpack.i.bf16 %v889_v18, %v887_v23  ;;  %v8914_v7 = vld [vmem:[#allocation49_spill] sm:$0xff]  ;;  %v8915_v18 = vld [vmem:[#allocation51_spill] sm:$0xff]  ;;  %vm2811_vm10 = vcmask 523264  }
  0x77   : > { %v6132_v1 = vpack.i.bf16 %v902_v10, %v900_v24  ;;  %v915_v23 = vrot.slane %v8914_v7, 2  ;;  %v907_v24 = vsel %vm821_vm1, %v904_v63, %v906_v28  ;;  %v8919_v10 = vld [vmem:[#allocation52_spill] sm:$0xff]  ;;  %vm2944_vm11 = vcmask 588800  }
  0x78   : > { %v910_v56 = vrot.slane %v8909_v47, 2  ;;  %8910 = vst [vmem:[#allocation40_spill] sm:$0xff] %v6124_v41  ;;  %v909_v47 = vsel %vm821_vm1, %v906_v28, %v908_v48  ;;  %v912_v51 = vrot.slane %v8919_v10, 2  ;;  %vm3600_vm12 = vcmask 1040384  }
  0x79   : > { %4300 = vrot.lane.b32.xlu1 %v6096_v34, %s5401_s7  ;;  %v896_v34 = vsel %vm821_vm1, %v894_v61, %v895_v32  ;;  %8913 = vst [vmem:[#allocation41_spill] sm:$0xff] %v6132_v1  ;;  %v8916_v61 = vld [vmem:[#allocation47_spill] sm:$0xff]  ;;  %vm3602_vm13 = vcmask 1041408  }
  0x7a   : > { %4295 = vrot.lane.b32.xlu0 %v6106_v31, %s5401_s7  ;;  %v911_v11 = vsel %vm821_vm1, %v908_v48, %v910_v56  ;;  %v917_v31 = vrot.slane %v8915_v18, 2  ;;  %v8917_v46 = vunpack.c.l.bf16 %v8916_v61  ;;  %v6142_v62 = vpack.i.bf16 %v898_v9, %v896_v34  ;;  %v8922_v61 = vld [vmem:[#allocation55_spill] sm:$0xff]  ;;  %v8923_v18 = vld [vmem:[#allocation57_spill] sm:$0xff] }
  0x7b   : > { %v913_v48 = vrot.slane %v8920_v8, 2  ;;  %v6150_v56 = vpack.i.bf16 %v911_v11, %v909_v47  ;;  %v926_v7 = vrot.slane %v8923_v18, 2  ;;  %v8927_v11 = vld [vmem:[#allocation62_spill] sm:$0xff] }
  0x7c   : > { %v919_v32 = vrot.slane %v8917_v46, 2  ;;  %8918 = vst [vmem:[#allocation42_spill] sm:$0xff] %v6142_v62  ;;  %v924_v46 = vrot.slane %v8922_v61, 2  ;;  %v918_v34 = vsel %vm821_vm1, %v915_v23, %v917_v31  ;;  %v921_v61 = vrot.slane %v8927_v11, 2  ;;  %v8928_v8 = vld [vmem:[#allocation58_spill] sm:$0xff]  ;;  %v8936_v11 = vld [vmem:[#allocation68_spill] sm:$0xff] }
  0x7d   : > { %4310 = vrot.lane.b32.xlu1 %v6114_v53, %s5401_s7  ;;  %v905_v53 = vsel %vm821_vm1, %v903_v25, %v904_v63  ;;  %8921 = vst [vmem:[#allocation38_spill] sm:$0xff] %v6150_v56  ;;  %v8924_v25 = vld [vmem:[#allocation54_spill] sm:$0xff]  ;;  %v916_v47 = vsel %vm821_vm1, %v913_v48, %v915_v23  ;;  %v922_v18 = vrot.slane %v8928_v8, 2 }
  0x7e   : > { %4305 = vrot.lane.b32.xlu0 %v6124_v41, %s5401_s7  ;;  %v920_v9 = vsel %vm821_vm1, %v917_v31, %v919_v32  ;;  %v8925_v41 = vunpack.c.l.bf16 %v8924_v25  ;;  %v6160_v28 = vpack.i.bf16 %v907_v24, %v905_v53  ;;  %v8930_v25 = vld [vmem:[#allocation63_spill] sm:$0xff]  ;;  %v8931_v24 = vld [vmem:[#allocation64_spill] sm:$0xff] }
  0x7f   : > { %v6168_v31 = vpack.i.bf16 %v920_v9, %v918_v34  ;;  %v933_v53 = vrot.slane %v8930_v25, 2  ;;  %v925_v34 = vsel %vm821_vm1, %v922_v18, %v924_v46  ;;  %v8935_v9 = vld [vmem:[#allocation65_spill] sm:$0xff] }
  0x80   : > { %v928_v63 = vrot.slane %v8925_v41, 2  ;;  %8926 = vst [vmem:[#allocation46_spill] sm:$0xff] %v6160_v28  ;;  %v927_v41 = vsel %vm821_vm1, %v924_v46, %v926_v7  ;;  %v930_v8 = vrot.slane %v8935_v9, 2 }
  0x81   : > { %4320 = vrot.lane.b32.xlu1 %v6132_v1, %s5401_s7  ;;  %v914_v1 = vsel %vm821_vm1, %v912_v51, %v913_v48  ;;  %8929 = vst [vmem:[#allocation45_spill] sm:$0xff] %v6168_v31  ;;  %v8932_v51 = vld [vmem:[#allocation59_spill] sm:$0xff] }
  0x82   : > { %4315 = vrot.lane.b32.xlu0 %v6142_v62, %s5401_s7  ;;  %v929_v32 = vsel %vm821_vm1, %v926_v7, %v928_v63  ;;  %v935_v62 = vrot.slane %v8931_v24, 2  ;;  %v8933_v10 = vunpack.c.l.bf16 %v8932_v51  ;;  %v6178_v48 = vpack.i.bf16 %v916_v47, %v914_v1  ;;  %v8938_v51 = vld [vmem:[#allocation69_spill] sm:$0xff]  ;;  %v8939_v24 = vld [vmem:[#allocation70_spill] sm:$0xff] }
  0x83   : > { %v931_v7 = vrot.slane %v8936_v11, 2  ;;  %v6186_v63 = vpack.i.bf16 %v929_v32, %v927_v41  ;;  %v944_v25 = vrot.slane %v8939_v24, 2  ;;  %v8943_v32 = vld [vmem:[#allocation74_spill] sm:$0xff]  ;;  %v8944_v11 = vld [vmem:[#allocation73_spill] sm:$0xff] }
  0x84   : > { %v937_v23 = vrot.slane %v8933_v10, 2  ;;  %8934 = vst [vmem:[#allocation47_spill] sm:$0xff] %v6178_v48  ;;  %v942_v10 = vrot.slane %v8938_v51, 2  ;;  %v936_v1 = vsel %vm821_vm1, %v933_v53, %v935_v62  ;;  %v939_v51 = vrot.slane %v8943_v32, 2  ;;  %v8952_v32 = vld [vmem:[#allocation81_spill] sm:$0xff] }
  0x85   : > { %4330 = vrot.lane.b32.xlu1 %v6150_v56, %s5401_s7  ;;  %v923_v56 = vsel %vm821_vm1, %v921_v61, %v922_v18  ;;  %8937 = vst [vmem:[#allocation54_spill] sm:$0xff] %v6186_v63  ;;  %v8940_v61 = vld [vmem:[#allocation66_spill] sm:$0xff]  ;;  %v934_v41 = vsel %vm821_vm1, %v931_v7, %v933_v53  ;;  %v940_v24 = vrot.slane %v8944_v11, 2 }
  0x86   : > { %4325 = vrot.lane.b32.xlu0 %v6160_v28, %s5401_s7  ;;  %v938_v47 = vsel %vm821_vm1, %v935_v62, %v937_v23  ;;  %v8941_v28 = vunpack.c.l.bf16 %v8940_v61  ;;  %v6196_v46 = vpack.i.bf16 %v925_v34, %v923_v56  ;;  %v8946_v61 = vld [vmem:[#allocation77_spill] sm:$0xff]  ;;  %v8947_v34 = vld [vmem:[#allocation79_spill] sm:$0xff] }
  0x87   : > { %v6204_v62 = vpack.i.bf16 %v938_v47, %v936_v1  ;;  %v951_v56 = vrot.slane %v8946_v61, 2  ;;  %v943_v1 = vsel %vm821_vm1, %v940_v24, %v942_v10  ;;  %v8951_v47 = vld [vmem:[#allocation80_spill] sm:$0xff] }
  0x88   : > { %v946_v18 = vrot.slane %v8941_v28, 2  ;;  %8942 = vst [vmem:[#allocation59_spill] sm:$0xff] %v6196_v46  ;;  %v945_v28 = vsel %vm821_vm1, %v942_v10, %v944_v25  ;;  %v948_v11 = vrot.slane %v8951_v47, 2 }
  0x89   : > { %4340 = vrot.lane.b32.xlu1 %v6168_v31, %s5401_s7  ;;  %v932_v31 = vsel %vm821_vm1, %v930_v8, %v931_v7  ;;  %8945 = vst [vmem:[#allocation66_spill] sm:$0xff] %v6204_v62  ;;  %v8948_v8 = vld [vmem:[#allocation75_spill] sm:$0xff] }
  0x8a   : > { %4335 = vrot.lane.b32.xlu0 %v6178_v48, %s5401_s7  ;;  %v947_v23 = vsel %vm821_vm1, %v944_v25, %v946_v18  ;;  %v953_v48 = vrot.slane %v8947_v34, 2  ;;  %v8949_v9 = vunpack.c.l.bf16 %v8948_v8  ;;  %v6214_v7 = vpack.i.bf16 %v934_v41, %v932_v31  ;;  %v8954_v8 = vld [vmem:[#allocation82_spill] sm:$0xff] }
  0x8b   : > { %v949_v25 = vrot.slane %v8952_v32, 2  ;;  %v6222_v18 = vpack.i.bf16 %v947_v23, %v945_v28  ;;  %v962_v41 = vrot.slane %v5942_v58, 2 }
  0x8c   : > { %v955_v53 = vrot.slane %v8949_v9, 2  ;;  %8950 = vst [vmem:[#allocation75_spill] sm:$0xff] %v6214_v7  ;;  %v960_v9 = vrot.slane %v8954_v8, 2  ;;  %v954_v34 = vsel %vm821_vm1, %v951_v56, %v953_v48 }
  0x8d   : > { %4350 = vrot.lane.b32.xlu1 %v6186_v63, %s5401_s7  ;;  %v941_v63 = vsel %vm821_vm1, %v939_v51, %v940_v24  ;;  %8953 = vst [vmem:[#allocation81_spill] sm:$0xff] %v6222_v18  ;;  %v8955_v51 = vunpack.c.l.bf16 %v5924_v35  ;;  %v950_v23 = vsel %vm821_vm1, %v948_v11, %v949_v25 }
  0x8e   : > { %4345 = vrot.lane.b32.xlu0 %v6196_v46, %s5401_s7  ;;  %v956_v31 = vsel %vm821_vm1, %v953_v48, %v955_v53  ;;  %v6234_v46 = vpack.i.bf16 %v943_v1, %v941_v63  ;;  %v957_v48 = vrot.slane %v5960_v52, 2  ;;  %v958_v53 = vrot.slane %v5949_v60, 2 }
  0x8f   : > { %v964_v24 = vrot.slane %v8955_v51, 2  ;;  %v6244_v35 = vpack.i.bf16 %v956_v31, %v954_v34  ;;  %v963_v51 = vsel %vm821_vm1, %v960_v9, %v962_v41 }
  0x90   : > { %8957 = vst [vmem:[#allocation102_spill] sm:$0xff] %v6234_v46 }
  0x91   : > { %4360 = vrot.lane.b32.xlu1 %v6204_v62, %s5401_s7  ;;  %v952_v62 = vsel %vm821_vm1, %v949_v25, %v951_v56  ;;  %8959 = vst [vmem:[#allocation104_spill] sm:$0xff] %v6244_v35  ;;  %v965_v63 = vsel %vm821_vm1, %v962_v41, %v964_v24  ;;  %v959_v25 = vsel %vm821_vm1, %v957_v48, %v958_v53 }
  0x92   : > { %4355 = vrot.lane.b32.xlu0 %v6214_v7, %s5401_s7  ;;  %v6232_v10 = vpop.permute.xlu1 %4085  ;;  %v6252_v11 = vpack.i.bf16 %v952_v62, %v950_v23  ;;  %v6260_v34 = vpack.i.bf16 %v965_v63, %v963_v51  ;;  %v4394_v23 = vpack.i.bf16 %v5477_v4, %v5481_v6  ;;  %v6292_v51 = vpack.i.bf16 %v5539_v44, %v5537_v43  ;;  %v8988_v6 = vld [vmem:[#allocation49_spill] sm:$0xff] }
  0x93   : > { %8956 = vst [vmem:[#allocation101_spill] sm:$0xff] %v6232_v10  ;;  %v6236_v28 = vpop.permute.xlu0 %4075  ;;  %v6356_v43 = vpack.i.bf16 %v5664_v55, %v5662_v54  ;;  %v9014_v7 = vld [vmem:[#allocation73_spill] sm:$0xff] }
  0x94   : > { %8958 = vst [vmem:[#allocation103_spill] sm:$0xff] %v6236_v28  ;;  %8961 = vst [vmem:[#allocation106_spill] sm:$0xff] %v6252_v11  ;;  %v961_v28 = vsel %vm821_vm1, %v958_v53, %v960_v9  ;;  %v4399_v9 = vpack.i.bf16 %v5495_v13, %v5479_v5  ;;  %v6404_v5 = vpack.i.bf16 %v8912_v12, %v8911_v14 }
  0x95   : > { %4370 = vrot.lane.b32.xlu1 %v6222_v18, %s5401_s7  ;;  %8963 = vst [vmem:[#allocation108_spill] sm:$0xff] %v6260_v34  ;;  %v6266_v41 = vpack.i.bf16 %v961_v28, %v959_v25  ;;  %v6285_v28 = vpack.i.bf16 %v5532_v40, %v5530_v39  ;;  %8971 = vst [vmem:[#allocation116_spill] sm:$0xff] %v6292_v51  ;;  %v6300_v25 = vpack.i.bf16 %v5559_v57, %v5541_v45  ;;  %v9013_v18 = vld [vmem:[#allocation74_spill] sm:$0xff] }
  0x96   : > { %4365 = vrot.lane.b32.xlu0 %v6234_v46, %s5401_s7  ;;  %v6250_v1 = vpop.permute.xlu1 %4090  ;;  %v6324_v45 = vpack.i.bf16 %v5610_v38, %v5593_v26  ;;  %v6348_v38 = vpack.i.bf16 %v5658_v42, %v5649_v36  ;;  %8981 = vst [vmem:[#allocation126_spill] sm:$0xff] %v6356_v43  ;;  %8987 = vst [vmem:[#allocation132_spill] sm:$0xff] %v6404_v5 }
  0x97   : > { %8960 = vst [vmem:[#allocation105_spill] sm:$0xff] %v6250_v1  ;;  %v6254_v56 = vpop.permute.xlu0 %4080  ;;  %8965 = vst [vmem:[#allocation110_spill] sm:$0xff] %v6266_v41  ;;  %v8992_v1 = vld [vmem:[#allocation53_spill] sm:$0xff] }
  0x98   : > { %8962 = vst [vmem:[#allocation107_spill] sm:$0xff] %v6254_v56  ;;  %8969 = vst [vmem:[#allocation114_spill] sm:$0xff] %v6285_v28  ;;  %v8991_v56 = vld [vmem:[#allocation52_spill] sm:$0xff] }
  0x99   : > { %4380 = vrot.lane.b32.xlu1 %v6244_v35, %s5401_s7  ;;  %8973 = vst [vmem:[#allocation118_spill] sm:$0xff] %v6300_v25  ;;  %8977 = vst [vmem:[#allocation122_spill] sm:$0xff] %v6324_v45 }
  0x9a   : > { %4375 = vrot.lane.b32.xlu0 %v6252_v11, %s5401_s7  ;;  %v6264_v31 = vpop.permute.xlu1 %4100  ;;  %8980 = vst [vmem:[#allocation125_spill] sm:$0xff] %v6348_v38 }
  0x9b   : > { %8964 = vst [vmem:[#allocation109_spill] sm:$0xff] %v6264_v31  ;;  %v6268_v62 = vpop.permute.xlu0 %4095 }
  0x9c   : > { %8966 = vst [vmem:[#allocation111_spill] sm:$0xff] %v6268_v62  ;;  %v6396_v62 = vpack.i.bf16 %v8907_v27, %v8906_v29 }
  0x9d   : > { %4390 = vrot.lane.b32.xlu1 %v6260_v34, %s5401_s7  ;;  %v6316_v34 = vpack.i.bf16 %v5586_v20, %v5584_v19  ;;  %v6340_v20 = vpack.i.bf16 %v5637_v15, %v5639_v16  ;;  %v6364_v15 = vpack.i.bf16 %v5686_v30, %v5675_v33 }
  0x9e   : > { %4385 = vrot.lane.b32.xlu0 %v6266_v41, %s5401_s7  ;;  %v6276_v24 = vpop.permute.xlu1 %4110  ;;  %8986 = vst [vmem:[#allocation131_spill] sm:$0xff] %v6396_v62 }
  0x9f   : > { %8967 = vst [vmem:[#allocation112_spill] sm:$0xff] %v6276_v24  ;;  %v6280_v48 = vpop.permute.xlu0 %4105  ;;  %8976 = vst [vmem:[#allocation121_spill] sm:$0xff] %v6316_v34  ;;  %v6388_v24 = vpack.i.bf16 %v8904_v3, %v8903_v2 }
  0xa0   : > { %8968 = vst [vmem:[#allocation113_spill] sm:$0xff] %v6280_v48  ;;  %8979 = vst [vmem:[#allocation124_spill] sm:$0xff] %v6340_v20 }
  0xa1   : > { %4400 = vrot.lane.b32.xlu1 %v4399_v9, %s5402_s8  ;;  %8982 = vst [vmem:[#allocation127_spill] sm:$0xff] %v6364_v15  ;;  %8985 = vst [vmem:[#allocation130_spill] sm:$0xff] %v6388_v24 }
  0xa2   : > { %4395 = vrot.lane.b32.xlu0 %v4394_v23, %s5402_s8  ;;  %v6288_v53 = vpop.permute.xlu1 %4120  ;;  %v6308_v23 = vpack.i.bf16 %v5568_v0, %v5581_v17  ;;  %v6332_v0 = vpack.i.bf16 %v5616_v50, %v5614_v49 }
  0xa3   : > { %8970 = vst [vmem:[#allocation115_spill] sm:$0xff] %v6288_v53  ;;  %v6294_v63 = vpop.permute.xlu0 %4115  ;;  %v6380_v53 = vpack.i.bf16 %v5714_v59, %v5712_v22 }
  0xa4   : > { %8972 = vst [vmem:[#allocation117_spill] sm:$0xff] %v6294_v63  ;;  %8974 = vst [vmem:[#allocation119_spill] sm:$0xff] %v6308_v23 }
  0xa5   : > { %4410 = vrot.lane.b32.xlu1 %v6285_v28, %s5402_s8  ;;  %8978 = vst [vmem:[#allocation123_spill] sm:$0xff] %v6332_v0  ;;  %8984 = vst [vmem:[#allocation129_spill] sm:$0xff] %v6380_v53 }
  0xa6   : > { %4405 = vrot.lane.b32.xlu0 %v6292_v51, %s5402_s8  ;;  %v6304_v9 = vpop.permute.xlu1 %4130  ;;  %v9010_v51 = vld [vmem:[#allocation70_spill] sm:$0xff] }
  0xa7   : > { %v6310_v41 = vpop.permute.xlu0 %4125 }
  0xa8   : > { %8975 = vst [vmem:[#allocation120_spill] sm:$0xff] %v6310_v41  ;;  %v6372_v41 = vpack.i.bf16 %v5694_v21, %v5709_v37 }
  0xa9   : > { %4420 = vrot.lane.b32.xlu1 %v6300_v25, %s5402_s8  ;;  %v9005_v25 = vld [vmem:[#allocation65_spill] sm:$0xff] }
  0xaa   : > { %4415 = vrot.lane.b32.xlu0 %v6308_v23, %s5402_s8  ;;  %v6320_v35 = vpop.permute.xlu1 %4140  ;;  %8983 = vst [vmem:[#allocation128_spill] sm:$0xff] %v6372_v41  ;;  %v9006_v23 = vld [vmem:[#allocation68_spill] sm:$0xff] }
  0xab   : > { %v6326_v17 = vpop.permute.xlu0 %4135  ;;  %v6452_v28 = vpack.i.bf16 %v9006_v23, %v9005_v25 }
  0xad   : > { %4430 = vrot.lane.b32.xlu1 %v6316_v34, %s5402_s8  ;;  %v9002_v34 = vld [vmem:[#allocation64_spill] sm:$0xff] }
  0xae   : > { %4425 = vrot.lane.b32.xlu0 %v6324_v45, %s5402_s8 }
  0xaf   : > { %v6336_v19 = vpop.permute.xlu1 %4150 }
  0xb0   : > { %v6342_v26 = vpop.permute.xlu0 %4145 }
  0xb1   : > { %4440 = vrot.lane.b32.xlu1 %v6332_v0, %s5402_s8 }
  0xb2   : > { %4435 = vrot.lane.b32.xlu0 %v6340_v20, %s5402_s8 }
  0xb3   : > { %v6352_v57 = vpop.permute.xlu1 %4160 }
  0xb4   : > { %v6358_v16 = vpop.permute.xlu0 %4155 }
  0xb5   : > { %4450 = vrot.lane.b32.xlu1 %v6348_v38, %s5402_s8 }
  0xb6   : > { %4445 = vrot.lane.b32.xlu0 %v6356_v43, %s5402_s8  ;;  %v8998_v43 = vld [vmem:[#allocation58_spill] sm:$0xff] }
  0xb7   : > { %v6368_v44 = vpop.permute.xlu1 %4170  ;;  %9007 = vst [vmem:[#allocation58_spill] sm:$0xff] %v6452_v28 }
  0xb8   : > { %v6374_v63 = vpop.permute.xlu0 %4165 }
  0xb9   : > { %4460 = vrot.lane.b32.xlu1 %v6364_v15, %s5402_s8  ;;  %v8994_v15 = vld [vmem:[#allocation55_spill] sm:$0xff] }
  0xba   : > { %4455 = vrot.lane.b32.xlu0 %v6372_v41, %s5402_s8 }
  0xbb   : > { %v6384_v48 = vpop.permute.xlu1 %4180 }
  0xbc   : > { %v6390_v39 = vpop.permute.xlu0 %4175 }
  0xbd   : > { %4470 = vrot.lane.b32.xlu1 %v6380_v53, %s5402_s8  ;;  %v8989_v53 = vld [vmem:[#allocation51_spill] sm:$0xff] }
  0xbe   : > { %4465 = vrot.lane.b32.xlu0 %v6388_v24, %s5402_s8  ;;  %v6412_v4 = vpack.i.bf16 %v8989_v53, %v8988_v6  ;;  %v6420_v24 = vpack.i.bf16 %v8992_v1, %v8991_v56 }
  0xbf   : > { %v6400_v40 = vpop.permute.xlu1 %4190 }
  0xc0   : > { %v6406_v13 = vpop.permute.xlu0 %4185  ;;  %8990 = vst [vmem:[#allocation49_spill] sm:$0xff] %v6412_v4  ;;  %8993 = vst [vmem:[#allocation51_spill] sm:$0xff] %v6420_v24 }
  0xc1   : > { %4480 = vrot.lane.b32.xlu1 %v6396_v62, %s5402_s8  ;;  %v8995_v62 = vld [vmem:[#allocation57_spill] sm:$0xff] }
  0xc2   : > { %4475 = vrot.lane.b32.xlu0 %v6404_v5, %s5402_s8  ;;  %v6428_v41 = vpack.i.bf16 %v8995_v62, %v8994_v15  ;;  %v8997_v5 = vld [vmem:[#allocation62_spill] sm:$0xff] }
  0xc3   : > { %v6416_v31 = vpop.permute.xlu1 %4200  ;;  %v6436_v0 = vpack.i.bf16 %v8998_v43, %v8997_v5 }
  0xc4   : > { %v6422_v10 = vpop.permute.xlu0 %4195  ;;  %8996 = vst [vmem:[#allocation52_spill] sm:$0xff] %v6428_v41 }
  0xc5   : > { %4490 = vrot.lane.b32.xlu1 %v6412_v4, %s5402_s8  ;;  %8999 = vst [vmem:[#allocation53_spill] sm:$0xff] %v6436_v0  ;;  %v9001_v4 = vld [vmem:[#allocation63_spill] sm:$0xff] }
  0xc6   : > { %4485 = vrot.lane.b32.xlu0 %v6420_v24, %s5402_s8  ;;  %v6444_v45 = vpack.i.bf16 %v9002_v34, %v9001_v4 }
  0xc7   : > { %v6432_v38 = vpop.permute.xlu1 %4210 }
  0xc8   : > { %v6438_v20 = vpop.permute.xlu0 %4205  ;;  %9003 = vst [vmem:[#allocation57_spill] sm:$0xff] %v6444_v45 }
  0xc9   : > { %9000 = vst [vmem:[#allocation55_spill] sm:$0xff] %v6438_v20  ;;  %4500 = vrot.lane.b32.xlu1 %v6428_v41, %s5402_s8  ;;  %v9009_v41 = vld [vmem:[#allocation69_spill] sm:$0xff] }
  0xca   : > { %4495 = vrot.lane.b32.xlu0 %v6436_v0, %s5402_s8  ;;  %v6460_v46 = vpack.i.bf16 %v9010_v51, %v9009_v41  ;;  %v3899_v41 = vld [vmem:[%s5471_s5 + $0x148] sm:$0xff]  }
  0xcb   : > { %v6448_v24 = vpop.permute.xlu1 %4220 }
  0xcc   : > { %9004 = vst [vmem:[#allocation62_spill] sm:$0xff] %v6448_v24  ;;  %v6454_v11 = vpop.permute.xlu0 %4215  ;;  %9011 = vst [vmem:[#allocation64_spill] sm:$0xff] %v6460_v46  ;;  %v6468_v24 = vpack.i.bf16 %v9014_v7, %v9013_v18  ;;  %v3898_v18 = vld [vmem:[%s5471_s5 + $0x140] sm:$0xff]  }
  0xcd   : > { %9008 = vst [vmem:[#allocation63_spill] sm:$0xff] %v6454_v11  ;;  %4510 = vrot.lane.b32.xlu1 %v6444_v45, %s5402_s8  ;;  %v9017_v45 = vld [vmem:[#allocation79_spill] sm:$0xff] }
  0xce   : > { %4505 = vrot.lane.b32.xlu0 %v6452_v28, %s5402_s8  ;;  %9015 = vst [vmem:[#allocation68_spill] sm:$0xff] %v6468_v24  ;;  %v6476_v11 = vpack.i.bf16 %v9017_v45, %v8946_v61  ;;  %v6498_v61 = vunpack.c.h.bf16 %v3899_v41 }
  0xcf   : > { %v6464_v0 = vpop.permute.xlu1 %4230 }
  0xd0   : > { %9012 = vst [vmem:[#allocation65_spill] sm:$0xff] %v6464_v0  ;;  %v6470_v20 = vpop.permute.xlu0 %4225  ;;  %9018 = vst [vmem:[#allocation79_spill] sm:$0xff] %v6476_v11  ;;  %v6485_v0 = vpack.i.bf16 %v8952_v32, %v8951_v47 }
  0xd1   : > { %9016 = vst [vmem:[#allocation70_spill] sm:$0xff] %v6470_v20  ;;  %4520 = vrot.lane.b32.xlu1 %v6460_v46, %s5402_s8  ;;  %v6494_v46 = vpack.i.bf16 %v5942_v58, %v8954_v8  ;;  %v6496_v20 = vunpack.c.l.bf16 %v3899_v41  ;;  %9024 = vst [vmem:[#allocation138_spill] sm:$0xff] %v6498_v61 }
  0xd2   : > { %4515 = vrot.lane.b32.xlu0 %v6468_v24, %s5402_s8  ;;  %9020 = vst [vmem:[#allocation134_spill] sm:$0xff] %v6485_v0 }
  0xd3   : > { %v6481_v28 = vpop.permute.xlu1 %4240  ;;  %9022 = vst [vmem:[#allocation136_spill] sm:$0xff] %v6494_v46  ;;  %9023 = vst [vmem:[#allocation137_spill] sm:$0xff] %v6496_v20  ;;  %v6518_v41 = vpack.i.bf16 %v6498_v61, %v6496_v20  ;;  %v6563_v61 = vld [vmem:[%s5471_s5 + $0x150] sm:$0x1] }
  0xd4   : > { %9019 = vst [vmem:[#allocation133_spill] sm:$0xff] %v6481_v28  ;;  %v6488_v7 = vpop.permute.xlu0 %4235  ;;  %v6506_v28 = vpack.i.bf16 %v5949_v60, %v5960_v52  ;;  %v4143_v60 = vunpack.i.h.bf16 %v6320_v35  ;;  %9044 = vst [vmem:[#allocation151_spill] sm:$0xff] %v6563_v61 }
  0xd5   : > { %9021 = vst [vmem:[#allocation135_spill] sm:$0xff] %v6488_v7  ;;  %4530 = vrot.lane.b32.xlu1 %v6476_v11, %s5402_s8  ;;  %v6508_v7 = vunpack.c.l.bf16 %v3898_v18  ;;  %v6510_v11 = vunpack.c.h.bf16 %v3898_v18  ;;  %9030 = vst [vmem:[#allocation144_spill] sm:$0xff] %v6518_v41 }
  0xd6   : > { %4525 = vrot.lane.b32.xlu0 %v6485_v0, %s5402_s8  ;;  %9026 = vst [vmem:[#allocation140_spill] sm:$0xff] %v6506_v28 }
  0xd7   : > { %v6502_v24 = vpop.permute.xlu1 %4250  ;;  %9027 = vst [vmem:[#allocation141_spill] sm:$0xff] %v6508_v7  ;;  %9028 = vst [vmem:[#allocation142_spill] sm:$0xff] %v6510_v11 }
  0xd8   : > { %9025 = vst [vmem:[#allocation139_spill] sm:$0xff] %v6502_v24  ;;  %v6512_v47 = vpop.permute.xlu0 %4245  ;;  %v6526_v24 = vpack.i.bf16 %v6510_v11, %v6508_v7 }
  0xd9   : > { %9029 = vst [vmem:[#allocation143_spill] sm:$0xff] %v6512_v47  ;;  %4540 = vrot.lane.b32.xlu1 %v6494_v46, %s5402_s8 }
  0xda   : > { %4535 = vrot.lane.b32.xlu0 %v6506_v28, %s5402_s8  ;;  %9032 = vst [vmem:[#allocation146_spill] sm:$0xff] %v6526_v24  ;;  %v9036_v28 = vld [vmem:[#allocation16_spill] sm:$0xff] }
  0xdb   : > { %v6522_v0 = vpop.permute.xlu1 %4260 }
  0xdc   : > { %9031 = vst [vmem:[#allocation145_spill] sm:$0xff] %v6522_v0  ;;  %v6528_v18 = vpop.permute.xlu0 %4255  ;;  %v9037_v0 = vld [vmem:[#allocation10_spill] sm:$0xff] }
  0xdd   : > { %9033 = vst [vmem:[#allocation147_spill] sm:$0xff] %v6528_v18  ;;  %4550 = vrot.lane.b32.xlu1 %v6518_v41, %s5402_s8  ;;  %v4133_v41 = vunpack.i.h.bf16 %v6304_v9 }
  0xde   : > { %4545 = vrot.lane.b32.xlu0 %v6526_v24, %s5402_s8  ;;  %v4132_v24 = vunpack.i.l.bf16 %v6304_v9  ;;  %v4142_v9 = vunpack.i.l.bf16 %v6320_v35 }
  0xdf   : > { %v6534_v46 = vpop.permute.xlu1 %4270 }
  0xe0   : > { %9034 = vst [vmem:[#allocation148_spill] sm:$0xff] %v6534_v46  ;;  %v6536_v47 = vpop.permute.xlu0 %4265  ;;  %v9041_v46 = vld [vmem:[#allocation20_spill] sm:$0xff] }
  0xe1   : > { %9035 = vst [vmem:[#allocation149_spill] sm:$0xff] %v6536_v47  ;;  %4560 = vrot.lane.b32.xlu1 %v9036_v28, %s5403_s9  ;;  %v9040_v47 = vld [vmem:[#allocation19_spill] sm:$0xff] }
  0xe2   : > { %4555 = vrot.lane.b32.xlu0 %v9037_v0, %s5403_s9  ;;  %v2380_v0 = vsel %vm2356_vm2, %v5616_v50, %v4133_v41  ;;  %v4138_v50 = vunpack.i.h.bf16 %v6326_v17 }
  0xe3   : > { %v6542_v18 = vpop.permute.xlu1 %4280 }
  0xe4   : > { %9038 = vst [vmem:[#allocation16_spill] sm:$0xff] %v6542_v18  ;;  %v6546_v11 = vpop.permute.xlu0 %4275  ;;  %v2379_v18 = vsel %vm2356_vm2, %v5614_v49, %v4132_v24  ;;  %v4137_v49 = vunpack.i.l.bf16 %v6326_v17  ;;  %v9046_v24 = vld [vmem:[#allocation27_spill] sm:$0xff]  ;;  %v4152_v17 = vunpack.i.l.bf16 %v6336_v19 }
  0xe5   : > { %9039 = vst [vmem:[#allocation10_spill] sm:$0xff] %v6546_v11  ;;  %4570 = vrot.lane.b32.xlu1 %v9040_v47, %s5403_s9  ;;  %v9043_v47 = vld [vmem:[#allocation25_spill] sm:$0xff] }
  0xe6   : > { %4565 = vrot.lane.b32.xlu0 %v9041_v46, %s5403_s9 }
  0xe7   : > { %v4291_v28 = vpop.permute.xlu1 %4290 }
  0xe8   : > { %v4293_v7 = vunpack.i.h.bf16 %v4291_v28  ;;  %v4292_v52 = vunpack.i.l.bf16 %v4291_v28  ;;  %v6558_v11 = vpop.permute.xlu0 %4285 }
  0xe9   : > { %9042 = vst [vmem:[#allocation150_spill] sm:$0xff] %v6558_v11  ;;  %4580 = vrot.lane.b32.xlu1 %v9043_v47, %s5403_s9 }
  0xea   : > { %v6566_v46 = vsel %vm2421_vm3, %v2380_v0, %v4293_v7  ;;  %v6569_v28 = vsel %vm2421_vm3, %v2379_v18, %v4292_v52  ;;  %4575 = vrot.lane.b32.xlu0 %v9046_v24, %s5403_s9  ;;  %v2384_v7 = vsel %vm2356_vm2, %v5658_v42, %v4143_v60  ;;  %v2383_v52 = vsel %vm2356_vm2, %v5649_v36, %v4142_v9  ;;  %v9047_v24 = vld [vmem:[#allocation28_spill] sm:$0xff]  ;;  %v9048_v9 = vld [vmem:[#allocation31_spill] sm:$0xff] }
  0xeb   : > { %9045 = vst [vmem:[#allocation152_spill] sm:$0xff] %v6566_v46  ;;  %v4301_v35 = vpop.permute.xlu1 %4300  ;;  %v4153_v18 = vunpack.i.h.bf16 %v6336_v19  ;;  %v2382_v42 = vsel %vm2356_vm2, %v5664_v55, %v4138_v50  ;;  %v2381_v36 = vsel %vm2356_vm2, %v5662_v54, %v4137_v49  ;;  %v4148_v19 = vunpack.i.h.bf16 %v6342_v26 }
  0xec   : > { %v4303_v41 = vunpack.i.h.bf16 %v4301_v35  ;;  %v4302_v11 = vunpack.i.l.bf16 %v4301_v35  ;;  %v4296_v0 = vpop.permute.xlu0 %4295  ;;  %v4147_v60 = vunpack.i.l.bf16 %v6342_v26  ;;  %v2387_v54 = vsel %vm2356_vm2, %v5675_v33, %v4152_v17  ;;  %v9050_v17 = vld [vmem:[#allocation33_spill] sm:$0xff] }
  0xed   : > { %4590 = vrot.lane.b32.xlu1 %v9047_v24, %s5403_s9  ;;  %v4298_v8 = vunpack.i.h.bf16 %v4296_v0  ;;  %v4297_v46 = vunpack.i.l.bf16 %v4296_v0  ;;  %v2388_v55 = vsel %vm2356_vm2, %v5686_v30, %v4153_v18  ;;  %v4163_v26 = vunpack.i.h.bf16 %v6352_v57  ;;  %v9049_v24 = vld [vmem:[#allocation32_spill] sm:$0xff] }
  0xee   : > { %v6586_v35 = vsel %vm2421_vm3, %v2384_v7, %v4303_v41  ;;  %v6589_v47 = vsel %vm2421_vm3, %v2383_v52, %v4302_v11  ;;  %4585 = vrot.lane.b32.xlu0 %v9048_v9, %s5403_s9  ;;  %v4162_v50 = vunpack.i.l.bf16 %v6352_v57  ;;  %v2386_v30 = vsel %vm2356_vm2, %v5694_v21, %v4148_v19 }
  0xef   : > { %v4311_v41 = vpop.permute.xlu1 %4310  ;;  %v6600_v7 = vsel %vm2421_vm3, %v2381_v36, %v4297_v46  ;;  %v6603_v11 = vsel %vm2421_vm3, %v2382_v42, %v4298_v8  ;;  %v2385_v33 = vsel %vm2356_vm2, %v5709_v37, %v4147_v60  ;;  %v4158_v57 = vunpack.i.h.bf16 %v6358_v16 }
  0xf0   : > { %v4313_v52 = vunpack.i.h.bf16 %v4311_v41  ;;  %v4312_v0 = vunpack.i.l.bf16 %v4311_v41  ;;  %v4306_v49 = vpop.permute.xlu0 %4305  ;;  %v4157_v18 = vunpack.i.l.bf16 %v6358_v16  ;;  %v2392_v21 = vsel %vm2356_vm2, %v5714_v59, %v4163_v26 }
  0xf1   : > { %4600 = vrot.lane.b32.xlu1 %v9049_v24, %s5403_s9  ;;  %v4308_v42 = vunpack.i.h.bf16 %v4306_v49  ;;  %v4307_v36 = vunpack.i.l.bf16 %v4306_v49  ;;  %v2391_v37 = vsel %vm2356_vm2, %v5712_v22, %v4162_v50  ;;  %v4173_v16 = vunpack.i.h.bf16 %v6368_v44  ;;  %v9051_v49 = vld [vmem:[#allocation35_spill] sm:$0xff]  ;;  %v9052_v50 = vld [vmem:[#allocation36_spill] sm:$0xff] }
  0xf2   : > { %v6614_v46 = vsel %vm2421_vm3, %v2388_v55, %v4313_v52  ;;  %v6617_v8 = vsel %vm2421_vm3, %v2387_v54, %v4312_v0  ;;  %4595 = vrot.lane.b32.xlu0 %v9050_v17, %s5403_s9  ;;  %v4172_v19 = vunpack.i.l.bf16 %v6368_v44  ;;  %v2390_v59 = vsel %vm2356_vm2, %v8904_v3, %v4158_v57 }
  0xf3   : > { %v4321_v41 = vpop.permute.xlu1 %4320  ;;  %v6628_v52 = vsel %vm2421_vm3, %v2385_v33, %v4307_v36  ;;  %v6631_v0 = vsel %vm2421_vm3, %v2386_v30, %v4308_v42  ;;  %v2389_v22 = vsel %vm2356_vm2, %v8903_v2, %v4157_v18  ;;  %v4168_v44 = vunpack.i.h.bf16 %v6374_v63 }
  0xf4   : > { %v4323_v55 = vunpack.i.h.bf16 %v4321_v41  ;;  %v4322_v54 = vunpack.i.l.bf16 %v4321_v41  ;;  %v4316_v60 = vpop.permute.xlu0 %4315  ;;  %v4167_v26 = vunpack.i.l.bf16 %v6374_v63  ;;  %v2396_v3 = vsel %vm2356_vm2, %v8907_v27, %v4173_v16 }
  0xf5   : > { %4610 = vrot.lane.b32.xlu1 %v9051_v49, %s5403_s9  ;;  %v4318_v30 = vunpack.i.h.bf16 %v4316_v60  ;;  %v4317_v33 = vunpack.i.l.bf16 %v4316_v60  ;;  %v2395_v2 = vsel %vm2356_vm2, %v8906_v29, %v4172_v19  ;;  %v4183_v63 = vunpack.i.h.bf16 %v6384_v48  ;;  %v9053_v60 = vld [vmem:[#allocation39_spill] sm:$0xff] }
  0xf6   : > { %v6642_v36 = vsel %vm2421_vm3, %v2392_v21, %v4323_v55  ;;  %v6645_v42 = vsel %vm2421_vm3, %v2391_v37, %v4322_v54  ;;  %4605 = vrot.lane.b32.xlu0 %v9052_v50, %s5403_s9  ;;  %v4182_v57 = vunpack.i.l.bf16 %v6384_v48  ;;  %v2394_v27 = vsel %vm2356_vm2, %v8912_v12, %v4168_v44  ;;  %v9054_v19 = vld [vmem:[#allocation43_spill] sm:$0xff] }
  0xf7   : > { %v4331_v41 = vpop.permute.xlu1 %4330  ;;  %v6656_v55 = vsel %vm2421_vm3, %v2389_v22, %v4317_v33  ;;  %v6659_v54 = vsel %vm2421_vm3, %v2390_v59, %v4318_v30  ;;  %v2393_v29 = vsel %vm2356_vm2, %v8911_v14, %v4167_v26  ;;  %v4178_v48 = vunpack.i.h.bf16 %v6390_v39  ;;  %v9113_v49 = vld [vmem:[#allocation99_spill] sm:$0xff] }
  0xf8   : > { %v4333_v21 = vunpack.i.h.bf16 %v4331_v41  ;;  %v4332_v37 = vunpack.i.l.bf16 %v4331_v41  ;;  %v4326_v18 = vpop.permute.xlu0 %4325  ;;  %v4177_v16 = vunpack.i.l.bf16 %v6390_v39  ;;  %v2400_v12 = vsel %vm2356_vm2, %v8989_v53, %v4183_v63 }
  0xf9   : > { %4620 = vrot.lane.b32.xlu1 %v9053_v60, %s5403_s9  ;;  %v4328_v59 = vunpack.i.h.bf16 %v4326_v18  ;;  %v4327_v22 = vunpack.i.l.bf16 %v4326_v18  ;;  %v2399_v14 = vsel %vm2356_vm2, %v8988_v6, %v4182_v57  ;;  %v4193_v39 = vunpack.i.h.bf16 %v6400_v40  ;;  %v9055_v18 = vld [vmem:[#allocation44_spill] sm:$0xff] }
  0xfa   : > { %v6670_v33 = vsel %vm2421_vm3, %v2396_v3, %v4333_v21  ;;  %v6673_v30 = vsel %vm2421_vm3, %v2395_v2, %v4332_v37  ;;  %4615 = vrot.lane.b32.xlu0 %v9054_v19, %s5403_s9  ;;  %v4192_v44 = vunpack.i.l.bf16 %v6400_v40  ;;  %v2398_v53 = vsel %vm2356_vm2, %v8992_v1, %v4178_v48  ;;  %v9056_v57 = vld [vmem:[#allocation48_spill] sm:$0xff] }
  0xfb   : > { %v4341_v41 = vpop.permute.xlu1 %4340  ;;  %v6684_v21 = vsel %vm2421_vm3, %v2393_v29, %v4327_v22  ;;  %v6687_v37 = vsel %vm2421_vm3, %v2394_v27, %v4328_v59  ;;  %v2397_v6 = vsel %vm2356_vm2, %v8991_v56, %v4177_v16  ;;  %v4188_v40 = vunpack.i.h.bf16 %v6406_v13 }
  0xfc   : > { %v4343_v3 = vunpack.i.h.bf16 %v4341_v41  ;;  %v4342_v2 = vunpack.i.l.bf16 %v4341_v41  ;;  %v4336_v26 = vpop.permute.xlu0 %4335  ;;  %v4187_v63 = vunpack.i.l.bf16 %v6406_v13  ;;  %v2404_v1 = vsel %vm2356_vm2, %v8995_v62, %v4193_v39 }
  0xfd   : > { %4630 = vrot.lane.b32.xlu1 %v9055_v18, %s5403_s9  ;;  %v4338_v27 = vunpack.i.h.bf16 %v4336_v26  ;;  %v4337_v29 = vunpack.i.l.bf16 %v4336_v26  ;;  %v2403_v56 = vsel %vm2356_vm2, %v8994_v15, %v4192_v44  ;;  %v4203_v13 = vunpack.i.h.bf16 %v6416_v31  ;;  %v9057_v26 = vld [vmem:[#allocation50_spill] sm:$0xff]  ;;  %v9058_v44 = vld [vmem:[#allocation56_spill] sm:$0xff] }
  0xfe   : > { %v6698_v22 = vsel %vm2421_vm3, %v2400_v12, %v4343_v3  ;;  %v6701_v59 = vsel %vm2421_vm3, %v2399_v14, %v4342_v2  ;;  %4625 = vrot.lane.b32.xlu0 %v9056_v57, %s5403_s9  ;;  %v4202_v48 = vunpack.i.l.bf16 %v6416_v31  ;;  %v2402_v62 = vsel %vm2356_vm2, %v8998_v43, %v4188_v40  ;;  %v9071_v57 = vld [vmem:[#allocation72_spill] sm:$0xff] }
  0xff   : > { %v4351_v41 = vpop.permute.xlu1 %4350  ;;  %v6712_v3 = vsel %vm2421_vm3, %v2397_v6, %v4337_v29  ;;  %v6715_v2 = vsel %vm2421_vm3, %v2398_v53, %v4338_v27  ;;  %v2401_v15 = vsel %vm2356_vm2, %v8997_v5, %v4187_v63  ;;  %v4198_v31 = vunpack.i.h.bf16 %v6422_v10 }
 0x100   : > { %v4353_v12 = vunpack.i.h.bf16 %v4351_v41  ;;  %v4352_v14 = vunpack.i.l.bf16 %v4351_v41  ;;  %v4346_v16 = vpop.permute.xlu0 %4345  ;;  %v4197_v39 = vunpack.i.l.bf16 %v6422_v10  ;;  %v2408_v43 = vsel %vm2356_vm2, %v9002_v34, %v4203_v13  ;;  %v9060_v13 = vld [vmem:[#allocation55_spill] sm:$0xff] }
 0x101   : > { %4640 = vrot.lane.b32.xlu1 %v9057_v26, %s5403_s9  ;;  %v4348_v53 = vunpack.i.h.bf16 %v4346_v16  ;;  %v4347_v6 = vunpack.i.l.bf16 %v4346_v16  ;;  %v2407_v5 = vsel %vm2356_vm2, %v9001_v4, %v4202_v48  ;;  %v4213_v10 = vunpack.i.h.bf16 %v6432_v38  ;;  %v9059_v16 = vld [vmem:[#allocation60_spill] sm:$0xff]  ;;  %v9064_v26 = vld [vmem:[#allocation67_spill] sm:$0xff] }
 0x102   : > { %v6726_v29 = vsel %vm2421_vm3, %v2404_v1, %v4353_v12  ;;  %v6729_v27 = vsel %vm2421_vm3, %v2403_v56, %v4352_v14  ;;  %4635 = vrot.lane.b32.xlu0 %v9058_v44, %s5403_s9  ;;  %v4212_v40 = vunpack.i.l.bf16 %v6432_v38  ;;  %v2406_v34 = vsel %vm2356_vm2, %v9006_v23, %v4198_v31 }
 0x103   : > { %v4361_v41 = vpop.permute.xlu1 %4360  ;;  %v6740_v12 = vsel %vm2421_vm3, %v2401_v15, %v4347_v6  ;;  %v6743_v14 = vsel %vm2421_vm3, %v2402_v62, %v4348_v53  ;;  %v2405_v4 = vsel %vm2356_vm2, %v9005_v25, %v4197_v39  ;;  %v4208_v38 = vunpack.i.h.bf16 %v9060_v13  ;;  %v9062_v25 = vld [vmem:[#allocation69_spill] sm:$0xff]  ;;  %v9063_v39 = vld [vmem:[#allocation62_spill] sm:$0xff] }
 0x104   : > { %v4363_v1 = vunpack.i.h.bf16 %v4361_v41  ;;  %v4362_v56 = vunpack.i.l.bf16 %v4361_v41  ;;  %v4356_v63 = vpop.permute.xlu0 %4355  ;;  %v4207_v48 = vunpack.i.l.bf16 %v9060_v13  ;;  %v9061_v41 = vld [vmem:[#allocation61_spill] sm:$0xff]  ;;  %v2412_v23 = vsel %vm2356_vm2, %v9010_v51, %v4213_v10 }
 0x105   : > { %4650 = vrot.lane.b32.xlu1 %v9059_v16, %s5403_s9  ;;  %v4358_v62 = vunpack.i.h.bf16 %v4356_v63  ;;  %v4357_v15 = vunpack.i.l.bf16 %v4356_v63  ;;  %v2411_v31 = vsel %vm2356_vm2, %v9062_v25, %v4212_v40  ;;  %v4223_v13 = vunpack.i.h.bf16 %v9063_v39  ;;  %v9065_v51 = vld [vmem:[#allocation73_spill] sm:$0xff]  ;;  %v9066_v40 = vld [vmem:[#allocation74_spill] sm:$0xff]  ;;  %v9067_v25 = vld [vmem:[#allocation63_spill] sm:$0xff] }
 0x106   : > { %v6754_v6 = vsel %vm2421_vm3, %v2408_v43, %v4363_v1  ;;  %v6757_v53 = vsel %vm2421_vm3, %v2407_v5, %v4362_v56  ;;  %4645 = vrot.lane.b32.xlu0 %v9061_v41, %s5403_s9  ;;  %v4222_v16 = vunpack.i.l.bf16 %v9063_v39  ;;  %v2410_v10 = vsel %vm2356_vm2, %v9065_v51, %v4208_v38 }
 0x107   : > { %v4371_v1 = vpop.permute.xlu1 %4370  ;;  %v6768_v43 = vsel %vm2421_vm3, %v2405_v4, %v4357_v15  ;;  %v6771_v56 = vsel %vm2421_vm3, %v2406_v34, %v4358_v62  ;;  %v4218_v39 = vunpack.i.h.bf16 %v9067_v25  ;;  %v4217_v44 = vunpack.i.l.bf16 %v9067_v25 }
 0x108   : > { %v4373_v5 = vunpack.i.h.bf16 %v4371_v1  ;;  %v4372_v63 = vunpack.i.l.bf16 %v4371_v1  ;;  %v4366_v41 = vpop.permute.xlu0 %4365  ;;  %v2409_v1 = vsel %vm2356_vm2, %v9066_v40, %v4207_v48  ;;  %v2416_v38 = vsel %vm2356_vm2, %v9017_v45, %v4223_v13  ;;  %v9069_v48 = vld [vmem:[#allocation77_spill] sm:$0xff] }
 0x109   : > { %4660 = vrot.lane.b32.xlu1 %v9064_v26, %s5403_s9  ;;  %v4368_v34 = vunpack.i.h.bf16 %v4366_v41  ;;  %v4367_v4 = vunpack.i.l.bf16 %v4366_v41  ;;  %v9068_v26 = vld [vmem:[#allocation71_spill] sm:$0xff]  ;;  %v2415_v51 = vsel %vm2356_vm2, %v9069_v48, %v4222_v16  ;;  %v9070_v40 = vld [vmem:[#allocation65_spill] sm:$0xff]  ;;  %v2414_v45 = vsel %vm2356_vm2, %v8952_v32, %v4218_v39  ;;  %v9072_v16 = vld [vmem:[#allocation80_spill] sm:$0xff] }
 0x10a   : > { %v6782_v15 = vsel %vm2421_vm3, %v2412_v23, %v4373_v5  ;;  %v6785_v62 = vsel %vm2421_vm3, %v2411_v31, %v4372_v63  ;;  %4655 = vrot.lane.b32.xlu0 %v9068_v26, %s5403_s9  ;;  %v4233_v25 = vunpack.i.h.bf16 %v9070_v40  ;;  %v4232_v18 = vunpack.i.l.bf16 %v9070_v40 }
 0x10b   : > { %v4381_v5 = vpop.permute.xlu1 %4380  ;;  %v6796_v23 = vsel %vm2421_vm3, %v2409_v1, %v4367_v4  ;;  %v6799_v63 = vsel %vm2421_vm3, %v2410_v10, %v4368_v34  ;;  %v2413_v13 = vsel %vm2356_vm2, %v9072_v16, %v4217_v44  ;;  %v9075_v44 = vld [vmem:[#allocation82_spill] sm:$0xff] }
 0x10c   : > { %v4383_v41 = vunpack.i.h.bf16 %v4381_v5  ;;  %v4382_v31 = vunpack.i.l.bf16 %v4381_v5  ;;  %v4376_v26 = vpop.permute.xlu0 %4375  ;;  %v9073_v5 = vld [vmem:[#allocation70_spill] sm:$0xff]  ;;  %v2420_v32 = vsel %vm2356_vm2, %v5942_v58, %v4233_v25  ;;  %v2419_v39 = vsel %vm2356_vm2, %v9075_v44, %v4232_v18  ;;  %v9079_v25 = vld [vmem:[#allocation84_spill] sm:$0xff]  ;;  %v9080_v44 = vld [vmem:[#allocation87_spill] sm:$0xff] }
 0x10d   : > { %4670 = vrot.lane.b32.xlu1 %v9071_v57, %s5403_s9  ;;  %v4378_v10 = vunpack.i.h.bf16 %v4376_v26  ;;  %v4377_v1 = vunpack.i.l.bf16 %v4376_v26  ;;  %v4228_v48 = vunpack.i.h.bf16 %v9073_v5  ;;  %v4227_v40 = vunpack.i.l.bf16 %v9073_v5  ;;  %v9074_v57 = vld [vmem:[#allocation76_spill] sm:$0xff]  ;;  %v9076_v5 = vld [vmem:[#allocation78_spill] sm:$0xff] }
 0x10e   : > { %v6810_v4 = vsel %vm2421_vm3, %v2416_v38, %v4383_v41  ;;  %v6813_v34 = vsel %vm2421_vm3, %v2415_v51, %v4382_v31  ;;  %4665 = vrot.lane.b32.xlu0 %v9074_v57, %s5403_s9  ;;  %v9077_v57 = vld [vmem:[#allocation138_spill] sm:$0xff] }
 0x10f   : > { %v4391_v41 = vpop.permute.xlu1 %4390  ;;  %v6824_v38 = vsel %vm2421_vm3, %v2413_v13, %v4377_v1  ;;  %v6827_v31 = vsel %vm2421_vm3, %v2414_v45, %v4378_v10  ;;  %v1360_v60 = vrot.slane %v9077_v57, 1  ;;  %v9078_v1 = vunpack.c.l.bf16 %v6563_v61 }
 0x110   : > { %v4393_v26 = vunpack.i.h.bf16 %v4391_v41  ;;  %v4392_v51 = vunpack.i.l.bf16 %v4391_v41  ;;  %v4386_v16 = vpop.permute.xlu0 %4385  ;;  %v2418_v18 = vsel %vm2356_vm2, %v9079_v25, %v4228_v48  ;;  %v2417_v19 = vsel %vm2356_vm2, %v9080_v44, %v4227_v40  ;;  %v9086_v48 = vld [vmem:[#allocation85_spill] sm:$0xff] }
 0x111   : > { %4680 = vrot.lane.b32.xlu1 %v9076_v5, %s5403_s9  ;;  %v1362_v13 = vrot.slane %v9078_v1, 1  ;;  %v4388_v41 = vunpack.i.h.bf16 %v4386_v16  ;;  %v4387_v58 = vunpack.i.l.bf16 %v4386_v16  ;;  %v9081_v5 = vld [vmem:[#allocation83_spill] sm:$0xff]  ;;  %v9087_v40 = vrot.slane %v6496_v20, 1 }
 0x112   : > { %v6839_v10 = vsel %vm2421_vm3, %v2420_v32, %v4393_v26  ;;  %v6842_v45 = vsel %vm2421_vm3, %v2419_v39, %v4392_v51  ;;  %4675 = vrot.lane.b32.xlu0 %v9081_v5, %s5403_s9  ;;  %v9083_v51 = vld [vmem:[#allocation141_spill] sm:$0xff]  ;;  %v9084_v39 = vld [vmem:[#allocation142_spill] sm:$0xff] }
 0x113   : > { %v6850_v57 = vpop.permute.xlu1 %4400  ;;  %v6853_v1 = vsel %vm2421_vm3, %v2417_v19, %v4387_v58  ;;  %v6856_v26 = vsel %vm2421_vm3, %v2418_v18, %v4388_v41  ;;  %v1355_v32 = vrot.slane %v9083_v51, 1  ;;  %v1356_v16 = vrot.slane %v9084_v39, 1  ;;  %v9088_v19 = vld [vmem:[#allocation86_spill] sm:$0xff] }
 0x114   : > { %9082 = vst [vmem:[#allocation31_spill] sm:$0xff] %v6850_v57  ;;  %v6860_v61 = vpop.permute.xlu0 %4395  ;;  %v1361_v25 = vsel %vm484_vm0, %v9087_v40, %v1360_v60  ;;  %v1363_v44 = vsel %vm484_vm0, %v1360_v60, %v1362_v13  ;;  %v9090_v18 = vmov %v9087_v40  ;;  %v9094_v60 = vld [vmem:[#allocation89_spill] sm:$0xff] }
 0x115   : > { %9085 = vst [vmem:[#allocation32_spill] sm:$0xff] %v6860_v61  ;;  %4690 = vrot.lane.b32.xlu1 %v9086_v48, %s5403_s9  ;;  %v1357_v58 = vsel %vm484_vm0, %v1355_v32, %v1356_v16  ;;  %v1359_v39 = vsel %vm484_vm0, %v1356_v16, %v9090_v18  ;;  %v9092_v48 = vld [vmem:[#allocation88_spill] sm:$0xff]  ;;  %v6880_v5 = vpack.i.bf16 %v1363_v44, %v1361_v25  ;;  %v9100_v25 = vld [vmem:[#allocation90_spill] sm:$0xff]  ;;  %v9101_v44 = vld [vmem:[#allocation91_spill] sm:$0xff] }
 0x116   : > { %4685 = vrot.lane.b32.xlu0 %v9088_v19, %s5403_s9  ;;  %v6886_v40 = vpack.i.bf16 %v1359_v39, %v1357_v58  ;;  %v9104_v18 = vld [vmem:[#allocation92_spill] sm:$0xff] }
 0x117   : > { %v6870_v41 = vpop.permute.xlu1 %4410  ;;  %9093 = vst [vmem:[#allocation69_spill] sm:$0xff] %v6880_v5 }
 0x118   : > { %9089 = vst [vmem:[#allocation33_spill] sm:$0xff] %v6870_v41  ;;  %v6876_v51 = vpop.permute.xlu0 %4405  ;;  %9096 = vst [vmem:[#allocation73_spill] sm:$0xff] %v6886_v40 }
 0x119   : > { %9091 = vst [vmem:[#allocation55_spill] sm:$0xff] %v6876_v51  ;;  %4700 = vrot.lane.b32.xlu1 %v9092_v48, %s5403_s9 }
 0x11a   : > { %4695 = vrot.lane.b32.xlu0 %v9094_v60, %s5403_s9 }
 0x11b   : > { %v6884_v13 = vpop.permute.xlu1 %4420 }
 0x11c   : > { %9095 = vst [vmem:[#allocation62_spill] sm:$0xff] %v6884_v13  ;;  %v6888_v19 = vpop.permute.xlu0 %4415 }
 0x11d   : > { %9097 = vst [vmem:[#allocation74_spill] sm:$0xff] %v6888_v19  ;;  %4710 = vrot.lane.b32.xlu1 %v6880_v5, %s5403_s9 }
 0x11e   : > { %4705 = vrot.lane.b32.xlu0 %v6886_v40, %s5403_s9  ;;  %v9105_v40 = vld [vmem:[#allocation93_spill] sm:$0xff] }
 0x11f   : > { %v6894_v32 = vpop.permute.xlu1 %4430 }
 0x120   : > { %9098 = vst [vmem:[#allocation63_spill] sm:$0xff] %v6894_v32  ;;  %v6896_v16 = vpop.permute.xlu0 %4425 }
 0x121   : > { %9099 = vst [vmem:[#allocation77_spill] sm:$0xff] %v6896_v16  ;;  %4720 = vrot.lane.b32.xlu1 %v9100_v25, %s5404_s10  ;;  %v9107_v25 = vld [vmem:[#allocation94_spill] sm:$0xff]  ;;  %v9109_v16 = vld [vmem:[#allocation95_spill] sm:$0xff] }
 0x122   : > { %4715 = vrot.lane.b32.xlu0 %v9101_v44, %s5404_s10 }
 0x123   : > { %v6902_v39 = vpop.permute.xlu1 %4440 }
 0x124   : > { %9102 = vst [vmem:[#allocation65_spill] sm:$0xff] %v6902_v39  ;;  %v6904_v58 = vpop.permute.xlu0 %4435 }
 0x125   : > { %9103 = vst [vmem:[#allocation80_spill] sm:$0xff] %v6904_v58  ;;  %4730 = vrot.lane.b32.xlu1 %v9104_v18, %s5404_s10  ;;  %v9108_v58 = vld [vmem:[#allocation152_spill] sm:$0xff] }
 0x126   : > { %4725 = vrot.lane.b32.xlu0 %v9105_v40, %s5404_s10 }
 0x127   : > { %v4451_v5 = vpop.permute.xlu1 %4450 }
 0x128   : > { %v4453_v60 = vunpack.i.h.bf16 %v4451_v5  ;;  %v4452_v48 = vunpack.i.l.bf16 %v4451_v5  ;;  %v6910_v20 = vpop.permute.xlu0 %4445 }
 0x129   : > { %9106 = vst [vmem:[#allocation70_spill] sm:$0xff] %v6910_v20  ;;  %4740 = vrot.lane.b32.xlu1 %v9107_v25, %s5404_s10  ;;  %v9110_v20 = vld [vmem:[#allocation96_spill] sm:$0xff] }
 0x12a   : > { %v6916_v44 = vsel %vm2486_vm4, %v6569_v28, %v4452_v48  ;;  %v6920_v39 = vsel %vm2486_vm4, %v9108_v58, %v4453_v60  ;;  %4735 = vrot.lane.b32.xlu0 %v9109_v16, %s5404_s10  ;;  %v9111_v58 = vld [vmem:[#allocation97_spill] sm:$0xff] }
 0x12b   : > { %v4461_v32 = vpop.permute.xlu1 %4460 }
 0x12c   : > { %v4463_v19 = vunpack.i.h.bf16 %v4461_v32  ;;  %v4462_v5 = vunpack.i.l.bf16 %v4461_v32  ;;  %v4456_v13 = vpop.permute.xlu0 %4455 }
 0x12d   : > { %4750 = vrot.lane.b32.xlu1 %v9110_v20, %s5404_s10  ;;  %v4458_v48 = vunpack.i.h.bf16 %v4456_v13  ;;  %v4457_v60 = vunpack.i.l.bf16 %v4456_v13 }
 0x12e   : > { %v6928_v51 = vsel %vm2486_vm4, %v6589_v47, %v4462_v5  ;;  %v6932_v28 = vsel %vm2486_vm4, %v6586_v35, %v4463_v19  ;;  %4745 = vrot.lane.b32.xlu0 %v9111_v58, %s5404_s10  ;;  %v9112_v35 = vld [vmem:[#allocation98_spill] sm:$0xff] }
 0x12f   : > { %v4471_v41 = vpop.permute.xlu1 %4470  ;;  %v6938_v32 = vsel %vm2486_vm4, %v6600_v7, %v4457_v60  ;;  %v6942_v61 = vsel %vm2486_vm4, %v6603_v11, %v4458_v48 }
 0x130   : > { %v4473_v47 = vunpack.i.h.bf16 %v4471_v41  ;;  %v4472_v5 = vunpack.i.l.bf16 %v4471_v41  ;;  %v4466_v57 = vpop.permute.xlu0 %4465 }
 0x131   : > { %4760 = vrot.lane.b32.xlu1 %v9112_v35, %s5404_s10  ;;  %v4468_v7 = vunpack.i.h.bf16 %v4466_v57  ;;  %v4467_v60 = vunpack.i.l.bf16 %v4466_v57  ;;  %v9115_v35 = vld [vmem:[#allocation34_spill] sm:$0xff] }
 0x132   : > { %v6948_v19 = vsel %vm2486_vm4, %v6617_v8, %v4472_v5  ;;  %v6952_v13 = vsel %vm2486_vm4, %v6614_v46, %v4473_v47  ;;  %4755 = vrot.lane.b32.xlu0 %v9113_v49, %s5404_s10  ;;  %v9114_v46 = vld [vmem:[#allocation100_spill] sm:$0xff] }
 0x133   : > { %v4481_v11 = vpop.permute.xlu1 %4480  ;;  %v6958_v41 = vsel %vm2486_vm4, %v6628_v52, %v4467_v60  ;;  %v6962_v48 = vsel %vm2486_vm4, %v6631_v0, %v4468_v7 }
 0x134   : > { %v4483_v8 = vunpack.i.h.bf16 %v4481_v11  ;;  %v4482_v5 = vunpack.i.l.bf16 %v4481_v11  ;;  %v4476_v50 = vpop.permute.xlu0 %4475 }
 0x135   : > { %4770 = vrot.lane.b32.xlu1 %v9114_v46, %s5404_s10  ;;  %v4478_v52 = vunpack.i.h.bf16 %v4476_v50  ;;  %v4477_v60 = vunpack.i.l.bf16 %v4476_v50 }
 0x136   : > { %v6968_v57 = vsel %vm2486_vm4, %v6645_v42, %v4482_v5  ;;  %v6972_v47 = vsel %vm2486_vm4, %v6642_v36, %v4483_v8  ;;  %4765 = vrot.lane.b32.xlu0 %v9115_v35, %s5404_s10  ;;  %v9116_v36 = vld [vmem:[#allocation37_spill] sm:$0xff]  ;;  %v9117_v35 = vld [vmem:[#allocation40_spill] sm:$0xff] }
 0x137   : > { %v4491_v0 = vpop.permute.xlu1 %4490  ;;  %v6978_v7 = vsel %vm2486_vm4, %v6656_v55, %v4477_v60  ;;  %v6982_v11 = vsel %vm2486_vm4, %v6659_v54, %v4478_v52 }
 0x138   : > { %v4493_v42 = vunpack.i.h.bf16 %v4491_v0  ;;  %v4492_v5 = vunpack.i.l.bf16 %v4491_v0  ;;  %v4486_v46 = vpop.permute.xlu0 %4485 }
 0x139   : > { %4780 = vrot.lane.b32.xlu1 %v9116_v36, %s5404_s10  ;;  %v4488_v55 = vunpack.i.h.bf16 %v4486_v46  ;;  %v4487_v60 = vunpack.i.l.bf16 %v4486_v46 }
 0x13a   : > { %v6988_v50 = vsel %vm2486_vm4, %v6673_v30, %v4492_v5  ;;  %v6992_v8 = vsel %vm2486_vm4, %v6670_v33, %v4493_v42  ;;  %4775 = vrot.lane.b32.xlu0 %v9117_v35, %s5404_s10  ;;  %v9118_v33 = vld [vmem:[#allocation41_spill] sm:$0xff]  ;;  %v9119_v35 = vld [vmem:[#allocation42_spill] sm:$0xff] }
 0x13b   : > { %v4501_v54 = vpop.permute.xlu1 %4500  ;;  %v6998_v52 = vsel %vm2486_vm4, %v6684_v21, %v4487_v60  ;;  %v7002_v0 = vsel %vm2486_vm4, %v6687_v37, %v4488_v55 }
 0x13c   : > { %v4503_v30 = vunpack.i.h.bf16 %v4501_v54  ;;  %v4502_v5 = vunpack.i.l.bf16 %v4501_v54  ;;  %v4496_v36 = vpop.permute.xlu0 %4495 }
 0x13d   : > { %4790 = vrot.lane.b32.xlu1 %v9118_v33, %s5404_s10  ;;  %v4498_v21 = vunpack.i.h.bf16 %v4496_v36  ;;  %v4497_v60 = vunpack.i.l.bf16 %v4496_v36 }
 0x13e   : > { %v7008_v46 = vsel %vm2486_vm4, %v6701_v59, %v4502_v5  ;;  %v7012_v42 = vsel %vm2486_vm4, %v6698_v22, %v4503_v30  ;;  %4785 = vrot.lane.b32.xlu0 %v9119_v35, %s5404_s10  ;;  %v9120_v22 = vld [vmem:[#allocation38_spill] sm:$0xff] }
 0x13f   : > { %v4511_v37 = vpop.permute.xlu1 %4510  ;;  %v7018_v55 = vsel %vm2486_vm4, %v6712_v3, %v4497_v60  ;;  %v7022_v54 = vsel %vm2486_vm4, %v6715_v2, %v4498_v21  ;;  %v9121_v35 = vld [vmem:[#allocation46_spill] sm:$0xff] }
 0x140   : > { %v4513_v59 = vunpack.i.h.bf16 %v4511_v37  ;;  %v4512_v5 = vunpack.i.l.bf16 %v4511_v37  ;;  %v4506_v33 = vpop.permute.xlu0 %4505 }
 0x141   : > { %4800 = vrot.lane.b32.xlu1 %v9120_v22, %s5404_s10  ;;  %v4508_v3 = vunpack.i.h.bf16 %v4506_v33  ;;  %v4507_v60 = vunpack.i.l.bf16 %v4506_v33  ;;  %v5354_v33 = vld [vmem:[%s8474_s1 + $0x20] ss:$0 sps:$4 sm:$0xff]  }
 0x142   : > { %v7028_v36 = vsel %vm2486_vm4, %v6729_v27, %v4512_v5  ;;  %v7032_v30 = vsel %vm2486_vm4, %v6726_v29, %v4513_v59  ;;  %4795 = vrot.lane.b32.xlu0 %v9121_v35, %s5404_s10  ;;  %v9122_v29 = vld [vmem:[#allocation45_spill] sm:$0xff]  ;;  %4022 = vmatprep.subr.msk.bf16.mxu0 %vm3041_vm5, %v5354_v33 }
 0x143   : > { %v4521_v2 = vpop.permute.xlu1 %4520  ;;  %v7038_v21 = vsel %vm2486_vm4, %v6740_v12, %v4507_v60  ;;  %v7042_v37 = vsel %vm2486_vm4, %v6743_v14, %v4508_v3  ;;  %v9123_v60 = vld [vmem:[#allocation47_spill] sm:$0xff]  ;;  %4023 = vmatprep.subr.msk.bf16.mxu1 %vm3041_vm5, %v5354_v33 }
 0x144   : > { %v4523_v27 = vunpack.i.h.bf16 %v4521_v2  ;;  %v4522_v5 = vunpack.i.l.bf16 %v4521_v2  ;;  %v4516_v22 = vpop.permute.xlu0 %4515 }
 0x145   : > { %4810 = vrot.lane.b32.xlu1 %v9122_v29, %s5404_s10  ;;  %v4518_v14 = vunpack.i.h.bf16 %v4516_v22  ;;  %v4517_v3 = vunpack.i.l.bf16 %v4516_v22  ;;  %v9124_v22 = vld [vmem:[#allocation54_spill] sm:$0xff] }
 0x146   : > { %v7051_v59 = vsel %vm2486_vm4, %v6757_v53, %v4522_v5  ;;  %v7055_v12 = vsel %vm2486_vm4, %v6754_v6, %v4523_v27  ;;  %4805 = vrot.lane.b32.xlu0 %v9123_v60, %s5404_s10  ;;  %v3043_v27 = vsel %vm3041_vm5, %v5354_v33, 0  ;;  %v5355_v60 = vld [vmem:[%s8474_s1 + $0x18] sm:$0xff]  }
 0x147   : > { %v4531_v2 = vpop.permute.xlu1 %4530  ;;  %v7061_v29 = vsel %vm2486_vm4, %v6768_v43, %v4517_v3  ;;  %v7065_v35 = vsel %vm2486_vm4, %v6771_v56, %v4518_v14  ;;  %3939 = vmatpush3.bf16.msra.mxu0 %v3043_v27  ;;  %4017 = vmatpush3.bf16.msra.mxu1 %v3043_v27  ;;  %v5356_v27 = vld [vmem:[%s8474_s1 + $0x10] sm:$0xff]  }
 0x148   : > { %v4533_v53 = vunpack.i.h.bf16 %v4531_v2  ;;  %v4532_v5 = vunpack.i.l.bf16 %v4531_v2  ;;  %v4526_v6 = vpop.permute.xlu0 %4525  ;;  %v9125_v2 = vld [vmem:[#allocation59_spill] sm:$0xff]  ;;  %3940 = vmatprep.subr.bf16.mxu0 %v5355_v60  ;;  %4013 = vmatprep.subr.bf16.mxu1 %v5355_v60 }
 0x149   : > { %4820 = vrot.lane.b32.xlu1 %v9124_v22, %s5404_s10  ;;  %v4528_v14 = vunpack.i.h.bf16 %v4526_v6  ;;  %v4527_v3 = vunpack.i.l.bf16 %v4526_v6  ;;  %v9126_v6 = vld [vmem:[#allocation66_spill] sm:$0xff] }
 0x14a   : > { %v7074_v43 = vsel %vm2486_vm4, %v6785_v62, %v4532_v5  ;;  %v7078_v56 = vsel %vm2486_vm4, %v6782_v15, %v4533_v53  ;;  %4815 = vrot.lane.b32.xlu0 %v9125_v2, %s5404_s10 }
 0x14b   : > { %v4541_v33 = vpop.permute.xlu1 %4540  ;;  %v7084_v22 = vsel %vm2486_vm4, %v6796_v23, %v4527_v3  ;;  %v7088_v62 = vsel %vm2486_vm4, %v6799_v63, %v4528_v14  ;;  %3941 = vmatpush3.bf16.msra.mxu0 %v5355_v60  ;;  %4018 = vmatpush3.bf16.msra.mxu1 %v5355_v60  ;;  %v9127_v3 = vld [vmem:[#allocation75_spill] sm:$0xff] }
 0x14c   : > { %v4543_v5 = vunpack.i.h.bf16 %v4541_v33  ;;  %v4542_v15 = vunpack.i.l.bf16 %v4541_v33  ;;  %v4536_v53 = vpop.permute.xlu0 %4535  ;;  %3942 = vmatprep.subr.bf16.mxu0 %v5356_v27  ;;  %4014 = vmatprep.subr.bf16.mxu1 %v5356_v27  ;;  %v5357_v60 = vld [vmem:[%s8474_s1 + $0x8] sm:$0xff]  }
 0x14d   : > { %4830 = vrot.lane.b32.xlu1 %v9126_v6, %s5404_s10  ;;  %v4538_v63 = vunpack.i.h.bf16 %v4536_v53  ;;  %v4537_v14 = vunpack.i.l.bf16 %v4536_v53  ;;  %v9128_v53 = vld [vmem:[#allocation81_spill] sm:$0xff] }
 0x14e   : > { %v7097_v2 = vsel %vm2486_vm4, %v6813_v34, %v4542_v15  ;;  %v7101_v23 = vsel %vm2486_vm4, %v6810_v4, %v4543_v5  ;;  %4825 = vrot.lane.b32.xlu0 %v9127_v3, %s5404_s10 }
 0x14f   : > { %v4551_v33 = vpop.permute.xlu1 %4550  ;;  %v7107_v6 = vsel %vm2486_vm4, %v6824_v38, %v4537_v14  ;;  %v7111_v34 = vsel %vm2486_vm4, %v6827_v31, %v4538_v63  ;;  %3943 = vmatpush3.bf16.msra.mxu0 %v5356_v27  ;;  %4019 = vmatpush3.bf16.msra.mxu1 %v5356_v27  ;;  %v9129_v14 = vld [vmem:[#allocation102_spill] sm:$0xff]  ;;  %v9130_v27 = vld [vmem:[#allocation116_spill] sm:$0xff] }
 0x150   : > { %v4553_v15 = vunpack.i.h.bf16 %v4551_v33  ;;  %v4552_v4 = vunpack.i.l.bf16 %v4551_v33  ;;  %v4546_v5 = vpop.permute.xlu0 %4545  ;;  %3944 = vmatprep.subr.bf16.mxu0 %v5357_v60  ;;  %4015 = vmatprep.subr.bf16.mxu1 %v5357_v60 }
 0x151   : > { %4840 = vrot.lane.b32.xlu1 %v9128_v53, %s5404_s10  ;;  %v4548_v31 = vunpack.i.h.bf16 %v4546_v5  ;;  %v4547_v63 = vunpack.i.l.bf16 %v4546_v5  ;;  %v9132_v5 = vld [vmem:[#allocation20_spill] sm:$0xff] }
 0x152   : > { %v7120_v3 = vsel %vm2486_vm4, %v6842_v45, %v4552_v4  ;;  %v7124_v38 = vsel %vm2486_vm4, %v6839_v10, %v4553_v15  ;;  %4835 = vrot.lane.b32.xlu0 %v9129_v14, %s5404_s10  ;;  %v5358_v15 = vld [vmem:[%s8474_s1] sm:$0xff]  }
 0x153   : > { %v7128_v33 = vpop.permute.xlu1 %4560  ;;  %v7132_v53 = vsel %vm2486_vm4, %v6853_v1, %v4547_v63  ;;  %v7136_v45 = vsel %vm2486_vm4, %v6856_v26, %v4548_v31  ;;  %3945 = vmatpush3.bf16.msra.mxu0 %v5357_v60  ;;  %4020 = vmatpush3.bf16.msra.mxu1 %v5357_v60  ;;  %v9131_v1 = vld [vmem:[#allocation106_spill] sm:$0xff] }
 0x154   : > { %v7138_v10 = vpop.permute.xlu0 %4555  ;;  %3946 = vmatprep.subr.bf16.mxu0 %v5358_v15  ;;  %4016 = vmatprep.subr.bf16.mxu1 %v5358_v15  ;;  %v9133_v31 = vld [vmem:[#allocation114_spill] sm:$0xff] }
 0x155   : > { %4850 = vrot.lane.b32.xlu1 %v9130_v27, %s5405_s24  ;;  %v9136_v27 = vld [vmem:[#allocation19_spill] sm:$0xff] }
 0x156   : > { %4845 = vrot.lane.b32.xlu0 %v9131_v1, %s5404_s10 }
 0x157   : > { %v7147_v4 = vpop.permute.xlu1 %4570  ;;  %3947 = vmatpush3.bf16.msra.mxu0 %v5358_v15  ;;  %4021 = vmatpush3.bf16.msra.mxu1 %v5358_v15  ;;  %v9139_v15 = vld [vmem:[#allocation119_spill] sm:$0xff] }
 0x158   : > { %v7149_v26 = vpop.permute.xlu0 %4565 }
 0x159   : > { %4860 = vrot.lane.b32.xlu1 %v9132_v5, %s5406_s28 }
 0x15a   : > { %4855 = vrot.lane.b32.xlu0 %v9133_v31, %s5405_s24 }
 0x15b   : > { %v7155_v63 = vpop.permute.xlu1 %4580 }
 0x15c   : > { %9134 = vst [vmem:[#allocation82_spill] sm:$0xff] %v7155_v63  ;;  %v7157_v60 = vpop.permute.xlu0 %4575 }
 0x15d   : > { %9135 = vst [vmem:[#allocation84_spill] sm:$0xff] %v7157_v60  ;;  %4870 = vrot.lane.b32.xlu1 %v9105_v40, %s5407_s30  ;;  %v9142_v60 = vld [vmem:[#allocation27_spill] sm:$0xff]  ;;  %v9143_v40 = vld [vmem:[#allocation118_spill] sm:$0xff] }
 0x15e   : > { %4865 = vrot.lane.b32.xlu0 %v9136_v27, %s5406_s28 }
 0x15f   : > { %v7163_v1 = vpop.permute.xlu1 %4590 }
 0x160   : > { %9137 = vst [vmem:[#allocation87_spill] sm:$0xff] %v7163_v1  ;;  %v7165_v14 = vpop.permute.xlu0 %4585 }
 0x161   : > { %9138 = vst [vmem:[#allocation90_spill] sm:$0xff] %v7165_v14  ;;  %4880 = vrot.lane.b32.xlu1 %v9139_v15, %s5405_s24 }
 0x162   : > { %4875 = vrot.lane.b32.xlu0 %v9104_v18, %s5407_s30 }
 0x163   : > { %v7171_v5 = vpop.permute.xlu1 %4600 }
 0x164   : > { %9140 = vst [vmem:[#allocation91_spill] sm:$0xff] %v7171_v5  ;;  %v7173_v31 = vpop.permute.xlu0 %4595 }
 0x165   : > { %9141 = vst [vmem:[#allocation92_spill] sm:$0xff] %v7173_v31  ;;  %4890 = vrot.lane.b32.xlu1 %v9142_v60, %s5406_s28  ;;  %v9145_v60 = vld [vmem:[#allocation25_spill] sm:$0xff] }
 0x166   : > { %4885 = vrot.lane.b32.xlu0 %v9143_v40, %s5405_s24 }
 0x167   : > { %v4611_v27 = vpop.permute.xlu1 %4610 }
 0x168   : > { %v4613_v1 = vunpack.i.h.bf16 %v4611_v27  ;;  %v4612_v63 = vunpack.i.l.bf16 %v4611_v27  ;;  %v7179_v14 = vpop.permute.xlu0 %4605 }
 0x169   : > { %9144 = vst [vmem:[#allocation93_spill] sm:$0xff] %v7179_v14  ;;  %4900 = vrot.lane.b32.xlu1 %v9109_v16, %s5407_s30  ;;  %v9146_v14 = vld [vmem:[#allocation122_spill] sm:$0xff] }
 0x16a   : > { %v7185_v18 = vsel %vm2551_vm6, %v6916_v44, %v4612_v63  ;;  %v7189_v15 = vsel %vm2551_vm6, %v6920_v39, %v4613_v1  ;;  %4895 = vrot.lane.b32.xlu0 %v9145_v60, %s5406_s28 }
 0x16b   : > { %v4621_v40 = vpop.permute.xlu1 %4620 }
 0x16c   : > { %v4623_v31 = vunpack.i.h.bf16 %v4621_v40  ;;  %v4622_v27 = vunpack.i.l.bf16 %v4621_v40  ;;  %v4616_v5 = vpop.permute.xlu0 %4615 }
 0x16d   : > { %4910 = vrot.lane.b32.xlu1 %v9146_v14, %s5405_s24  ;;  %v4618_v39 = vunpack.i.h.bf16 %v4616_v5  ;;  %v4617_v1 = vunpack.i.l.bf16 %v4616_v5 }
 0x16e   : > { %v7197_v16 = vsel %vm2551_vm6, %v6928_v51, %v4622_v27  ;;  %v7201_v44 = vsel %vm2551_vm6, %v6932_v28, %v4623_v31  ;;  %4905 = vrot.lane.b32.xlu0 %v9107_v25, %s5407_s30  ;;  %v9151_v31 = vld [vmem:[#allocation121_spill] sm:$0xff] }
 0x16f   : > { %9147 = vst [vmem:[#allocation94_spill] sm:$0xff] %v7197_v16  ;;  %9148 = vst [vmem:[#allocation152_spill] sm:$0xff] %v7201_v44  ;;  %v4631_v63 = vpop.permute.xlu1 %4630  ;;  %v7207_v60 = vsel %vm2551_vm6, %v6938_v32, %v4617_v1  ;;  %v7211_v14 = vsel %vm2551_vm6, %v6942_v61, %v4618_v39 }
 0x170   : > { %v4633_v51 = vunpack.i.h.bf16 %v4631_v63  ;;  %v4632_v40 = vunpack.i.l.bf16 %v4631_v63  ;;  %v4626_v27 = vpop.permute.xlu0 %4625 }
 0x171   : > { %4920 = vrot.lane.b32.xlu1 %v9048_v9, %s5406_s28  ;;  %v4628_v32 = vunpack.i.h.bf16 %v4626_v27  ;;  %v4627_v5 = vunpack.i.l.bf16 %v4626_v27  ;;  %v9156_v27 = vld [vmem:[#allocation28_spill] sm:$0xff] }
 0x172   : > { %v7217_v28 = vsel %vm2551_vm6, %v6948_v19, %v4632_v40  ;;  %v7221_v25 = vsel %vm2551_vm6, %v6952_v13, %v4633_v51  ;;  %4915 = vrot.lane.b32.xlu0 %v9151_v31, %s5405_s24 }
 0x173   : > { %9149 = vst [vmem:[#allocation95_spill] sm:$0xff] %v7217_v28  ;;  %9150 = vst [vmem:[#allocation96_spill] sm:$0xff] %v7221_v25  ;;  %v4641_v61 = vpop.permute.xlu1 %4640  ;;  %v7227_v39 = vsel %vm2551_vm6, %v6958_v41, %v4627_v5  ;;  %v7231_v9 = vsel %vm2551_vm6, %v6962_v48, %v4628_v32  ;;  %v9250_v28 = vld [vmem:[#allocation148_spill] sm:$0xff] }
 0x174   : > { %9152 = vst [vmem:[#allocation97_spill] sm:$0xff] %v7227_v39  ;;  %9153 = vst [vmem:[#allocation99_spill] sm:$0xff] %v7231_v9  ;;  %v4643_v19 = vunpack.i.h.bf16 %v4641_v61  ;;  %v4642_v1 = vunpack.i.l.bf16 %v4641_v61  ;;  %v4636_v63 = vpop.permute.xlu0 %4635  ;;  %v4273_v9 = vunpack.i.h.bf16 %v9250_v28 }
 0x175   : > { %4930 = vrot.lane.b32.xlu1 %v9111_v58, %s5407_s30  ;;  %v4638_v41 = vunpack.i.h.bf16 %v4636_v63  ;;  %v4637_v40 = vunpack.i.l.bf16 %v4636_v63 }
 0x176   : > { %v7237_v13 = vsel %vm2551_vm6, %v6968_v57, %v4642_v1  ;;  %v7241_v51 = vsel %vm2551_vm6, %v6972_v47, %v4643_v19  ;;  %4925 = vrot.lane.b32.xlu0 %v9156_v27, %s5406_s28  ;;  %v9159_v47 = vld [vmem:[#allocation124_spill] sm:$0xff] }
 0x177   : > { %9154 = vst [vmem:[#allocation116_spill] sm:$0xff] %v7237_v13  ;;  %9155 = vst [vmem:[#allocation20_spill] sm:$0xff] %v7241_v51  ;;  %v4651_v48 = vpop.permute.xlu1 %4650  ;;  %v7247_v32 = vsel %vm2551_vm6, %v6978_v7, %v4637_v40  ;;  %v7251_v58 = vsel %vm2551_vm6, %v6982_v11, %v4638_v41  ;;  %v9235_v51 = vld [vmem:[#allocation23_spill] sm:$0xff]  ;;  %v9236_v13 = vld [vmem:[#allocation22_spill] sm:$0xff] }
 0x178   : > { %9157 = vst [vmem:[#allocation114_spill] sm:$0xff] %v7247_v32  ;;  %9158 = vst [vmem:[#allocation19_spill] sm:$0xff] %v7251_v58  ;;  %v4653_v57 = vunpack.i.h.bf16 %v4651_v48  ;;  %v4652_v5 = vunpack.i.l.bf16 %v4651_v48  ;;  %v4646_v31 = vpop.permute.xlu0 %4645  ;;  %v9249_v32 = vld [vmem:[#allocation147_spill] sm:$0xff] }
 0x179   : > { %4940 = vrot.lane.b32.xlu1 %v9159_v47, %s5405_s24  ;;  %v4648_v7 = vunpack.i.h.bf16 %v4646_v31  ;;  %v4647_v1 = vunpack.i.l.bf16 %v4646_v31  ;;  %v4258_v25 = vunpack.i.h.bf16 %v9249_v32 }
 0x17a   : > { %v7257_v61 = vsel %vm2551_vm6, %v6988_v50, %v4652_v5  ;;  %v7261_v19 = vsel %vm2551_vm6, %v6992_v8, %v4653_v57  ;;  %4935 = vrot.lane.b32.xlu0 %v9110_v20, %s5407_s30  ;;  %v9166_v57 = vld [vmem:[#allocation123_spill] sm:$0xff] }
 0x17b   : > { %9160 = vst [vmem:[#allocation119_spill] sm:$0xff] %v7257_v61  ;;  %9161 = vst [vmem:[#allocation27_spill] sm:$0xff] %v7261_v19  ;;  %v4661_v11 = vpop.permute.xlu1 %4660  ;;  %v7267_v63 = vsel %vm2551_vm6, %v6998_v52, %v4647_v1  ;;  %v7271_v41 = vsel %vm2551_vm6, %v7002_v0, %v4648_v7 }
 0x17c   : > { %9162 = vst [vmem:[#allocation118_spill] sm:$0xff] %v7267_v63  ;;  %9163 = vst [vmem:[#allocation25_spill] sm:$0xff] %v7271_v41  ;;  %v4663_v50 = vunpack.i.h.bf16 %v4661_v11  ;;  %v4662_v40 = vunpack.i.l.bf16 %v4661_v11  ;;  %v4656_v27 = vpop.permute.xlu0 %4655  ;;  %v9232_v41 = vld [vmem:[#allocation15_spill] sm:$0xff]  ;;  %v9233_v63 = vld [vmem:[#allocation18_spill] sm:$0xff] }
 0x17d   : > { %4950 = vrot.lane.b32.xlu1 %v9050_v17, %s5406_s28  ;;  %v4658_v52 = vunpack.i.h.bf16 %v4656_v27  ;;  %v4657_v48 = vunpack.i.l.bf16 %v4656_v27 }
 0x17e   : > { %v7277_v8 = vsel %vm2551_vm6, %v7008_v46, %v4662_v40  ;;  %v7281_v20 = vsel %vm2551_vm6, %v7012_v42, %v4663_v50  ;;  %4945 = vrot.lane.b32.xlu0 %v9166_v57, %s5405_s24 }
 0x17f   : > { %9164 = vst [vmem:[#allocation122_spill] sm:$0xff] %v7277_v8  ;;  %9165 = vst [vmem:[#allocation121_spill] sm:$0xff] %v7281_v20  ;;  %v4671_v0 = vpop.permute.xlu1 %4670  ;;  %v7287_v5 = vsel %vm2551_vm6, %v7018_v55, %v4657_v48  ;;  %v7291_v17 = vsel %vm2551_vm6, %v7022_v54, %v4658_v52  ;;  %v9176_v48 = vld [vmem:[#allocation98_spill] sm:$0xff]  ;;  %v9228_v20 = vld [vmem:[#allocation133_spill] sm:$0xff] }
 0x180   : > { %9167 = vst [vmem:[#allocation28_spill] sm:$0xff] %v7287_v5  ;;  %9168 = vst [vmem:[#allocation124_spill] sm:$0xff] %v7291_v17  ;;  %v4673_v46 = vunpack.i.h.bf16 %v4671_v0  ;;  %v4672_v31 = vunpack.i.l.bf16 %v4671_v0  ;;  %v4666_v47 = vpop.permute.xlu0 %4665  ;;  %v4243_v8 = vunpack.i.h.bf16 %v9228_v20  ;;  %v9229_v17 = vld [vmem:[#allocation44_spill] sm:$0xff] }
 0x181   : > { %4960 = vrot.lane.b32.xlu1 %v9113_v49, %s5407_s30  ;;  %v4668_v55 = vunpack.i.h.bf16 %v4666_v47  ;;  %v4667_v1 = vunpack.i.l.bf16 %v4666_v47 }
 0x182   : > { %v7297_v42 = vsel %vm2551_vm6, %v7028_v36, %v4672_v31  ;;  %v7301_v7 = vsel %vm2551_vm6, %v7032_v30, %v4673_v46  ;;  %4955 = vrot.lane.b32.xlu0 %v9049_v24, %s5406_s28  ;;  %v9173_v30 = vld [vmem:[#allocation126_spill] sm:$0xff] }
 0x183   : > { %9169 = vst [vmem:[#allocation123_spill] sm:$0xff] %v7297_v42  ;;  %9170 = vst [vmem:[#allocation153_spill] sm:$0xff] %v7301_v7  ;;  %v4681_v54 = vpop.permute.xlu1 %4680  ;;  %v7307_v11 = vsel %vm2551_vm6, %v7038_v21, %v4667_v1  ;;  %v7311_v49 = vsel %vm2551_vm6, %v7042_v37, %v4668_v55  ;;  %v9225_v7 = vld [vmem:[#allocation117_spill] sm:$0xff] }
 0x184   : > { %9171 = vst [vmem:[#allocation154_spill] sm:$0xff] %v7307_v11  ;;  %9172 = vst [vmem:[#allocation155_spill] sm:$0xff] %v7311_v49  ;;  %v4683_v36 = vunpack.i.h.bf16 %v4681_v54  ;;  %v4682_v50 = vunpack.i.l.bf16 %v4681_v54  ;;  %v4676_v40 = vpop.permute.xlu0 %4675  ;;  %v9182_v54 = vld [vmem:[#allocation125_spill] sm:$0xff]  ;;  %v4118_v42 = vunpack.i.h.bf16 %v9225_v7  ;;  %v9227_v11 = vld [vmem:[#allocation14_spill] sm:$0xff] }
 0x185   : > { %4970 = vrot.lane.b32.xlu1 %v9173_v30, %s5405_s24  ;;  %v4678_v21 = vunpack.i.h.bf16 %v4676_v40  ;;  %v4677_v52 = vunpack.i.l.bf16 %v4676_v40 }
 0x186   : > { %v7317_v27 = vsel %vm2551_vm6, %v7051_v59, %v4682_v50  ;;  %v7321_v24 = vsel %vm2551_vm6, %v7055_v12, %v4683_v36  ;;  %4965 = vrot.lane.b32.xlu0 %v9176_v48, %s5407_s30  ;;  %v9179_v12 = vld [vmem:[#allocation36_spill] sm:$0xff] }
 0x187   : > { %9174 = vst [vmem:[#allocation126_spill] sm:$0xff] %v7317_v27  ;;  %9175 = vst [vmem:[#allocation156_spill] sm:$0xff] %v7321_v24  ;;  %v4691_v37 = vpop.permute.xlu1 %4690  ;;  %v7327_v57 = vsel %vm2551_vm6, %v7061_v29, %v4677_v52  ;;  %v7331_v0 = vsel %vm2551_vm6, %v7065_v35, %v4678_v21 }
 0x188   : > { %9177 = vst [vmem:[#allocation98_spill] sm:$0xff] %v7327_v57  ;;  %9178 = vst [vmem:[#allocation157_spill] sm:$0xff] %v7331_v0  ;;  %v4693_v59 = vunpack.i.h.bf16 %v4691_v37  ;;  %v4692_v46 = vunpack.i.l.bf16 %v4691_v37  ;;  %v4686_v31 = vpop.permute.xlu0 %4685  ;;  %v9188_v37 = vld [vmem:[#allocation35_spill] sm:$0xff] }
 0x189   : > { %4980 = vrot.lane.b32.xlu1 %v9179_v12, %s5406_s28  ;;  %v4688_v29 = vunpack.i.h.bf16 %v4686_v31  ;;  %v4687_v1 = vunpack.i.l.bf16 %v4686_v31 }
 0x18a   : > { %v7337_v47 = vsel %vm2551_vm6, %v7074_v43, %v4692_v46  ;;  %v7341_v55 = vsel %vm2551_vm6, %v7078_v56, %v4693_v59  ;;  %4975 = vrot.lane.b32.xlu0 %v9182_v54, %s5405_s24  ;;  %v9185_v56 = vld [vmem:[#allocation34_spill] sm:$0xff] }
 0x18b   : > { %9180 = vst [vmem:[#allocation36_spill] sm:$0xff] %v7337_v47  ;;  %9181 = vst [vmem:[#allocation158_spill] sm:$0xff] %v7341_v55  ;;  %v4701_v35 = vpop.permute.xlu1 %4700  ;;  %v7347_v36 = vsel %vm2551_vm6, %v7084_v22, %v4687_v1  ;;  %v7351_v50 = vsel %vm2551_vm6, %v7088_v62, %v4688_v29  ;;  %v9212_v47 = vld [vmem:[#allocation48_spill] sm:$0xff] }
 0x18c   : > { %9183 = vst [vmem:[#allocation125_spill] sm:$0xff] %v7347_v36  ;;  %9184 = vst [vmem:[#allocation159_spill] sm:$0xff] %v7351_v50  ;;  %v4703_v43 = vunpack.i.h.bf16 %v4701_v35  ;;  %v4702_v40 = vunpack.i.l.bf16 %v4701_v35  ;;  %v4696_v30 = vpop.permute.xlu0 %4695  ;;  %v9194_v35 = vld [vmem:[#allocation100_spill] sm:$0xff]  ;;  %v9218_v36 = vld [vmem:[#allocation111_spill] sm:$0xff] }
 0x18d   : > { %4990 = vrot.lane.b32.xlu1 %v9185_v56, %s5407_s30  ;;  %v4698_v22 = vunpack.i.h.bf16 %v4696_v30  ;;  %v4697_v48 = vunpack.i.l.bf16 %v4696_v30  ;;  %v9198_v30 = vld [vmem:[#allocation127_spill] sm:$0xff]  ;;  %v4097_v24 = vunpack.i.l.bf16 %v9218_v36 }
 0x18e   : > { %v7357_v21 = vsel %vm2551_vm6, %v7097_v2, %v4702_v40  ;;  %v7361_v52 = vsel %vm2551_vm6, %v7101_v23, %v4703_v43  ;;  %4985 = vrot.lane.b32.xlu0 %v9188_v37, %s5406_s28  ;;  %v9191_v23 = vld [vmem:[#allocation128_spill] sm:$0xff]  ;;  %v9201_v37 = vld [vmem:[#allocation101_spill] sm:$0xff] }
 0x18f   : > { %9186 = vst [vmem:[#allocation34_spill] sm:$0xff] %v7357_v21  ;;  %9187 = vst [vmem:[#allocation160_spill] sm:$0xff] %v7361_v52  ;;  %v4711_v62 = vpop.permute.xlu1 %4710  ;;  %v7367_v59 = vsel %vm2551_vm6, %v7107_v6, %v4697_v48  ;;  %v7371_v46 = vsel %vm2551_vm6, %v7111_v34, %v4698_v22  ;;  %v9199_v48 = vld [vmem:[#allocation40_spill] sm:$0xff]  ;;  %v9210_v52 = vld [vmem:[#allocation6_spill] sm:$0xff] }
 0x190   : > { %9189 = vst [vmem:[#allocation35_spill] sm:$0xff] %v7367_v59  ;;  %9190 = vst [vmem:[#allocation161_spill] sm:$0xff] %v7371_v46  ;;  %v4713_v2 = vunpack.i.h.bf16 %v4711_v62  ;;  %v4712_v31 = vunpack.i.l.bf16 %v4711_v62  ;;  %v4706_v12 = vpop.permute.xlu0 %4705  ;;  %v4088_v62 = vunpack.i.h.bf16 %v9201_v37  ;;  %v9209_v59 = vld [vmem:[#allocation4_spill] sm:$0xff]  ;;  %v9211_v21 = vld [vmem:[#allocation5_spill] sm:$0xff] }
 0x191   : > { %5000 = vrot.lane.b32.xlu1 %v9191_v23, %s5405_s24  ;;  %v4708_v6 = vunpack.i.h.bf16 %v4706_v12  ;;  %v4707_v54 = vunpack.i.l.bf16 %v4706_v12 }
 0x192   : > { %v7377_v29 = vsel %vm2551_vm6, %v7120_v3, %v4712_v31  ;;  %v7381_v1 = vsel %vm2551_vm6, %v7124_v38, %v4713_v2  ;;  %4995 = vrot.lane.b32.xlu0 %v9194_v35, %s5407_s30  ;;  %v9197_v38 = vld [vmem:[#allocation43_spill] sm:$0xff]  ;;  %v4087_v2 = vunpack.i.l.bf16 %v9201_v37  ;;  %v9204_v35 = vld [vmem:[#allocation105_spill] sm:$0xff] }
 0x193   : > { %9192 = vst [vmem:[#allocation128_spill] sm:$0xff] %v7377_v29  ;;  %9193 = vst [vmem:[#allocation162_spill] sm:$0xff] %v7381_v1  ;;  %v7385_v34 = vpop.permute.xlu1 %4720  ;;  %v7389_v43 = vsel %vm2551_vm6, %v7132_v53, %v4707_v54  ;;  %v7393_v40 = vsel %vm2551_vm6, %v7136_v45, %v4708_v6  ;;  %v9200_v53 = vld [vmem:[#allocation39_spill] sm:$0xff]  ;;  %v9203_v54 = vld [vmem:[#allocation130_spill] sm:$0xff] }
 0x194   : > { %9195 = vst [vmem:[#allocation100_spill] sm:$0xff] %v7389_v43  ;;  %9196 = vst [vmem:[#allocation163_spill] sm:$0xff] %v7393_v40  ;;  %v7395_v3 = vpop.permute.xlu0 %4715  ;;  %v9202_v31 = vld [vmem:[#allocation103_spill] sm:$0xff]  ;;  %v9206_v43 = vld [vmem:[#allocation109_spill] sm:$0xff] }
 0x195   : > { %5010 = vrot.lane.b32.xlu1 %v9197_v38, %s5406_s28  ;;  %v4078_v12 = vunpack.i.h.bf16 %v9202_v31  ;;  %v4077_v23 = vunpack.i.l.bf16 %v9202_v31  ;;  %v4093_v38 = vunpack.i.h.bf16 %v9204_v35  ;;  %v4103_v1 = vunpack.i.h.bf16 %v9206_v43  ;;  %v9207_v37 = vld [vmem:[#allocation37_spill] sm:$0xff]  ;;  %v9208_v31 = vld [vmem:[#allocation2_spill] sm:$0xff] }
 0x196   : > { %5005 = vrot.lane.b32.xlu0 %v9198_v30, %s5405_s24  ;;  %v4092_v30 = vunpack.i.l.bf16 %v9204_v35  ;;  %v7430_v46 = vsel %vm2356_vm2, %v9208_v31, %v4088_v62  ;;  %v7435_v35 = vsel %vm2356_vm2, %v9209_v59, %v4087_v2  ;;  %v9213_v62 = vld [vmem:[#allocation9_spill] sm:$0xff]  ;;  %v9215_v2 = vld [vmem:[#allocation8_spill] sm:$0xff] }
 0x197   : > { %v7401_v56 = vpop.permute.xlu1 %4730  ;;  %v2357_v55 = vsel %vm2356_vm2, %v9211_v21, %v4077_v23  ;;  %v7449_v31 = vsel %vm2356_vm2, %v9213_v62, %v4093_v38  ;;  %v9217_v21 = vld [vmem:[#allocation12_spill] sm:$0xff]  ;;  %v9219_v38 = vld [vmem:[#allocation129_spill] sm:$0xff] }
 0x198   : > { %v7403_v22 = vpop.permute.xlu0 %4725  ;;  %v7461_v23 = vsel %vm2356_vm2, %v9217_v21, %v4103_v1  ;;  %v9223_v21 = vld [vmem:[#allocation115_spill] sm:$0xff] }
 0x199   : > { %5020 = vrot.lane.b32.xlu1 %v9199_v48, %s5407_s30  ;;  %v9205_v48 = vld [vmem:[#allocation107_spill] sm:$0xff]  ;;  %v4123_v0 = vunpack.i.h.bf16 %v9223_v21 }
 0x19a   : > { %5015 = vrot.lane.b32.xlu0 %v9200_v53, %s5406_s28  ;;  %v4083_v53 = vunpack.i.h.bf16 %v9205_v48  ;;  %v4082_v40 = vunpack.i.l.bf16 %v9205_v48  ;;  %v7439_v48 = vsel %vm2356_vm2, %v9210_v52, %v4078_v12  ;;  %v9216_v12 = vld [vmem:[#allocation7_spill] sm:$0xff] }
 0x19b   : > { %v7409_v45 = vpop.permute.xlu1 %4740 }
 0x19c   : > { %v7415_v6 = vpop.permute.xlu0 %4735  ;;  %v2360_v52 = vsel %vm2356_vm2, %v9215_v2, %v4083_v53  ;;  %v2359_v50 = vsel %vm2356_vm2, %v9216_v12, %v4082_v40  ;;  %v9221_v53 = vld [vmem:[#allocation112_spill] sm:$0xff]  ;;  %v9222_v12 = vld [vmem:[#allocation113_spill] sm:$0xff] }
 0x19d   : > { %5030 = vrot.lane.b32.xlu1 %v9203_v54, %s5405_s24  ;;  %v4102_v54 = vunpack.i.l.bf16 %v9206_v43  ;;  %v9214_v43 = vld [vmem:[#allocation3_spill] sm:$0xff]  ;;  %v4113_v2 = vunpack.i.h.bf16 %v9221_v53  ;;  %v4112_v40 = vunpack.i.l.bf16 %v9221_v53  ;;  %v4108_v27 = vunpack.i.h.bf16 %v9222_v12 }
 0x19e   : > { %5025 = vrot.lane.b32.xlu0 %v9207_v37, %s5407_s30  ;;  %v7453_v59 = vsel %vm2356_vm2, %v9214_v43, %v4092_v30  ;;  %v9220_v30 = vld [vmem:[#allocation11_spill] sm:$0xff]  ;;  %v4107_v1 = vunpack.i.l.bf16 %v9222_v12 }
 0x19f   : > { %v7426_v29 = vpop.permute.xlu1 %4750  ;;  %v2367_v43 = vsel %vm2356_vm2, %v9220_v30, %v4102_v54  ;;  %v4117_v54 = vunpack.i.l.bf16 %v9225_v7  ;;  %v9226_v30 = vld [vmem:[#allocation120_spill] sm:$0xff]  ;;  %v9231_v7 = vld [vmem:[#allocation17_spill] sm:$0xff] }
 0x1a0   : > { %v7443_v37 = vpop.permute.xlu0 %4745  ;;  %v4128_v49 = vunpack.i.h.bf16 %v9226_v30  ;;  %v4127_v53 = vunpack.i.l.bf16 %v9226_v30  ;;  %v2372_v61 = vsel %vm2356_vm2, %v9231_v7, %v4113_v2  ;;  %v2371_v30 = vsel %vm2356_vm2, %v9232_v41, %v4112_v40  ;;  %v9237_v2 = vld [vmem:[#allocation132_spill] sm:$0xff]  ;;  %v9238_v41 = vld [vmem:[#allocation26_spill] sm:$0xff] }
 0x1a1   : > { %5040 = vrot.lane.b32.xlu1 %v9212_v47, %s5406_s28  ;;  %v4098_v47 = vunpack.i.h.bf16 %v9218_v36  ;;  %v4122_v36 = vunpack.i.l.bf16 %v9223_v21  ;;  %v4242_v21 = vunpack.i.l.bf16 %v9228_v20  ;;  %v7517_v40 = vsel %vm2356_vm2, %v9238_v41, %v4118_v42  ;;  %v9242_v42 = vld [vmem:[#allocation135_spill] sm:$0xff] }
 0x1a2   : > { %5035 = vrot.lane.b32.xlu0 %v9219_v38, %s5405_s24  ;;  %v9224_v38 = vld [vmem:[#allocation42_spill] sm:$0xff]  ;;  %v4237_v7 = vunpack.i.l.bf16 %v9242_v42 }
 0x1a3   : > { %v7467_v62 = vpop.permute.xlu1 %4760  ;;  %v2366_v12 = vsel %vm2356_vm2, %v9227_v11, %v4098_v47  ;;  %v2370_v11 = vsel %vm2356_vm2, %v9233_v63, %v4108_v27  ;;  %v9234_v47 = vld [vmem:[#allocation21_spill] sm:$0xff]  ;;  %v7509_v58 = vsel %vm2356_vm2, %v9236_v13, %v4122_v36  ;;  %v9239_v63 = vld [vmem:[#allocation24_spill] sm:$0xff]  ;;  %v7532_v36 = vsel %vm2421_vm3, %v2359_v50, %v4242_v21 }
 0x1a4   : > { %v7477_v57 = vpop.permute.xlu0 %4755  ;;  %v2369_v20 = vsel %vm2356_vm2, %v9234_v47, %v4107_v1  ;;  %v7521_v27 = vsel %vm2356_vm2, %v9239_v63, %v4117_v54  ;;  %v9240_v1 = vld [vmem:[#allocation29_spill] sm:$0xff]  ;;  %v9246_v63 = vld [vmem:[#allocation143_spill] sm:$0xff]  ;;  %v2422_v39 = vsel %vm2421_vm3, %v2357_v55, %v4237_v7 }
 0x1a5   : > { %5050 = vrot.lane.b32.xlu1 %v9224_v38, %s5407_s30  ;;  %v9230_v38 = vld [vmem:[#allocation13_spill] sm:$0xff]  ;;  %v4247_v50 = vunpack.i.l.bf16 %v9246_v63 }
 0x1a6   : > { %5045 = vrot.lane.b32.xlu0 %v9229_v17, %s5406_s28  ;;  %v2365_v19 = vsel %vm2356_vm2, %v9230_v38, %v4097_v24  ;;  %v7505_v17 = vsel %vm2356_vm2, %v9235_v51, %v4123_v0  ;;  %v7525_v51 = vsel %vm2356_vm2, %v9240_v1, %v4128_v49  ;;  %v9241_v0 = vld [vmem:[#allocation30_spill] sm:$0xff]  ;;  %v7535_v38 = vsel %vm2421_vm3, %v2360_v52, %v4243_v8  ;;  %v9243_v47 = vld [vmem:[#allocation41_spill] sm:$0xff] }
 0x1a7   : > { %v7491_v5 = vpop.permute.xlu1 %4770  ;;  %v7529_v13 = vsel %vm2356_vm2, %v9241_v0, %v4127_v53  ;;  %v4238_v49 = vunpack.i.h.bf16 %v9242_v42  ;;  %v4248_v1 = vunpack.i.h.bf16 %v9246_v63  ;;  %v9247_v21 = vld [vmem:[#allocation145_spill] sm:$0xff]  ;;  %v4257_v42 = vunpack.i.l.bf16 %v9249_v32 }
 0x1a8   : > { %v7511_v24 = vpop.permute.xlu0 %4765  ;;  %v4263_v8 = vunpack.i.h.bf16 %v9247_v21  ;;  %v4262_v52 = vunpack.i.l.bf16 %v9247_v21  ;;  %v9251_v63 = vld [vmem:[#allocation149_spill] sm:$0xff]  ;;  %v9252_v21 = vld [vmem:[#allocation131_spill] sm:$0xff]  ;;  %v2426_v7 = vsel %vm2421_vm3, %v7435_v35, %v4247_v50 }
 0x1a9   : > { %5060 = vrot.lane.b32.xlu1 %v9237_v2, %s5405_s24  ;;  %v9245_v2 = vld [vmem:[#allocation139_spill] sm:$0xff]  ;;  %v4268_v44 = vunpack.i.h.bf16 %v9251_v63  ;;  %v4267_v16 = vunpack.i.l.bf16 %v9251_v63  ;;  %v2427_v55 = vsel %vm2421_vm3, %v7430_v46, %v4248_v1  ;;  %v7590_v46 = vsel %vm2421_vm3, %v2372_v61, %v4273_v9  ;;  %v9259_v9 = vld [vmem:[#allocation10_spill] sm:$0xff] }
 0x1aa   : > { %5055 = vrot.lane.b32.xlu0 %v9243_v47, %s5407_s30  ;;  %v4253_v41 = vunpack.i.h.bf16 %v9245_v2  ;;  %v4252_v53 = vunpack.i.l.bf16 %v9245_v2  ;;  %v9248_v47 = vld [vmem:[#allocation56_spill] sm:$0xff]  ;;  %v4272_v2 = vunpack.i.l.bf16 %v9250_v28  ;;  %v7576_v63 = vsel %vm2421_vm3, %v7461_v23, %v4263_v8  ;;  %v9263_v8 = vld [vmem:[#allocation51_spill] sm:$0xff] }
 0x1ab   : > { %v7540_v54 = vpop.permute.xlu1 %4780  ;;  %v7596_v23 = vsel %vm2421_vm3, %v2369_v20, %v4267_v16  ;;  %v4278_v61 = vunpack.i.h.bf16 %v9259_v9  ;;  %v9261_v20 = vld [vmem:[#allocation31_spill] sm:$0xff] }
 0x1ac   : > { %9244 = vst [vmem:[#allocation43_spill] sm:$0xff] %v7540_v54  ;;  %v7549_v0 = vpop.permute.xlu0 %4775  ;;  %v2429_v32 = vsel %vm2421_vm3, %v7449_v31, %v4253_v41  ;;  %v2428_v28 = vsel %vm2421_vm3, %v7453_v59, %v4252_v53  ;;  %v7584_v31 = vsel %vm2421_vm3, %v2365_v19, %v4257_v42  ;;  %v7587_v59 = vsel %vm2421_vm3, %v2366_v12, %v4258_v25  ;;  %v9257_v19 = vld [vmem:[#allocation50_spill] sm:$0xff] }
 0x1ad   : > { %5070 = vrot.lane.b32.xlu1 %v9248_v47, %s5406_s28  ;;  %v2423_v47 = vsel %vm2421_vm3, %v7439_v48, %v4238_v49  ;;  %v9255_v48 = vld [vmem:[#allocation46_spill] sm:$0xff]  ;;  %v7593_v35 = vsel %vm2421_vm3, %v2371_v30, %v4272_v2  ;;  %v9256_v49 = vld [vmem:[#allocation16_spill] sm:$0xff]  ;;  %v4277_v12 = vunpack.i.l.bf16 %v9259_v9 }
 0x1ae   : > { %5065 = vrot.lane.b32.xlu0 %v9252_v21, %s5405_s24  ;;  %v2432_v21 = vsel %vm2421_vm3, %v2367_v43, %v4262_v52  ;;  %v7599_v43 = vsel %vm2421_vm3, %v2370_v11, %v4268_v44  ;;  %v4283_v41 = vunpack.i.h.bf16 %v9256_v49  ;;  %v4282_v25 = vunpack.i.l.bf16 %v9256_v49  ;;  %v9260_v30 = vld [vmem:[#allocation150_spill] sm:$0xff]  ;;  %v9264_v52 = vld [vmem:[#allocation32_spill] sm:$0xff] }
 0x1af   : > { %v7562_v54 = vpop.permute.xlu1 %4790  ;;  %v4287_v1 = vunpack.i.l.bf16 %v9260_v30  ;;  %v4288_v16 = vunpack.i.h.bf16 %v9260_v30  ;;  %v4403_v44 = vunpack.i.h.bf16 %v9261_v20  ;;  %v4402_v11 = vunpack.i.l.bf16 %v9261_v20  ;;  %v9266_v30 = vld [vmem:[#allocation55_spill] sm:$0xff] }
 0x1b0   : > { %9253 = vst [vmem:[#allocation127_spill] sm:$0xff] %v7562_v54  ;;  %v7579_v54 = vpop.permute.xlu0 %4785  ;;  %v4398_v42 = vunpack.i.h.bf16 %v9264_v52  ;;  %v4397_v2 = vunpack.i.l.bf16 %v9264_v52  ;;  %v2441_v9 = vsel %vm2421_vm3, %v7505_v17, %v4283_v41  ;;  %v4407_v20 = vunpack.i.l.bf16 %v9266_v30 }
 0x1b1   : > { %9254 = vst [vmem:[#allocation40_spill] sm:$0xff] %v7579_v54  ;;  %5080 = vrot.lane.b32.xlu1 %v9255_v48, %s5407_s30  ;;  %v9265_v48 = vld [vmem:[#allocation33_spill] sm:$0xff]  ;;  %v2438_v52 = vsel %vm2421_vm3, %v7521_v27, %v4277_v12  ;;  %v2442_v17 = vsel %vm2421_vm3, %v7529_v13, %v4287_v1  ;;  %v2443_v41 = vsel %vm2421_vm3, %v7525_v51, %v4288_v16 }
 0x1b2   : > { %5075 = vrot.lane.b32.xlu0 %v9257_v19, %s5406_s28  ;;  %v4413_v49 = vunpack.i.h.bf16 %v9265_v48  ;;  %v4412_v19 = vunpack.i.l.bf16 %v9265_v48  ;;  %v2439_v48 = vsel %vm2421_vm3, %v7517_v40, %v4278_v61  ;;  %v9270_v27 = vld [vmem:[#allocation61_spill] sm:$0xff]  ;;  %v7652_v40 = vsel %vm2486_vm4, %v2422_v39, %v4397_v2  ;;  %v9271_v61 = vld [vmem:[#allocation62_spill] sm:$0xff] }
 0x1b3   : > { %v7604_v53 = vpop.permute.xlu1 %4800  ;;  %v7655_v13 = vsel %vm2486_vm4, %v2423_v47, %v4398_v42  ;;  %v4422_v12 = vunpack.i.l.bf16 %v9271_v61  ;;  %v9272_v39 = vld [vmem:[#allocation49_spill] sm:$0xff]  ;;  %v4423_v47 = vunpack.i.h.bf16 %v9271_v61  ;;  %v9280_v61 = vld [vmem:[#allocation80_spill] sm:$0xff] }
 0x1b4   : > { %9258 = vst [vmem:[#allocation39_spill] sm:$0xff] %v7604_v53  ;;  %v7613_v50 = vpop.permute.xlu0 %4795  ;;  %v4408_v53 = vunpack.i.h.bf16 %v9266_v30  ;;  %v7645_v30 = vsel %vm2486_vm4, %v7535_v38, %v4403_v44  ;;  %v7658_v51 = vsel %vm2486_vm4, %v2428_v28, %v4412_v19  ;;  %v7664_v38 = vsel %vm2486_vm4, %v2426_v7, %v4407_v20  ;;  %v9274_v28 = vld [vmem:[#allocation74_spill] sm:$0xff]  ;;  %v9275_v44 = vld [vmem:[#allocation63_spill] sm:$0xff]  ;;  %v9276_v42 = vld [vmem:[#allocation77_spill] sm:$0xff] }
 0x1b5   : > { %9262 = vst [vmem:[#allocation101_spill] sm:$0xff] %v7613_v50  ;;  %5090 = vrot.lane.b32.xlu1 %v9263_v8, %s5405_s24  ;;  %v9267_v50 = vld [vmem:[#allocation38_spill] sm:$0xff]  ;;  %v2440_v8 = vsel %vm2421_vm3, %v7509_v58, %v4282_v25  ;;  %v4418_v16 = vunpack.i.h.bf16 %v9274_v28  ;;  %v4433_v7 = vunpack.i.h.bf16 %v9275_v44  ;;  %v9279_v19 = vld [vmem:[#allocation65_spill] sm:$0xff] }
 0x1b6   : > { %5085 = vrot.lane.b32.xlu0 %v9267_v50, %s5407_s30  ;;  %v7641_v50 = vsel %vm2486_vm4, %v7532_v36, %v4402_v11  ;;  %v7661_v36 = vsel %vm2486_vm4, %v2429_v32, %v4413_v49  ;;  %v7667_v25 = vsel %vm2486_vm4, %v2427_v55, %v4408_v53  ;;  %v4417_v32 = vunpack.i.l.bf16 %v9274_v28  ;;  %v9278_v49 = vld [vmem:[#allocation47_spill] sm:$0xff] }
 0x1b7   : > { %v7627_v54 = vpop.permute.xlu1 %4810  ;;  %v4432_v11 = vunpack.i.l.bf16 %v9275_v44  ;;  %v4428_v55 = vunpack.i.h.bf16 %v9276_v42  ;;  %v4427_v53 = vunpack.i.l.bf16 %v9276_v42  ;;  %v4443_v20 = vunpack.i.h.bf16 %v9279_v19  ;;  %v9281_v44 = vld [vmem:[#allocation70_spill] sm:$0xff]  ;;  %v9282_v42 = vld [vmem:[#allocation60_spill] sm:$0xff] }
 0x1b8   : > { %9268 = vst [vmem:[#allocation103_spill] sm:$0xff] %v7627_v54  ;;  %v7647_v58 = vpop.permute.xlu0 %4805  ;;  %v4437_v28 = vunpack.i.l.bf16 %v9280_v61  ;;  %v4448_v54 = vunpack.i.h.bf16 %v9281_v44 }
 0x1b9   : > { %9269 = vst [vmem:[#allocation130_spill] sm:$0xff] %v7647_v58  ;;  %5100 = vrot.lane.b32.xlu1 %v9270_v27, %s5406_s28  ;;  %v4442_v27 = vunpack.i.l.bf16 %v9279_v19  ;;  %v4447_v58 = vunpack.i.l.bf16 %v9281_v44  ;;  %v2495_v19 = vsel %vm2486_vm4, %v7584_v31, %v4417_v32  ;;  %v7712_v44 = vsel %vm2486_vm4, %v7596_v23, %v4427_v53  ;;  %v9284_v32 = vld [vmem:[#allocation45_spill] sm:$0xff] }
 0x1ba   : > { %5095 = vrot.lane.b32.xlu0 %v9272_v39, %s5405_s24  ;;  %v4438_v39 = vunpack.i.h.bf16 %v9280_v61  ;;  %v2496_v61 = vsel %vm2486_vm4, %v7587_v59, %v4418_v16  ;;  %v9283_v59 = vld [vmem:[#allocation53_spill] sm:$0xff]  ;;  %v7738_v16 = vsel %vm2486_vm4, %v2443_v41, %v4448_v54  ;;  %v4573_v54 = vunpack.i.h.bf16 %v7147_v4 }
 0x1bb   : > { %v7672_v1 = vpop.permute.xlu1 %4820  ;;  %v4572_v41 = vunpack.i.l.bf16 %v7147_v4 }
 0x1bc   : > { %9273 = vst [vmem:[#allocation105_spill] sm:$0xff] %v7672_v1  ;;  %v7681_v2 = vpop.permute.xlu0 %4815  ;;  %v2497_v1 = vsel %vm2486_vm4, %v2432_v21, %v4422_v12  ;;  %v7704_v21 = vsel %vm2486_vm4, %v7593_v35, %v4432_v11  ;;  %v7708_v12 = vsel %vm2486_vm4, %v7590_v46, %v4433_v7  ;;  %v7723_v35 = vsel %vm2486_vm4, %v2440_v8, %v4442_v27 }
 0x1bd   : > { %9277 = vst [vmem:[#allocation107_spill] sm:$0xff] %v7681_v2  ;;  %5110 = vrot.lane.b32.xlu1 %v9278_v49, %s5407_s30  ;;  %v2498_v49 = vsel %vm2486_vm4, %v7576_v63, %v4423_v47  ;;  %v7716_v63 = vsel %vm2486_vm4, %v7599_v43, %v4428_v55  ;;  %v7726_v47 = vsel %vm2486_vm4, %v2441_v9, %v4443_v20  ;;  %v4563_v9 = vunpack.i.h.bf16 %v7128_v33  ;;  %v9287_v55 = vld [vmem:[#allocation52_spill] sm:$0xff] }
 0x1be   : > { %5105 = vrot.lane.b32.xlu0 %v9282_v42, %s5406_s28  ;;  %v7729_v46 = vsel %vm2486_vm4, %v2438_v52, %v4437_v28  ;;  %v7732_v23 = vsel %vm2486_vm4, %v2439_v48, %v4438_v39  ;;  %v7735_v43 = vsel %vm2486_vm4, %v2442_v17, %v4447_v58  ;;  %v4562_v11 = vunpack.i.l.bf16 %v7128_v33  ;;  %v9286_v17 = vld [vmem:[#allocation71_spill] sm:$0xff]  ;;  %v9288_v39 = vld [vmem:[#allocation82_spill] sm:$0xff] }
 0x1bf   : > { %v7694_v2 = vpop.permute.xlu1 %4830  ;;  %v4558_v52 = vunpack.i.h.bf16 %v7138_v10  ;;  %v4557_v48 = vunpack.i.l.bf16 %v7138_v10  ;;  %v4568_v58 = vunpack.i.h.bf16 %v7149_v26  ;;  %v4567_v33 = vunpack.i.l.bf16 %v7149_v26 }
 0x1c0   : > { %v7718_v31 = vpop.permute.xlu0 %4825  ;;  %v2554_v53 = vsel %vm2551_vm6, %v7641_v50, %v4562_v11  ;;  %v2555_v20 = vsel %vm2551_vm6, %v7645_v30, %v4563_v9  ;;  %v4583_v28 = vunpack.i.h.bf16 %v9288_v39  ;;  %v4582_v26 = vunpack.i.l.bf16 %v9288_v39 }
 0x1c1   : > { %5120 = vrot.lane.b32.xlu1 %v9283_v59, %s5405_s24  ;;  %v2552_v27 = vsel %vm2551_vm6, %v7652_v40, %v4557_v48  ;;  %v2553_v4 = vsel %vm2551_vm6, %v7655_v13, %v4558_v52  ;;  %v9290_v59 = vld [vmem:[#allocation59_spill] sm:$0xff]  ;;  %v7774_v50 = vsel %vm2551_vm6, %v7658_v51, %v4572_v41  ;;  %v7778_v30 = vsel %vm2551_vm6, %v7661_v36, %v4573_v54  ;;  %v9291_v40 = vld [vmem:[#allocation84_spill] sm:$0xff] }
 0x1c2   : > { %5115 = vrot.lane.b32.xlu0 %v9284_v32, %s5407_s30  ;;  %v4578_v32 = vunpack.i.h.bf16 %v9291_v40  ;;  %v4577_v13 = vunpack.i.l.bf16 %v9291_v40  ;;  %v7784_v9 = vsel %vm2551_vm6, %v7664_v38, %v4567_v33  ;;  %v7788_v11 = vsel %vm2551_vm6, %v7667_v25, %v4568_v58  ;;  %v9292_v36 = vld [vmem:[#allocation67_spill] sm:$0xff]  ;;  %v9293_v58 = vld [vmem:[#allocation58_spill] sm:$0xff] }
 0x1c3   : > { %v7742_v8 = vpop.permute.xlu1 %4840  ;;  %v4718_v51 = vunpack.i.h.bf16 %v7395_v3  ;;  %v4717_v52 = vunpack.i.l.bf16 %v7395_v3  ;;  %v7795_v41 = vsel %vm2551_vm6, %v2497_v1, %v4582_v26  ;;  %v7798_v38 = vsel %vm2551_vm6, %v2498_v49, %v4583_v28  ;;  %v9295_v26 = vld [vmem:[#allocation90_spill] sm:$0xff] }
 0x1c4   : > { %9285 = vst [vmem:[#allocation109_spill] sm:$0xff] %v7742_v8  ;;  %v7748_v7 = vpop.permute.xlu0 %4835  ;;  %v7803_v3 = vsel %vm2551_vm6, %v2495_v19, %v4577_v13  ;;  %v7806_v39 = vsel %vm2551_vm6, %v2496_v61, %v4578_v32  ;;  %v4588_v40 = vunpack.i.h.bf16 %v9295_v26  ;;  %v4587_v49 = vunpack.i.l.bf16 %v9295_v26  ;;  %v9297_v26 = vld [vmem:[#allocation76_spill] sm:$0xff] }
 0x1c5   : > { %5130 = vrot.lane.b32.xlu1 %v9286_v17, %s5406_s28  ;;  %v2617_v28 = vsel %vm2616_vm7, %v2552_v27, %v4717_v52 }
 0x1c6   : > { %5125 = vrot.lane.b32.xlu0 %v9287_v55, %s5405_s24 }
 0x1c7   : > { %v4851_v10 = vpop.permute.xlu1 %4850 }
 0x1c8   : > { %v7768_v42 = vpop.permute.xlu0 %4845  ;;  %v4853_v17 = vunpack.i.h.bf16 %v4851_v10  ;;  %v4852_v54 = vunpack.i.l.bf16 %v4851_v10 }
 0x1c9   : > { %9289 = vst [vmem:[#allocation37_spill] sm:$0xff] %v7768_v42  ;;  %5140 = vrot.lane.b32.xlu1 %v9290_v59, %s5407_s30  ;;  %v9294_v59 = vld [vmem:[#allocation87_spill] sm:$0xff]  ;;  %v4722_v42 = vunpack.i.l.bf16 %v7385_v34 }
 0x1ca   : > { %5135 = vrot.lane.b32.xlu0 %v9292_v36, %s5406_s28  ;;  %v4593_v10 = vunpack.i.h.bf16 %v9294_v59  ;;  %v4592_v1 = vunpack.i.l.bf16 %v9294_v59  ;;  %v2618_v36 = vsel %vm2616_vm7, %v2553_v4, %v4718_v51  ;;  %v2682_v61 = vsel %vm2681_vm8, %v2617_v28, %v4852_v54 }
 0x1cb   : > { %v4861_v48 = vpop.permute.xlu1 %4860  ;;  %v2683_v32 = vsel %vm2681_vm8, %v2618_v36, %v4853_v17  ;;  %v4723_v59 = vunpack.i.h.bf16 %v7385_v34  ;;  %v9298_v36 = vld [vmem:[#allocation57_spill] sm:$0xff] }
 0x1cc   : > { %v4863_v33 = vunpack.i.h.bf16 %v4861_v48  ;;  %v4862_v55 = vunpack.i.l.bf16 %v4861_v48  ;;  %v4856_v25 = vpop.permute.xlu0 %4855  ;;  %v9296_v48 = vld [vmem:[#allocation54_spill] sm:$0xff] }
 0x1cd   : > { %5150 = vrot.lane.b32.xlu1 %v9293_v58, %s5405_s24  ;;  %v4858_v51 = vunpack.i.h.bf16 %v4856_v25  ;;  %v4857_v52 = vunpack.i.l.bf16 %v4856_v25  ;;  %v9299_v25 = vld [vmem:[#allocation91_spill] sm:$0xff] }
 0x1ce   : > { %5145 = vrot.lane.b32.xlu0 %v9296_v48, %s5407_s30  ;;  %v2747_v27 = vsel %vm2746_vm9, %v2682_v61, %v4862_v55  ;;  %v2748_v4 = vsel %vm2746_vm9, %v2683_v32, %v4863_v33  ;;  %v7834_v33 = vsel %vm2551_vm6, %v7708_v12, %v4593_v10  ;;  %v7838_v55 = vsel %vm2551_vm6, %v7712_v44, %v4587_v49 }
 0x1cf   : > { %v4871_v19 = vpop.permute.xlu1 %4870  ;;  %v2620_v61 = vsel %vm2616_vm7, %v2555_v20, %v4723_v59 }
 0x1d0   : > { %v4873_v13 = vunpack.i.h.bf16 %v4871_v19  ;;  %v4872_v58 = vunpack.i.l.bf16 %v4871_v19  ;;  %v4866_v8 = vpop.permute.xlu0 %4865  ;;  %v2685_v44 = vsel %vm2681_vm8, %v2620_v61, %v4858_v51  ;;  %v9304_v61 = vld [vmem:[#allocation93_spill] sm:$0xff] }
 0x1d1   : > { %5160 = vrot.lane.b32.xlu1 %v9297_v26, %s5406_s28  ;;  %v4868_v28 = vunpack.i.h.bf16 %v4866_v8  ;;  %v4867_v17 = vunpack.i.l.bf16 %v4866_v8  ;;  %v7830_v26 = vsel %vm2551_vm6, %v7704_v21, %v4592_v1  ;;  %v7842_v8 = vsel %vm2551_vm6, %v7716_v63, %v4588_v40  ;;  %v9300_v1 = vld [vmem:[#allocation75_spill] sm:$0xff] }
 0x1d2   : > { %v2812_v48 = vsel %vm2811_vm10, %v2747_v27, %v4872_v58  ;;  %v2813_v54 = vsel %vm2811_vm10, %v2748_v4, %v4873_v13  ;;  %5155 = vrot.lane.b32.xlu0 %v9298_v36, %s5405_s24  ;;  %v4602_v13 = vunpack.i.l.bf16 %v9299_v25  ;;  %v2619_v58 = vsel %vm2616_vm7, %v2554_v53, %v4722_v42  ;;  %v9301_v42 = vld [vmem:[#allocation72_spill] sm:$0xff] }
 0x1d3   : > { %v4881_v34 = vpop.permute.xlu1 %4880  ;;  %v2876_v19 = vpack.c.bf16 %v2813_v54, %v2812_v48  ;;  %v2684_v12 = vsel %vm2681_vm8, %v2619_v58, %v4857_v52  ;;  %v4728_v63 = vunpack.i.h.bf16 %v7403_v22  ;;  %v4727_v40 = vunpack.i.l.bf16 %v7403_v22 }
 0x1d4   : > { %v4876_v21 = vpop.permute.xlu0 %4875  ;;  %v2749_v53 = vsel %vm2746_vm9, %v2684_v12, %v4867_v17  ;;  %v2750_v20 = vsel %vm2746_vm9, %v2685_v44, %v4868_v28  ;;  %v4883_v59 = vunpack.i.h.bf16 %v4881_v34  ;;  %v4882_v27 = vunpack.i.l.bf16 %v4881_v34  ;;  %v9302_v17 = vld [vmem:[#allocation68_spill] sm:$0xff]  ;;  %v9305_v12 = vld [vmem:[#allocation66_spill] sm:$0xff] }
 0x1d5   : > { %5170 = vrot.lane.b32.xlu1 %v9300_v1, %s5407_s30  ;;  %3948 = vmatprep.mubr.msk.bf16.mxu0 %vm2944_vm11, %v2876_v19  ;;  %v4878_v10 = vunpack.i.h.bf16 %v4876_v21  ;;  %v4877_v49 = vunpack.i.l.bf16 %v4876_v21  ;;  %v4603_v52 = vunpack.i.h.bf16 %v9299_v25  ;;  %v7865_v28 = vsel %vm2551_vm6, %v7723_v35, %v4602_v13  ;;  %v9303_v19 = vld [vmem:[#allocation92_spill] sm:$0xff] }
 0x1d6   : > { %5165 = vrot.lane.b32.xlu0 %v9301_v42, %s5406_s28  ;;  %v4598_v58 = vunpack.i.h.bf16 %v9303_v19  ;;  %v4597_v34 = vunpack.i.l.bf16 %v9303_v19  ;;  %v4607_v21 = vunpack.i.l.bf16 %v9304_v61  ;;  %v2621_v25 = vsel %vm2616_vm7, %v7784_v9, %v4727_v40  ;;  %v9306_v40 = vld [vmem:[#allocation83_spill] sm:$0xff] }
 0x1d7   : > { %v4891_v32 = vpop.permute.xlu1 %4890  ;;  %v2814_v4 = vsel %vm2811_vm10, %v2749_v53, %v4877_v49  ;;  %v2815_v51 = vsel %vm2811_vm10, %v2750_v20, %v4878_v10  ;;  %v2622_v1 = vsel %vm2616_vm7, %v7788_v11, %v4728_v63  ;;  %v2686_v35 = vsel %vm2681_vm8, %v2621_v25, %v4882_v27 }
 0x1d8   : > { %v2877_v48 = vpack.c.bf16 %v2815_v51, %v2814_v4  ;;  %v4893_v54 = vunpack.i.h.bf16 %v4891_v32  ;;  %v4892_v36 = vunpack.i.l.bf16 %v4891_v32  ;;  %v4886_v22 = vpop.permute.xlu0 %4885  ;;  %v2687_v13 = vsel %vm2681_vm8, %v2622_v1, %v4883_v59 }
 0x1d9   : > { %5180 = vrot.lane.b32.xlu1 %v9302_v17, %s5405_s24  ;;  %v4733_v53 = vunpack.i.h.bf16 %v7401_v56  ;;  %v4732_v20 = vunpack.i.l.bf16 %v7401_v56  ;;  %v4888_v42 = vunpack.i.h.bf16 %v4886_v22  ;;  %v4887_v32 = vunpack.i.l.bf16 %v4886_v22 }
 0x1da   : > { %5175 = vrot.lane.b32.xlu0 %v9305_v12, %s5407_s30  ;;  %3949 = vmatmul.mubr.msk.bf16.vlgmr.msra.gmra.mxu0 %vm2944_vm11, %v2877_v48  ;;  %v2751_v9 = vsel %vm2746_vm9, %v2686_v35, %v4892_v36  ;;  %v2752_v11 = vsel %vm2746_vm9, %v2687_v13, %v4893_v54  ;;  %v7889_v4 = vsel %vm2551_vm6, %v7726_v47, %v4603_v52  ;;  %v9307_v36 = vld [vmem:[#allocation64_spill] sm:$0xff]  ;;  %v4608_v19 = vunpack.i.h.bf16 %v9304_v61  ;;  %v9309_v12 = vld [vmem:[#allocation78_spill] sm:$0xff] }
 0x1db   : > { %v4901_v44 = vpop.permute.xlu1 %4900  ;;  %v7895_v17 = vsel %vm2551_vm6, %v7729_v46, %v4597_v34  ;;  %v7899_v22 = vsel %vm2551_vm6, %v7732_v23, %v4598_v58  ;;  %v7904_v47 = vsel %vm2551_vm6, %v7735_v43, %v4607_v21  ;;  %v2623_v52 = vsel %vm2616_vm7, %v7774_v50, %v4732_v20  ;;  %v9308_v46 = vld [vmem:[#allocation102_spill] sm:$0xff] }
 0x1dc   : > { %v4903_v10 = vunpack.i.h.bf16 %v4901_v44  ;;  %v4902_v49 = vunpack.i.l.bf16 %v4901_v44  ;;  %v4896_v63 = vpop.permute.xlu0 %4895  ;;  %v2624_v25 = vsel %vm2616_vm7, %v7778_v30, %v4733_v53  ;;  %v2688_v58 = vsel %vm2681_vm8, %v2623_v52, %v4887_v32  ;;  %v9311_v32 = vld [vmem:[#allocation81_spill] sm:$0xff] }
 0x1dd   : > { %5190 = vrot.lane.b32.xlu1 %v9306_v40, %s5406_s28  ;;  %v4898_v56 = vunpack.i.h.bf16 %v4896_v63  ;;  %v4897_v48 = vunpack.i.l.bf16 %v4896_v63  ;;  %v2689_v23 = vsel %vm2681_vm8, %v2624_v25, %v4888_v42  ;;  %v4738_v43 = vunpack.i.h.bf16 %v7415_v6  ;;  %v9310_v63 = vld [vmem:[#allocation134_spill] sm:$0xff] }
 0x1de   : > { %v2816_v27 = vsel %vm2811_vm10, %v2751_v9, %v4902_v49  ;;  %v2817_v59 = vsel %vm2811_vm10, %v2752_v11, %v4903_v10  ;;  %5185 = vrot.lane.b32.xlu0 %v9307_v36, %s5405_s24  ;;  %v4737_v21 = vunpack.i.l.bf16 %v7415_v6  ;;  %v7925_v53 = vsel %vm2551_vm6, %v7738_v16, %v4608_v19  ;;  %v9312_v19 = vld [vmem:[#allocation86_spill] sm:$0xff] }
 0x1df   : > { %v2878_v51 = vpack.c.bf16 %v2817_v59, %v2816_v27  ;;  %v4911_v54 = vpop.permute.xlu1 %4910  ;;  %v2753_v50 = vsel %vm2746_vm9, %v2688_v58, %v4897_v48  ;;  %v2754_v30 = vsel %vm2746_vm9, %v2689_v23, %v4898_v56  ;;  %v2626_v42 = vsel %vm2616_vm7, %v7806_v39, %v4738_v43 }
 0x1e0   : > { %v4906_v1 = vpop.permute.xlu0 %4905  ;;  %v4913_v35 = vunpack.i.h.bf16 %v4911_v54  ;;  %v4912_v13 = vunpack.i.l.bf16 %v4911_v54  ;;  %v2625_v40 = vsel %vm2616_vm7, %v7803_v3, %v4737_v21  ;;  %v4743_v48 = vunpack.i.h.bf16 %v7409_v45 }
 0x1e1   : > { %5200 = vrot.lane.b32.xlu1 %v9308_v46, %s5407_s30  ;;  %3952 = vmatprep.mubr.msk.bf16.mxu0 %vm2944_vm11, %v2878_v51  ;;  %v4908_v34 = vunpack.i.h.bf16 %v4906_v1  ;;  %v4907_v61 = vunpack.i.l.bf16 %v4906_v1  ;;  %v4742_v36 = vunpack.i.l.bf16 %v7409_v45 }
 0x1e2   : > { %5195 = vrot.lane.b32.xlu0 %v9309_v12, %s5406_s28  ;;  %v2690_v27 = vsel %vm2681_vm8, %v2625_v40, %v4912_v13  ;;  %v2691_v59 = vsel %vm2681_vm8, %v2626_v42, %v4913_v35  ;;  %v2628_v21 = vsel %vm2616_vm7, %v7798_v38, %v4743_v48 }
 0x1e3   : > { %v4921_v44 = vpop.permute.xlu1 %4920  ;;  %v2818_v10 = vsel %vm2811_vm10, %v2753_v50, %v4907_v61  ;;  %v2819_v49 = vsel %vm2811_vm10, %v2754_v30, %v4908_v34  ;;  %v9313_v61 = vld [vmem:[#allocation79_spill] sm:$0xff]  ;;  %v2627_v43 = vsel %vm2616_vm7, %v7795_v41, %v4742_v36  ;;  %v9314_v30 = vld [vmem:[#allocation106_spill] sm:$0xff] }
 0x1e4   : > { %v2879_v20 = vpack.c.bf16 %v2819_v49, %v2818_v10  ;;  %v4923_v6 = vunpack.i.h.bf16 %v4921_v44  ;;  %v4922_v9 = vunpack.i.l.bf16 %v4921_v44  ;;  %v4916_v11 = vpop.permute.xlu0 %4915  ;;  %v4748_v10 = vunpack.i.h.bf16 %v7443_v37  ;;  %v9319_v36 = vld [vmem:[#allocation151_spill] sm:$0xff] }
 0x1e5   : > { %5210 = vrot.lane.b32.xlu1 %v9310_v63, %s5405_s24  ;;  %v4918_v52 = vunpack.i.h.bf16 %v4916_v11  ;;  %v4917_v25 = vunpack.i.l.bf16 %v4916_v11  ;;  %v4747_v49 = vunpack.i.l.bf16 %v7443_v37  ;;  %v9316_v37 = vld [vmem:[#allocation104_spill] sm:$0xff] }
 0x1e6   : > { %5205 = vrot.lane.b32.xlu0 %v9311_v32, %s5407_s30  ;;  %3953 = vmatmul.mubr.msk.bf16.gmra.mxu0 %vm2944_vm11, %v2879_v20  ;;  %v2755_v3 = vsel %vm2746_vm9, %v2690_v27, %v4922_v9  ;;  %v2756_v39 = vsel %vm2746_vm9, %v2691_v59, %v4923_v6  ;;  %v9315_v20 = vld [vmem:[#allocation85_spill] sm:$0xff] }
 0x1e7   : > { %v4931_v16 = vpop.permute.xlu1 %4930  ;;  %v2693_v12 = vsel %vm2681_vm8, %v2628_v21, %v4918_v52  ;;  %v2692_v44 = vsel %vm2681_vm8, %v2627_v43, %v4917_v25  ;;  %v9317_v59 = vld [vmem:[#allocation137_spill] sm:$0xff] }
 0x1e8   : > { %v4933_v51 = vunpack.i.h.bf16 %v4931_v16  ;;  %v4932_v56 = vunpack.i.l.bf16 %v4931_v16  ;;  %v4926_v54 = vpop.permute.xlu0 %4925  ;;  %v9321_v25 = vld [vmem:[#allocation141_spill] sm:$0xff] }
 0x1e9   : > { %5220 = vrot.lane.b32.xlu1 %v9312_v19, %s5406_s28  ;;  %v4928_v58 = vunpack.i.h.bf16 %v4926_v54  ;;  %v4927_v34 = vunpack.i.l.bf16 %v4926_v54  ;;  %v2629_v54 = vsel %vm2616_vm7, %v7838_v55, %v4747_v49  ;;  %v2630_v19 = vsel %vm2616_vm7, %v7842_v8, %v4748_v10 }
 0x1ea   : > { %v2820_v1 = vsel %vm2811_vm10, %v2755_v3, %v4932_v56  ;;  %v2821_v46 = vsel %vm2811_vm10, %v2756_v39, %v4933_v51  ;;  %5215 = vrot.lane.b32.xlu0 %v9313_v61, %s5405_s24  ;;  %v1559_v51 = vrot.slane %v9317_v59, 2  ;;  %v9318_v56 = vld [vmem:[#allocation138_spill] sm:$0xff]  ;;  %v9320_v3 = vunpack.c.l.bf16 %v9319_v36  ;;  %v9326_v36 = vld [vmem:[#allocation89_spill] sm:$0xff] }
 0x1eb   : > { %v2880_v23 = vpack.c.bf16 %v2821_v46, %v2820_v1  ;;  %v4941_v45 = vpop.permute.xlu1 %4940  ;;  %v2757_v41 = vsel %vm2746_vm9, %v2692_v44, %v4927_v34  ;;  %v2758_v38 = vsel %vm2746_vm9, %v2693_v12, %v4928_v58  ;;  %v1561_v48 = vrot.slane %v9318_v56, 2  ;;  %v9322_v46 = vld [vmem:[#allocation142_spill] sm:$0xff] }
 0x1ec   : > { %v4936_v50 = vpop.permute.xlu0 %4935  ;;  %v4943_v9 = vunpack.i.h.bf16 %v4941_v45  ;;  %v4942_v11 = vunpack.i.l.bf16 %v4941_v45  ;;  %v1563_v39 = vrot.slane %v9320_v3, 2  ;;  %v1556_v1 = vrot.slane %v9321_v25, 2 }
 0x1ed   : > { %5230 = vrot.lane.b32.xlu1 %v9314_v30, %s5407_s30  ;;  %3956 = vmatprep.mubr.msk.bf16.mxu0 %vm2944_vm11, %v2880_v23  ;;  %v4938_v35 = vunpack.i.h.bf16 %v4936_v50  ;;  %v4937_v13 = vunpack.i.l.bf16 %v4936_v50  ;;  %v1557_v23 = vrot.slane %v9322_v46, 2  ;;  %v4753_v55 = vunpack.i.h.bf16 %v7426_v29  ;;  %v9323_v30 = vld [vmem:[#allocation136_spill] sm:$0xff] }
 0x1ee   : > { %5225 = vrot.lane.b32.xlu0 %v9315_v20, %s5406_s28  ;;  %v2694_v58 = vsel %vm2681_vm8, %v2629_v54, %v4942_v11  ;;  %v2695_v34 = vsel %vm2681_vm8, %v2630_v19, %v4943_v9  ;;  %v4752_v8 = vunpack.i.l.bf16 %v7426_v29  ;;  %v1562_v20 = vsel %vm821_vm1, %v1559_v51, %v1561_v48 }
 0x1ef   : > { %v4951_v6 = vpop.permute.xlu1 %4950  ;;  %v2822_v63 = vsel %vm2811_vm10, %v2757_v41, %v4937_v13  ;;  %v2823_v40 = vsel %vm2811_vm10, %v2758_v38, %v4938_v35  ;;  %v9324_v38 = vld [vmem:[#allocation140_spill] sm:$0xff]  ;;  %v1558_v9 = vsel %vm821_vm1, %v1556_v1, %v1557_v23  ;;  %v4757_v56 = vunpack.i.l.bf16 %v7477_v57 }
 0x1f0   : > { %v2881_v42 = vpack.c.bf16 %v2823_v40, %v2822_v63  ;;  %v4953_v32 = vunpack.i.h.bf16 %v4951_v6  ;;  %v4952_v16 = vunpack.i.l.bf16 %v4951_v6  ;;  %v4946_v27 = vpop.permute.xlu0 %4945  ;;  %v1564_v6 = vsel %vm821_vm1, %v1561_v48, %v1563_v39  ;;  %v3900_v39 = vld [vmem:[%s5471_s5 + $0x158] sm:$0xff]  }
 0x1f1   : > { %5240 = vrot.lane.b32.xlu1 %v9316_v37, %s5404_s10  ;;  %v4948_v12 = vunpack.i.h.bf16 %v4946_v27  ;;  %v4947_v44 = vunpack.i.l.bf16 %v4946_v27  ;;  %v2631_v11 = vsel %vm2616_vm7, %v7830_v26, %v4752_v8  ;;  %v2632_v63 = vsel %vm2616_vm7, %v7834_v33, %v4753_v55 }
 0x1f2   : > { %5235 = vrot.lane.b32.xlu0 %v9316_v37, %s5407_s30  ;;  %3957 = vmatmul.mubr.msk.bf16.gmra.mxu0 %vm2944_vm11, %v2881_v42  ;;  %v2759_v43 = vsel %vm2746_vm9, %v2694_v58, %v4952_v16  ;;  %v2760_v21 = vsel %vm2746_vm9, %v2695_v34, %v4953_v32  ;;  %v9325_v42 = vld [vmem:[#allocation88_spill] sm:$0xff]  ;;  %v1560_v32 = vsel %vm821_vm1, %v1557_v23, %v1559_v51  ;;  %v4758_v26 = vunpack.i.h.bf16 %v7477_v57 }
 0x1f3   : > { %v4961_v52 = vpop.permute.xlu1 %4960  ;;  %v2697_v16 = vsel %vm2681_vm8, %v2632_v63, %v4948_v12  ;;  %v2696_v27 = vsel %vm2681_vm8, %v2631_v11, %v4947_v44  ;;  %v312_v51 = vld [vmem:[%s5471_s5 + $0x154] ss:$12 sps:$4 sm:$0xff]   ;;  %v8017_v34 = vpack.i.bf16 %v1564_v6, %v1562_v20  ;;  %v2633_v8 = vsel %vm2616_vm7, %v7895_v17, %v4757_v56 }
 0x1f4   : > { %v4963_v61 = vunpack.i.h.bf16 %v4961_v52  ;;  %v4962_v45 = vunpack.i.l.bf16 %v4961_v52  ;;  %v4956_v50 = vpop.permute.xlu0 %4955  ;;  %v9327_v58 = vld [vmem:[#allocation108_spill] sm:$0xff]  ;;  %v8023_v55 = vunpack.c.h.bf16 %v312_v51  ;;  %v8034_v12 = vunpack.c.l.bf16 %v312_v51 }
 0x1f5   : > { %5250 = vrot.lane.b32.xlu1 %v9323_v30, %s5405_s24  ;;  %v4958_v49 = vunpack.i.h.bf16 %v4956_v50  ;;  %v4957_v41 = vunpack.i.l.bf16 %v4956_v50  ;;  %v8032_v30 = vunpack.c.l.bf16 %v3900_v39  ;;  %v9329_v56 = vld [vmem:[#allocation144_spill] sm:$0xff] }
 0x1f6   : > { %v2824_v35 = vsel %vm2811_vm10, %v2759_v43, %v4962_v45  ;;  %v2825_v13 = vsel %vm2811_vm10, %v2760_v21, %v4963_v61  ;;  %5245 = vrot.lane.b32.xlu0 %v9324_v38, %s5405_s24  ;;  %v8019_v61 = vpack.i.bf16 %v1560_v32, %v1558_v9  ;;  %v8021_v45 = vunpack.c.h.bf16 %v3900_v39  ;;  %v9328_v21 = vld [vmem:[#allocation110_spill] sm:$0xff] }
 0x1f7   : > { %v2882_v10 = vpack.c.bf16 %v2825_v13, %v2824_v35  ;;  %v4971_v29 = vpop.permute.xlu1 %4970  ;;  %v2761_v33 = vsel %vm2746_vm9, %v2696_v27, %v4957_v41  ;;  %v2762_v48 = vsel %vm2746_vm9, %v2697_v16, %v4958_v49  ;;  %v2634_v43 = vsel %vm2616_vm7, %v7899_v22, %v4758_v26 }
 0x1f8   : > { %v4966_v40 = vpop.permute.xlu0 %4965  ;;  %v4973_v54 = vunpack.i.h.bf16 %v4971_v29  ;;  %v4972_v19 = vunpack.i.l.bf16 %v4971_v29  ;;  %v4762_v22 = vunpack.i.l.bf16 %v7467_v62  ;;  %v313_v29 = vld [vmem:[%s5471_s5 + $0x164] sm:$0x1]  ;;  %v5329_v32 = vpack.i.bf16 %v8023_v55, %v8021_v45 }
 0x1f9   : > { %5260 = vrot.lane.b32.xlu1 %v9325_v42, %s5406_s28  ;;  %3960 = vmatprep.mubr.msk.bf16.mxu0 %vm2944_vm11, %v2882_v10  ;;  %v4968_v37 = vunpack.i.h.bf16 %v4966_v40  ;;  %v4967_v59 = vunpack.i.l.bf16 %v4966_v40  ;;  %v4763_v10 = vunpack.i.h.bf16 %v7467_v62  ;;  %v5324_v16 = vpack.i.bf16 %v8032_v30, %v8034_v12 }
 0x1fa   : > { %5255 = vrot.lane.b32.xlu0 %v9326_v36, %s5406_s28  ;;  %v2698_v44 = vsel %vm2681_vm8, %v2633_v8, %v4972_v19  ;;  %v2699_v35 = vsel %vm2681_vm8, %v2634_v43, %v4973_v54  ;;  %v403_v27 = vunpack.c.l.bf16 %v313_v29 }
 0x1fb   : > { %v4981_v3 = vpop.permute.xlu1 %4980  ;;  %v2826_v52 = vsel %vm2811_vm10, %v2761_v33, %v4967_v59  ;;  %v2827_v25 = vsel %vm2811_vm10, %v2762_v48, %v4968_v37  ;;  %v2635_v37 = vsel %vm2616_vm7, %v7865_v28, %v4762_v22  ;;  %v2636_v59 = vsel %vm2616_vm7, %v7889_v4, %v4763_v10 }
 0x1fc   : > { %v2883_v1 = vpack.c.bf16 %v2827_v25, %v2826_v52  ;;  %v4983_v46 = vunpack.i.h.bf16 %v4981_v3  ;;  %v4982_v23 = vunpack.i.l.bf16 %v4981_v3  ;;  %v4976_v57 = vpop.permute.xlu0 %4975  ;;  %v1957_v33 = vrot.slane %v8021_v45, 1  ;;  %v9330_v52 = vld [vmem:[#allocation146_spill] sm:$0xff] }
 0x1fd   : > { %5270 = vrot.lane.b32.xlu1 %v9327_v58, %s5407_s30  ;;  %v4978_v20 = vunpack.i.h.bf16 %v4976_v57  ;;  %v4977_v6 = vunpack.i.l.bf16 %v4976_v57  ;;  %v1959_v48 = vrot.slane %v8023_v55, 1  ;;  %v4768_v28 = vunpack.i.h.bf16 %v7511_v24 }
 0x1fe   : > { %5265 = vrot.lane.b32.xlu0 %v9328_v21, %s5407_s30  ;;  %3961 = vmatmul.mubr.msk.bf16.gmra.mxu0 %vm2944_vm11, %v2883_v1  ;;  %v2763_v49 = vsel %vm2746_vm9, %v2698_v44, %v4982_v23  ;;  %v2764_v41 = vsel %vm2746_vm9, %v2699_v35, %v4983_v46  ;;  %v4767_v4 = vunpack.i.l.bf16 %v7511_v24  ;;  %v9331_v24 = vld [vmem:[#allocation69_spill] sm:$0xff]  ;;  %v1954_v35 = vrot.slane %v8034_v12, 1 }
 0x1ff   : > { %v4991_v50 = vpop.permute.xlu1 %4990  ;;  %v2701_v36 = vsel %vm2681_vm8, %v2636_v59, %v4978_v20  ;;  %v2700_v3 = vsel %vm2681_vm8, %v2635_v37, %v4977_v6  ;;  %v8075_v44 = vsel %vm484_vm0, %v1957_v33, %v1959_v48  ;;  %v2638_v22 = vsel %vm2616_vm7, %v7925_v53, %v4768_v28 }
 0x200   : > { %v4993_v13 = vunpack.i.h.bf16 %v4991_v50  ;;  %v4992_v17 = vunpack.i.l.bf16 %v4991_v50  ;;  %v4986_v38 = vpop.permute.xlu0 %4985  ;;  %v1961_v50 = vrot.slane %v403_v27, 1  ;;  %v2637_v10 = vsel %vm2616_vm7, %v7904_v47, %v4767_v4 }
 0x201   : > { %5280 = vrot.lane.b32.xlu1 %v9327_v58, %s5404_s10  ;;  %v4988_v40 = vunpack.i.h.bf16 %v4986_v38  ;;  %v4987_v42 = vunpack.i.l.bf16 %v4986_v38  ;;  %v2160_v38 = vrot.slane %v8023_v55, 2  ;;  %v2162_v29 = vrot.slane %v403_v27, 2 }
 0x202   : > { %v2828_v9 = vsel %vm2811_vm10, %v2763_v49, %v4992_v17  ;;  %v2829_v11 = vsel %vm2811_vm10, %v2764_v41, %v4993_v13  ;;  %5275 = vrot.lane.b32.xlu0 %v9328_v21, %s5404_s10  ;;  %v1955_v13 = vrot.slane %v8032_v30, 1  ;;  %v2158_v17 = vrot.slane %v8021_v45, 2  ;;  %v9332_v49 = vld [vmem:[#allocation73_spill] sm:$0xff] }
 0x203   : > { %v2884_v63 = vpack.c.bf16 %v2829_v11, %v2828_v9  ;;  %v5001_v62 = vpop.permute.xlu1 %5000  ;;  %v2765_v54 = vsel %vm2746_vm9, %v2700_v3, %v4987_v42  ;;  %v2766_v19 = vsel %vm2746_vm9, %v2701_v36, %v4988_v40  ;;  %v4773_v47 = vunpack.i.h.bf16 %v7491_v5 }
 0x204   : > { %v4996_v26 = vpop.permute.xlu0 %4995  ;;  %v5003_v1 = vunpack.i.h.bf16 %v5001_v62  ;;  %v5002_v46 = vunpack.i.l.bf16 %v5001_v62  ;;  %v1962_v3 = vsel %vm484_vm0, %v1959_v48, %v1961_v50  ;;  %v2161_v28 = vsel %vm821_vm1, %v2158_v17, %v2160_v38 }
 0x205   : > { %5290 = vrot.lane.b32.xlu1 %v9329_v56, %s5405_s24  ;;  %3964 = vmatprep.mubr.msk.bf16.mxu0 %vm2944_vm11, %v2884_v63  ;;  %v4998_v39 = vunpack.i.h.bf16 %v4996_v26  ;;  %v4997_v51 = vunpack.i.l.bf16 %v4996_v26  ;;  %v4772_v63 = vunpack.i.l.bf16 %v7491_v5  ;;  %v2155_v4 = vrot.slane %v8034_v12, 2 }
 0x206   : > { %5285 = vrot.lane.b32.xlu0 %v9330_v52, %s5405_s24  ;;  %v2702_v20 = vsel %vm2681_vm8, %v2637_v10, %v5002_v46  ;;  %v2703_v6 = vsel %vm2681_vm8, %v2638_v22, %v5003_v1  ;;  %v2156_v48 = vrot.slane %v8032_v30, 2 }
 0x207   : > { %v5011_v25 = vpop.permute.xlu1 %5010  ;;  %v2830_v23 = vsel %vm2811_vm10, %v2765_v54, %v4997_v51  ;;  %v2831_v57 = vsel %vm2811_vm10, %v2766_v19, %v4998_v39  ;;  %v1956_v39 = vsel %vm484_vm0, %v1954_v35, %v1955_v13  ;;  %v1958_v51 = vsel %vm484_vm0, %v1955_v13, %v1957_v33 }
 0x208   : > { %v2885_v58 = vpack.c.bf16 %v2831_v57, %v2830_v23  ;;  %v5013_v8 = vunpack.i.h.bf16 %v5011_v25  ;;  %v5012_v43 = vunpack.i.l.bf16 %v5011_v25  ;;  %v5006_v21 = vpop.permute.xlu0 %5005  ;;  %v2639_v54 = vsel %vm2616_vm7, %v7185_v18, %v4772_v63 }
 0x209   : > { %5300 = vrot.lane.b32.xlu1 %v9331_v24, %s5406_s28  ;;  %v5008_v62 = vunpack.i.h.bf16 %v5006_v21  ;;  %v5007_v27 = vunpack.i.l.bf16 %v5006_v21  ;;  %v2640_v19 = vsel %vm2616_vm7, %v7189_v15, %v4773_v47  ;;  %v2163_v33 = vsel %vm821_vm1, %v2160_v38, %v2162_v29 }
 0x20a   : > { %5295 = vrot.lane.b32.xlu0 %v9332_v49, %s5406_s28  ;;  %3965 = vmatmul.mubr.msk.bf16.gmra.mxu0 %vm2944_vm11, %v2885_v58  ;;  %v2767_v53 = vsel %vm2746_vm9, %v2702_v20, %v5012_v43  ;;  %v2768_v40 = vsel %vm2746_vm9, %v2703_v6, %v5013_v8  ;;  %v4778_v18 = vunpack.i.h.bf16 %v7549_v0  ;;  %v4777_v15 = vunpack.i.l.bf16 %v7549_v0  ;;  %v9333_v6 = vld [vmem:[#allocation43_spill] sm:$0xff] }
 0x20b   : > { %v5021_v41 = vpop.permute.xlu1 %5020  ;;  %v2705_v25 = vsel %vm2681_vm8, %v2640_v19, %v5008_v62  ;;  %v2704_v1 = vsel %vm2681_vm8, %v2639_v54, %v5007_v27  ;;  %v5339_v0 = vpack.i.bf16 %v1962_v3, %v8075_v44  ;;  %v5334_v22 = vpack.i.bf16 %v1958_v51, %v1956_v39  ;;  %v9334_v27 = vld [vmem:[#allocation94_spill] sm:$0xff]  ;;  %v9336_v51 = vld [vmem:[#allocation40_spill] sm:$0xff] }
 0x20c   : > { %v5023_v9 = vunpack.i.h.bf16 %v5021_v41  ;;  %v5022_v11 = vunpack.i.l.bf16 %v5021_v41  ;;  %v5016_v42 = vpop.permute.xlu0 %5015  ;;  %v2157_v49 = vsel %vm821_vm1, %v2155_v4, %v2156_v48  ;;  %v2641_v41 = vsel %vm2616_vm7, %v7207_v60, %v4777_v15 }
 0x20d   : > { %5310 = vrot.lane.b32.xlu1 %v8017_v34, %s5407_s30  ;;  %v5018_v56 = vunpack.i.h.bf16 %v5016_v42  ;;  %v5017_v36 = vunpack.i.l.bf16 %v5016_v42  ;;  %v2642_v38 = vsel %vm2616_vm7, %v7211_v14, %v4778_v18  ;;  %v4783_v14 = vunpack.i.h.bf16 %v9333_v6 }
 0x20e   : > { %v2832_v37 = vsel %vm2811_vm10, %v2767_v53, %v5022_v11  ;;  %v2833_v59 = vsel %vm2811_vm10, %v2768_v40, %v5023_v9  ;;  %5305 = vrot.lane.b32.xlu0 %v8019_v61, %s5407_s30  ;;  %v4782_v9 = vunpack.i.l.bf16 %v9333_v6  ;;  %v4787_v4 = vunpack.i.l.bf16 %v9336_v51  ;;  %v9340_v6 = vld [vmem:[#allocation95_spill] sm:$0xff] }
 0x20f   : > { %v2886_v26 = vpack.c.bf16 %v2833_v59, %v2832_v37  ;;  %v5031_v5 = vpop.permute.xlu1 %5030  ;;  %v2769_v57 = vsel %vm2746_vm9, %v2704_v1, %v5017_v36  ;;  %v9335_v59 = vld [vmem:[#allocation152_spill] sm:$0xff] }
 0x210   : > { %v5026_v52 = vpop.permute.xlu0 %5025  ;;  %v5033_v8 = vunpack.i.h.bf16 %v5031_v5  ;;  %v5032_v43 = vunpack.i.l.bf16 %v5031_v5  ;;  %v2643_v37 = vsel %vm2616_vm7, %v9334_v27, %v4782_v9  ;;  %v9341_v9 = vld [vmem:[#allocation96_spill] sm:$0xff] }
 0x211   : > { %5320 = vrot.lane.b32.xlu1 %v8017_v34, %s5404_s10  ;;  %3968 = vmatprep.mubr.msk.bf16.mxu0 %vm2944_vm11, %v2886_v26  ;;  %v5028_v46 = vunpack.i.h.bf16 %v5026_v52  ;;  %v5027_v23 = vunpack.i.l.bf16 %v5026_v52  ;;  %v2770_v34 = vsel %vm2746_vm9, %v2705_v25, %v5018_v56  ;;  %v2644_v26 = vsel %vm2616_vm7, %v9335_v59, %v4783_v14 }
 0x212   : > { %5315 = vrot.lane.b32.xlu0 %v8019_v61, %s5404_s10  ;;  %v5349_v61 = vpack.i.bf16 %v2163_v33, %v2161_v28  ;;  %v2706_v44 = vsel %vm2681_vm8, %v2641_v41, %v5032_v43  ;;  %v2707_v29 = vsel %vm2681_vm8, %v2642_v38, %v5033_v8  ;;  %v4788_v28 = vunpack.i.h.bf16 %v9336_v51 }
 0x213   : > { %v5041_v58 = vpop.permute.xlu1 %5040  ;;  %v2834_v21 = vsel %vm2811_vm10, %v2769_v57, %v5027_v23  ;;  %v2835_v24 = vsel %vm2811_vm10, %v2770_v34, %v5028_v46  ;;  %v9337_v57 = vld [vmem:[#allocation97_spill] sm:$0xff] }
 0x214   : > { %v2887_v50 = vpack.c.bf16 %v2835_v24, %v2834_v21  ;;  %v5043_v35 = vunpack.i.h.bf16 %v5041_v58  ;;  %v5042_v13 = vunpack.i.l.bf16 %v5041_v58  ;;  %v5036_v10 = vpop.permute.xlu0 %5035  ;;  %v2645_v34 = vsel %vm2616_vm7, %v9337_v57, %v4787_v4  ;;  %v9338_v58 = vld [vmem:[#allocation99_spill] sm:$0xff] }
 0x215   : > { %5330 = vrot.lane.b32.xlu1 %v5329_v32, %s5405_s24  ;;  %v2159_v32 = vsel %vm821_vm1, %v2156_v48, %v2158_v17  ;;  %v5038_v45 = vunpack.i.h.bf16 %v5036_v10  ;;  %v5037_v11 = vunpack.i.l.bf16 %v5036_v10  ;;  %v2646_v8 = vsel %vm2616_vm7, %v9338_v58, %v4788_v28  ;;  %v9344_v28 = vld [vmem:[#allocation19_spill] sm:$0xff] }
 0x216   : > { %5325 = vrot.lane.b32.xlu0 %v5324_v16, %s5405_s24  ;;  %3969 = vmatmul.mubr.msk.bf16.gmra.mxu0 %vm2944_vm11, %v2887_v50  ;;  %v2771_v30 = vsel %vm2746_vm9, %v2706_v44, %v5042_v13  ;;  %v2772_v12 = vsel %vm2746_vm9, %v2707_v29, %v5043_v35  ;;  %v5344_v62 = vpack.i.bf16 %v2159_v32, %v2157_v49  ;;  %v9339_v13 = vld [vmem:[#allocation127_spill] sm:$0xff] }
 0x217   : > { %v5051_v55 = vpop.permute.xlu1 %5050  ;;  %v2709_v36 = vsel %vm2681_vm8, %v2644_v26, %v5038_v45  ;;  %v2708_v5 = vsel %vm2681_vm8, %v2643_v37, %v5037_v11  ;;  %v4793_v10 = vunpack.i.h.bf16 %v9339_v13 }
 0x218   : > { %v5053_v60 = vunpack.i.h.bf16 %v5051_v55  ;;  %v5052_v20 = vunpack.i.l.bf16 %v5051_v55  ;;  %v5046_v16 = vpop.permute.xlu0 %5045 }
 0x219   : > { %5340 = vrot.lane.b32.xlu1 %v5339_v0, %s5406_s28  ;;  %v5048_v53 = vunpack.i.h.bf16 %v5046_v16  ;;  %v5047_v40 = vunpack.i.l.bf16 %v5046_v16  ;;  %v4792_v0 = vunpack.i.l.bf16 %v9339_v13 }
 0x21a   : > { %v2836_v17 = vsel %vm2811_vm10, %v2771_v30, %v5052_v20  ;;  %v2837_v47 = vsel %vm2811_vm10, %v2772_v12, %v5053_v60  ;;  %5335 = vrot.lane.b32.xlu0 %v5334_v22, %s5406_s28  ;;  %v2648_v30 = vsel %vm2616_vm7, %v9341_v9, %v4793_v10  ;;  %v9347_v10 = vld [vmem:[#allocation20_spill] sm:$0xff] }
 0x21b   : > { %v2888_v63 = vpack.c.bf16 %v2837_v47, %v2836_v17  ;;  %v5061_v42 = vpop.permute.xlu1 %5060  ;;  %v2773_v54 = vsel %vm2746_vm9, %v2708_v5, %v5047_v40  ;;  %v2774_v19 = vsel %vm2746_vm9, %v2709_v36, %v5048_v53  ;;  %v2647_v14 = vsel %vm2616_vm7, %v9340_v6, %v4792_v0  ;;  %v9342_v47 = vld [vmem:[#allocation101_spill] sm:$0xff] }
 0x21c   : > { %v5056_v56 = vpop.permute.xlu0 %5055  ;;  %v5063_v33 = vunpack.i.h.bf16 %v5061_v42  ;;  %v5062_v48 = vunpack.i.l.bf16 %v5061_v42  ;;  %v4797_v53 = vunpack.i.l.bf16 %v9342_v47 }
 0x21d   : > { %5350 = vrot.lane.b32.xlu1 %v5349_v61, %s5407_s30  ;;  %3972 = vmatprep.mubr.msk.bf16.mxu0 %vm2944_vm11, %v2888_v63  ;;  %v5058_v3 = vunpack.i.h.bf16 %v5056_v56  ;;  %v5057_v39 = vunpack.i.l.bf16 %v5056_v56  ;;  %v4798_v63 = vunpack.i.h.bf16 %v9342_v47 }
 0x21e   : > { %5345 = vrot.lane.b32.xlu0 %v5344_v62, %s5407_s30  ;;  %v2710_v21 = vsel %vm2681_vm8, %v2645_v34, %v5062_v48  ;;  %v2711_v24 = vsel %vm2681_vm8, %v2646_v8, %v5063_v33 }
 0x21f   : > { %v5071_v52 = vpop.permute.xlu1 %5070  ;;  %v2838_v25 = vsel %vm2811_vm10, %v2773_v54, %v5057_v39  ;;  %v2839_v1 = vsel %vm2811_vm10, %v2774_v19, %v5058_v3  ;;  %v9343_v39 = vld [vmem:[#allocation114_spill] sm:$0xff]  ;;  %v2650_v4 = vsel %vm2616_vm7, %v9344_v28, %v4798_v63  ;;  %v9350_v63 = vld [vmem:[#allocation25_spill] sm:$0xff] }
 0x220   : > { %v2889_v46 = vpack.c.bf16 %v2839_v1, %v2838_v25  ;;  %v5073_v23 = vunpack.i.h.bf16 %v5071_v52  ;;  %v5072_v18 = vunpack.i.l.bf16 %v5071_v52  ;;  %v5066_v15 = vpop.permute.xlu0 %5065  ;;  %v2649_v51 = vsel %vm2616_vm7, %v9343_v39, %v4797_v53  ;;  %v9345_v25 = vld [vmem:[#allocation39_spill] sm:$0xff] }
 0x221   : > { %v5068_v41 = vunpack.i.h.bf16 %v5066_v15  ;;  %v5067_v38 = vunpack.i.l.bf16 %v5066_v15  ;;  %v4803_v1 = vunpack.i.h.bf16 %v9345_v25 }
 0x222   : > { %3973 = vmatmul.mubr.msk.bf16.gmra.mxu0 %vm2944_vm11, %v2889_v46  ;;  %v2775_v22 = vsel %vm2746_vm9, %v2710_v21, %v5072_v18  ;;  %v2776_v61 = vsel %vm2746_vm9, %v2711_v24, %v5073_v23  ;;  %v4802_v46 = vunpack.i.l.bf16 %v9345_v25 }
 0x223   : > { %v5081_v43 = vpop.permute.xlu1 %5080  ;;  %v2713_v16 = vsel %vm2681_vm8, %v2648_v30, %v5068_v41  ;;  %v2712_v45 = vsel %vm2681_vm8, %v2647_v14, %v5067_v38  ;;  %v2652_v0 = vsel %vm2616_vm7, %v9347_v10, %v4803_v1  ;;  %v9353_v1 = vld [vmem:[#allocation27_spill] sm:$0xff] }
 0x224   : > { %v5083_v50 = vunpack.i.h.bf16 %v5081_v43  ;;  %v5082_v35 = vunpack.i.l.bf16 %v5081_v43  ;;  %v5076_v49 = vpop.permute.xlu0 %5075 }
 0x225   : > { %v5078_v29 = vunpack.i.h.bf16 %v5076_v49  ;;  %v5077_v60 = vunpack.i.l.bf16 %v5076_v49 }
 0x226   : > { %v2840_v55 = vsel %vm2811_vm10, %v2775_v22, %v5082_v35  ;;  %v2841_v32 = vsel %vm2811_vm10, %v2776_v61, %v5083_v50  ;;  %v9346_v35 = vld [vmem:[#allocation116_spill] sm:$0xff] }
 0x227   : > { %v2890_v44 = vpack.c.bf16 %v2841_v32, %v2840_v55  ;;  %v5091_v20 = vpop.permute.xlu1 %5090  ;;  %v2777_v40 = vsel %vm2746_vm9, %v2712_v45, %v5077_v60  ;;  %v2778_v42 = vsel %vm2746_vm9, %v2713_v16, %v5078_v29  ;;  %v2651_v13 = vsel %vm2616_vm7, %v9346_v35, %v4802_v46  ;;  %v9348_v55 = vld [vmem:[#allocation130_spill] sm:$0xff] }
 0x228   : > { %v5086_v12 = vpop.permute.xlu0 %5085  ;;  %v5093_v27 = vunpack.i.h.bf16 %v5091_v20  ;;  %v5092_v37 = vunpack.i.l.bf16 %v5091_v20  ;;  %v4808_v32 = vunpack.i.h.bf16 %v9348_v55 }
 0x229   : > { %3976 = vmatprep.mubr.msk.bf16.mxu0 %vm2944_vm11, %v2890_v44  ;;  %v5088_v11 = vunpack.i.h.bf16 %v5086_v12  ;;  %v5087_v17 = vunpack.i.l.bf16 %v5086_v12  ;;  %v4807_v44 = vunpack.i.l.bf16 %v9348_v55 }
 0x22a   : > { %v2714_v19 = vsel %vm2681_vm8, %v2649_v51, %v5092_v37  ;;  %v2715_v52 = vsel %vm2681_vm8, %v2650_v4, %v5093_v27  ;;  %v2654_v53 = vsel %vm2616_vm7, %v9350_v63, %v4808_v32  ;;  %v9356_v32 = vld [vmem:[#allocation124_spill] sm:$0xff] }
 0x22b   : > { %v5101_v62 = vpop.permute.xlu1 %5100  ;;  %v2842_v59 = vsel %vm2811_vm10, %v2777_v40, %v5087_v17  ;;  %v2843_v26 = vsel %vm2811_vm10, %v2778_v42, %v5088_v11  ;;  %v9349_v17 = vld [vmem:[#allocation118_spill] sm:$0xff] }
 0x22c   : > { %v2891_v56 = vpack.c.bf16 %v2843_v26, %v2842_v59  ;;  %v5103_v36 = vunpack.i.h.bf16 %v5101_v62  ;;  %v5102_v5 = vunpack.i.l.bf16 %v5101_v62  ;;  %v5096_v3 = vpop.permute.xlu0 %5095  ;;  %v2653_v47 = vsel %vm2616_vm7, %v9349_v17, %v4807_v44  ;;  %v9351_v59 = vld [vmem:[#allocation103_spill] sm:$0xff] }
 0x22d   : > { %v5098_v57 = vunpack.i.h.bf16 %v5096_v3  ;;  %v5097_v34 = vunpack.i.l.bf16 %v5096_v3  ;;  %v4813_v26 = vunpack.i.h.bf16 %v9351_v59 }
 0x22e   : > { %3977 = vmatmul.mubr.msk.bf16.gmra.mxu0 %vm2944_vm11, %v2891_v56  ;;  %v2779_v18 = vsel %vm2746_vm9, %v2714_v19, %v5102_v5  ;;  %v2780_v15 = vsel %vm2746_vm9, %v2715_v52, %v5103_v36  ;;  %v4812_v56 = vunpack.i.l.bf16 %v9351_v59 }
 0x22f   : > { %v5111_v54 = vpop.permute.xlu1 %5110  ;;  %v2717_v61 = vsel %vm2681_vm8, %v2652_v0, %v5098_v57  ;;  %v2716_v49 = vsel %vm2681_vm8, %v2651_v13, %v5097_v34  ;;  %v2656_v46 = vsel %vm2616_vm7, %v9353_v1, %v4813_v26  ;;  %v9359_v26 = vld [vmem:[#allocation121_spill] sm:$0xff] }
 0x230   : > { %v5113_v33 = vunpack.i.h.bf16 %v5111_v54  ;;  %v5112_v48 = vunpack.i.l.bf16 %v5111_v54  ;;  %v5106_v23 = vpop.permute.xlu0 %5105 }
 0x231   : > { %v5108_v43 = vunpack.i.h.bf16 %v5106_v23  ;;  %v5107_v21 = vunpack.i.l.bf16 %v5106_v23 }
 0x232   : > { %v2844_v58 = vsel %vm2811_vm10, %v2779_v18, %v5112_v48  ;;  %v2845_v8 = vsel %vm2811_vm10, %v2780_v15, %v5113_v33  ;;  %v9352_v48 = vld [vmem:[#allocation119_spill] sm:$0xff] }
 0x233   : > { %v5121_v24 = vpop.permute.xlu1 %5120  ;;  %v2892_v50 = vpack.c.bf16 %v2845_v8, %v2844_v58  ;;  %v2781_v29 = vsel %vm2746_vm9, %v2716_v49, %v5107_v21  ;;  %v2782_v60 = vsel %vm2746_vm9, %v2717_v61, %v5108_v43  ;;  %v2655_v25 = vsel %vm2616_vm7, %v9352_v48, %v4812_v56  ;;  %v9354_v58 = vld [vmem:[#allocation107_spill] sm:$0xff] }
 0x234   : > { %v5116_v22 = vpop.permute.xlu0 %5115  ;;  %v5123_v6 = vunpack.i.h.bf16 %v5121_v24  ;;  %v5122_v14 = vunpack.i.l.bf16 %v5121_v24  ;;  %v4818_v8 = vunpack.i.h.bf16 %v9354_v58  ;;  %v4817_v43 = vunpack.i.l.bf16 %v9354_v58  ;;  %v9361_v58 = vld [vmem:[#allocation155_spill] sm:$0xff] }
 0x235   : > { %3980 = vmatprep.mubr.msk.bf16.mxu1 %vm2944_vm11, %v2892_v50  ;;  %v5118_v41 = vunpack.i.h.bf16 %v5116_v22  ;;  %v5117_v38 = vunpack.i.l.bf16 %v5116_v22 }
 0x236   : > { %v2718_v42 = vsel %vm2681_vm8, %v2653_v47, %v5122_v14  ;;  %v2719_v62 = vsel %vm2681_vm8, %v2654_v53, %v5123_v6  ;;  %v2658_v44 = vsel %vm2616_vm7, %v9356_v32, %v4818_v8 }
 0x237   : > { %v5131_v20 = vpop.permute.xlu1 %5130  ;;  %v2846_v9 = vsel %vm2811_vm10, %v2781_v29, %v5117_v38  ;;  %v2847_v30 = vsel %vm2811_vm10, %v2782_v60, %v5118_v41  ;;  %v9355_v38 = vld [vmem:[#allocation28_spill] sm:$0xff] }
 0x238   : > { %v2893_v12 = vpack.c.bf16 %v2847_v30, %v2846_v9  ;;  %v5133_v16 = vunpack.i.h.bf16 %v5131_v20  ;;  %v5132_v45 = vunpack.i.l.bf16 %v5131_v20  ;;  %v5126_v11 = vpop.permute.xlu0 %5125  ;;  %v2657_v55 = vsel %vm2616_vm7, %v9355_v38, %v4817_v43  ;;  %v9357_v9 = vld [vmem:[#allocation105_spill] sm:$0xff] }
 0x239   : > { %v5128_v39 = vunpack.i.h.bf16 %v5126_v11  ;;  %v5127_v51 = vunpack.i.l.bf16 %v5126_v11  ;;  %v4823_v30 = vunpack.i.h.bf16 %v9357_v9 }
 0x23a   : > { %3981 = vmatmul.mubr.msk.bf16.vlgmr.msra.gmra.mxu1 %vm2944_vm11, %v2893_v12  ;;  %v2783_v36 = vsel %vm2746_vm9, %v2718_v42, %v5132_v45  ;;  %v2784_v5 = vsel %vm2746_vm9, %v2719_v62, %v5133_v16  ;;  %v4822_v12 = vunpack.i.l.bf16 %v9357_v9 }
 0x23b   : > { %v5141_v40 = vpop.permute.xlu1 %5140  ;;  %v2721_v18 = vsel %vm2681_vm8, %v2656_v46, %v5128_v39  ;;  %v2720_v15 = vsel %vm2681_vm8, %v2655_v25, %v5127_v51  ;;  %v2660_v56 = vsel %vm2616_vm7, %v9359_v26, %v4823_v30 }
 0x23c   : > { %v5143_v27 = vunpack.i.h.bf16 %v5141_v40  ;;  %v5142_v37 = vunpack.i.l.bf16 %v5141_v40  ;;  %v5136_v3 = vpop.permute.xlu0 %5135 }
 0x23d   : > { %v5138_v19 = vunpack.i.h.bf16 %v5136_v3  ;;  %v5137_v52 = vunpack.i.l.bf16 %v5136_v3 }
 0x23e   : > { %v2848_v28 = vsel %vm2811_vm10, %v2783_v36, %v5142_v37  ;;  %v2849_v4 = vsel %vm2811_vm10, %v2784_v5, %v5143_v27  ;;  %v9358_v37 = vld [vmem:[#allocation122_spill] sm:$0xff] }
 0x23f   : > { %v2894_v54 = vpack.c.bf16 %v2849_v4, %v2848_v28  ;;  %v5151_v33 = vpop.permute.xlu1 %5150  ;;  %v2785_v21 = vsel %vm2746_vm9, %v2720_v15, %v5137_v52  ;;  %v2786_v24 = vsel %vm2746_vm9, %v2721_v18, %v5138_v19  ;;  %v2659_v59 = vsel %vm2616_vm7, %v9358_v37, %v4822_v12 }
 0x240   : > { %v5146_v23 = vpop.permute.xlu0 %5145  ;;  %v5153_v35 = vunpack.i.h.bf16 %v5151_v33  ;;  %v5152_v13 = vunpack.i.l.bf16 %v5151_v33  ;;  %v4828_v28 = vunpack.i.h.bf16 %v7718_v31  ;;  %v4827_v4 = vunpack.i.l.bf16 %v7718_v31 }
 0x241   : > { %3984 = vmatprep.mubr.msk.bf16.mxu1 %vm2944_vm11, %v2894_v54  ;;  %v5148_v57 = vunpack.i.h.bf16 %v5146_v23  ;;  %v5147_v34 = vunpack.i.l.bf16 %v5146_v23 }
 0x242   : > { %v2722_v60 = vsel %vm2681_vm8, %v2657_v55, %v5152_v13  ;;  %v2723_v20 = vsel %vm2681_vm8, %v2658_v44, %v5153_v35  ;;  %v2662_v31 = vsel %vm2616_vm7, %v9361_v58, %v4828_v28  ;;  %v4833_v35 = vunpack.i.h.bf16 %v7694_v2 }
 0x243   : > { %v5161_v50 = vpop.permute.xlu1 %5160  ;;  %v2850_v10 = vsel %vm2811_vm10, %v2785_v21, %v5147_v34  ;;  %v2851_v0 = vsel %vm2811_vm10, %v2786_v24, %v5148_v57  ;;  %v9360_v57 = vld [vmem:[#allocation154_spill] sm:$0xff]  ;;  %v4832_v13 = vunpack.i.l.bf16 %v7694_v2 }
 0x244   : > { %v2895_v22 = vpack.c.bf16 %v2851_v0, %v2850_v10  ;;  %v5163_v61 = vunpack.i.h.bf16 %v5161_v50  ;;  %v5162_v49 = vunpack.i.l.bf16 %v5161_v50  ;;  %v5156_v41 = vpop.permute.xlu0 %5155  ;;  %v2661_v34 = vsel %vm2616_vm7, %v9360_v57, %v4827_v4 }
 0x245   : > { %v5158_v17 = vunpack.i.h.bf16 %v5156_v41  ;;  %v5157_v47 = vunpack.i.l.bf16 %v5156_v41 }
 0x246   : > { %3985 = vmatmul.mubr.msk.bf16.gmra.mxu1 %vm2944_vm11, %v2895_v22  ;;  %v2787_v16 = vsel %vm2746_vm9, %v2722_v60, %v5162_v49  ;;  %v2788_v45 = vsel %vm2746_vm9, %v2723_v20, %v5163_v61  ;;  %v9362_v60 = vld [vmem:[#allocation123_spill] sm:$0xff] }
 0x247   : > { %v5171_v29 = vpop.permute.xlu1 %5170  ;;  %v2725_v5 = vsel %vm2681_vm8, %v2660_v56, %v5158_v17  ;;  %v2724_v3 = vsel %vm2681_vm8, %v2659_v59, %v5157_v47  ;;  %v2663_v20 = vsel %vm2616_vm7, %v9362_v60, %v4832_v13  ;;  %v9364_v56 = vld [vmem:[#allocation98_spill] sm:$0xff] }
 0x248   : > { %v5173_v6 = vunpack.i.h.bf16 %v5171_v29  ;;  %v5172_v14 = vunpack.i.l.bf16 %v5171_v29  ;;  %v5166_v11 = vpop.permute.xlu0 %5165 }
 0x249   : > { %v5168_v42 = vunpack.i.h.bf16 %v5166_v11  ;;  %v5167_v62 = vunpack.i.l.bf16 %v5166_v11  ;;  %v4837_v11 = vunpack.i.l.bf16 %v7748_v7 }
 0x24a   : > { %v2852_v63 = vsel %vm2811_vm10, %v2787_v16, %v5172_v14  ;;  %v2853_v53 = vsel %vm2811_vm10, %v2788_v45, %v5173_v6  ;;  %v9363_v6 = vld [vmem:[#allocation153_spill] sm:$0xff]  ;;  %v4838_v45 = vunpack.i.h.bf16 %v7748_v7 }
 0x24b   : > { %v2896_v40 = vpack.c.bf16 %v2853_v53, %v2852_v63  ;;  %v5181_v27 = vpop.permute.xlu1 %5180  ;;  %v2789_v54 = vsel %vm2746_vm9, %v2724_v3, %v5167_v62  ;;  %v2790_v19 = vsel %vm2746_vm9, %v2725_v5, %v5168_v42  ;;  %v2664_v2 = vsel %vm2616_vm7, %v9363_v6, %v4833_v35  ;;  %v9365_v5 = vld [vmem:[#allocation157_spill] sm:$0xff] }
 0x24c   : > { %v5176_v36 = vpop.permute.xlu0 %5175  ;;  %v5183_v33 = vunpack.i.h.bf16 %v5181_v27  ;;  %v5182_v48 = vunpack.i.l.bf16 %v5181_v27  ;;  %v2666_v7 = vsel %vm2616_vm7, %v9365_v5, %v4838_v45 }
 0x24d   : > { %3988 = vmatprep.mubr.msk.bf16.mxu1 %vm2944_vm11, %v2896_v40  ;;  %v5178_v39 = vunpack.i.h.bf16 %v5176_v36  ;;  %v5177_v51 = vunpack.i.l.bf16 %v5176_v36  ;;  %v2665_v36 = vsel %vm2616_vm7, %v9364_v56, %v4837_v11  ;;  %v9370_v11 = vld [vmem:[#allocation125_spill] sm:$0xff] }
 0x24e   : > { %v2726_v43 = vsel %vm2681_vm8, %v2661_v34, %v5182_v48  ;;  %v2727_v21 = vsel %vm2681_vm8, %v2662_v31, %v5183_v33  ;;  %v9367_v31 = vld [vmem:[#allocation126_spill] sm:$0xff] }
 0x24f   : > { %v5191_v52 = vpop.permute.xlu1 %5190  ;;  %v2854_v25 = vsel %vm2811_vm10, %v2789_v54, %v5177_v51  ;;  %v2855_v1 = vsel %vm2811_vm10, %v2790_v19, %v5178_v39  ;;  %v9366_v54 = vld [vmem:[#allocation109_spill] sm:$0xff] }
 0x250   : > { %v2897_v46 = vpack.c.bf16 %v2855_v1, %v2854_v25  ;;  %v5193_v23 = vunpack.i.h.bf16 %v5191_v52  ;;  %v5192_v18 = vunpack.i.l.bf16 %v5191_v52  ;;  %v5186_v15 = vpop.permute.xlu0 %5185  ;;  %v4843_v19 = vunpack.i.h.bf16 %v9366_v54 }
 0x251   : > { %v5188_v61 = vunpack.i.h.bf16 %v5186_v15  ;;  %v5187_v49 = vunpack.i.l.bf16 %v5186_v15  ;;  %v4842_v52 = vunpack.i.l.bf16 %v9366_v54 }
 0x252   : > { %3989 = vmatmul.mubr.msk.bf16.gmra.mxu1 %vm2944_vm11, %v2897_v46  ;;  %v2791_v10 = vsel %vm2746_vm9, %v2726_v43, %v5192_v18  ;;  %v2792_v0 = vsel %vm2746_vm9, %v2727_v21, %v5193_v23  ;;  %v9368_v43 = vld [vmem:[#allocation156_spill] sm:$0xff] }
 0x253   : > { %v5201_v8 = vpop.permute.xlu1 %5200  ;;  %v2729_v9 = vsel %vm2681_vm8, %v2664_v2, %v5188_v61  ;;  %v2728_v30 = vsel %vm2681_vm8, %v2663_v20, %v5187_v49  ;;  %v2668_v21 = vsel %vm2616_vm7, %v9368_v43, %v4843_v19 }
 0x254   : > { %v5203_v24 = vunpack.i.h.bf16 %v5201_v8  ;;  %v5202_v50 = vunpack.i.l.bf16 %v5201_v8  ;;  %v5196_v22 = vpop.permute.xlu0 %5195  ;;  %v2667_v8 = vsel %vm2616_vm7, %v9367_v31, %v4842_v52 }
 0x255   : > { %v5198_v32 = vunpack.i.h.bf16 %v5196_v22  ;;  %v5197_v44 = vunpack.i.l.bf16 %v5196_v22 }
 0x256   : > { %v2856_v41 = vsel %vm2811_vm10, %v2791_v10, %v5202_v50  ;;  %v2857_v38 = vsel %vm2811_vm10, %v2792_v0, %v5203_v24 }
 0x257   : > { %v2898_v55 = vpack.c.bf16 %v2857_v38, %v2856_v41  ;;  %v5211_v29 = vpop.permute.xlu1 %5210  ;;  %v2793_v17 = vsel %vm2746_vm9, %v2728_v30, %v5197_v44  ;;  %v2794_v47 = vsel %vm2746_vm9, %v2729_v9, %v5198_v32  ;;  %v9369_v32 = vld [vmem:[#allocation37_spill] sm:$0xff] }
 0x258   : > { %v5206_v14 = vpop.permute.xlu0 %5205  ;;  %v5213_v53 = vunpack.i.h.bf16 %v5211_v29  ;;  %v5212_v40 = vunpack.i.l.bf16 %v5211_v29  ;;  %v4848_v44 = vunpack.i.h.bf16 %v9369_v32  ;;  %v4847_v29 = vunpack.i.l.bf16 %v9369_v32 }
 0x259   : > { %3992 = vmatprep.mubr.msk.bf16.mxu1 %vm2944_vm11, %v2898_v55  ;;  %v5208_v12 = vunpack.i.h.bf16 %v5206_v14  ;;  %v5207_v16 = vunpack.i.l.bf16 %v5206_v14 }
 0x25a   : > { %v2730_v39 = vsel %vm2681_vm8, %v2665_v36, %v5212_v40  ;;  %v2731_v51 = vsel %vm2681_vm8, %v2666_v7, %v5213_v53  ;;  %v9372_v53 = vld [vmem:[#allocation36_spill] sm:$0xff] }
 0x25b   : > { %v5221_v63 = vpop.permute.xlu1 %5220  ;;  %v2858_v42 = vsel %vm2811_vm10, %v2793_v17, %v5207_v16  ;;  %v2859_v62 = vsel %vm2811_vm10, %v2794_v47, %v5208_v12  ;;  %v2669_v17 = vsel %vm2616_vm7, %v9370_v11, %v4847_v29  ;;  %v9371_v47 = vld [vmem:[#allocation159_spill] sm:$0xff] }
 0x25c   : > { %v2899_v27 = vpack.c.bf16 %v2859_v62, %v2858_v42  ;;  %v5223_v37 = vunpack.i.h.bf16 %v5221_v63  ;;  %v5222_v59 = vunpack.i.l.bf16 %v5221_v63  ;;  %v5216_v26 = vpop.permute.xlu0 %5215  ;;  %v2670_v63 = vsel %vm2616_vm7, %v9371_v47, %v4848_v44  ;;  %v9373_v42 = vld [vmem:[#allocation158_spill] sm:$0xff]  ;;  %v9377_v44 = vld [vmem:[#allocation161_spill] sm:$0xff] }
 0x25d   : > { %v5218_v1 = vunpack.i.h.bf16 %v5216_v26  ;;  %v5217_v46 = vunpack.i.l.bf16 %v5216_v26 }
 0x25e   : > { %3993 = vmatmul.mubr.msk.bf16.gmra.mxu1 %vm2944_vm11, %v2899_v27  ;;  %v2795_v33 = vsel %vm2746_vm9, %v2730_v39, %v5222_v59  ;;  %v2796_v48 = vsel %vm2746_vm9, %v2731_v51, %v5223_v37 }
 0x25f   : > { %v5231_v3 = vpop.permute.xlu1 %5230  ;;  %v2733_v50 = vsel %vm2681_vm8, %v2668_v21, %v5218_v1  ;;  %v2732_v35 = vsel %vm2681_vm8, %v2667_v8, %v5217_v46 }
 0x260   : > { %v5233_v28 = vunpack.i.h.bf16 %v5231_v3  ;;  %v5232_v4 = vunpack.i.l.bf16 %v5231_v3  ;;  %v5226_v25 = vpop.permute.xlu0 %5225 }
 0x261   : > { %v5228_v57 = vunpack.i.h.bf16 %v5226_v25  ;;  %v5227_v34 = vunpack.i.l.bf16 %v5226_v25 }
 0x262   : > { %v2860_v23 = vsel %vm2811_vm10, %v2795_v33, %v5232_v4  ;;  %v2861_v18 = vsel %vm2811_vm10, %v2796_v48, %v5233_v28 }
 0x263   : > { %v2900_v15 = vpack.c.bf16 %v2861_v18, %v2860_v23  ;;  %v5241_v58 = vpop.permute.xlu1 %5240  ;;  %v2797_v0 = vsel %vm2746_vm9, %v2732_v35, %v5227_v34  ;;  %v2798_v22 = vsel %vm2746_vm9, %v2733_v50, %v5228_v57 }
 0x264   : > { %v5236_v24 = vpop.permute.xlu0 %5235  ;;  %v5243_v60 = vunpack.i.h.bf16 %v5241_v58  ;;  %v5242_v20 = vunpack.i.l.bf16 %v5241_v58 }
 0x265   : > { %3996 = vmatprep.mubr.msk.bf16.mxu1 %vm2944_vm11, %v2900_v15  ;;  %v5238_v13 = vunpack.i.h.bf16 %v5236_v24  ;;  %v5237_v10 = vunpack.i.l.bf16 %v5236_v24 }
 0x266   : > { %v2671_v40 = vsel %vm2616_vm7, %v9372_v53, %v5242_v20  ;;  %v2672_v62 = vsel %vm2616_vm7, %v9373_v42, %v5243_v60 }
 0x267   : > { %v5251_v61 = vpop.permute.xlu1 %5250  ;;  %v2862_v49 = vsel %vm2811_vm10, %v2797_v0, %v5237_v10  ;;  %v2863_v41 = vsel %vm2811_vm10, %v2798_v22, %v5238_v13 }
 0x268   : > { %v2901_v38 = vpack.c.bf16 %v2863_v41, %v2862_v49  ;;  %v5246_v55 = vpop.permute.xlu0 %5245  ;;  %v5253_v2 = vunpack.i.h.bf16 %v5251_v61  ;;  %v5252_v14 = vunpack.i.l.bf16 %v5251_v61  ;;  %v9374_v61 = vld [vmem:[#allocation34_spill] sm:$0xff]  ;;  %v9375_v41 = vld [vmem:[#allocation160_spill] sm:$0xff] }
 0x269   : > { %v5248_v9 = vunpack.i.h.bf16 %v5246_v55  ;;  %v5247_v30 = vunpack.i.l.bf16 %v5246_v55  ;;  %v9376_v55 = vld [vmem:[#allocation35_spill] sm:$0xff] }
 0x26a   : > { %3997 = vmatmul.mubr.msk.bf16.gmra.mxu1 %vm2944_vm11, %v2901_v38  ;;  %v2736_v26 = vsel %vm2681_vm8, %v2671_v40, %v5252_v14  ;;  %v2737_v56 = vsel %vm2681_vm8, %v2672_v62, %v5253_v2 }
 0x26b   : > { %v5261_v6 = vpop.permute.xlu1 %5260  ;;  %v2734_v7 = vsel %vm2681_vm8, %v2669_v17, %v5247_v30  ;;  %v2735_v3 = vsel %vm2681_vm8, %v2670_v63, %v5248_v9 }
 0x26c   : > { %v5263_v12 = vunpack.i.h.bf16 %v5261_v6  ;;  %v5262_v16 = vunpack.i.l.bf16 %v5261_v6  ;;  %v5256_v45 = vpop.permute.xlu0 %5255 }
 0x26d   : > { %v5258_v27 = vunpack.i.h.bf16 %v5256_v45  ;;  %v5257_v37 = vunpack.i.l.bf16 %v5256_v45 }
 0x26e   : > { %v2801_v39 = vsel %vm2746_vm9, %v2736_v26, %v5262_v16  ;;  %v2802_v51 = vsel %vm2746_vm9, %v2737_v56, %v5263_v12 }
 0x26f   : > { %v5271_v59 = vpop.permute.xlu1 %5270  ;;  %v2799_v33 = vsel %vm2746_vm9, %v2734_v7, %v5257_v37  ;;  %v2800_v48 = vsel %vm2746_vm9, %v2735_v3, %v5258_v27 }
 0x270   : > { %v5273_v36 = vunpack.i.h.bf16 %v5271_v59  ;;  %v5272_v5 = vunpack.i.l.bf16 %v5271_v59  ;;  %v5266_v28 = vpop.permute.xlu0 %5265 }
 0x271   : > { %v5268_v19 = vunpack.i.h.bf16 %v5266_v28  ;;  %v5267_v52 = vunpack.i.l.bf16 %v5266_v28 }
 0x272   : > { %v2866_v4 = vsel %vm2811_vm10, %v2801_v39, %v5272_v5  ;;  %v2867_v54 = vsel %vm2811_vm10, %v2802_v51, %v5273_v36 }
 0x273   : > { %v2903_v25 = vpack.c.bf16 %v2867_v54, %v2866_v4  ;;  %v5281_v1 = vpop.permute.xlu1 %5280  ;;  %v2864_v46 = vsel %vm2811_vm10, %v2799_v33, %v5267_v52  ;;  %v2865_v23 = vsel %vm2811_vm10, %v2800_v48, %v5268_v19 }
 0x274   : > { %v2902_v18 = vpack.c.bf16 %v2865_v23, %v2864_v46  ;;  %v5276_v15 = vpop.permute.xlu0 %5275  ;;  %v5283_v58 = vunpack.i.h.bf16 %v5281_v1  ;;  %v5282_v31 = vunpack.i.l.bf16 %v5281_v1  ;;  %v9378_v46 = vld [vmem:[#allocation128_spill] sm:$0xff] }
 0x275   : > { %v5278_v8 = vunpack.i.h.bf16 %v5276_v15  ;;  %v5277_v43 = vunpack.i.l.bf16 %v5276_v15 }
 0x276   : > { %4000 = vmatprep.mubr.msk.bf16.mxu1 %vm2944_vm11, %v2902_v18  ;;  %v2675_v49 = vsel %vm2616_vm7, %v9374_v61, %v5282_v31  ;;  %v2676_v38 = vsel %vm2616_vm7, %v9375_v41, %v5283_v58  ;;  %v9379_v18 = vld [vmem:[#allocation162_spill] sm:$0xff]  ;;  %v9381_v58 = vld [vmem:[#allocation163_spill] sm:$0xff] }
 0x277   : > { %v5291_v57 = vpop.permute.xlu1 %5290  ;;  %4001 = vmatmul.mubr.msk.bf16.gmra.mxu1 %vm2944_vm11, %v2903_v25  ;;  %v2673_v32 = vsel %vm2616_vm7, %v9376_v55, %v5277_v43  ;;  %v2674_v29 = vsel %vm2616_vm7, %v9377_v44, %v5278_v8 }
 0x278   : > { %v5286_v34 = vpop.permute.xlu0 %5285  ;;  %v5293_v24 = vunpack.i.h.bf16 %v5291_v57  ;;  %v5292_v50 = vunpack.i.l.bf16 %v5291_v57  ;;  %v9380_v57 = vld [vmem:[#allocation100_spill] sm:$0xff] }
 0x279   : > { %v5288_v35 = vunpack.i.h.bf16 %v5286_v34  ;;  %v5287_v13 = vunpack.i.l.bf16 %v5286_v34 }
 0x27a   : > { %v2740_v2 = vsel %vm2681_vm8, %v2675_v49, %v5292_v50  ;;  %v2741_v14 = vsel %vm2681_vm8, %v2676_v38, %v5293_v24 }
 0x27b   : > { %v5301_v21 = vpop.permute.xlu1 %5300  ;;  %v2738_v12 = vsel %vm2681_vm8, %v2673_v32, %v5287_v13  ;;  %v2739_v16 = vsel %vm2681_vm8, %v2674_v29, %v5288_v35 }
 0x27c   : > { %v5303_v10 = vunpack.i.h.bf16 %v5301_v21  ;;  %v5302_v0 = vunpack.i.l.bf16 %v5301_v21  ;;  %v5296_v22 = vpop.permute.xlu0 %5295 }
 0x27d   : > { %v5298_v60 = vunpack.i.h.bf16 %v5296_v22  ;;  %v5297_v20 = vunpack.i.l.bf16 %v5296_v22 }
 0x27e   : > { %v2805_v45 = vsel %vm2746_vm9, %v2740_v2, %v5302_v0  ;;  %v2806_v11 = vsel %vm2746_vm9, %v2741_v14, %v5303_v10 }
 0x27f   : > { %v5311_v6 = vpop.permute.xlu1 %5310  ;;  %v2803_v42 = vsel %vm2746_vm9, %v2738_v12, %v5297_v20  ;;  %v2804_v62 = vsel %vm2746_vm9, %v2739_v16, %v5298_v60 }
 0x280   : > { %v5313_v9 = vunpack.i.h.bf16 %v5311_v6  ;;  %v5312_v30 = vunpack.i.l.bf16 %v5311_v6  ;;  %v5306_v17 = vpop.permute.xlu0 %5305 }
 0x281   : > { %v5308_v53 = vunpack.i.h.bf16 %v5306_v17  ;;  %v5307_v40 = vunpack.i.l.bf16 %v5306_v17 }
 0x282   : > { %v2870_v47 = vsel %vm2811_vm10, %v2805_v45, %v5312_v30  ;;  %v2871_v63 = vsel %vm2811_vm10, %v2806_v11, %v5313_v9 }
 0x283   : > { %v2905_v27 = vpack.c.bf16 %v2871_v63, %v2870_v47  ;;  %v5321_v37 = vpop.permute.xlu1 %5320  ;;  %v2868_v59 = vsel %vm2811_vm10, %v2803_v42, %v5307_v40  ;;  %v2869_v26 = vsel %vm2811_vm10, %v2804_v62, %v5308_v53 }
 0x284   : > { %v2904_v56 = vpack.c.bf16 %v2869_v26, %v2868_v59  ;;  %v5316_v36 = vpop.permute.xlu0 %5315  ;;  %v5323_v3 = vunpack.i.h.bf16 %v5321_v37  ;;  %v5322_v39 = vunpack.i.l.bf16 %v5321_v37 }
 0x285   : > { %v5318_v51 = vunpack.i.h.bf16 %v5316_v36  ;;  %v5317_v28 = vunpack.i.l.bf16 %v5316_v36 }
 0x286   : > { %4004 = vmatprep.mubr.msk.bf16.mxu1 %vm2944_vm11, %v2904_v56  ;;  %v2679_v23 = vsel %vm2616_vm7, %v9378_v46, %v5322_v39  ;;  %v2680_v15 = vsel %vm2616_vm7, %v9379_v18, %v5323_v3 }
 0x287   : > { %v5331_v5 = vpop.permute.xlu1 %5330  ;;  %4005 = vmatmul.mubr.msk.bf16.gmra.mxu1 %vm2944_vm11, %v2905_v27  ;;  %v2677_v34 = vsel %vm2616_vm7, %v9380_v57, %v5317_v28  ;;  %v2678_v31 = vsel %vm2616_vm7, %v9381_v58, %v5318_v51 }
 0x288   : > { %v5326_v7 = vpop.permute.xlu0 %5325  ;;  %v5333_v54 = vunpack.i.h.bf16 %v5331_v5  ;;  %v5332_v19 = vunpack.i.l.bf16 %v5331_v5 }
 0x289   : > { %v5328_v52 = vunpack.i.h.bf16 %v5326_v7  ;;  %v5327_v33 = vunpack.i.l.bf16 %v5326_v7 }
 0x28a   : > { %v2744_v24 = vsel %vm2681_vm8, %v2679_v23, %v5332_v19  ;;  %v2745_v50 = vsel %vm2681_vm8, %v2680_v15, %v5333_v54 }
 0x28b   : > { %v5341_v4 = vpop.permute.xlu1 %5340  ;;  %v2742_v10 = vsel %vm2681_vm8, %v2677_v34, %v5327_v33  ;;  %v2743_v0 = vsel %vm2681_vm8, %v2678_v31, %v5328_v52 }
 0x28c   : > { %v5343_v48 = vunpack.i.h.bf16 %v5341_v4  ;;  %v5342_v25 = vunpack.i.l.bf16 %v5341_v4  ;;  %v5336_v1 = vpop.permute.xlu0 %5335 }
 0x28d   : > { %v5338_v8 = vunpack.i.h.bf16 %v5336_v1  ;;  %v5337_v43 = vunpack.i.l.bf16 %v5336_v1 }
 0x28e   : > { %v2809_v22 = vsel %vm2746_vm9, %v2744_v24, %v5342_v25  ;;  %v2810_v61 = vsel %vm2746_vm9, %v2745_v50, %v5343_v48 }
 0x28f   : > { %v5351_v21 = vpop.permute.xlu1 %5350  ;;  %v2807_v44 = vsel %vm2746_vm9, %v2742_v10, %v5337_v43  ;;  %v2808_v29 = vsel %vm2746_vm9, %v2743_v0, %v5338_v8 }
 0x290   : > { %v5353_v35 = vunpack.i.h.bf16 %v5351_v21  ;;  %v5352_v13 = vunpack.i.l.bf16 %v5351_v21  ;;  %v5346_v49 = vpop.permute.xlu0 %5345 }
 0x291   : > { %v5348_v55 = vunpack.i.h.bf16 %v5346_v49  ;;  %v5347_v32 = vunpack.i.l.bf16 %v5346_v49 }
 0x292   : > { %v2874_v41 = vsel %vm2811_vm10, %v2809_v22, %v5352_v13  ;;  %v2875_v38 = vsel %vm2811_vm10, %v2810_v61, %v5353_v35 }
 0x293   : > { %v2907_v60 = vpack.c.bf16 %v2875_v38, %v2874_v41  ;;  %v2872_v20 = vsel %vm2811_vm10, %v2807_v44, %v5347_v32  ;;  %v2873_v6 = vsel %vm2811_vm10, %v2808_v29, %v5348_v55 }
 0x294   : > { %v2906_v2 = vpack.c.bf16 %v2873_v6, %v2872_v20 }
 0x296   : > { %4008 = vmatprep.mubr.msk.bf16.mxu1 %vm2944_vm11, %v2906_v2 }
 0x297   : > { %4009 = vmatmul.mubr.msk.bf16.gmra.mxu1 %vm2944_vm11, %v2907_v60 }
 0x29a   : > { %v3950_v14 = vpop.f32.mrf.mxu0 }
 0x29b   : > { %3336 = vst [vmem:[%s5461_s26 + $0x10] sm:$0xff] %v3950_v14  ;;  %v3469_v17 = vmul.f32 %v3950_v14, %v3950_v14 }
 0x29c   : > { %v3079_v9 = vpop.f32.mrf.mxu0 }
 0x29d   : > { %3334 = vst [vmem:[%s5461_s26] sm:$0xff] %v3079_v9  ;;  %v3467_v16 = vmul.f32 %v3079_v9, %v3079_v9 }
 0x29e   : > { %v3951_v30 = vpop.f32.mrf.mxu0 }
 0x29f   : > { %3337 = vst [vmem:[%s5461_s26 + $0x18] sm:$0xff] %v3951_v30  ;;  %v3470_v53 = vmul.f32 %v3951_v30, %v3951_v30 }
 0x2a0   : > { %v3082_v12 = vpop.f32.mrf.mxu0 }
 0x2a1   : > { %3335 = vst [vmem:[%s5461_s26 + $0x8] sm:$0xff] %v3082_v12  ;;  %v3398_v45 = vadd.f32 %v3082_v12, %v3079_v9  ;;  %v3468_v11 = vmul.f32 %v3082_v12, %v3082_v12 }
 0x2a3   : > { %v3399_v47 = vadd.f32 %v3950_v14, %v3398_v45  ;;  %v3531_v63 = vadd.f32 %v3468_v11, %v3467_v16 }
 0x2a5   : > { %v3532_v40 = vadd.f32 %v3531_v63, %v3469_v17  ;;  %v3400_v42 = vadd.f32 %v3951_v30, %v3399_v47 }
 0x2a6   : > { %v3954_v62 = vpop.f32.mrf.mxu0 }
 0x2a7   : > { %3340 = vst [vmem:[%s5461_s26 + $0x30] sm:$0xff] %v3954_v62  ;;  %v3533_v27 = vadd.f32 %v3532_v40, %v3470_v53  ;;  %v3473_v39 = vmul.f32 %v3954_v62, %v3954_v62 }
 0x2a8   : > { %v3095_v37 = vpop.f32.mrf.mxu0 }
 0x2a9   : > { %3338 = vst [vmem:[%s5461_s26 + $0x20] sm:$0xff] %v3095_v37  ;;  %v3401_v59 = vadd.f32 %v3400_v42, %v3095_v37  ;;  %v3471_v26 = vmul.f32 %v3095_v37, %v3095_v37 }
 0x2aa   : > { %v3955_v56 = vpop.f32.mrf.mxu0 }
 0x2ab   : > { %v3534_v36 = vadd.f32 %v3533_v27, %v3471_v26  ;;  %3341 = vst [vmem:[%s5461_s26 + $0x38] sm:$0xff] %v3955_v56  ;;  %v3474_v4 = vmul.f32 %v3955_v56, %v3955_v56 }
 0x2ac   : > { %v3098_v5 = vpop.f32.mrf.mxu0 }
 0x2ad   : > { %3339 = vst [vmem:[%s5461_s26 + $0x28] sm:$0xff] %v3098_v5  ;;  %v3402_v7 = vadd.f32 %v3401_v59, %v3098_v5  ;;  %v3472_v3 = vmul.f32 %v3098_v5, %v3098_v5 }
 0x2af   : > { %v3403_v51 = vadd.f32 %v3954_v62, %v3402_v7  ;;  %v3535_v28 = vadd.f32 %v3534_v36, %v3472_v3 }
 0x2b1   : > { %v3536_v54 = vadd.f32 %v3535_v28, %v3473_v39  ;;  %v3404_v19 = vadd.f32 %v3955_v56, %v3403_v51 }
 0x2b2   : > { %v3958_v52 = vpop.f32.mrf.mxu0 }
 0x2b3   : > { %3344 = vst [vmem:[%s5461_s26 + $0x50] sm:$0xff] %v3958_v52  ;;  %v3537_v33 = vadd.f32 %v3536_v54, %v3474_v4  ;;  %v3477_v34 = vmul.f32 %v3958_v52, %v3958_v52 }
 0x2b4   : > { %v3111_v48 = vpop.f32.mrf.mxu0 }
 0x2b5   : > { %3342 = vst [vmem:[%s5461_s26 + $0x40] sm:$0xff] %v3111_v48  ;;  %v3405_v25 = vadd.f32 %v3404_v19, %v3111_v48  ;;  %v3475_v1 = vmul.f32 %v3111_v48, %v3111_v48 }
 0x2b6   : > { %v3959_v46 = vpop.f32.mrf.mxu0 }
 0x2b7   : > { %3345 = vst [vmem:[%s5461_s26 + $0x58] sm:$0xff] %v3959_v46  ;;  %v3538_v18 = vadd.f32 %v3537_v33, %v3475_v1  ;;  %v3478_v8 = vmul.f32 %v3959_v46, %v3959_v46 }
 0x2b8   : > { %v3114_v23 = vpop.f32.mrf.mxu0 }
 0x2b9   : > { %3343 = vst [vmem:[%s5461_s26 + $0x48] sm:$0xff] %v3114_v23  ;;  %v3406_v15 = vadd.f32 %v3405_v25, %v3114_v23  ;;  %v3476_v57 = vmul.f32 %v3114_v23, %v3114_v23 }
 0x2bb   : > { %v3407_v58 = vadd.f32 %v3958_v52, %v3406_v15  ;;  %v3539_v31 = vadd.f32 %v3538_v18, %v3476_v57 }
 0x2bd   : > { %v3540_v43 = vadd.f32 %v3539_v31, %v3477_v34  ;;  %v3408_v21 = vadd.f32 %v3959_v46, %v3407_v58 }
 0x2be   : > { %v3962_v24 = vpop.f32.mrf.mxu0 }
 0x2bf   : > { %3348 = vst [vmem:[%s5461_s26 + $0x70] sm:$0xff] %v3962_v24  ;;  %v3541_v50 = vadd.f32 %v3540_v43, %v3478_v8  ;;  %v3481_v38 = vmul.f32 %v3962_v24, %v3962_v24 }
 0x2c0   : > { %v3127_v35 = vpop.f32.mrf.mxu0 }
 0x2c1   : > { %3346 = vst [vmem:[%s5461_s26 + $0x60] sm:$0xff] %v3127_v35  ;;  %v3479_v13 = vmul.f32 %v3127_v35, %v3127_v35  ;;  %v3409_v0 = vadd.f32 %v3408_v21, %v3127_v35 }
 0x2c2   : > { %v3963_v10 = vpop.f32.mrf.mxu0 }
 0x2c3   : > { %3349 = vst [vmem:[%s5461_s26 + $0x78] sm:$0xff] %v3963_v10  ;;  %v3542_v61 = vadd.f32 %v3541_v50, %v3479_v13  ;;  %v3482_v14 = vmul.f32 %v3963_v10, %v3963_v10 }
 0x2c4   : > { %v3130_v22 = vpop.f32.mrf.mxu0 }
 0x2c5   : > { %3347 = vst [vmem:[%s5461_s26 + $0x68] sm:$0xff] %v3130_v22  ;;  %v3410_v49 = vadd.f32 %v3409_v0, %v3130_v22  ;;  %v3480_v41 = vmul.f32 %v3130_v22, %v3130_v22 }
 0x2c7   : > { %v3411_v55 = vadd.f32 %v3962_v24, %v3410_v49  ;;  %v3543_v32 = vadd.f32 %v3542_v61, %v3480_v41 }
 0x2c9   : > { %v3544_v44 = vadd.f32 %v3543_v32, %v3481_v38  ;;  %v3412_v29 = vadd.f32 %v3963_v10, %v3411_v55 }
 0x2ca   : > { %v3966_v60 = vpop.f32.mrf.mxu0 }
 0x2cb   : > { %3352 = vst [vmem:[%s5461_s26 + $0x90] sm:$0xff] %v3966_v60  ;;  %v3545_v16 = vadd.f32 %v3544_v44, %v3482_v14  ;;  %v3485_v42 = vmul.f32 %v3966_v60, %v3966_v60 }
 0x2cc   : > { %v3143_v20 = vpop.f32.mrf.mxu0 }
 0x2cd   : > { %3350 = vst [vmem:[%s5461_s26 + $0x80] sm:$0xff] %v3143_v20  ;;  %v3483_v9 = vmul.f32 %v3143_v20, %v3143_v20  ;;  %v3413_v12 = vadd.f32 %v3412_v29, %v3143_v20 }
 0x2ce   : > { %v3967_v6 = vpop.f32.mrf.mxu0 }
 0x2cf   : > { %3353 = vst [vmem:[%s5461_s26 + $0x98] sm:$0xff] %v3967_v6  ;;  %v3546_v17 = vadd.f32 %v3545_v16, %v3483_v9  ;;  %v3486_v37 = vmul.f32 %v3967_v6, %v3967_v6 }
 0x2d0   : > { %v3146_v2 = vpop.f32.mrf.mxu0 }
 0x2d1   : > { %3351 = vst [vmem:[%s5461_s26 + $0x88] sm:$0xff] %v3146_v2  ;;  %v3484_v45 = vmul.f32 %v3146_v2, %v3146_v2  ;;  %v3414_v47 = vadd.f32 %v3413_v12, %v3146_v2 }
 0x2d3   : > { %v3547_v53 = vadd.f32 %v3546_v17, %v3484_v45  ;;  %v3415_v62 = vadd.f32 %v3966_v60, %v3414_v47 }
 0x2d5   : > { %v3548_v27 = vadd.f32 %v3547_v53, %v3485_v42  ;;  %v3416_v59 = vadd.f32 %v3967_v6, %v3415_v62 }
 0x2d6   : > { %v3970_v30 = vpop.f32.mrf.mxu0 }
 0x2d7   : > { %3356 = vst [vmem:[%s5461_s26 + $0xb0] sm:$0xff] %v3970_v30  ;;  %v3549_v5 = vadd.f32 %v3548_v27, %v3486_v37  ;;  %v3489_v19 = vmul.f32 %v3970_v30, %v3970_v30 }
 0x2d8   : > { %v3159_v11 = vpop.f32.mrf.mxu0 }
 0x2d9   : > { %3354 = vst [vmem:[%s5461_s26 + $0xa0] sm:$0xff] %v3159_v11  ;;  %v3487_v26 = vmul.f32 %v3159_v11, %v3159_v11  ;;  %v3417_v36 = vadd.f32 %v3416_v59, %v3159_v11 }
 0x2da   : > { %v3971_v63 = vpop.f32.mrf.mxu0 }
 0x2db   : > { %3357 = vst [vmem:[%s5461_s26 + $0xb8] sm:$0xff] %v3971_v63  ;;  %v3550_v39 = vadd.f32 %v3549_v5, %v3487_v26  ;;  %v3490_v48 = vmul.f32 %v3971_v63, %v3971_v63 }
 0x2dc   : > { %v3162_v40 = vpop.f32.mrf.mxu0 }
 0x2dd   : > { %3355 = vst [vmem:[%s5461_s26 + $0xa8] sm:$0xff] %v3162_v40  ;;  %v3488_v7 = vmul.f32 %v3162_v40, %v3162_v40  ;;  %v3418_v51 = vadd.f32 %v3417_v36, %v3162_v40 }
 0x2df   : > { %v3551_v4 = vadd.f32 %v3550_v39, %v3488_v7  ;;  %v3419_v52 = vadd.f32 %v3970_v30, %v3418_v51 }
 0x2e1   : > { %v3552_v33 = vadd.f32 %v3551_v4, %v3489_v19  ;;  %v3420_v25 = vadd.f32 %v3971_v63, %v3419_v52 }
 0x2e2   : > { %v3974_v56 = vpop.f32.mrf.mxu0 }
 0x2e3   : > { %3360 = vst [vmem:[%s5461_s26 + $0xd0] sm:$0xff] %v3974_v56  ;;  %v3553_v18 = vadd.f32 %v3552_v33, %v3490_v48  ;;  %v3493_v21 = vmul.f32 %v3974_v56, %v3974_v56 }
 0x2e4   : > { %v3175_v3 = vpop.f32.mrf.mxu0 }
 0x2e5   : > { %3358 = vst [vmem:[%s5461_s26 + $0xc0] sm:$0xff] %v3175_v3  ;;  %v3491_v1 = vmul.f32 %v3175_v3, %v3175_v3  ;;  %v3421_v23 = vadd.f32 %v3420_v25, %v3175_v3 }
 0x2e6   : > { %v3975_v28 = vpop.f32.mrf.mxu0 }
 0x2e7   : > { %3361 = vst [vmem:[%s5461_s26 + $0xd8] sm:$0xff] %v3975_v28  ;;  %v3554_v34 = vadd.f32 %v3553_v18, %v3491_v1  ;;  %v3494_v35 = vmul.f32 %v3975_v28, %v3975_v28 }
 0x2e8   : > { %v3178_v54 = vpop.f32.mrf.mxu0 }
 0x2e9   : > { %3359 = vst [vmem:[%s5461_s26 + $0xc8] sm:$0xff] %v3178_v54  ;;  %v3492_v15 = vmul.f32 %v3178_v54, %v3178_v54  ;;  %v3422_v58 = vadd.f32 %v3421_v23, %v3178_v54 }
 0x2eb   : > { %v3555_v8 = vadd.f32 %v3554_v34, %v3492_v15  ;;  %v3423_v24 = vadd.f32 %v3974_v56, %v3422_v58 }
 0x2ed   : > { %v3556_v50 = vadd.f32 %v3555_v8, %v3493_v21  ;;  %v3424_v13 = vadd.f32 %v3975_v28, %v3423_v24 }
 0x2ee   : > { %v3978_v46 = vpop.f32.mrf.mxu0 }
 0x2ef   : > { %3364 = vst [vmem:[%s5461_s26 + $0xf0] sm:$0xff] %v3978_v46  ;;  %v3557_v61 = vadd.f32 %v3556_v50, %v3494_v35  ;;  %v3497_v60 = vmul.f32 %v3978_v46, %v3978_v46 }
 0x2f0   : > { %v3191_v57 = vpop.f32.mrf.mxu0 }
 0x2f1   : > { %3362 = vst [vmem:[%s5461_s26 + $0xe0] sm:$0xff] %v3191_v57  ;;  %v3495_v10 = vmul.f32 %v3191_v57, %v3191_v57  ;;  %v3425_v22 = vadd.f32 %v3424_v13, %v3191_v57 }
 0x2f2   : > { %v3979_v31 = vpop.f32.mrf.mxu0 }
 0x2f3   : > { %3365 = vst [vmem:[%s5461_s26 + $0xf8] sm:$0xff] %v3979_v31  ;;  %v3558_v38 = vadd.f32 %v3557_v61, %v3495_v10  ;;  %v3498_v2 = vmul.f32 %v3979_v31, %v3979_v31 }
 0x2f4   : > { %v3194_v43 = vpop.f32.mrf.mxu0 }
 0x2f5   : > { %3363 = vst [vmem:[%s5461_s26 + $0xe8] sm:$0xff] %v3194_v43  ;;  %v3496_v49 = vmul.f32 %v3194_v43, %v3194_v43  ;;  %v3426_v55 = vadd.f32 %v3425_v22, %v3194_v43 }
 0x2f7   : > { %v3559_v44 = vadd.f32 %v3558_v38, %v3496_v49  ;;  %v3427_v20 = vadd.f32 %v3978_v46, %v3426_v55 }
 0x2f9   : > { %v3560_v6 = vadd.f32 %v3559_v44, %v3497_v60  ;;  %v3428_v14 = vadd.f32 %v3979_v31, %v3427_v20 }
 0x2fa   : > { %v3982_v0 = vpop.f32.mrf.mxu1 }
 0x2fb   : > { %3368 = vst [vmem:[%s5461_s26 + $0x110] sm:$0xff] %v3982_v0  ;;  %v3561_v16 = vadd.f32 %v3560_v6, %v3498_v2  ;;  %v3501_v42 = vmul.f32 %v3982_v0, %v3982_v0 }
 0x2fc   : > { %v3207_v41 = vpop.f32.mrf.mxu1 }
 0x2fd   : > { %3366 = vst [vmem:[%s5461_s26 + $0x100] sm:$0xff] %v3207_v41  ;;  %v3499_v9 = vmul.f32 %v3207_v41, %v3207_v41  ;;  %v3429_v12 = vadd.f32 %v3428_v14, %v3207_v41 }
 0x2fe   : > { %v3983_v32 = vpop.f32.mrf.mxu1 }
 0x2ff   : > { %3369 = vst [vmem:[%s5461_s26 + $0x118] sm:$0xff] %v3983_v32  ;;  %v3562_v17 = vadd.f32 %v3561_v16, %v3499_v9  ;;  %v3502_v37 = vmul.f32 %v3983_v32, %v3983_v32 }
 0x300   : > { %v3210_v29 = vpop.f32.mrf.mxu1 }
 0x301   : > { %3367 = vst [vmem:[%s5461_s26 + $0x108] sm:$0xff] %v3210_v29  ;;  %v3500_v45 = vmul.f32 %v3210_v29, %v3210_v29  ;;  %v3430_v47 = vadd.f32 %v3429_v12, %v3210_v29 }
 0x303   : > { %v3563_v53 = vadd.f32 %v3562_v17, %v3500_v45  ;;  %v3431_v62 = vadd.f32 %v3982_v0, %v3430_v47 }
 0x305   : > { %v3564_v27 = vadd.f32 %v3563_v53, %v3501_v42  ;;  %v3432_v59 = vadd.f32 %v3983_v32, %v3431_v62 }
 0x306   : > { %v3986_v30 = vpop.f32.mrf.mxu1 }
 0x307   : > { %3372 = vst [vmem:[%s5461_s26 + $0x130] sm:$0xff] %v3986_v30  ;;  %v3565_v5 = vadd.f32 %v3564_v27, %v3502_v37  ;;  %v3505_v19 = vmul.f32 %v3986_v30, %v3986_v30 }
 0x308   : > { %v3223_v11 = vpop.f32.mrf.mxu1 }
 0x309   : > { %3370 = vst [vmem:[%s5461_s26 + $0x120] sm:$0xff] %v3223_v11  ;;  %v3503_v26 = vmul.f32 %v3223_v11, %v3223_v11  ;;  %v3433_v36 = vadd.f32 %v3432_v59, %v3223_v11 }
 0x30a   : > { %v3987_v63 = vpop.f32.mrf.mxu1 }
 0x30b   : > { %3373 = vst [vmem:[%s5461_s26 + $0x138] sm:$0xff] %v3987_v63  ;;  %v3566_v39 = vadd.f32 %v3565_v5, %v3503_v26  ;;  %v3506_v48 = vmul.f32 %v3987_v63, %v3987_v63 }
 0x30c   : > { %v3226_v40 = vpop.f32.mrf.mxu1 }
 0x30d   : > { %3371 = vst [vmem:[%s5461_s26 + $0x128] sm:$0xff] %v3226_v40  ;;  %v3504_v7 = vmul.f32 %v3226_v40, %v3226_v40  ;;  %v3434_v51 = vadd.f32 %v3433_v36, %v3226_v40 }
 0x30f   : > { %v3567_v4 = vadd.f32 %v3566_v39, %v3504_v7  ;;  %v3435_v52 = vadd.f32 %v3986_v30, %v3434_v51 }
 0x311   : > { %v3568_v33 = vadd.f32 %v3567_v4, %v3505_v19  ;;  %v3436_v25 = vadd.f32 %v3987_v63, %v3435_v52 }
 0x312   : > { %v3990_v56 = vpop.f32.mrf.mxu1 }
 0x313   : > { %3376 = vst [vmem:[%s5461_s26 + $0x150] sm:$0xff] %v3990_v56  ;;  %v3569_v18 = vadd.f32 %v3568_v33, %v3506_v48  ;;  %v3509_v21 = vmul.f32 %v3990_v56, %v3990_v56 }
 0x314   : > { %v3239_v3 = vpop.f32.mrf.mxu1 }
 0x315   : > { %3374 = vst [vmem:[%s5461_s26 + $0x140] sm:$0xff] %v3239_v3  ;;  %v3507_v1 = vmul.f32 %v3239_v3, %v3239_v3  ;;  %v3437_v23 = vadd.f32 %v3436_v25, %v3239_v3 }
 0x316   : > { %v3991_v28 = vpop.f32.mrf.mxu1 }
 0x317   : > { %3377 = vst [vmem:[%s5461_s26 + $0x158] sm:$0xff] %v3991_v28  ;;  %v3570_v34 = vadd.f32 %v3569_v18, %v3507_v1  ;;  %v3510_v35 = vmul.f32 %v3991_v28, %v3991_v28 }
 0x318   : > { %v3242_v54 = vpop.f32.mrf.mxu1 }
 0x319   : > { %3375 = vst [vmem:[%s5461_s26 + $0x148] sm:$0xff] %v3242_v54  ;;  %v3508_v15 = vmul.f32 %v3242_v54, %v3242_v54  ;;  %v3438_v58 = vadd.f32 %v3437_v23, %v3242_v54 }
 0x31b   : > { %v3571_v8 = vadd.f32 %v3570_v34, %v3508_v15  ;;  %v3439_v24 = vadd.f32 %v3990_v56, %v3438_v58 }
 0x31d   : > { %v3572_v50 = vadd.f32 %v3571_v8, %v3509_v21  ;;  %v3440_v13 = vadd.f32 %v3991_v28, %v3439_v24 }
 0x31e   : > { %v3994_v46 = vpop.f32.mrf.mxu1 }
 0x31f   : > { %3380 = vst [vmem:[%s5461_s26 + $0x170] sm:$0xff] %v3994_v46  ;;  %v3573_v61 = vadd.f32 %v3572_v50, %v3510_v35  ;;  %v3513_v60 = vmul.f32 %v3994_v46, %v3994_v46 }
 0x320   : > { %v3255_v57 = vpop.f32.mrf.mxu1 }
 0x321   : > { %3378 = vst [vmem:[%s5461_s26 + $0x160] sm:$0xff] %v3255_v57  ;;  %v3511_v10 = vmul.f32 %v3255_v57, %v3255_v57  ;;  %v3441_v22 = vadd.f32 %v3440_v13, %v3255_v57 }
 0x322   : > { %v3995_v31 = vpop.f32.mrf.mxu1 }
 0x323   : > { %3381 = vst [vmem:[%s5461_s26 + $0x178] sm:$0xff] %v3995_v31  ;;  %v3574_v38 = vadd.f32 %v3573_v61, %v3511_v10  ;;  %v3514_v2 = vmul.f32 %v3995_v31, %v3995_v31 }
 0x324   : > { %v3258_v43 = vpop.f32.mrf.mxu1 }
 0x325   : > { %3379 = vst [vmem:[%s5461_s26 + $0x168] sm:$0xff] %v3258_v43  ;;  %v3512_v49 = vmul.f32 %v3258_v43, %v3258_v43  ;;  %v3442_v55 = vadd.f32 %v3441_v22, %v3258_v43 }
 0x327   : > { %v3575_v44 = vadd.f32 %v3574_v38, %v3512_v49  ;;  %v3443_v20 = vadd.f32 %v3994_v46, %v3442_v55 }
 0x329   : > { %v3576_v6 = vadd.f32 %v3575_v44, %v3513_v60  ;;  %v3444_v14 = vadd.f32 %v3995_v31, %v3443_v20 }
 0x32a   : > { %v3998_v0 = vpop.f32.mrf.mxu1 }
 0x32b   : > { %3384 = vst [vmem:[%s5461_s26 + $0x190] sm:$0xff] %v3998_v0  ;;  %v3577_v16 = vadd.f32 %v3576_v6, %v3514_v2  ;;  %v3517_v42 = vmul.f32 %v3998_v0, %v3998_v0 }
 0x32c   : > { %v3271_v41 = vpop.f32.mrf.mxu1 }
 0x32d   : > { %3382 = vst [vmem:[%s5461_s26 + $0x180] sm:$0xff] %v3271_v41  ;;  %v3515_v9 = vmul.f32 %v3271_v41, %v3271_v41  ;;  %v3445_v12 = vadd.f32 %v3444_v14, %v3271_v41 }
 0x32e   : > { %v3999_v32 = vpop.f32.mrf.mxu1 }
 0x32f   : > { %3385 = vst [vmem:[%s5461_s26 + $0x198] sm:$0xff] %v3999_v32  ;;  %v3578_v17 = vadd.f32 %v3577_v16, %v3515_v9  ;;  %v3518_v37 = vmul.f32 %v3999_v32, %v3999_v32 }
 0x330   : > { %v3274_v29 = vpop.f32.mrf.mxu1 }
 0x331   : > { %3383 = vst [vmem:[%s5461_s26 + $0x188] sm:$0xff] %v3274_v29  ;;  %v3516_v45 = vmul.f32 %v3274_v29, %v3274_v29  ;;  %v3446_v47 = vadd.f32 %v3445_v12, %v3274_v29 }
 0x333   : > { %v3579_v53 = vadd.f32 %v3578_v17, %v3516_v45  ;;  %v3447_v62 = vadd.f32 %v3998_v0, %v3446_v47 }
 0x335   : > { %v3580_v27 = vadd.f32 %v3579_v53, %v3517_v42  ;;  %v3448_v59 = vadd.f32 %v3999_v32, %v3447_v62  ;;  %v3604_v53 = vld [vmem:[%s5466_s29] sm:$0xff] }
 0x337   : > { %v4002_v30 = vpop.f32.mrf.mxu1  ;;  %v3581_v36 = vadd.f32 %v3580_v27, %v3518_v37 }
 0x338   : > { %3388 = vst [vmem:[%s5461_s26 + $0x1b0] sm:$0xff] %v4002_v30  ;;  %v3521_v4 = vmul.f32 %v4002_v30, %v4002_v30 }
 0x339   : > { %v3287_v11 = vpop.f32.mrf.mxu1 }
 0x33a   : > { %3386 = vst [vmem:[%s5461_s26 + $0x1a0] sm:$0xff] %v3287_v11  ;;  %v3519_v26 = vmul.f32 %v3287_v11, %v3287_v11  ;;  %v3449_v56 = vadd.f32 %v3448_v59, %v3287_v11 }
 0x33b   : > { %v4003_v63 = vpop.f32.mrf.mxu1 }
 0x33c   : > { %3389 = vst [vmem:[%s5461_s26 + $0x1b8] sm:$0xff] %v4003_v63  ;;  %v3582_v7 = vadd.f32 %v3581_v36, %v3519_v26  ;;  %v3522_v48 = vmul.f32 %v4003_v63, %v4003_v63 }
 0x33d   : > { %v3290_v40 = vpop.f32.mrf.mxu1 }
 0x33e   : > { %3387 = vst [vmem:[%s5461_s26 + $0x1a8] sm:$0xff] %v3290_v40  ;;  %v3520_v5 = vmul.f32 %v3290_v40, %v3290_v40  ;;  %v3450_v3 = vadd.f32 %v3449_v56, %v3290_v40 }
 0x340   : > { %v3583_v51 = vadd.f32 %v3582_v7, %v3520_v5  ;;  %v3451_v54 = vadd.f32 %v4002_v30, %v3450_v3 }
 0x342   : > { %v3584_v52 = vadd.f32 %v3583_v51, %v3521_v4  ;;  %v3452_v25 = vadd.f32 %v4003_v63, %v3451_v54 }
 0x344   : > { %v3585_v23 = vadd.f32 %v3584_v52, %v3522_v48 }
 0x347   : > { %v4006_v39 = vpop.f32.mrf.mxu1 }
 0x348   : > { %3392 = vst [vmem:[%s5461_s26 + $0x1d0] sm:$0xff] %v4006_v39  ;;  %v3525_v58 = vmul.f32 %v4006_v39, %v4006_v39 }
 0x349   : > { %v3303_v28 = vpop.f32.mrf.mxu1 }
 0x34a   : > { %3390 = vst [vmem:[%s5461_s26 + $0x1c0] sm:$0xff] %v3303_v28  ;;  %v3523_v1 = vmul.f32 %v3303_v28, %v3303_v28  ;;  %v3453_v46 = vadd.f32 %v3452_v25, %v3303_v28 }
 0x34b   : > { %v4007_v19 = vpop.f32.mrf.mxu1 }
 0x34c   : > { %3393 = vst [vmem:[%s5461_s26 + $0x1d8] sm:$0xff] %v4007_v19  ;;  %v3586_v15 = vadd.f32 %v3585_v23, %v3523_v1  ;;  %v3526_v24 = vmul.f32 %v4007_v19, %v4007_v19 }
 0x34d   : > { %v3306_v33 = vpop.f32.mrf.mxu1 }
 0x34e   : > { %3391 = vst [vmem:[%s5461_s26 + $0x1c8] sm:$0xff] %v3306_v33  ;;  %v3524_v18 = vmul.f32 %v3306_v33, %v3306_v33  ;;  %v3454_v57 = vadd.f32 %v3453_v46, %v3306_v33 }
 0x350   : > { %v3587_v34 = vadd.f32 %v3586_v15, %v3524_v18  ;;  %v3455_v31 = vadd.f32 %v4006_v39, %v3454_v57 }
 0x352   : > { %v3588_v43 = vadd.f32 %v3587_v34, %v3525_v58  ;;  %v3456_v50 = vadd.f32 %v4007_v19, %v3455_v31 }
 0x354   : > { %v3589_v0 = vadd.f32 %v3588_v43, %v3526_v24 }
 0x357   : > { %v4010_v8 = vpop.f32.mrf.mxu1 }
 0x358   : > { %3396 = vst [vmem:[%s5461_s26 + $0x1f0] sm:$0xff] %v4010_v8  ;;  %v3529_v38 = vmul.f32 %v4010_v8, %v4010_v8 }
 0x359   : > { %v3319_v21 = vpop.f32.mrf.mxu1 }
 0x35a   : > { %3394 = vst [vmem:[%s5461_s26 + $0x1e0] sm:$0xff] %v3319_v21  ;;  %v3527_v35 = vmul.f32 %v3319_v21, %v3319_v21  ;;  %v3457_v10 = vadd.f32 %v3456_v50, %v3319_v21 }
 0x35b   : > { %v4011_v13 = vpop.f32.mrf.mxu1 }
 0x35c   : > { %3397 = vst [vmem:[%s5461_s26 + $0x1f8] sm:$0xff] %v4011_v13  ;;  %v3590_v61 = vadd.f32 %v3589_v0, %v3527_v35  ;;  %v3530_v44 = vmul.f32 %v4011_v13, %v4011_v13 }
 0x35d   : > { %v3322_v22 = vpop.f32.mrf.mxu1 }
 0x35e   : > { %3395 = vst [vmem:[%s5461_s26 + $0x1e8] sm:$0xff] %v3322_v22  ;;  %v3458_v49 = vadd.f32 %v3457_v10, %v3322_v22  ;;  %v3528_v41 = vmul.f32 %v3322_v22, %v3322_v22 }
 0x360   : > { %v3459_v55 = vadd.f32 %v4010_v8, %v3458_v49  ;;  %v3591_v32 = vadd.f32 %v3590_v61, %v3528_v41 }
 0x362   : > { %v3460_v29 = vadd.f32 %v4011_v13, %v3459_v55  ;;  %v3592_v60 = vadd.f32 %v3591_v32, %v3529_v38 }
 0x364   : > { %v3461_v20 = vrot.slane %v3460_v29, 4  ;;  %v3593_v6 = vadd.f32 %v3592_v60, %v3530_v44 }
 0x366   : > { %v3462_v2 = vadd.f32 %v3461_v20, %v3460_v29  ;;  %v3594_v14 = vrot.slane %v3593_v6, 4 }
 0x368   : > { %v3463_v9 = vrot.slane %v3462_v2, 2  ;;  %v3595_v30 = vadd.f32 %v3594_v14, %v3593_v6 }
 0x36a   : > { %v3464_v12 = vadd.f32 %v3463_v9, %v3462_v2  ;;  %v3596_v16 = vrot.slane %v3595_v30, 2 }
 0x36c   : > { %v3465_v45 = vrot.slane %v3464_v12, 1  ;;  %v3597_v11 = vadd.f32 %v3596_v16, %v3595_v30 }
 0x36e   : > { %v3598_v17 = vrot.slane %v3597_v11, 1  ;;  %v3466_v47 = vadd.f32 %v3465_v45, %v3464_v12 }
 0x370   : > { %v3599_v63 = vadd.f32 %v3598_v17, %v3597_v11 }
 0x372   : > { %v3601_v40 = vsel %vm3600_vm12, %v3466_v47, %v3599_v63 }
 0x373   : > { %v3603_v42 = vsel %vm3602_vm13, %v3601_v40, 0.0 }
 0x374   : > { %v3605_v62 = vadd.f32 %v3604_v53, %v3603_v42 }
 0x376   : > { %3606 = vst [vmem:[%s5466_s29] sm:$0xff] %v3605_v62 }
 0x377 PF: > { %s14_s16 = sadd.s32 1, %s5397_s16   ;;  %s9382_s12 = smov %s5389_s14 }
 0x378   : > { %p11_p8 = scmp.ge.s32.totalorder %s14_s16, 6   ;;  %s9383_s13 = smov %s5393_s15 }
 0x379   : > { %s9384_s14 = smov %s9387_s17  ;;  %s9385_s15 = smov %s9391_s18 }
 0x37a   :  { %13 = sbr.rel (!%p11_p8) target bundleno = 3 (0x3), region = 74 }

// kernel: double_conv.6
= control target key start
LH: loop header
LB: loop body
LE: loop exit
PB: predicated region body
PF: predicated region fallthrough
CT: control target
= control target key end

     0   :  { %s5204_s12 = smov 0   ;;  %s5206_s13 = smov 0   ;;  %s8062_s0 = inlined_call_operand.vmem [shape: bf16[4,18,34,32], index: 0, kind: input, shape index: {}]   ;;  %s8063_s1 = inlined_call_operand.vmem [shape: bf16[288,128], index: 1, kind: input, shape index: {}]   ;;  %s8064_s2 = inlined_call_operand.vmem [shape: f32[4,512,128], index: 2, kind: output, shape index: {0}]   ;;  %s8065_s3 = inlined_call_operand.vmem [shape: f32[2,8,128], index: 3, kind: output, shape index: {1}]  }
   0x1   :  { %s5208_s14 = smov 0   ;;  %s5210_s15 = smov 0  }
   0x2   :  { %s5212_s16 = smov 0  }
   0x3 LB: > { %s23_s17 = sadd.s32 1, %s5169_s14  ;;  %s26_s18 = sadd.s32 1, %s5173_s15  ;;  %s5177_s16 = sphi %s5212_s16, %s14_s16   ;;  %s5173_s15 = sphi %s5210_s15, %s9032_s15   ;;  %s5169_s14 = sphi %s5208_s14, %s9031_s14   ;;  %s5165_s13 = sphi %s5206_s13, %s9030_s13   ;;  %s5161_s12 = sphi %s5204_s12, %s9029_s12  }
   0x4   : > { %p24_p0 = scmp.ge.s32.totalorder %s23_s17, 2  ;;  %p3786_p1 = scmp.ge.s32.totalorder %s5177_s16, 1 }
   0x5   : > { %p164_p2 = scmp.lt.s32.totalorder %s5177_s16, 5 }
   0x6   : > { %s9034_s17 = smov (%p24_p0, %s23_s17), 0  ;;  %s9036_s18 = smov (!%p24_p0, %s26_s18), %s5173_s15 }
   0x7   : > { %p165_p3 = pnand %p3786_p1, %p164_p2  ;;  %p28_p4 = scmp.ge.s32.totalorder %s9036_s18, 2 }
   0x9   : > { %s9038_s18 = smov (%p28_p4, %s9036_s18), 0  ;;  %168 = sbr.rel (%p165_p3) target bundleno = 799 (0x31f), region = 28 }
   0xe   : > { %s3787_s19 = sshll.u32 %s5165_s13, 1  ;;  %p214_p5 = scmp.lt.s32.totalorder %s5165_s13, 1 }
   0xf   : > { %s197_s20 = sadd.s32 %s5161_s12, %s3787_s19  ;;  %p3793_p7 = scmp.ne.s32.totalorder %s5161_s12, 0 }
  0x10   : > { %p198_p6 = scmp.lt.s32.totalorder %s197_s20, 3  ;;  %s9040_s13 = smov (!%p214_p5, %s5165_s13), 1 }
  0x11   : > { %s3792_s21 = sshll.u32 %s9040_s13, 3  ;;  %222 = sbr.rel (%p3793_p7) target bundleno = 24 (0x18), region = 32 }
  0x12   : > { %s9042_s20 = smov (!%p198_p6, %s197_s20), 3  ;;  %s5242_s29 = scalar_lea.vmem %s8065_s3, %s3792_s21 }
  0x13   : > { %s4115_s22 = smul.u32 360, %s9042_s20  ;;  %s3846_s23 = sshll.u32 %s9042_s20, 9 }
  0x14   : > { %s5237_s26 = scalar_lea.vmem %s8064_s2, %s3846_s23 }
  0x15   : > { %s5247_s5 = scalar_lea.vmem %s8062_s0, %s4115_s22 }
  0x16   : > { %v5179_v0 = vmov 0.0  }
  0x17   : > { %223 = vst [vmem:[%s5242_s29] sm:$0xff] %v5179_v0 }
  0x18 PF: > { %v229_v1 = vld [vmem:[%s5247_s5 + $0x14] ss:$12 sps:$4 sm:$0xff]   ;;  %v3956_v2 = vld [vmem:[%s5247_s5 + $0x18] sm:$0xff]   ;;  %vm484_vm0 = vcmask 1046528   ;;  %v3955_v8 = vld [vmem:[%s5247_s5 + $0x8] sm:$0xff]   ;;  %s5180_s6 = smov 32  }
  0x19   : > { %v3848_v3 = vld [vmem:[%s5247_s5] sm:$0xff]   ;;  %v5253_v4 = vunpack.c.l.bf16 %v3956_v2  ;;  %v5255_v5 = vunpack.c.h.bf16 %v3956_v2  ;;  %v5257_v6 = vunpack.c.l.bf16 %v229_v1  ;;  %v5267_v11 = vunpack.c.l.bf16 %v3955_v8  ;;  %v5274_v14 = vld [vmem:[%s5247_s5 + $0x10] sm:$0x1]  ;;  %v5294_v28 = vld [vmem:[%s5247_s5 + $0x38] sm:$0x1]  ;;  %s5181_s7 = smov 64  }
  0x1a   : > { %v5259_v7 = vunpack.c.l.bf16 %v3848_v3  ;;  %v5263_v9 = vld [vmem:[%s5247_s5 + $0x24] sm:$0x1]  ;;  %v5265_v10 = vunpack.c.h.bf16 %v3848_v3  ;;  %v5269_v12 = vunpack.c.h.bf16 %v3955_v8  ;;  %v5271_v13 = vunpack.c.h.bf16 %v229_v1  ;;  %v3958_v27 = vld [vmem:[%s5247_s5 + $0x30] sm:$0xff]   ;;  %v3957_v29 = vld [vmem:[%s5247_s5 + $0x28] sm:$0xff]   ;;  %s5183_s23 = smov 96  }
  0x1b   : > { %8408 = vst [vmem:[#allocation4_spill] sm:$0xff] %v5267_v11  ;;  %v494_v15 = vrot.slane %v5257_v6, 1  ;;  %v495_v16 = vrot.slane %v5253_v4, 1  ;;  %v497_v17 = vrot.slane %v5255_v5, 1  ;;  %v488_v20 = vrot.slane %v5267_v11, 1  ;;  %v3959_v34 = vld [vmem:[%s5247_s5 + $0x40] sm:$0xff]  }
  0x1c   : > { %8406 = vst [vmem:[#allocation2_spill] sm:$0xff] %v5259_v7  ;;  %8407 = vst [vmem:[#allocation3_spill] sm:$0xff] %v5265_v10  ;;  %v485_v18 = vrot.slane %v5259_v7, 1  ;;  %v486_v19 = vrot.slane %v5265_v10, 1  ;;  %v8069_v21 = vunpack.c.l.bf16 %v5263_v9  ;;  %v499_v22 = vrot.slane %v5271_v13, 1  ;;  %v3961_v61 = vld [vmem:[%s5247_s5 + $0x58] sm:$0xff]  }
  0x1d   : > { %8409 = vst [vmem:[#allocation5_spill] sm:$0xff] %v5269_v12  ;;  %v5285_v23 = vsel %vm484_vm0, %v494_v15, %v495_v16  ;;  %v5288_v24 = vsel %vm484_vm0, %v495_v16, %v497_v17  ;;  %v8071_v25 = vunpack.c.l.bf16 %v5274_v14  ;;  %v490_v26 = vrot.slane %v5269_v12, 1  ;;  %v242_v43 = vld [vmem:[%s5247_s5 + $0x3c] ss:$12 sps:$4 sm:$0xff]   ;;  %v5329_v48 = vld [vmem:[%s5247_s5 + $0x4c] sm:$0x1] }
  0x1e   : > { %8410 = vst [vmem:[#allocation6_spill] sm:$0xff] %v5285_v23  ;;  %8411 = vst [vmem:[#allocation7_spill] sm:$0xff] %v5288_v24  ;;  %v4171_v30 = vpack.i.bf16 %v5288_v24, %v5285_v23  ;;  %v487_v31 = vsel %vm484_vm0, %v485_v18, %v486_v19  ;;  %v489_v32 = vsel %vm484_vm0, %v486_v19, %v488_v20  ;;  %v501_v36 = vrot.slane %v8069_v21, 1  ;;  %v5362_v2 = vld [vmem:[%s5247_s5 + $0x60] sm:$0x1]  ;;  %v3960_v3 = vld [vmem:[%s5247_s5 + $0x50] sm:$0xff]  }
  0x1f   : > { %v5302_v33 = vsel %vm484_vm0, %v497_v17, %v499_v22  ;;  %v4161_v35 = vpack.i.bf16 %v489_v32, %v487_v31  ;;  %v491_v37 = vsel %vm484_vm0, %v488_v20, %v490_v26  ;;  %v492_v38 = vrot.slane %v8071_v25, 1  ;;  %v3962_v31 = vld [vmem:[%s5247_s5 + $0x68] sm:$0xff]   ;;  %v252_v32 = vld [vmem:[%s5247_s5 + $0x64] ss:$12 sps:$4 sm:$0xff]  }
  0x20   : > { %8412 = vst [vmem:[#allocation8_spill] sm:$0xff] %v5302_v33  ;;  %4172 = vrot.lane.b32.xlu1 %v4171_v30, %s5180_s6  ;;  %v5311_v39 = vunpack.c.l.bf16 %v3958_v27  ;;  %v5313_v40 = vunpack.c.h.bf16 %v3958_v27  ;;  %v8068_v41 = vunpack.c.l.bf16 %v5294_v28  ;;  %v5316_v42 = vunpack.c.l.bf16 %v3957_v29  ;;  %v5516_v24 = vld [vmem:[%s5247_s5 + $0xb0] sm:$0x1] }
  0x21   : > { %4162 = vrot.lane.b32.xlu0 %v4161_v35, %s5180_s6  ;;  %v5321_v44 = vsel %vm484_vm0, %v499_v22, %v501_v36  ;;  %v493_v45 = vsel %vm484_vm0, %v490_v26, %v492_v38  ;;  %v5324_v46 = vunpack.c.h.bf16 %v3957_v29  ;;  %v5326_v47 = vunpack.c.h.bf16 %v3959_v34  ;;  %v5400_v38 = vld [vmem:[%s5247_s5 + $0x74] sm:$0x1]  ;;  %8459 = vst [vmem:[#allocation55_spill] sm:$0xff] %v5516_v24 }
  0x22   : > { %8413 = vst [vmem:[#allocation9_spill] sm:$0xff] %v5311_v39  ;;  %8414 = vst [vmem:[#allocation10_spill] sm:$0xff] %v5313_v40  ;;  %v4176_v49 = vpack.i.bf16 %v5321_v44, %v5302_v33  ;;  %v4166_v50 = vpack.i.bf16 %v493_v45, %v491_v37  ;;  %v506_v51 = vrot.slane %v5311_v39, 1  ;;  %v508_v52 = vrot.slane %v5313_v40, 1 }
  0x23   : > { %8415 = vst [vmem:[#allocation11_spill] sm:$0xff] %v5316_v42  ;;  %8416 = vst [vmem:[#allocation12_spill] sm:$0xff] %v5321_v44  ;;  %v510_v53 = vrot.slane %v8068_v41, 1  ;;  %v503_v54 = vrot.slane %v5316_v42, 1  ;;  %v504_v55 = vrot.slane %v5324_v46, 1  ;;  %v5339_v56 = vunpack.c.h.bf16 %v242_v43  ;;  %v3967_v44 = vld [vmem:[%s5247_s5 + $0xa8] sm:$0xff]  }
  0x24   : > { %8417 = vst [vmem:[#allocation13_spill] sm:$0xff] %v5324_v46  ;;  %8418 = vst [vmem:[#allocation14_spill] sm:$0xff] %v5326_v47  ;;  %4177 = vrot.lane.b32.xlu1 %v4176_v49, %s5180_s6  ;;  %v5343_v57 = vsel %vm484_vm0, %v506_v51, %v508_v52  ;;  %v8067_v58 = vunpack.c.l.bf16 %v5329_v48  ;;  %v515_v59 = vrot.slane %v5326_v47, 1  ;;  %v5347_v60 = vunpack.c.l.bf16 %v3959_v34 }
  0x25   : > { %8419 = vst [vmem:[#allocation15_spill] sm:$0xff] %v5339_v56  ;;  %8420 = vst [vmem:[#allocation16_spill] sm:$0xff] %v5343_v57  ;;  %4167 = vrot.lane.b32.xlu0 %v4166_v50, %s5180_s6  ;;  %v5352_v62 = vsel %vm484_vm0, %v508_v52, %v510_v53  ;;  %v5355_v63 = vsel %vm484_vm0, %v503_v54, %v504_v55  ;;  %v5358_v0 = vsel %vm484_vm0, %v504_v55, %v506_v51  ;;  %v3964_v51 = vld [vmem:[%s5247_s5 + $0x80] sm:$0xff]   ;;  %vm821_vm1 = vcmask 1045504  }
  0x26   : > { %8421 = vst [vmem:[#allocation17_spill] sm:$0xff] %v5347_v60  ;;  %8422 = vst [vmem:[#allocation18_spill] sm:$0xff] %v5352_v62  ;;  %v517_v1 = vrot.slane %v5339_v56, 1  ;;  %v4186_v8 = vpack.i.bf16 %v5352_v62, %v5343_v57  ;;  %v4181_v15 = vpack.i.bf16 %v5358_v0, %v5355_v63  ;;  %v519_v16 = vrot.slane %v8067_v58, 1  ;;  %v5452_v58 = vld [vmem:[%s5247_s5 + $0x9c] sm:$0x1] }
  0x27   : > { %8423 = vst [vmem:[#allocation19_spill] sm:$0xff] %v5355_v63  ;;  %8424 = vst [vmem:[#allocation20_spill] sm:$0xff] %v5358_v0  ;;  %v5371_v17 = vunpack.c.l.bf16 %v242_v43  ;;  %v513_v19 = vrot.slane %v5347_v60, 1  ;;  %v5377_v20 = vunpack.c.l.bf16 %v3961_v61  ;;  %v5379_v22 = vunpack.c.h.bf16 %v3961_v61  ;;  %v5614_v57 = vld [vmem:[%s5247_s5 + $0xd8] sm:$0x1] }
  0x28   : > { %v5374_v18 = vsel %vm484_vm0, %v515_v59, %v517_v1  ;;  %4187 = vrot.lane.b32.xlu1 %v4186_v8, %s5180_s6  ;;  %v5383_v26 = vsel %vm484_vm0, %v517_v1, %v519_v16  ;;  %v8066_v29 = vunpack.c.l.bf16 %v5362_v2  ;;  %v5387_v30 = vunpack.c.l.bf16 %v3960_v3  ;;  %8485 = vst [vmem:[#allocation79_spill] sm:$0xff] %v5614_v57 }
  0x29   : > { %8425 = vst [vmem:[#allocation21_spill] sm:$0xff] %v5371_v17  ;;  %8426 = vst [vmem:[#allocation22_spill] sm:$0xff] %v5374_v18  ;;  %v512_v27 = vrot.slane %v5371_v17, 1  ;;  %4182 = vrot.lane.b32.xlu0 %v4181_v15, %s5180_s6  ;;  %v4196_v34 = vpack.i.bf16 %v5383_v26, %v5374_v18  ;;  %v5395_v35 = vsel %vm484_vm0, %v513_v19, %v515_v59  ;;  %v524_v36 = vrot.slane %v5377_v20, 1  ;;  %v5421_v59 = vld [vmem:[%s5247_s5 + $0x88] sm:$0x1] }
  0x2a   : > { %8427 = vst [vmem:[#allocation23_spill] sm:$0xff] %v5377_v20  ;;  %8428 = vst [vmem:[#allocation24_spill] sm:$0xff] %v5379_v22  ;;  %v526_v37 = vrot.slane %v5379_v22, 1  ;;  %v528_v45 = vrot.slane %v8066_v29, 1  ;;  %v5407_v49 = vunpack.c.h.bf16 %v3960_v3  ;;  %v521_v50 = vrot.slane %v5387_v30, 1  ;;  %v3963_v15 = vld [vmem:[%s5247_s5 + $0x78] sm:$0xff]  }
  0x2b   : > { %8429 = vst [vmem:[#allocation25_spill] sm:$0xff] %v5383_v26  ;;  %8430 = vst [vmem:[#allocation26_spill] sm:$0xff] %v5387_v30  ;;  %v5403_v43 = vsel %vm484_vm0, %v512_v27, %v513_v19  ;;  %v5416_v54 = vunpack.c.h.bf16 %v3962_v31  ;;  %v5418_v55 = vunpack.c.h.bf16 %v252_v32  ;;  %v8070_v3 = vunpack.c.l.bf16 %v5400_v38  ;;  %v262_v29 = vld [vmem:[%s5247_s5 + $0x8c] ss:$12 sps:$4 sm:$0xff]  }
  0x2c   : > { %8431 = vst [vmem:[#allocation27_spill] sm:$0xff] %v5395_v35  ;;  %8432 = vst [vmem:[#allocation28_spill] sm:$0xff] %v5403_v43  ;;  %v4191_v52 = vpack.i.bf16 %v5395_v35, %v5403_v43  ;;  %v5414_v53 = vsel %vm484_vm0, %v524_v36, %v526_v37  ;;  %4197 = vrot.lane.b32.xlu1 %v4196_v34, %s5180_s6  ;;  %v5425_v61 = vsel %vm484_vm0, %v526_v37, %v528_v45  ;;  %v5553_v43 = vld [vmem:[%s5247_s5 + $0xc4] sm:$0x1]  ;;  %vm2100_vm2 = vcmask 261120  }
  0x2d   : > { %8433 = vst [vmem:[#allocation29_spill] sm:$0xff] %v5407_v49  ;;  %8434 = vst [vmem:[#allocation30_spill] sm:$0xff] %v5414_v53  ;;  %v522_v1 = vrot.slane %v5407_v49, 1  ;;  %v5429_v8 = vunpack.c.l.bf16 %v3962_v31  ;;  %v5435_v16 = vpack.i.bf16 %v5425_v61, %v5414_v53  ;;  %v533_v19 = vrot.slane %v5416_v54, 1 }
  0x2e   : > { %8435 = vst [vmem:[#allocation31_spill] sm:$0xff] %v5416_v54  ;;  %8436 = vst [vmem:[#allocation32_spill] sm:$0xff] %v5418_v55  ;;  %4192 = vrot.lane.b32.xlu0 %v4191_v52, %s5180_s6  ;;  %v535_v27 = vrot.slane %v5418_v55, 1  ;;  %v5439_v34 = vunpack.c.l.bf16 %v252_v32  ;;  %v537_v45 = vrot.slane %v8070_v3, 1  ;;  %v5462_v21 = vunpack.c.l.bf16 %v3964_v51 }
  0x2f   : > { %8437 = vst [vmem:[#allocation33_spill] sm:$0xff] %v5425_v61  ;;  %8438 = vst [vmem:[#allocation34_spill] sm:$0xff] %v5429_v8  ;;  %v5442_v37 = vsel %vm484_vm0, %v521_v50, %v522_v1  ;;  %v5445_v31 = vsel %vm484_vm0, %v522_v1, %v524_v36  ;;  %v531_v52 = vrot.slane %v5429_v8, 1  ;;  %v3965_v36 = vld [vmem:[%s5247_s5 + $0x90] sm:$0xff]   ;;  %v5473_v25 = vunpack.c.h.bf16 %v3964_v51 }
  0x30   : > { %8439 = vst [vmem:[#allocation35_spill] sm:$0xff] %v5435_v16  ;;  %8440 = vst [vmem:[#allocation36_spill] sm:$0xff] %v5439_v34  ;;  %v5456_v41 = vpack.i.bf16 %v5445_v31, %v5442_v37  ;;  %v5459_v32 = vsel %vm484_vm0, %v533_v19, %v535_v27  ;;  %v530_v50 = vrot.slane %v5439_v34, 1  ;;  %4207 = vrot.lane.b32.xlu1 %v5435_v16, %s5180_s6  ;;  %v8080_v53 = vunpack.c.l.bf16 %v5421_v59  ;;  %v272_v16 = vld [vmem:[%s5247_s5 + $0xb4] ss:$12 sps:$4 sm:$0xff]  }
  0x31   : > { %8441 = vst [vmem:[#allocation37_spill] sm:$0xff] %v5442_v37  ;;  %8442 = vst [vmem:[#allocation38_spill] sm:$0xff] %v5445_v31  ;;  %v5468_v1 = vsel %vm484_vm0, %v535_v27, %v537_v45  ;;  %v5471_v3 = vsel %vm484_vm0, %v531_v52, %v533_v19  ;;  %v542_v27 = vrot.slane %v5462_v21, 1  ;;  %v5486_v19 = vunpack.c.l.bf16 %v3963_v15 }
  0x32   : > { %8443 = vst [vmem:[#allocation39_spill] sm:$0xff] %v5456_v41  ;;  %8444 = vst [vmem:[#allocation40_spill] sm:$0xff] %v5459_v32  ;;  %4202 = vrot.lane.b32.xlu0 %v5456_v41, %s5180_s6  ;;  %v5480_v61 = vpack.i.bf16 %v5468_v1, %v5459_v32  ;;  %v5483_v37 = vsel %vm484_vm0, %v530_v50, %v531_v52  ;;  %v544_v45 = vrot.slane %v5473_v25, 1  ;;  %v546_v31 = vrot.slane %v8080_v53, 1 }
  0x33   : > { %8445 = vst [vmem:[#allocation41_spill] sm:$0xff] %v5462_v21  ;;  %8446 = vst [vmem:[#allocation42_spill] sm:$0xff] %v5468_v1  ;;  %v5490_v51 = vpack.i.bf16 %v5471_v3, %v5483_v37  ;;  %v5495_v32 = vunpack.c.h.bf16 %v3963_v15  ;;  %v539_v52 = vrot.slane %v5486_v19, 1  ;;  %v5498_v50 = vunpack.c.h.bf16 %v3965_v36 }
  0x34   : > { %8447 = vst [vmem:[#allocation43_spill] sm:$0xff] %v5471_v3  ;;  %8448 = vst [vmem:[#allocation44_spill] sm:$0xff] %v5473_v25  ;;  %v5500_v1 = vunpack.c.h.bf16 %v262_v29  ;;  %4217 = vrot.lane.b32.xlu1 %v5480_v61, %s5180_s6  ;;  %v5509_v53 = vsel %vm484_vm0, %v544_v45, %v546_v31  ;;  %v5512_v3 = vunpack.c.l.bf16 %v3965_v36  ;;  %v3966_v36 = vld [vmem:[%s5247_s5 + $0xa0] sm:$0xff]   ;;  %vm2165_vm3 = vcmask 523264  }
  0x35   : > { %8449 = vst [vmem:[#allocation45_spill] sm:$0xff] %v5480_v61  ;;  %8450 = vst [vmem:[#allocation46_spill] sm:$0xff] %v5483_v37  ;;  %v5506_v37 = vsel %vm484_vm0, %v542_v27, %v544_v45  ;;  %v540_v15 = vrot.slane %v5495_v32, 1  ;;  %v551_v23 = vrot.slane %v5498_v50, 1  ;;  %v8461_v45 = vunpack.c.l.bf16 %v5452_v58 }
  0x36   : > { %8451 = vst [vmem:[#allocation47_spill] sm:$0xff] %v5486_v19  ;;  %8452 = vst [vmem:[#allocation48_spill] sm:$0xff] %v5490_v51  ;;  %4212 = vrot.lane.b32.xlu0 %v5490_v51, %s5180_s6  ;;  %v5522_v33 = vpack.i.bf16 %v5509_v53, %v5506_v37  ;;  %v553_v31 = vrot.slane %v5500_v1, 1  ;;  %v5536_v51 = vunpack.c.l.bf16 %v262_v29  ;;  %vm2230_vm4 = vcmask 785408  }
  0x37   : > { %8453 = vst [vmem:[#allocation49_spill] sm:$0xff] %v5495_v32  ;;  %8454 = vst [vmem:[#allocation50_spill] sm:$0xff] %v5498_v50  ;;  %v555_v61 = vrot.slane %v8461_v45, 1  ;;  %v5531_v41 = vsel %vm484_vm0, %v539_v52, %v540_v15  ;;  %v5534_v26 = vsel %vm484_vm0, %v540_v15, %v542_v27  ;;  %v5550_v52 = vunpack.c.l.bf16 %v3967_v44 }
  0x38   : > { %8455 = vst [vmem:[#allocation51_spill] sm:$0xff] %v5500_v1  ;;  %8456 = vst [vmem:[#allocation52_spill] sm:$0xff] %v5506_v37  ;;  %v549_v37 = vrot.slane %v5512_v3, 1  ;;  %v5542_v18 = vpack.i.bf16 %v5534_v26, %v5531_v41  ;;  %v5545_v35 = vsel %vm484_vm0, %v551_v23, %v553_v31  ;;  %4227 = vrot.lane.b32.xlu1 %v5522_v33, %s5180_s6  ;;  %v548_v27 = vrot.slane %v5536_v51, 1 }
  0x39   : > { %8457 = vst [vmem:[#allocation53_spill] sm:$0xff] %v5509_v53  ;;  %8458 = vst [vmem:[#allocation54_spill] sm:$0xff] %v5512_v3  ;;  %v3968_v53 = vld [vmem:[%s5247_s5 + $0xb8] sm:$0xff]   ;;  %v5548_v45 = vsel %vm484_vm0, %v553_v31, %v555_v61  ;;  %v560_v31 = vrot.slane %v5550_v52, 1  ;;  %vm3667_vm5 = vcmask 1040384   ;;  %vm3669_vm6 = vcmask 1041408  }
  0x3a   : > { %8460 = vst [vmem:[#allocation56_spill] sm:$0xff] %v5522_v33  ;;  %8462 = vst [vmem:[#allocation57_spill] sm:$0xff] %v5531_v41  ;;  %v5559_v29 = vpack.i.bf16 %v5548_v45, %v5545_v35  ;;  %v5563_v15 = vsel %vm484_vm0, %v549_v37, %v551_v23  ;;  %v5565_v41 = vunpack.c.h.bf16 %v3967_v44  ;;  %4222 = vrot.lane.b32.xlu0 %v5542_v18, %s5180_s6  ;;  %v5573_v33 = vunpack.c.h.bf16 %v3966_v36 }
  0x3b   : > { %8463 = vst [vmem:[#allocation58_spill] sm:$0xff] %v5534_v26  ;;  %8464 = vst [vmem:[#allocation59_spill] sm:$0xff] %v5536_v51  ;;  %v5571_v26 = vunpack.c.l.bf16 %v3966_v36  ;;  %v5581_v44 = vunpack.c.h.bf16 %v272_v16 }
  0x3c   : > { %8465 = vst [vmem:[#allocation60_spill] sm:$0xff] %v5542_v18  ;;  %8466 = vst [vmem:[#allocation61_spill] sm:$0xff] %v5545_v35  ;;  %v5576_v35 = vsel %vm484_vm0, %v548_v27, %v549_v37  ;;  %v562_v23 = vrot.slane %v5565_v41, 1  ;;  %v8479_v18 = vunpack.c.l.bf16 %v5516_v24  ;;  %v558_v37 = vrot.slane %v5573_v33, 1  ;;  %4237 = vrot.lane.b32.xlu1 %v5559_v29, %s5180_s6 }
  0x3d   : > { %8467 = vst [vmem:[#allocation62_spill] sm:$0xff] %v5548_v45  ;;  %8468 = vst [vmem:[#allocation63_spill] sm:$0xff] %v5550_v52  ;;  %v5579_v45 = vunpack.c.h.bf16 %v3968_v53  ;;  %v5585_v61 = vpack.i.bf16 %v5563_v15, %v5576_v35  ;;  %v557_v36 = vrot.slane %v5571_v26, 1 }
  0x3e   : > { %8469 = vst [vmem:[#allocation64_spill] sm:$0xff] %v5553_v43  ;;  %8470 = vst [vmem:[#allocation65_spill] sm:$0xff] %v5559_v29  ;;  %v564_v62 = vrot.slane %v8479_v18, 1  ;;  %v5594_v27 = vsel %vm484_vm0, %v560_v31, %v562_v23  ;;  %v5609_v29 = vsel %vm484_vm0, %v558_v37, %v560_v31 }
  0x3f   : > { %8471 = vst [vmem:[#allocation66_spill] sm:$0xff] %v5563_v15  ;;  %8472 = vst [vmem:[#allocation67_spill] sm:$0xff] %v5565_v41  ;;  %v569_v0 = vrot.slane %v5579_v45, 1  ;;  %v3970_v15 = vld [vmem:[%s5247_s5 + $0xd0] sm:$0xff]   ;;  %4232 = vrot.lane.b32.xlu0 %v5585_v61, %s5180_s6  ;;  %v5606_v63 = vsel %vm484_vm0, %v557_v36, %v558_v37  ;;  %v5630_v36 = vunpack.c.l.bf16 %v272_v16  ;;  %v3971_v16 = vld [vmem:[%s5247_s5 + $0xe0] sm:$0xff]  }
  0x40   : > { %8473 = vst [vmem:[#allocation68_spill] sm:$0xff] %v5571_v26  ;;  %8474 = vst [vmem:[#allocation69_spill] sm:$0xff] %v5573_v33  ;;  %v5603_v18 = vsel %vm484_vm0, %v562_v23, %v564_v62  ;;  %v5611_v33 = vunpack.c.l.bf16 %v3968_v53  ;;  %v5623_v62 = vpack.i.bf16 %v5609_v29, %v5606_v63  ;;  %v8489_v53 = vunpack.c.l.bf16 %v5553_v43  ;;  %v5650_v43 = vld [vmem:[%s5247_s5 + $0xec] sm:$0x1] }
  0x41   : > { %8475 = vst [vmem:[#allocation70_spill] sm:$0xff] %v5576_v35  ;;  %8476 = vst [vmem:[#allocation71_spill] sm:$0xff] %v5579_v45  ;;  %v571_v35 = vrot.slane %v5581_v44, 1  ;;  %v5633_v45 = vunpack.c.l.bf16 %v3970_v15  ;;  %v5635_v26 = vunpack.c.h.bf16 %v3970_v15 }
  0x42   : > { %8477 = vst [vmem:[#allocation72_spill] sm:$0xff] %v5581_v44  ;;  %8478 = vst [vmem:[#allocation73_spill] sm:$0xff] %v5585_v61  ;;  %v3969_v44 = vld [vmem:[%s5247_s5 + $0xc8] sm:$0xff]   ;;  %v5619_v61 = vpack.i.bf16 %v5603_v18, %v5594_v27  ;;  %v573_v31 = vrot.slane %v8489_v53, 1  ;;  %v567_v37 = vrot.slane %v5611_v33, 1 }
  0x43   : > { %8480 = vst [vmem:[#allocation74_spill] sm:$0xff] %v5594_v27  ;;  %8481 = vst [vmem:[#allocation75_spill] sm:$0xff] %v5603_v18  ;;  %v5626_v23 = vsel %vm484_vm0, %v569_v0, %v571_v35  ;;  %v282_v53 = vld [vmem:[%s5247_s5 + $0xdc] ss:$12 sps:$4 sm:$0xff]   ;;  %4242 = vrot.lane.b32.xlu0 %v5623_v62, %s5180_s6  ;;  %v580_v18 = vrot.slane %v5635_v26, 1 }
  0x44   : > { %8482 = vst [vmem:[#allocation76_spill] sm:$0xff] %v5606_v63  ;;  %8483 = vst [vmem:[#allocation77_spill] sm:$0xff] %v5609_v29  ;;  %4247 = vrot.lane.b32.xlu1 %v5619_v61, %s5180_s6  ;;  %v5640_v27 = vsel %vm484_vm0, %v571_v35, %v573_v31  ;;  %v5643_v63 = vunpack.c.l.bf16 %v3969_v44  ;;  %v5645_v29 = vunpack.c.h.bf16 %v3969_v44  ;;  %v566_v35 = vrot.slane %v5630_v36, 1 }
  0x45   : > { %8484 = vst [vmem:[#allocation78_spill] sm:$0xff] %v5611_v33  ;;  %8486 = vst [vmem:[#allocation80_spill] sm:$0xff] %v5619_v61  ;;  %v5656_v15 = vpack.i.bf16 %v5640_v27, %v5626_v23  ;;  %v5660_v31 = vsel %vm484_vm0, %v567_v37, %v569_v0  ;;  %v578_v44 = vrot.slane %v5633_v45, 1  ;;  %v8499_v61 = vunpack.c.l.bf16 %v5614_v57  ;;  %v5693_v57 = vld [vmem:[%s5247_s5 + $0x100] sm:$0x1] }
  0x46   : > { %8487 = vst [vmem:[#allocation81_spill] sm:$0xff] %v5623_v62  ;;  %8488 = vst [vmem:[#allocation82_spill] sm:$0xff] %v5626_v23  ;;  %v575_v62 = vrot.slane %v5643_v63, 1  ;;  %v576_v24 = vrot.slane %v5645_v29, 1  ;;  %v5669_v23 = vsel %vm484_vm0, %v566_v35, %v567_v37  ;;  %v5673_v0 = vunpack.c.h.bf16 %v282_v53  ;;  %v3973_v35 = vld [vmem:[%s5247_s5 + $0xf8] sm:$0xff]  }
  0x47   : > { %8490 = vst [vmem:[#allocation83_spill] sm:$0xff] %v5630_v36  ;;  %8491 = vst [vmem:[#allocation84_spill] sm:$0xff] %v5633_v45  ;;  %v582_v33 = vrot.slane %v8499_v61, 1  ;;  %v5680_v61 = vpack.i.bf16 %v5660_v31, %v5669_v23 }
  0x48   : > { %8492 = vst [vmem:[#allocation85_spill] sm:$0xff] %v5635_v26  ;;  %8493 = vst [vmem:[#allocation86_spill] sm:$0xff] %v5640_v27  ;;  %v5671_v27 = vunpack.c.h.bf16 %v3971_v16  ;;  %4257 = vrot.lane.b32.xlu1 %v5656_v15, %s5180_s6  ;;  %v5689_v37 = vsel %vm484_vm0, %v575_v62, %v576_v24  ;;  %v8511_v62 = vunpack.c.l.bf16 %v5650_v43  ;;  %v5745_v26 = vld [vmem:[%s5247_s5 + $0x114] sm:$0x1] }
  0x49   : > { %8494 = vst [vmem:[#allocation87_spill] sm:$0xff] %v5643_v63  ;;  %8495 = vst [vmem:[#allocation88_spill] sm:$0xff] %v5645_v29  ;;  %v5683_v63 = vsel %vm484_vm0, %v578_v44, %v580_v18  ;;  %v5686_v29 = vsel %vm484_vm0, %v580_v18, %v582_v33  ;;  %v3972_v33 = vld [vmem:[%s5247_s5 + $0xf0] sm:$0xff]   ;;  %4252 = vrot.lane.b32.xlu0 %v5680_v61, %s5180_s6 }
  0x4a   : > { %8496 = vst [vmem:[#allocation89_spill] sm:$0xff] %v5650_v43  ;;  %8497 = vst [vmem:[#allocation90_spill] sm:$0xff] %v5656_v15  ;;  %v5697_v36 = vpack.i.bf16 %v5686_v29, %v5683_v63  ;;  %v5700_v15 = vsel %vm484_vm0, %v576_v24, %v578_v44  ;;  %v5715_v24 = vunpack.c.l.bf16 %v282_v53  ;;  %v292_v43 = vld [vmem:[%s5247_s5 + $0x104] ss:$12 sps:$4 sm:$0xff]  }
  0x4b   : > { %8498 = vst [vmem:[#allocation91_spill] sm:$0xff] %v5660_v31  ;;  %8500 = vst [vmem:[#allocation92_spill] sm:$0xff] %v5669_v23  ;;  %v587_v23 = vrot.slane %v5671_v27, 1  ;;  %v589_v31 = vrot.slane %v5673_v0, 1  ;;  %v5709_v18 = vpack.i.bf16 %v5700_v15, %v5689_v37 }
  0x4c   : > { %8501 = vst [vmem:[#allocation93_spill] sm:$0xff] %v5671_v27  ;;  %8502 = vst [vmem:[#allocation94_spill] sm:$0xff] %v5673_v0  ;;  %v5720_v0 = vunpack.c.l.bf16 %v3973_v35  ;;  %v5722_v27 = vunpack.c.h.bf16 %v3973_v35  ;;  %4267 = vrot.lane.b32.xlu1 %v5697_v36, %s5180_s6 }
  0x4d   : > { %8503 = vst [vmem:[#allocation95_spill] sm:$0xff] %v5680_v61  ;;  %8504 = vst [vmem:[#allocation96_spill] sm:$0xff] %v5683_v63  ;;  %v591_v63 = vrot.slane %v8511_v62, 1  ;;  %v5718_v44 = vsel %vm484_vm0, %v587_v23, %v589_v31  ;;  %v5732_v62 = vunpack.c.l.bf16 %v3972_v33  ;;  %4262 = vrot.lane.b32.xlu0 %v5709_v18, %s5180_s6 }
  0x4e   : > { %8505 = vst [vmem:[#allocation97_spill] sm:$0xff] %v5686_v29  ;;  %8506 = vst [vmem:[#allocation98_spill] sm:$0xff] %v5689_v37  ;;  %v5713_v29 = vunpack.c.l.bf16 %v3971_v16  ;;  %v584_v16 = vrot.slane %v5715_v24, 1  ;;  %v596_v61 = vrot.slane %v5720_v0, 1 }
  0x4f   : > { %8507 = vst [vmem:[#allocation99_spill] sm:$0xff] %v5693_v57  ;;  %8508 = vst [vmem:[#allocation100_spill] sm:$0xff] %v5697_v36  ;;  %v5728_v37 = vsel %vm484_vm0, %v589_v31, %v591_v63  ;;  %v598_v36 = vrot.slane %v5722_v27, 1  ;;  %v8520_v63 = vunpack.c.l.bf16 %v5693_v57 }
  0x50   : > { %8509 = vst [vmem:[#allocation101_spill] sm:$0xff] %v5700_v15  ;;  %8510 = vst [vmem:[#allocation102_spill] sm:$0xff] %v5709_v18  ;;  %v585_v53 = vrot.slane %v5713_v29, 1  ;;  %v3974_v15 = vld [vmem:[%s5247_s5 + $0x108] sm:$0xff]   ;;  %v5738_v35 = vpack.i.bf16 %v5728_v37, %v5718_v44 }
  0x51   : > { %8512 = vst [vmem:[#allocation103_spill] sm:$0xff] %v5713_v29  ;;  %8513 = vst [vmem:[#allocation104_spill] sm:$0xff] %v5715_v24  ;;  %v600_v31 = vrot.slane %v8520_v63, 1  ;;  %v5764_v57 = vsel %vm484_vm0, %v596_v61, %v598_v36 }
  0x52   : > { %8514 = vst [vmem:[#allocation105_spill] sm:$0xff] %v5718_v44  ;;  %8515 = vst [vmem:[#allocation106_spill] sm:$0xff] %v5720_v0  ;;  %v5750_v29 = vsel %vm484_vm0, %v584_v16, %v585_v53  ;;  %v5753_v24 = vsel %vm484_vm0, %v585_v53, %v587_v23  ;;  %v5755_v44 = vunpack.c.h.bf16 %v3972_v33  ;;  %v5769_v16 = vunpack.c.h.bf16 %v3974_v15  ;;  %4277 = vrot.lane.b32.xlu1 %v5738_v35, %s5180_s6 }
  0x53   : > { %8516 = vst [vmem:[#allocation107_spill] sm:$0xff] %v5722_v27  ;;  %8517 = vst [vmem:[#allocation108_spill] sm:$0xff] %v5728_v37  ;;  %v593_v37 = vrot.slane %v5732_v62, 1  ;;  %v3976_v27 = vld [vmem:[%s5247_s5 + $0x120] sm:$0xff]   ;;  %v5761_v63 = vpack.i.bf16 %v5753_v24, %v5750_v29  ;;  %v5767_v18 = vsel %vm484_vm0, %v598_v36, %v600_v31  ;;  %v5778_v53 = vunpack.c.h.bf16 %v292_v43 }
  0x54   : > { %8518 = vst [vmem:[#allocation109_spill] sm:$0xff] %v5732_v62  ;;  %8519 = vst [vmem:[#allocation110_spill] sm:$0xff] %v5738_v35  ;;  %v5775_v23 = vpack.i.bf16 %v5767_v18, %v5764_v57  ;;  %v594_v33 = vrot.slane %v5755_v44, 1  ;;  %v5782_v36 = vunpack.c.l.bf16 %v3974_v15  ;;  %v5784_v31 = vunpack.c.l.bf16 %v292_v43  ;;  %v5789_v35 = vld [vmem:[%s5247_s5 + $0x128] sm:$0x1] }
  0x55   : > { %8521 = vst [vmem:[#allocation111_spill] sm:$0xff] %v5745_v26  ;;  %8522 = vst [vmem:[#allocation112_spill] sm:$0xff] %v5750_v29  ;;  %v5786_v62 = vunpack.c.l.bf16 %v3976_v27  ;;  %4272 = vrot.lane.b32.xlu0 %v5761_v63, %s5180_s6  ;;  %v607_v15 = vrot.slane %v5778_v53, 1  ;;  %v8537_v43 = vunpack.c.l.bf16 %v5745_v26  ;;  %v5808_v0 = vunpack.c.h.bf16 %v3976_v27  ;;  %v5824_v26 = vld [vmem:[%s5247_s5 + $0x13c] sm:$0x1] }
  0x56   : > { %8523 = vst [vmem:[#allocation113_spill] sm:$0xff] %v5753_v24  ;;  %8524 = vst [vmem:[#allocation114_spill] sm:$0xff] %v5755_v44  ;;  %v605_v24 = vrot.slane %v5769_v16, 1  ;;  %v5797_v29 = vsel %vm484_vm0, %v594_v33, %v596_v61  ;;  %v602_v44 = vrot.slane %v5784_v31, 1  ;;  %4287 = vrot.lane.b32.xlu1 %v5775_v23, %s5180_s6 }
  0x57   : > { %8525 = vst [vmem:[#allocation115_spill] sm:$0xff] %v5761_v63  ;;  %8526 = vst [vmem:[#allocation116_spill] sm:$0xff] %v5764_v57  ;;  %v5794_v57 = vsel %vm484_vm0, %v593_v37, %v594_v33  ;;  %v603_v63 = vrot.slane %v5782_v36, 1  ;;  %v3975_v37 = vld [vmem:[%s5247_s5 + $0x118] sm:$0xff]  }
  0x58   : > { %8527 = vst [vmem:[#allocation117_spill] sm:$0xff] %v5767_v18  ;;  %8528 = vst [vmem:[#allocation118_spill] sm:$0xff] %v5769_v16  ;;  %v609_v18 = vrot.slane %v8537_v43, 1  ;;  %v5804_v16 = vpack.i.bf16 %v5797_v29, %v5794_v57  ;;  %v5814_v61 = vsel %vm484_vm0, %v605_v24, %v607_v15  ;;  %v8198_v43 = vunpack.c.l.bf16 %v5789_v35 }
  0x59   : > { %8529 = vst [vmem:[#allocation119_spill] sm:$0xff] %v5775_v23  ;;  %8530 = vst [vmem:[#allocation120_spill] sm:$0xff] %v5778_v53  ;;  %v5831_v23 = vsel %vm484_vm0, %v602_v44, %v603_v63  ;;  %v8555_v53 = vunpack.c.l.bf16 %v5824_v26 }
  0x5a   : > { %8531 = vst [vmem:[#allocation121_spill] sm:$0xff] %v5782_v36  ;;  %8532 = vst [vmem:[#allocation122_spill] sm:$0xff] %v5784_v31  ;;  %v5817_v33 = vsel %vm484_vm0, %v607_v15, %v609_v18  ;;  %v302_v31 = vld [vmem:[%s5247_s5 + $0x12c] ss:$12 sps:$4 sm:$0xff]   ;;  %v5834_v36 = vsel %vm484_vm0, %v603_v63, %v605_v24  ;;  %v616_v18 = vrot.slane %v5808_v0, 1  ;;  %4282 = vrot.lane.b32.xlu0 %v5804_v16, %s5180_s6 }
  0x5b   : > { %8533 = vst [vmem:[#allocation123_spill] sm:$0xff] %v5786_v62  ;;  %8534 = vst [vmem:[#allocation124_spill] sm:$0xff] %v5789_v35  ;;  %v5828_v27 = vpack.i.bf16 %v5817_v33, %v5814_v61  ;;  %v5841_v15 = vpack.i.bf16 %v5834_v36, %v5831_v23  ;;  %v5854_v63 = vunpack.c.h.bf16 %v302_v31 }
  0x5c   : > { %8535 = vst [vmem:[#allocation125_spill] sm:$0xff] %v5794_v57  ;;  %8536 = vst [vmem:[#allocation126_spill] sm:$0xff] %v5797_v29  ;;  %v614_v57 = vrot.slane %v5786_v62, 1  ;;  %v3977_v29 = vld [vmem:[%s5247_s5 + $0x130] sm:$0xff]   ;;  %v618_v62 = vrot.slane %v8198_v43, 1 }
  0x5d   : > { %8538 = vst [vmem:[#allocation127_spill] sm:$0xff] %v5804_v16  ;;  %8539 = vst [vmem:[#allocation128_spill] sm:$0xff] %v5808_v0  ;;  %v5852_v24 = vunpack.c.h.bf16 %v3977_v29  ;;  %4297 = vrot.lane.b32.xlu1 %v5828_v27, %s5180_s6  ;;  %v625_v16 = vrot.slane %v5854_v63, 1 }
  0x5e   : > { %8540 = vst [vmem:[#allocation129_spill] sm:$0xff] %v5814_v61  ;;  %8541 = vst [vmem:[#allocation130_spill] sm:$0xff] %v5817_v33  ;;  %v5845_v61 = vunpack.c.l.bf16 %v3975_v37  ;;  %v5847_v33 = vunpack.c.h.bf16 %v3975_v37  ;;  %v5850_v44 = vsel %vm484_vm0, %v614_v57, %v616_v18  ;;  %4292 = vrot.lane.b32.xlu0 %v5841_v15, %s5180_s6 }
  0x5f   : > { %8542 = vst [vmem:[#allocation131_spill] sm:$0xff] %v5824_v26  ;;  %8543 = vst [vmem:[#allocation132_spill] sm:$0xff] %v5828_v27  ;;  %v623_v0 = vrot.slane %v5852_v24, 1  ;;  %v627_v27 = vrot.slane %v8555_v53, 1 }
  0x60   : > { %8544 = vst [vmem:[#allocation133_spill] sm:$0xff] %v5831_v23  ;;  %8545 = vst [vmem:[#allocation134_spill] sm:$0xff] %v5834_v36  ;;  %v5860_v36 = vsel %vm484_vm0, %v616_v18, %v618_v62  ;;  %v611_v43 = vrot.slane %v5845_v61, 1  ;;  %v612_v37 = vrot.slane %v5847_v33, 1  ;;  %v5864_v23 = vunpack.c.l.bf16 %v3977_v29 }
  0x61   : > { %8546 = vst [vmem:[#allocation135_spill] sm:$0xff] %v5841_v15  ;;  %8547 = vst [vmem:[#allocation136_spill] sm:$0xff] %v5845_v61  ;;  %v5868_v35 = vpack.i.bf16 %v5860_v36, %v5850_v44  ;;  %v5882_v18 = vunpack.c.l.bf16 %v302_v31  ;;  %v5890_v26 = vsel %vm484_vm0, %v623_v0, %v625_v16  ;;  %v5893_v53 = vsel %vm484_vm0, %v625_v16, %v627_v27 }
  0x62   : > { %8548 = vst [vmem:[#allocation137_spill] sm:$0xff] %v5847_v33  ;;  %8549 = vst [vmem:[#allocation138_spill] sm:$0xff] %v5850_v44  ;;  %v5877_v62 = vsel %vm484_vm0, %v611_v43, %v612_v37  ;;  %v5880_v29 = vsel %vm484_vm0, %v612_v37, %v614_v57  ;;  %v621_v44 = vrot.slane %v5864_v23, 1  ;;  %v5899_v57 = vpack.i.bf16 %v5893_v53, %v5890_v26 }
  0x63   : > { %8550 = vst [vmem:[#allocation139_spill] sm:$0xff] %v5852_v24  ;;  %8551 = vst [vmem:[#allocation140_spill] sm:$0xff] %v5854_v63  ;;  %4307 = vrot.lane.b32.xlu1 %v5868_v35, %s5180_s6  ;;  %v620_v31 = vrot.slane %v5882_v18, 1  ;;  %v825_v37 = vrot.slane %v5267_v11, 2  ;;  %v827_v15 = vrot.slane %v5269_v12, 2  ;;  %v8562_v16 = vunpack.c.l.bf16 %v5274_v14 }
  0x64   : > { %8552 = vst [vmem:[#allocation141_spill] sm:$0xff] %v5860_v36  ;;  %8553 = vst [vmem:[#allocation142_spill] sm:$0xff] %v5864_v23  ;;  %v5887_v36 = vpack.i.bf16 %v5880_v29, %v5877_v62  ;;  %v5903_v43 = vsel %vm484_vm0, %v621_v44, %v623_v0  ;;  %v834_v0 = vrot.slane %v5255_v5, 2  ;;  %v8564_v11 = vunpack.c.l.bf16 %v5263_v9 }
  0x65   : > { %8554 = vst [vmem:[#allocation143_spill] sm:$0xff] %v5868_v35  ;;  %8556 = vst [vmem:[#allocation144_spill] sm:$0xff] %v5877_v62  ;;  %v829_v27 = vrot.slane %v8562_v16, 2  ;;  %v822_v62 = vrot.slane %v5259_v7, 2  ;;  %v828_v16 = vsel %vm821_vm1, %v825_v37, %v827_v15 }
  0x66   : > { %8557 = vst [vmem:[#allocation145_spill] sm:$0xff] %v5880_v29  ;;  %8558 = vst [vmem:[#allocation146_spill] sm:$0xff] %v5882_v18  ;;  %v823_v29 = vrot.slane %v5265_v10, 2  ;;  %4302 = vrot.lane.b32.xlu0 %v5887_v36, %s5180_s6  ;;  %v838_v12 = vrot.slane %v8564_v11, 2 }
  0x67   : > { %8559 = vst [vmem:[#allocation147_spill] sm:$0xff] %v5890_v26  ;;  %8560 = vst [vmem:[#allocation148_spill] sm:$0xff] %v5893_v53  ;;  %v5914_v26 = vsel %vm484_vm0, %v620_v31, %v621_v44  ;;  %v836_v53 = vrot.slane %v5271_v13, 2  ;;  %v830_v7 = vsel %vm821_vm1, %v827_v15, %v829_v27  ;;  %4317 = vrot.lane.b32.xlu1 %v5899_v57, %s5180_s6 }
  0x68   : > { %8561 = vst [vmem:[#allocation149_spill] sm:$0xff] %v5903_v43  ;;  %8563 = vst [vmem:[#allocation150_spill] sm:$0xff] %v5914_v26  ;;  %v5922_v14 = vpack.i.bf16 %v5903_v43, %v5914_v26  ;;  %v824_v10 = vsel %vm821_vm1, %v822_v62, %v823_v29  ;;  %v4326_v44 = vpack.i.bf16 %v830_v7, %v828_v16  ;;  %v831_v26 = vrot.slane %v5257_v6, 2 }
  0x69   : > { %v826_v31 = vsel %vm821_vm1, %v823_v29, %v825_v37  ;;  %v837_v35 = vsel %vm821_vm1, %v834_v0, %v836_v53  ;;  %v839_v9 = vsel %vm821_vm1, %v836_v53, %v838_v12  ;;  %v832_v43 = vrot.slane %v5253_v4, 2 }
  0x6a   : > { %v4321_v11 = vpack.i.bf16 %v826_v31, %v824_v10  ;;  %4312 = vrot.lane.b32.xlu0 %v5922_v14, %s5180_s6  ;;  %v5936_v15 = vpack.i.bf16 %v839_v9, %v837_v35  ;;  %v843_v62 = vrot.slane %v5311_v39, 2  ;;  %v845_v7 = vrot.slane %v5313_v40, 2 }
  0x6b   : > { %v8565_v29 = vunpack.c.l.bf16 %v5294_v28  ;;  %v833_v27 = vsel %vm821_vm1, %v831_v26, %v832_v43  ;;  %v835_v10 = vsel %vm821_vm1, %v832_v43, %v834_v0  ;;  %v840_v12 = vrot.slane %v5316_v42, 2  ;;  %4327 = vrot.lane.b32.xlu1 %v4326_v44, %s5181_s7 }
  0x6c   : > { %v841_v53 = vrot.slane %v5324_v46, 2  ;;  %v5948_v35 = vsel %vm821_vm1, %v843_v62, %v845_v7  ;;  %v852_v28 = vrot.slane %v5326_v47, 2  ;;  %v854_v31 = vrot.slane %v5339_v56, 2 }
  0x6d   : > { %v847_v37 = vrot.slane %v8565_v29, 2  ;;  %8566 = vst [vmem:[#allocation151_spill] sm:$0xff] %v5948_v35  ;;  %v5958_v43 = vpack.i.bf16 %v835_v10, %v833_v27  ;;  %v8568_v0 = vunpack.c.l.bf16 %v5329_v48  ;;  %v849_v29 = vrot.slane %v5371_v17, 2 }
  0x6e   : > { %4322 = vrot.lane.b32.xlu0 %v4321_v11, %s5181_s7  ;;  %v5963_v9 = vsel %vm821_vm1, %v840_v12, %v841_v53  ;;  %v5977_v48 = vsel %vm821_vm1, %v852_v28, %v854_v31  ;;  %v863_v10 = vrot.slane %v5379_v22, 2  ;;  %v8573_v12 = vunpack.c.l.bf16 %v5362_v2 }
  0x6f   : > { %v5951_v16 = vsel %vm821_vm1, %v845_v7, %v847_v37  ;;  %v856_v44 = vrot.slane %v8568_v0, 2  ;;  %8569 = vst [vmem:[#allocation153_spill] sm:$0xff] %v5963_v9  ;;  %v5966_v7 = vsel %vm821_vm1, %v841_v53, %v843_v62  ;;  %v850_v37 = vrot.slane %v5347_v60, 2  ;;  %4337 = vrot.lane.b32.xlu1 %v5936_v15, %s5181_s7  ;;  %8571 = vst [vmem:[#allocation155_spill] sm:$0xff] %v5977_v48 }
  0x70   : > { %8567 = vst [vmem:[#allocation152_spill] sm:$0xff] %v5951_v16  ;;  %8570 = vst [vmem:[#allocation154_spill] sm:$0xff] %v5966_v7  ;;  %v5974_v11 = vpack.i.bf16 %v5951_v16, %v5948_v35  ;;  %v861_v62 = vrot.slane %v5377_v20, 2  ;;  %v865_v53 = vrot.slane %v8573_v12, 2  ;;  %v5990_v0 = vpack.i.bf16 %v5966_v7, %v5963_v9 }
  0x71   : > { %v5980_v27 = vsel %vm821_vm1, %v854_v31, %v856_v44  ;;  %v5993_v26 = vsel %vm821_vm1, %v849_v29, %v850_v37  ;;  %v5996_v31 = vsel %vm821_vm1, %v850_v37, %v852_v28  ;;  %v858_v44 = vrot.slane %v5387_v30, 2 }
  0x72   : > { %8572 = vst [vmem:[#allocation156_spill] sm:$0xff] %v5980_v27  ;;  %4332 = vrot.lane.b32.xlu0 %v5958_v43, %s5181_s7  ;;  %8574 = vst [vmem:[#allocation157_spill] sm:$0xff] %v5993_v26  ;;  %v859_v35 = vrot.slane %v5407_v49, 2  ;;  %v6004_v2 = vpack.i.bf16 %v5980_v27, %v5977_v48  ;;  %v870_v12 = vrot.slane %v5416_v54, 2  ;;  %v6008_v16 = vsel %vm821_vm1, %v861_v62, %v863_v10 }
  0x73   : > { %8575 = vst [vmem:[#allocation158_spill] sm:$0xff] %v5996_v31  ;;  %4347 = vrot.lane.b32.xlu1 %v5974_v11, %s5181_s7  ;;  %8576 = vst [vmem:[#allocation159_spill] sm:$0xff] %v6008_v16  ;;  %v6011_v29 = vsel %vm821_vm1, %v863_v10, %v865_v53  ;;  %v872_v28 = vrot.slane %v5418_v55, 2  ;;  %v8578_v37 = vunpack.c.l.bf16 %v5400_v38  ;;  %v6020_v27 = vpack.i.bf16 %v5996_v31, %v5993_v26 }
  0x74   : > { %8577 = vst [vmem:[#allocation160_spill] sm:$0xff] %v6011_v29  ;;  %v6023_v48 = vsel %vm821_vm1, %v858_v44, %v859_v35  ;;  %v6026_v9 = vsel %vm821_vm1, %v859_v35, %v861_v62  ;;  %v867_v10 = vrot.slane %v5439_v34, 2  ;;  %v868_v53 = vrot.slane %v5429_v8, 2 }
  0x75   : > { %v874_v7 = vrot.slane %v8578_v37, 2  ;;  %8579 = vst [vmem:[#allocation161_spill] sm:$0xff] %v6023_v48  ;;  %8580 = vst [vmem:[#allocation162_spill] sm:$0xff] %v6026_v9  ;;  %v6034_v38 = vpack.i.bf16 %v6011_v29, %v6008_v16  ;;  %v879_v37 = vrot.slane %v5462_v21, 2  ;;  %v881_v31 = vrot.slane %v5473_v25, 2 }
  0x76   : > { %4342 = vrot.lane.b32.xlu0 %v5990_v0, %s5181_s7  ;;  %v6039_v44 = vsel %vm821_vm1, %v870_v12, %v872_v28  ;;  %v8583_v62 = vunpack.c.l.bf16 %v5421_v59  ;;  %v6050_v29 = vpack.i.bf16 %v6026_v9, %v6023_v48  ;;  %v6053_v16 = vsel %vm821_vm1, %v867_v10, %v868_v53 }
  0x77   : > { %4357 = vrot.lane.b32.xlu1 %v6004_v2, %s5181_s7  ;;  %8581 = vst [vmem:[#allocation163_spill] sm:$0xff] %v6039_v44  ;;  %v6042_v35 = vsel %vm821_vm1, %v872_v28, %v874_v7  ;;  %8584 = vst [vmem:[#allocation165_spill] sm:$0xff] %v6053_v16  ;;  %v6056_v25 = vsel %vm821_vm1, %v868_v53, %v870_v12  ;;  %v876_v21 = vrot.slane %v5486_v19, 2  ;;  %v877_v7 = vrot.slane %v5495_v32, 2 }
  0x78   : > { %8582 = vst [vmem:[#allocation164_spill] sm:$0xff] %v6042_v35  ;;  %v883_v26 = vrot.slane %v8583_v62, 2  ;;  %8585 = vst [vmem:[#allocation166_spill] sm:$0xff] %v6056_v25  ;;  %v6064_v59 = vpack.i.bf16 %v6042_v35, %v6039_v44  ;;  %v6067_v28 = vsel %vm821_vm1, %v879_v37, %v881_v31  ;;  %v888_v12 = vrot.slane %v5498_v50, 2 }
  0x79   : > { %8587 = vst [vmem:[#allocation168_spill] sm:$0xff] %v6067_v28  ;;  %v890_v53 = vrot.slane %v5500_v1, 2  ;;  %v8589_v62 = vunpack.c.l.bf16 %v5452_v58  ;;  %v6080_v35 = vpack.i.bf16 %v6056_v25, %v6053_v16  ;;  %v6083_v44 = vsel %vm821_vm1, %v876_v21, %v877_v7 }
  0x7a   : > { %4352 = vrot.lane.b32.xlu0 %v6020_v27, %s5181_s7  ;;  %8586 = vst [vmem:[#allocation167_spill] sm:$0xff] %v6064_v59  ;;  %v6070_v10 = vsel %vm821_vm1, %v881_v31, %v883_v26  ;;  %8591 = vst [vmem:[#allocation171_spill] sm:$0xff] %v6083_v44  ;;  %v6086_v26 = vsel %vm821_vm1, %v877_v7, %v879_v37  ;;  %v885_v31 = vrot.slane %v5536_v51, 2  ;;  %v886_v48 = vrot.slane %v5512_v3, 2  ;;  %v8596_v7 = vld [vmem:[#allocation55_spill] sm:$0xff] }
  0x7b   : > { %4367 = vrot.lane.b32.xlu1 %v6034_v38, %s5181_s7  ;;  %8588 = vst [vmem:[#allocation169_spill] sm:$0xff] %v6070_v10  ;;  %v892_v9 = vrot.slane %v8589_v62, 2  ;;  %8590 = vst [vmem:[#allocation170_spill] sm:$0xff] %v6080_v35  ;;  %v6094_v58 = vpack.i.bf16 %v6070_v10, %v6067_v28  ;;  %v897_v62 = vrot.slane %v5550_v52, 2  ;;  %v899_v25 = vrot.slane %v5565_v41, 2  ;;  %v8601_v52 = vld [vmem:[#allocation68_spill] sm:$0xff] }
  0x7c   : > { %8592 = vst [vmem:[#allocation172_spill] sm:$0xff] %v6086_v26  ;;  %v6099_v21 = vsel %vm821_vm1, %v888_v12, %v890_v53  ;;  %v8597_v16 = vunpack.c.l.bf16 %v8596_v7  ;;  %v6110_v10 = vpack.i.bf16 %v6086_v26, %v6083_v44  ;;  %v6113_v28 = vsel %vm821_vm1, %v885_v31, %v886_v48  ;;  %v8606_v26 = vld [vmem:[#allocation71_spill] sm:$0xff] }
  0x7d   : > { %8593 = vst [vmem:[#allocation173_spill] sm:$0xff] %v6094_v58  ;;  %8594 = vst [vmem:[#allocation174_spill] sm:$0xff] %v6099_v21  ;;  %v6102_v37 = vsel %vm821_vm1, %v890_v53, %v892_v9  ;;  %v6116_v41 = vsel %vm821_vm1, %v886_v48, %v888_v12  ;;  %v894_v50 = vrot.slane %v8601_v52, 2  ;;  %v8602_v9 = vld [vmem:[#allocation69_spill] sm:$0xff]  ;;  %v6127_v7 = vsel %vm821_vm1, %v897_v62, %v899_v25  ;;  %v8607_v12 = vld [vmem:[#allocation72_spill] sm:$0xff] }
  0x7e   : > { %4362 = vrot.lane.b32.xlu0 %v6050_v29, %s5181_s7  ;;  %8595 = vst [vmem:[#allocation175_spill] sm:$0xff] %v6102_v37  ;;  %v901_v1 = vrot.slane %v8597_v16, 2  ;;  %8598 = vst [vmem:[#allocation55_spill] sm:$0xff] %v6110_v10  ;;  %v895_v53 = vrot.slane %v8602_v9, 2  ;;  %v6124_v16 = vpack.i.bf16 %v6102_v37, %v6099_v21  ;;  %v906_v48 = vrot.slane %v8606_v26, 2  ;;  %v8608_v52 = vld [vmem:[#allocation64_spill] sm:$0xff] }
  0x7f   : > { %4377 = vrot.lane.b32.xlu1 %v6064_v59, %s5181_s7  ;;  %8599 = vst [vmem:[#allocation176_spill] sm:$0xff] %v6113_v28  ;;  %8600 = vst [vmem:[#allocation177_spill] sm:$0xff] %v6116_v41  ;;  %v908_v44 = vrot.slane %v8607_v12, 2  ;;  %v8609_v3 = vunpack.c.l.bf16 %v8608_v52  ;;  %v6140_v37 = vpack.i.bf16 %v6116_v41, %v6113_v28  ;;  %v915_v52 = vrot.slane %v5633_v45, 2  ;;  %v8616_v41 = vld [vmem:[#allocation85_spill] sm:$0xff]  ;;  %v8624_v45 = vld [vmem:[#allocation87_spill] sm:$0xff] }
  0x80   : > { %8603 = vst [vmem:[#allocation178_spill] sm:$0xff] %v6124_v16  ;;  %8604 = vst [vmem:[#allocation179_spill] sm:$0xff] %v6127_v7  ;;  %v6130_v31 = vsel %vm821_vm1, %v899_v25, %v901_v1  ;;  %v6143_v21 = vsel %vm821_vm1, %v894_v50, %v895_v53  ;;  %v6146_v25 = vsel %vm821_vm1, %v895_v53, %v897_v62  ;;  %v8613_v1 = vld [vmem:[#allocation83_spill] sm:$0xff]  ;;  %v917_v28 = vrot.slane %v8616_v41, 2  ;;  %v8667_v59 = vld [vmem:[#allocation124_spill] sm:$0xff] }
  0x81   : > { %8605 = vst [vmem:[#allocation180_spill] sm:$0xff] %v6130_v31  ;;  %v910_v9 = vrot.slane %v8609_v3, 2  ;;  %8610 = vst [vmem:[#allocation64_spill] sm:$0xff] %v6140_v37  ;;  %v903_v26 = vrot.slane %v8613_v1, 2  ;;  %v6154_v3 = vpack.i.bf16 %v6130_v31, %v6127_v7  ;;  %v6159_v50 = vsel %vm821_vm1, %v906_v48, %v908_v44  ;;  %v8619_v53 = vld [vmem:[#allocation79_spill] sm:$0xff] }
  0x82   : > { %4372 = vrot.lane.b32.xlu0 %v6080_v35, %s5181_s7  ;;  %8611 = vst [vmem:[#allocation181_spill] sm:$0xff] %v6143_v21  ;;  %8612 = vst [vmem:[#allocation182_spill] sm:$0xff] %v6146_v25  ;;  %v8620_v1 = vunpack.c.l.bf16 %v8619_v53  ;;  %v6170_v31 = vpack.i.bf16 %v6146_v25, %v6143_v21  ;;  %v6187_v53 = vsel %vm821_vm1, %v915_v52, %v917_v28  ;;  %v8629_v25 = vld [vmem:[#allocation93_spill] sm:$0xff]  ;;  %v948_v19 = vrot.slane %v5845_v61, 2 }
  0x83   : > { %4387 = vrot.lane.b32.xlu1 %v6094_v58, %s5181_s7  ;;  %v8614_v58 = vld [vmem:[#allocation78_spill] sm:$0xff]  ;;  %8615 = vst [vmem:[#allocation183_spill] sm:$0xff] %v6154_v3  ;;  %8617 = vst [vmem:[#allocation184_spill] sm:$0xff] %v6159_v50  ;;  %v6162_v62 = vsel %vm821_vm1, %v908_v44, %v910_v9  ;;  %v8625_v44 = vld [vmem:[#allocation88_spill] sm:$0xff] }
  0x84   : > { %v904_v12 = vrot.slane %v8614_v58, 2  ;;  %8618 = vst [vmem:[#allocation185_spill] sm:$0xff] %v6162_v62  ;;  %v919_v58 = vrot.slane %v8620_v1, 2  ;;  %8621 = vst [vmem:[#allocation79_spill] sm:$0xff] %v6170_v31  ;;  %v913_v9 = vrot.slane %v8625_v44, 2  ;;  %v6184_v1 = vpack.i.bf16 %v6162_v62, %v6159_v50  ;;  %v8634_v50 = vld [vmem:[#allocation104_spill] sm:$0xff] }
  0x85   : > { %8627 = vst [vmem:[#allocation189_spill] sm:$0xff] %v6187_v53 }
  0x86   : > { %4382 = vrot.lane.b32.xlu0 %v6110_v10, %s5181_s7  ;;  %v6173_v7 = vsel %vm821_vm1, %v903_v26, %v904_v12  ;;  %v6176_v41 = vsel %vm821_vm1, %v904_v12, %v906_v48  ;;  %8626 = vst [vmem:[#allocation188_spill] sm:$0xff] %v6184_v1  ;;  %v6190_v26 = vsel %vm821_vm1, %v917_v28, %v919_v58  ;;  %v924_v48 = vrot.slane %v8629_v25, 2  ;;  %v8630_v12 = vld [vmem:[#allocation94_spill] sm:$0xff]  ;;  %v8635_v10 = vld [vmem:[#allocation103_spill] sm:$0xff] }
  0x87   : > { %4397 = vrot.lane.b32.xlu1 %v6124_v16, %s5181_s7  ;;  %8622 = vst [vmem:[#allocation186_spill] sm:$0xff] %v6173_v7  ;;  %8623 = vst [vmem:[#allocation187_spill] sm:$0xff] %v6176_v41  ;;  %v912_v16 = vrot.slane %v8624_v45, 2  ;;  %v926_v21 = vrot.slane %v8630_v12, 2  ;;  %v8631_v45 = vld [vmem:[#allocation89_spill] sm:$0xff]  ;;  %v6200_v62 = vpack.i.bf16 %v6176_v41, %v6173_v7  ;;  %v922_v51 = vrot.slane %v8635_v10, 2 }
  0x88   : > { %8628 = vst [vmem:[#allocation190_spill] sm:$0xff] %v6190_v26  ;;  %v6208_v58 = vsel %vm821_vm1, %v913_v9, %v915_v52  ;;  %v8640_v7 = vld [vmem:[#allocation107_spill] sm:$0xff] }
  0x89   : > { %8633 = vst [vmem:[#allocation89_spill] sm:$0xff] %v6200_v62  ;;  %v6205_v28 = vsel %vm821_vm1, %v912_v16, %v913_v9  ;;  %8637 = vst [vmem:[#allocation192_spill] sm:$0xff] %v6208_v58  ;;  %v935_v12 = vrot.slane %v8640_v7, 2  ;;  %v6219_v25 = vsel %vm821_vm1, %v924_v48, %v926_v21  ;;  %v8643_v10 = vld [vmem:[#allocation99_spill] sm:$0xff] }
  0x8a   : > { %4392 = vrot.lane.b32.xlu0 %v6140_v37, %s5181_s7  ;;  %v8632_v37 = vunpack.c.l.bf16 %v8631_v45  ;;  %8636 = vst [vmem:[#allocation191_spill] sm:$0xff] %v6205_v28  ;;  %v6214_v45 = vpack.i.bf16 %v6190_v26, %v6187_v53  ;;  %8641 = vst [vmem:[#allocation194_spill] sm:$0xff] %v6219_v25  ;;  %v8644_v52 = vunpack.c.l.bf16 %v8643_v10  ;;  %v6230_v26 = vpack.i.bf16 %v6208_v58, %v6205_v28  ;;  %v8653_v58 = vld [vmem:[#allocation118_spill] sm:$0xff] }
  0x8b   : > { %4407 = vrot.lane.b32.xlu1 %v6154_v3, %s5181_s7  ;;  %v921_v3 = vrot.slane %v8634_v50, 2  ;;  %v6236_v50 = vsel %vm821_vm1, %v922_v51, %v924_v48  ;;  %v8654_v48 = vld [vmem:[#allocation120_spill] sm:$0xff] }
  0x8c   : > { %v928_v44 = vrot.slane %v8632_v37, 2  ;;  %8638 = vst [vmem:[#allocation193_spill] sm:$0xff] %v6214_v45  ;;  %v8639_v37 = vld [vmem:[#allocation106_spill] sm:$0xff]  ;;  %v937_v9 = vrot.slane %v8644_v52, 2  ;;  %8645 = vst [vmem:[#allocation99_spill] sm:$0xff] %v6230_v26  ;;  %v944_v28 = vrot.slane %v8654_v48, 2 }
  0x8d   : > { %v933_v41 = vrot.slane %v8639_v37, 2  ;;  %v6233_v53 = vsel %vm821_vm1, %v921_v3, %v922_v51  ;;  %8647 = vst [vmem:[#allocation197_spill] sm:$0xff] %v6236_v50  ;;  %v942_v51 = vrot.slane %v8653_v58, 2 }
  0x8e   : > { %4402 = vrot.lane.b32.xlu0 %v6170_v31, %s5181_s7  ;;  %v6222_v16 = vsel %vm821_vm1, %v926_v21, %v928_v44  ;;  %8646 = vst [vmem:[#allocation196_spill] sm:$0xff] %v6233_v53  ;;  %v8649_v21 = vld [vmem:[#allocation114_spill] sm:$0xff]  ;;  %v6250_v3 = vsel %vm821_vm1, %v935_v12, %v937_v9 }
  0x8f   : > { %4417 = vrot.lane.b32.xlu1 %v6184_v1, %s5181_s7  ;;  %8642 = vst [vmem:[#allocation195_spill] sm:$0xff] %v6222_v16  ;;  %v8648_v1 = vld [vmem:[#allocation109_spill] sm:$0xff]  ;;  %v931_v44 = vrot.slane %v8649_v21, 2  ;;  %v6244_v10 = vpack.i.bf16 %v6222_v16, %v6219_v25  ;;  %v6247_v52 = vsel %vm821_vm1, %v933_v41, %v935_v12  ;;  %8652 = vst [vmem:[#allocation200_spill] sm:$0xff] %v6250_v3  ;;  %v8660_v9 = vld [vmem:[#allocation122_spill] sm:$0xff] }
  0x90   : > { %v930_v31 = vrot.slane %v8648_v1, 2  ;;  %8651 = vst [vmem:[#allocation199_spill] sm:$0xff] %v6247_v52  ;;  %v6260_v16 = vpack.i.bf16 %v6236_v50, %v6233_v53  ;;  %v8661_v1 = vld [vmem:[#allocation121_spill] sm:$0xff]  ;;  %v8664_v53 = vld [vmem:[#allocation128_spill] sm:$0xff] }
  0x91   : > { %8650 = vst [vmem:[#allocation198_spill] sm:$0xff] %v6244_v10  ;;  %v6266_v12 = vsel %vm821_vm1, %v931_v44, %v933_v41  ;;  %v940_v21 = vrot.slane %v8661_v1, 2  ;;  %v5121_v41 = vld [vmem:[%s8063_s1 + $0x38] sm:$0xff]  }
  0x92   : > { %4412 = vrot.lane.b32.xlu0 %v6200_v62, %s5181_s7  ;;  %v8655_v62 = vld [vmem:[#allocation111_spill] sm:$0xff]  ;;  %v6263_v25 = vsel %vm821_vm1, %v930_v31, %v931_v44  ;;  %8659 = vst [vmem:[#allocation202_spill] sm:$0xff] %v6266_v12  ;;  %v6282_v31 = vsel %vm821_vm1, %v942_v51, %v944_v28 }
  0x93   : > { %4427 = vrot.lane.b32.xlu1 %v6214_v45, %s5181_s7  ;;  %v8656_v37 = vunpack.c.l.bf16 %v8655_v62  ;;  %8657 = vst [vmem:[#allocation111_spill] sm:$0xff] %v6260_v16  ;;  %8658 = vst [vmem:[#allocation201_spill] sm:$0xff] %v6263_v25  ;;  %v939_v45 = vrot.slane %v8660_v9, 2  ;;  %v6274_v62 = vpack.i.bf16 %v6250_v3, %v6247_v52  ;;  %v6293_v3 = vpack.i.bf16 %v6266_v12, %v6263_v25  ;;  %v8674_v12 = vld [vmem:[#allocation131_spill] sm:$0xff] }
  0x94   : > { %8665 = vst [vmem:[#allocation204_spill] sm:$0xff] %v6282_v31  ;;  %v6299_v32 = vsel %vm821_vm1, %v940_v21, %v942_v51  ;;  %v960_v51 = vrot.slane %v5852_v24, 2  ;;  %v8675_v25 = vunpack.c.l.bf16 %v8674_v12  ;;  %v957_v12 = vrot.slane %v5882_v18, 2 }
  0x95   : > { %v946_v7 = vrot.slane %v8656_v37, 2  ;;  %8662 = vst [vmem:[#allocation203_spill] sm:$0xff] %v6274_v62  ;;  %v8663_v37 = vld [vmem:[#allocation123_spill] sm:$0xff]  ;;  %8669 = vst [vmem:[#allocation124_spill] sm:$0xff] %v6293_v3  ;;  %v6296_v52 = vsel %vm821_vm1, %v939_v45, %v940_v21  ;;  %v5122_v21 = vld [vmem:[%s8063_s1 + $0x30] sm:$0xff]  }
  0x96   : > { %4422 = vrot.lane.b32.xlu0 %v6230_v26, %s5181_s7  ;;  %v951_v50 = vrot.slane %v8663_v37, 2  ;;  %v953_v26 = vrot.slane %v8664_v53, 2  ;;  %8670 = vst [vmem:[#allocation206_spill] sm:$0xff] %v6296_v52  ;;  %8671 = vst [vmem:[#allocation207_spill] sm:$0xff] %v6299_v32 }
  0x97   : > { %4437 = vrot.lane.b32.xlu1 %v6244_v10, %s5181_s7  ;;  %v6285_v44 = vsel %vm821_vm1, %v944_v28, %v946_v7  ;;  %v8668_v10 = vunpack.c.l.bf16 %v8667_v59  ;;  %v949_v7 = vrot.slane %v5847_v33, 2  ;;  %v8298_v28 = vmov 0  }
  0x98   : > { %8666 = vst [vmem:[#allocation205_spill] sm:$0xff] %v6285_v44  ;;  %2823 = vmatprep.subr.bf16.mxu0 %v8298_v28  ;;  %v6308_v59 = vpack.i.bf16 %v6285_v44, %v6282_v31  ;;  %v6311_v45 = vsel %vm821_vm1, %v951_v50, %v953_v26  ;;  %v962_v28 = vrot.slane %v5854_v63, 2  ;;  %v8676_v44 = vmov 0   ;;  %v6326_v31 = vpop.permute.xlu1 %4172 }
  0x99   : > { %v955_v35 = vrot.slane %v8668_v10, 2  ;;  %8672 = vst [vmem:[#allocation208_spill] sm:$0xff] %v6311_v45  ;;  %2824 = vmatpush1.bf16.msra.mxu0 %v5121_v41  ;;  %4083 = vmatprep.subr.bf16.mxu1 %v8676_v44 }
  0x9a   : > { %4432 = vrot.lane.b32.xlu0 %v6260_v16, %s5181_s7  ;;  %2825 = vmatprep.subr.bf16.mxu0 %v8676_v44  ;;  %v6330_v16 = vpack.i.bf16 %v6299_v32, %v6296_v52 }
  0x9b   : > { %4447 = vrot.lane.b32.xlu1 %v6274_v62, %s5181_s7  ;;  %v6317_v10 = vsel %vm821_vm1, %v953_v26, %v955_v35  ;;  %v964_v62 = vrot.slane %v8675_v25, 2  ;;  %v6333_v35 = vpop.permute.xlu0 %4162  ;;  %v6336_v26 = vsel %vm821_vm1, %v948_v19, %v949_v7  ;;  %v6339_v25 = vsel %vm821_vm1, %v949_v7, %v951_v50  ;;  %4099 = vmatpush1.bf16.msra.mxu1 %v5121_v41  ;;  %v5123_v19 = vld [vmem:[%s8063_s1 + $0x28] sm:$0xff]  }
  0x9c   : > { %8673 = vst [vmem:[#allocation209_spill] sm:$0xff] %v6317_v10  ;;  %8677 = vst [vmem:[#allocation131_spill] sm:$0xff] %v6336_v26  ;;  %v6347_v32 = vpack.i.bf16 %v6317_v10, %v6311_v45  ;;  %v6353_v50 = vsel %vm821_vm1, %v960_v51, %v962_v28  ;;  %4084 = vmatprep.subr.bf16.mxu1 %v8676_v44  ;;  %v6362_v41 = vpop.permute.xlu1 %4177  ;;  %v6366_v10 = vpack.i.bf16 %v6339_v25, %v6336_v26 }
  0x9d   : > { %8678 = vst [vmem:[#allocation210_spill] sm:$0xff] %v6339_v25  ;;  %2826 = vmatpush1.bf16.msra.mxu0 %v5122_v21  ;;  %8679 = vst [vmem:[#allocation211_spill] sm:$0xff] %v6353_v50  ;;  %v6356_v7 = vsel %vm821_vm1, %v962_v28, %v964_v62  ;;  %v5124_v25 = vld [vmem:[%s8063_s1 + $0x20] sm:$0xff]  }
  0x9e   : > { %4442 = vrot.lane.b32.xlu0 %v6293_v3, %s5181_s7  ;;  %v958_v3 = vrot.slane %v5864_v23, 2  ;;  %8680 = vst [vmem:[#allocation212_spill] sm:$0xff] %v6356_v7  ;;  %2827 = vmatprep.subr.bf16.mxu0 %v8676_v44  ;;  %v6380_v28 = vpack.i.bf16 %v6356_v7, %v6353_v50  ;;  %v5125_v7 = vld [vmem:[%s8063_s1 + $0x18] sm:$0xff]  }
  0x9f   : > { %4457 = vrot.lane.b32.xlu1 %v6308_v59, %s5181_s7  ;;  %v6368_v45 = vpop.permute.xlu0 %4167  ;;  %4100 = vmatpush1.bf16.msra.mxu1 %v5122_v21 }
  0xa0   : > { %v6371_v52 = vsel %vm821_vm1, %v957_v12, %v958_v3  ;;  %v6374_v62 = vsel %vm821_vm1, %v958_v3, %v960_v51  ;;  %4085 = vmatprep.subr.bf16.mxu1 %v8676_v44  ;;  %v6389_v3 = vpop.permute.xlu1 %4187  ;;  %v4486_v12 = vpack.i.bf16 %v5271_v13, %v5255_v5 }
  0xa1   : > { %8681 = vst [vmem:[#allocation213_spill] sm:$0xff] %v6371_v52  ;;  %8682 = vst [vmem:[#allocation214_spill] sm:$0xff] %v6374_v62  ;;  %2828 = vmatpush1.bf16.msra.mxu0 %v5123_v19  ;;  %v6393_v21 = vpack.i.bf16 %v6374_v62, %v6371_v52  ;;  %v8687_v52 = vld [vmem:[#allocation19_spill] sm:$0xff] }
  0xa2   : > { %4452 = vrot.lane.b32.xlu0 %v6330_v16, %s5181_s7  ;;  %2829 = vmatprep.subr.bf16.mxu0 %v8676_v44  ;;  %8683 = vst [vmem:[#allocation215_spill] sm:$0xff] %v6389_v3  ;;  %v4496_v26 = vpack.i.bf16 %v8687_v52, %v5311_v39  ;;  %v5126_v3 = vld [vmem:[%s8063_s1 + $0x10] sm:$0xff]  }
  0xa3   : > { %4467 = vrot.lane.b32.xlu1 %v6347_v32, %s5181_s7  ;;  %v6395_v51 = vpop.permute.xlu0 %4182  ;;  %4101 = vmatpush1.bf16.msra.mxu1 %v5123_v19  ;;  %v4481_v19 = vpack.i.bf16 %v5253_v4, %v5257_v6 }
  0xa4   : > { %8684 = vst [vmem:[#allocation216_spill] sm:$0xff] %v6395_v51  ;;  %4086 = vmatprep.subr.bf16.mxu1 %v8676_v44  ;;  %v6408_v50 = vpop.permute.xlu1 %4197  ;;  %v5129_v51 = vld [vmem:[%s8063_s1 + $0x78] sm:$0xff]  }
  0xa5   : > { %2830 = vmatpush1.bf16.msra.mxu0 %v5124_v25  ;;  %8685 = vst [vmem:[#allocation217_spill] sm:$0xff] %v6408_v50 }
  0xa6   : > { %4462 = vrot.lane.b32.xlu0 %v6366_v10, %s5181_s7  ;;  %2831 = vmatprep.subr.bf16.mxu0 %v8676_v44 }
  0xa7   : > { %4477 = vrot.lane.b32.xlu1 %v6380_v28, %s5181_s7  ;;  %v6412_v62 = vpop.permute.xlu0 %4192  ;;  %4102 = vmatpush1.bf16.msra.mxu1 %v5124_v25  ;;  %v4491_v25 = vpack.i.bf16 %v5324_v46, %v5316_v42  ;;  %v8697_v42 = vld [vmem:[#allocation28_spill] sm:$0xff] }
  0xa8   : > { %8686 = vst [vmem:[#allocation218_spill] sm:$0xff] %v6412_v62  ;;  %4087 = vmatprep.subr.bf16.mxu1 %v8676_v44  ;;  %v6423_v50 = vpop.permute.xlu1 %4207  ;;  %v5127_v62 = vld [vmem:[%s8063_s1 + $0x8] sm:$0xff]  }
  0xa9   : > { %2832 = vmatpush1.bf16.msra.mxu0 %v5125_v7  ;;  %8688 = vst [vmem:[#allocation19_spill] sm:$0xff] %v6423_v50 }
  0xaa   : > { %4472 = vrot.lane.b32.xlu0 %v6393_v21, %s5181_s7  ;;  %2833 = vmatprep.subr.bf16.mxu0 %v8676_v44 }
  0xab   : > { %4487 = vrot.lane.b32.xlu1 %v4486_v12, %s5183_s23  ;;  %v6427_v12 = vpop.permute.xlu0 %4202  ;;  %4103 = vmatpush1.bf16.msra.mxu1 %v5125_v7 }
  0xac   : > { %8689 = vst [vmem:[#allocation219_spill] sm:$0xff] %v6427_v12  ;;  %4088 = vmatprep.subr.bf16.mxu1 %v8676_v44  ;;  %v8694_v12 = vld [vmem:[#allocation16_spill] sm:$0xff] }
  0xad   : > { %2834 = vmatpush1.bf16.msra.mxu0 %v5126_v3 }
  0xae   : > { %4482 = vrot.lane.b32.xlu0 %v4481_v19, %s5183_s23  ;;  %2835 = vmatprep.subr.bf16.mxu0 %v8676_v44  ;;  %v6436_v19 = vpop.permute.xlu1 %4217 }
  0xaf   : > { %4497 = vrot.lane.b32.xlu1 %v4496_v26, %s5183_s23  ;;  %8690 = vst [vmem:[#allocation220_spill] sm:$0xff] %v6436_v19  ;;  %v6438_v50 = vpop.permute.xlu0 %4212  ;;  %4104 = vmatpush1.bf16.msra.mxu1 %v5126_v3  ;;  %v5128_v26 = vld [vmem:[%s8063_s1] sm:$0xff]   ;;  %v8693_v19 = vld [vmem:[#allocation20_spill] sm:$0xff] }
  0xb0   : > { %8691 = vst [vmem:[#allocation221_spill] sm:$0xff] %v6438_v50  ;;  %4089 = vmatprep.subr.bf16.mxu1 %v8676_v44  ;;  %v4511_v50 = vpack.i.bf16 %v8694_v12, %v8693_v19 }
  0xb1   : > { %2836 = vmatpush1.bf16.msra.mxu0 %v5127_v62 }
  0xb2   : > { %4492 = vrot.lane.b32.xlu0 %v4491_v25, %s5183_s23  ;;  %2837 = vmatprep.subr.bf16.mxu0 %v8676_v44  ;;  %v6448_v7 = vpop.permute.xlu1 %4227 }
  0xb3   : > { %4507 = vrot.lane.b32.xlu1 %v4491_v25, %s5181_s7  ;;  %8692 = vst [vmem:[#allocation222_spill] sm:$0xff] %v6448_v7  ;;  %v6452_v3 = vpop.permute.xlu0 %4222  ;;  %4105 = vmatpush1.bf16.msra.mxu1 %v5127_v62  ;;  %v8696_v25 = vld [vmem:[#allocation18_spill] sm:$0xff]  ;;  %v4521_v62 = vpack.i.bf16 %v5313_v40, %v5311_v39  ;;  %v6473_v7 = vpack.i.bf16 %v5347_v60, %v5371_v17  ;;  %v4179_v17 = vunpack.i.l.bf16 %v6362_v41 }
  0xb4   : > { %8695 = vst [vmem:[#allocation20_spill] sm:$0xff] %v6452_v3  ;;  %v4526_v46 = vpack.i.bf16 %v8697_v42, %v8696_v25  ;;  %4090 = vmatprep.subr.bf16.mxu1 %v8676_v44  ;;  %v5130_v3 = vld [vmem:[%s8063_s1 + $0x70] sm:$0xff]   ;;  %v8771_v39 = vld [vmem:[#allocation6_spill] sm:$0xff] }
  0xb5   : > { %2838 = vmatpush1.bf16.msra.mxu0 %v5128_v26 }
  0xb6   : > { %4502 = vrot.lane.b32.xlu0 %v5958_v43, %s5180_s6  ;;  %2839 = vmatprep.subr.bf16.mxu0 %v8676_v44  ;;  %v6464_v43 = vpop.permute.xlu1 %4237 }
  0xb7   : > { %4517 = vrot.lane.b32.xlu1 %v5936_v15, %s5180_s6  ;;  %8698 = vst [vmem:[#allocation16_spill] sm:$0xff] %v6464_v43  ;;  %v6468_v15 = vpop.permute.xlu0 %4232  ;;  %4106 = vmatpush1.bf16.msra.mxu1 %v5128_v26 }
  0xb8   : > { %8699 = vst [vmem:[#allocation18_spill] sm:$0xff] %v6468_v15  ;;  %4091 = vmatprep.subr.bf16.mxu1 %v8676_v44  ;;  %v5132_v15 = vld [vmem:[%s8063_s1 + $0x60] sm:$0xff]  }
  0xb9   : > { %2840 = vmatpush2.bf16.msra.mxu0 %v5129_v51 }
  0xba   : > { %4512 = vrot.lane.b32.xlu0 %v4511_v50, %s5183_s23  ;;  %2841 = vmatprep.subr.bf16.mxu0 %v8676_v44  ;;  %v6481_v50 = vpop.permute.xlu1 %4247 }
  0xbb   : > { %4527 = vrot.lane.b32.xlu1 %v4526_v46, %s5183_s23  ;;  %8700 = vst [vmem:[#allocation28_spill] sm:$0xff] %v6481_v50  ;;  %v6483_v26 = vpop.permute.xlu0 %4242  ;;  %4107 = vmatpush2.bf16.msra.mxu1 %v5129_v51  ;;  %v5131_v46 = vld [vmem:[%s8063_s1 + $0x68] sm:$0xff]  }
  0xbc   : > { %8701 = vst [vmem:[#allocation223_spill] sm:$0xff] %v6483_v26  ;;  %4092 = vmatprep.subr.bf16.mxu1 %v8676_v44  ;;  %v8703_v50 = vld [vmem:[#allocation27_spill] sm:$0xff]  ;;  %v8704_v26 = vld [vmem:[#allocation22_spill] sm:$0xff] }
  0xbd   : > { %2842 = vmatpush2.bf16.msra.mxu0 %v5130_v3  ;;  %v4541_v51 = vpack.i.bf16 %v8704_v26, %v8703_v50 }
  0xbe   : > { %4522 = vrot.lane.b32.xlu0 %v4521_v62, %s5181_s7  ;;  %2843 = vmatprep.subr.bf16.mxu0 %v8676_v44  ;;  %v6494_v62 = vpop.permute.xlu1 %4257 }
  0xbf   : > { %4537 = vrot.lane.b32.xlu1 %v6473_v7, %s5181_s7  ;;  %8702 = vst [vmem:[#allocation224_spill] sm:$0xff] %v6494_v62  ;;  %4108 = vmatpush2.bf16.msra.mxu1 %v5130_v3  ;;  %v6498_v43 = vpop.permute.xlu0 %4252  ;;  %v6512_v3 = vpack.i.bf16 %v5339_v56, %v5326_v47 }
  0xc0   : > { %8705 = vst [vmem:[#allocation27_spill] sm:$0xff] %v6498_v43  ;;  %4093 = vmatprep.subr.bf16.mxu1 %v8676_v44  ;;  %v6539_v43 = vpack.i.bf16 %v8661_v1, %v8660_v9  ;;  %v4169_v9 = vunpack.i.l.bf16 %v6368_v45 }
  0xc1   : > { %2844 = vmatpush2.bf16.msra.mxu0 %v5131_v46 }
  0xc2   : > { %4532 = vrot.lane.b32.xlu0 %v5990_v0, %s5180_s6  ;;  %2845 = vmatprep.subr.bf16.mxu0 %v8676_v44  ;;  %v6508_v0 = vpop.permute.xlu1 %4267  ;;  %8711 = vst [vmem:[#allocation227_spill] sm:$0xff] %v6539_v43 }
  0xc3   : > { %4547 = vrot.lane.b32.xlu1 %v5974_v11, %s5180_s6  ;;  %8706 = vst [vmem:[#allocation22_spill] sm:$0xff] %v6508_v0  ;;  %4109 = vmatpush2.bf16.msra.mxu1 %v5131_v46  ;;  %v6514_v62 = vpop.permute.xlu0 %4262  ;;  %v6520_v11 = vpack.i.bf16 %v5847_v33, %v5845_v61  ;;  %v8709_v0 = vld [vmem:[#allocation25_spill] sm:$0xff]  ;;  %v5134_v61 = vld [vmem:[%s8063_s1 + $0x50] sm:$0xff]   ;;  %v5135_v33 = vld [vmem:[%s8063_s1 + $0x48] sm:$0xff]  }
  0xc4   : > { %8707 = vst [vmem:[#allocation225_spill] sm:$0xff] %v6514_v62  ;;  %4094 = vmatprep.subr.bf16.mxu1 %v8676_v44 }
  0xc5   : > { %2846 = vmatpush2.bf16.msra.mxu0 %v5132_v15 }
  0xc6   : > { %4542 = vrot.lane.b32.xlu0 %v4541_v51, %s5183_s23  ;;  %v5133_v51 = vld [vmem:[%s8063_s1 + $0x58] sm:$0xff]   ;;  %2847 = vmatprep.subr.bf16.mxu0 %v8676_v44  ;;  %v6529_v46 = vpop.permute.xlu1 %4277 }
  0xc7   : > { %4557 = vrot.lane.b32.xlu1 %v6330_v16, %s5180_s6  ;;  %8708 = vst [vmem:[#allocation226_spill] sm:$0xff] %v6529_v46  ;;  %v4561_v16 = vpack.i.bf16 %v5313_v40, %v8709_v0  ;;  %4110 = vmatpush2.bf16.msra.mxu1 %v5132_v15  ;;  %v6533_v62 = vpop.permute.xlu0 %4272 }
  0xc8   : > { %8710 = vst [vmem:[#allocation25_spill] sm:$0xff] %v6533_v62  ;;  %4095 = vmatprep.subr.bf16.mxu1 %v8676_v44  ;;  %v6555_v62 = vpack.i.bf16 %v5407_v49, %v5387_v30  ;;  %v8715_v49 = vld [vmem:[#allocation39_spill] sm:$0xff]  ;;  %v4606_v30 = vpack.i.bf16 %v8664_v53, %v8663_v37 }
  0xc9   : > { %2848 = vmatpush2.bf16.msra.mxu0 %v5133_v51 }
  0xca   : > { %4552 = vrot.lane.b32.xlu0 %v6512_v3, %s5181_s7  ;;  %2849 = vmatprep.subr.bf16.mxu0 %v8676_v44  ;;  %v6547_v15 = vpop.permute.xlu1 %4287 }
  0xcb   : > { %4567 = vrot.lane.b32.xlu1 %v6520_v11, %s5181_s7  ;;  %4111 = vmatpush2.bf16.msra.mxu1 %v5133_v51 }
  0xcc   : > { %v6549_v46 = vpop.permute.xlu0 %4282  ;;  %4096 = vmatprep.subr.bf16.mxu1 %v8676_v44 }
  0xcd   : > { %2850 = vmatpush2.bf16.msra.mxu0 %v5134_v61 }
  0xce   : > { %4562 = vrot.lane.b32.xlu0 %v4561_v16, %s5183_s23  ;;  %2851 = vmatprep.subr.bf16.mxu0 %v8676_v44 }
  0xcf   : > { %4577 = vrot.lane.b32.xlu1 %v6539_v43, %s5183_s23  ;;  %v6564_v51 = vpop.permute.xlu1 %4297  ;;  %4112 = vmatpush2.bf16.msra.mxu1 %v5134_v61  ;;  %v5136_v43 = vld [vmem:[%s8063_s1 + $0x40] sm:$0xff]  }
  0xd0   : > { %8712 = vst [vmem:[#allocation228_spill] sm:$0xff] %v6564_v51  ;;  %v6566_v16 = vpop.permute.xlu0 %4292  ;;  %4097 = vmatprep.subr.bf16.mxu1 %v8676_v44  ;;  %v8760_v51 = vld [vmem:[#allocation3_spill] sm:$0xff] }
  0xd1   : > { %2852 = vmatpush2.bf16.msra.mxu0 %v5135_v33 }
  0xd2   : > { %4572 = vrot.lane.b32.xlu0 %v5887_v36, %s5183_s23  ;;  %2853 = vmatprep.subr.bf16.mxu0 %v8676_v44 }
  0xd3   : > { %4587 = vrot.lane.b32.xlu1 %v6555_v62, %s5181_s7  ;;  %4113 = vmatpush2.bf16.msra.mxu1 %v5135_v33  ;;  %v6595_v33 = vpack.i.bf16 %v8654_v48, %v8653_v58 }
  0xd4   : > { %4098 = vmatprep.subr.bf16.mxu1 %v8676_v44 }
  0xd5   : > { %v6577_v36 = vpop.permute.xlu1 %4307  ;;  %2854 = vmatpush2.bf16.msra.mxu0 %v5136_v43  ;;  %8718 = vst [vmem:[#allocation232_spill] sm:$0xff] %v6595_v33 }
  0xd6   : > { %4582 = vrot.lane.b32.xlu0 %v6020_v27, %s5180_s6  ;;  %8713 = vst [vmem:[#allocation229_spill] sm:$0xff] %v6577_v36  ;;  %v3980_v36 = vld [vmem:[%s5247_s5 + $0x158] sm:$0xff]  }
  0xd7   : > { %4597 = vrot.lane.b32.xlu1 %v8715_v49, %s5183_s23  ;;  %4114 = vmatpush2.bf16.msra.mxu1 %v5136_v43  ;;  %v8719_v43 = vld [vmem:[#allocation143_spill] sm:$0xff] }
  0xd8   : > { %v6579_v61 = vpop.permute.xlu0 %4302 }
  0xd9   : > { %8714 = vst [vmem:[#allocation230_spill] sm:$0xff] %v6579_v61  ;;  %v6588_v56 = vpop.permute.xlu1 %4317  ;;  %v4175_v61 = vunpack.i.h.bf16 %v6326_v31 }
  0xda   : > { %4592 = vrot.lane.b32.xlu0 %v6308_v59, %s5180_s6  ;;  %8716 = vst [vmem:[#allocation39_spill] sm:$0xff] %v6588_v56  ;;  %v4626_v59 = vpack.i.bf16 %v5379_v22, %v5377_v20  ;;  %v4646_v20 = vpack.i.bf16 %v5864_v23, %v5882_v18 }
  0xdb   : > { %4607 = vrot.lane.b32.xlu1 %v4606_v30, %s5181_s7 }
  0xdc   : > { %v6590_v27 = vpop.permute.xlu0 %4312 }
  0xdd   : > { %8717 = vst [vmem:[#allocation231_spill] sm:$0xff] %v6590_v27  ;;  %v6599_v49 = vpop.permute.xlu1 %4327 }
  0xde   : > { %4602 = vrot.lane.b32.xlu0 %v6473_v7, %s5183_s23 }
  0xdf   : > { %4617 = vrot.lane.b32.xlu1 %v6595_v33, %s5183_s23  ;;  %v8721_v33 = vld [vmem:[#allocation35_spill] sm:$0xff] }
  0xe0   : > { %v6601_v44 = vpop.permute.xlu0 %4322 }
  0xe1   : > { %v6609_v56 = vpop.permute.xlu1 %4337 }
  0xe2   : > { %4612 = vrot.lane.b32.xlu0 %v8719_v43, %s5183_s23 }
  0xe3   : > { %4627 = vrot.lane.b32.xlu1 %v4626_v59, %s5181_s7 }
  0xe4   : > { %v6611_v27 = vpop.permute.xlu0 %4332 }
  0xe5   : > { %v6616_v7 = vpop.permute.xlu1 %4347 }
  0xe6   : > { %4622 = vrot.lane.b32.xlu0 %v6004_v2, %s5180_s6  ;;  %8720 = vst [vmem:[#allocation143_spill] sm:$0xff] %v6616_v7 }
  0xe7   : > { %4637 = vrot.lane.b32.xlu1 %v8721_v33, %s5183_s23  ;;  %v6641_v33 = vpack.i.bf16 %v5429_v8, %v5439_v34  ;;  %v8730_v34 = vld [vmem:[#allocation48_spill] sm:$0xff] }
  0xe8   : > { %v6618_v37 = vpop.permute.xlu0 %4342 }
  0xe9   : > { %v6626_v43 = vpop.permute.xlu1 %4357 }
  0xea   : > { %4632 = vrot.lane.b32.xlu0 %v6366_v10, %s5180_s6  ;;  %8722 = vst [vmem:[#allocation35_spill] sm:$0xff] %v6626_v43 }
  0xeb   : > { %4647 = vrot.lane.b32.xlu1 %v4646_v20, %s5181_s7 }
  0xec   : > { %v6628_v22 = vpop.permute.xlu0 %4352 }
  0xed   : > { %8723 = vst [vmem:[#allocation233_spill] sm:$0xff] %v6628_v22  ;;  %v6633_v2 = vpop.permute.xlu1 %4367 }
  0xee   : > { %4642 = vrot.lane.b32.xlu0 %v6512_v3, %s5183_s23  ;;  %8724 = vst [vmem:[#allocation234_spill] sm:$0xff] %v6633_v2 }
  0xef   : > { %4657 = vrot.lane.b32.xlu1 %v6520_v11, %s5183_s23 }
  0xf0   : > { %v6635_v53 = vpop.permute.xlu0 %4362 }
  0xf1   : > { %8725 = vst [vmem:[#allocation235_spill] sm:$0xff] %v6635_v53  ;;  %v6645_v10 = vpop.permute.xlu1 %4377 }
  0xf2   : > { %4652 = vrot.lane.b32.xlu0 %v5922_v14, %s5183_s23  ;;  %8726 = vst [vmem:[#allocation236_spill] sm:$0xff] %v6645_v10  ;;  %v6661_v14 = vpack.i.bf16 %v5854_v63, %v5852_v24 }
  0xf3   : > { %4667 = vrot.lane.b32.xlu1 %v6641_v33, %s5181_s7 }
  0xf4   : > { %v6647_v18 = vpop.permute.xlu0 %4372 }
  0xf5   : > { %8727 = vst [vmem:[#allocation237_spill] sm:$0xff] %v6647_v18  ;;  %v6653_v3 = vpop.permute.xlu1 %4387 }
  0xf6   : > { %4662 = vrot.lane.b32.xlu0 %v6050_v29, %s5180_s6  ;;  %8728 = vst [vmem:[#allocation238_spill] sm:$0xff] %v6653_v3  ;;  %v6680_v3 = vpack.i.bf16 %v5418_v55, %v5416_v54 }
  0xf7   : > { %4677 = vrot.lane.b32.xlu1 %v8730_v34, %s5183_s23 }
  0xf8   : > { %v6655_v11 = vpop.permute.xlu0 %4382 }
  0xf9   : > { %8729 = vst [vmem:[#allocation239_spill] sm:$0xff] %v6655_v11  ;;  %v6665_v10 = vpop.permute.xlu1 %4397 }
  0xfa   : > { %4672 = vrot.lane.b32.xlu0 %v6347_v32, %s5180_s6  ;;  %8731 = vst [vmem:[#allocation48_spill] sm:$0xff] %v6665_v10  ;;  %v3978_v32 = vld [vmem:[%s5247_s5 + $0x140] sm:$0xff]   ;;  %v3979_v10 = vld [vmem:[%s5247_s5 + $0x148] sm:$0xff]  }
  0xfb   : > { %4687 = vrot.lane.b32.xlu1 %v6661_v14, %s5181_s7 }
  0xfc   : > { %v6667_v8 = vpop.permute.xlu0 %4392 }
  0xfd   : > { %8732 = vst [vmem:[#allocation240_spill] sm:$0xff] %v6667_v8  ;;  %v6673_v29 = vpop.permute.xlu1 %4407 }
  0xfe   : > { %4682 = vrot.lane.b32.xlu0 %v6555_v62, %s5183_s23  ;;  %8733 = vst [vmem:[#allocation241_spill] sm:$0xff] %v6673_v29  ;;  %v6691_v62 = vld [vmem:[%s8063_s1 + $0x88] sm:$0xff]   ;;  %v6693_v29 = vunpack.c.l.bf16 %v3978_v32 }
  0xff   : > { %4697 = vrot.lane.b32.xlu1 %v4606_v30, %s5183_s23  ;;  %v6697_v30 = vunpack.c.l.bf16 %v3979_v10  ;;  %4015 = vmatprep.subr.bf16.mxu1 %v6691_v62 }
 0x100   : > { %v6675_v34 = vpop.permute.xlu0 %4402 }
 0x101   : > { %8734 = vst [vmem:[#allocation242_spill] sm:$0xff] %v6675_v34  ;;  %v6686_v8 = vpop.permute.xlu1 %4417  ;;  %v6695_v34 = vunpack.c.h.bf16 %v3978_v32  ;;  %v1358_v32 = vrot.slane %v6697_v30, 1 }
 0x102   : > { %4692 = vrot.lane.b32.xlu0 %v5899_v57, %s5183_s23  ;;  %8735 = vst [vmem:[#allocation243_spill] sm:$0xff] %v6686_v8  ;;  %v1355_v8 = vrot.slane %v6693_v29, 1 }
 0x103   : > { %4707 = vrot.lane.b32.xlu1 %v6680_v3, %s5181_s7  ;;  %v1356_v54 = vrot.slane %v6695_v34, 1  ;;  %v6717_v24 = vpack.i.bf16 %v6695_v34, %v6693_v29  ;;  %v1429_v48 = vrot.slane %v6695_v34, 2  ;;  %v8759_v34 = vld [vmem:[#allocation44_spill] sm:$0xff] }
 0x104   : > { %v6699_v11 = vpop.permute.xlu0 %4412 }
 0x105   : > { %8736 = vst [vmem:[#allocation244_spill] sm:$0xff] %v6699_v11  ;;  %v6706_v57 = vpop.permute.xlu1 %4427  ;;  %v8739_v11 = vld [vmem:[#allocation45_spill] sm:$0xff]  ;;  %v6727_v63 = vsel %vm484_vm0, %v1356_v54, %v1358_v32 }
 0x106   : > { %4702 = vrot.lane.b32.xlu0 %v6034_v38, %s5180_s6  ;;  %8737 = vst [vmem:[#allocation245_spill] sm:$0xff] %v6706_v57  ;;  %v6724_v57 = vsel %vm484_vm0, %v1355_v8, %v1356_v54  ;;  %8742 = vst [vmem:[#allocation248_spill] sm:$0xff] %v6727_v63  ;;  %v8744_v8 = vld [vmem:[#allocation47_spill] sm:$0xff] }
 0x107   : > { %4717 = vrot.lane.b32.xlu1 %v8739_v11, %s5183_s23  ;;  %8741 = vst [vmem:[#allocation247_spill] sm:$0xff] %v6724_v57 }
 0x108   : > { %v6711_v55 = vpop.permute.xlu0 %4422 }
 0x109   : > { %8738 = vst [vmem:[#allocation246_spill] sm:$0xff] %v6711_v55  ;;  %v6721_v38 = vpop.permute.xlu1 %4437 }
 0x10a   : > { %4712 = vrot.lane.b32.xlu0 %v6393_v21, %s5180_s6  ;;  %8740 = vst [vmem:[#allocation45_spill] sm:$0xff] %v6721_v38  ;;  %v4731_v21 = vpack.i.bf16 %v6727_v63, %v6724_v57  ;;  %v8745_v38 = vld [vmem:[#allocation49_spill] sm:$0xff] }
 0x10b   : > { %4727 = vrot.lane.b32.xlu1 %v6717_v24, %s5181_s7  ;;  %v6743_v54 = vpack.i.bf16 %v8745_v38, %v8744_v8 }
 0x10c   : > { %v6729_v18 = vpop.permute.xlu0 %4432 }
 0x10d   : > { %8743 = vst [vmem:[#allocation249_spill] sm:$0xff] %v6729_v18  ;;  %v6734_v11 = vpop.permute.xlu1 %4447  ;;  %v308_v18 = vld [vmem:[%s5247_s5 + $0x150] sm:$0x1] }
 0x10e   : > { %4722 = vrot.lane.b32.xlu0 %v4626_v59, %s5183_s23  ;;  %v6749_v59 = vunpack.c.h.bf16 %v3979_v10  ;;  %v398_v2 = vunpack.c.l.bf16 %v308_v18  ;;  %v309_v10 = vld [vmem:[%s5247_s5 + $0x154] ss:$12 sps:$4 sm:$0xff]  }
 0x10f   : > { %4737 = vrot.lane.b32.xlu1 %v4646_v20, %s5183_s23  ;;  %v8748_v20 = vld [vmem:[#allocation170_spill] sm:$0xff]  ;;  %v6784_v43 = vunpack.c.l.bf16 %v309_v10 }
 0x110   : > { %v6738_v55 = vpop.permute.xlu0 %4442  ;;  %v1360_v8 = vrot.slane %v6749_v59, 1  ;;  %v1362_v38 = vrot.slane %v398_v2, 1  ;;  %v6766_v18 = vpack.i.bf16 %v6749_v59, %v6697_v30 }
 0x111   : > { %v6747_v23 = vpop.permute.xlu1 %4457  ;;  %8756 = vst [vmem:[#allocation256_spill] sm:$0xff] %v6784_v43  ;;  %v1826_v60 = vrot.slane %v6784_v43, 1 }
 0x112   : > { %4732 = vrot.lane.b32.xlu0 %v4731_v21, %s5183_s23  ;;  %8746 = vst [vmem:[#allocation250_spill] sm:$0xff] %v6747_v23  ;;  %v8751_v21 = vld [vmem:[#allocation60_spill] sm:$0xff]  ;;  %v6778_v47 = vsel %vm484_vm0, %v1360_v8, %v1362_v38  ;;  %v4164_v38 = vunpack.i.l.bf16 %v6333_v35 }
 0x113   : > { %4747 = vrot.lane.b32.xlu1 %v6743_v54, %s5181_s7  ;;  %8754 = vst [vmem:[#allocation254_spill] sm:$0xff] %v6778_v47 }
 0x114   : > { %v6751_v53 = vpop.permute.xlu0 %4452 }
 0x115   : > { %8747 = vst [vmem:[#allocation251_spill] sm:$0xff] %v6751_v53  ;;  %v6757_v57 = vpop.permute.xlu1 %4467  ;;  %v8772_v53 = vld [vmem:[#allocation7_spill] sm:$0xff] }
 0x116   : > { %4742 = vrot.lane.b32.xlu0 %v8748_v20, %s5180_s6  ;;  %8749 = vst [vmem:[#allocation170_spill] sm:$0xff] %v6757_v57  ;;  %v6775_v57 = vsel %vm484_vm0, %v1358_v32, %v1360_v8  ;;  %v4165_v32 = vunpack.i.h.bf16 %v6333_v35  ;;  %v4180_v8 = vunpack.i.h.bf16 %v6362_v41 }
 0x117   : > { %4757 = vrot.lane.b32.xlu1 %v8751_v21, %s5183_s23  ;;  %8753 = vst [vmem:[#allocation253_spill] sm:$0xff] %v6775_v57  ;;  %v6782_v21 = vunpack.c.h.bf16 %v3980_v36 }
 0x118   : > { %v6760_v63 = vpop.permute.xlu0 %4462 }
 0x119   : > { %8750 = vst [vmem:[#allocation252_spill] sm:$0xff] %v6760_v63  ;;  %v6772_v20 = vpop.permute.xlu1 %4477  ;;  %v6780_v63 = vunpack.c.l.bf16 %v3980_v36  ;;  %v1829_v23 = vrot.slane %v6782_v21, 1 }
 0x11a   : > { %4752 = vrot.lane.b32.xlu0 %v6380_v28, %s5180_s6  ;;  %8752 = vst [vmem:[#allocation60_spill] sm:$0xff] %v6772_v20  ;;  %v4174_v28 = vunpack.i.l.bf16 %v6326_v31  ;;  %v4771_v20 = vpack.i.bf16 %v6778_v47, %v6775_v57  ;;  %v1431_v31 = vrot.slane %v6697_v30, 2  ;;  %v4170_v57 = vunpack.i.h.bf16 %v6368_v45 }
 0x11b   : > { %8755 = vst [vmem:[#allocation255_spill] sm:$0xff] %v6780_v63  ;;  %4767 = vrot.lane.b32.xlu1 %v6766_v18, %s5181_s7  ;;  %v1827_v35 = vrot.slane %v6780_v63, 1  ;;  %v1433_v45 = vrot.slane %v6749_v59, 2  ;;  %v4806_v59 = vpack.i.bf16 %v6780_v63, %v6784_v43 }
 0x11c   : > { %v6787_v58 = vpop.permute.xlu0 %4472  ;;  %v6823_v22 = vsel %vm2100_vm2, %v5257_v6, %v4174_v28  ;;  %v6841_v28 = vsel %vm821_vm1, %v1429_v48, %v1431_v31 }
 0x11d   : > { %8757 = vst [vmem:[#allocation257_spill] sm:$0xff] %v6787_v58  ;;  %v6797_v36 = vpop.permute.xlu1 %4487  ;;  %v1428_v58 = vrot.slane %v6693_v29, 2  ;;  %v8758_v29 = vld [vmem:[#allocation41_spill] sm:$0xff] }
 0x11e   : > { %4762 = vrot.lane.b32.xlu0 %v6641_v33, %s5183_s23  ;;  %v6809_v33 = vsel %vm2100_vm2, %v5253_v4, %v4175_v61  ;;  %v6819_v30 = vpack.i.bf16 %v8759_v34, %v8758_v29  ;;  %v2102_v4 = vsel %vm2100_vm2, %v8760_v51, %v4165_v32  ;;  %v8761_v61 = vld [vmem:[#allocation2_spill] sm:$0xff]  ;;  %v6844_v51 = vsel %vm484_vm0, %v1826_v60, %v1827_v35 }
 0x11f   : > { %4777 = vrot.lane.b32.xlu1 %v6661_v14, %s5183_s23  ;;  %v2101_v41 = vsel %vm2100_vm2, %v8761_v61, %v4164_v38  ;;  %v6832_v14 = vsel %vm2100_vm2, %v5271_v13, %v4180_v8  ;;  %v6838_v6 = vsel %vm821_vm1, %v1428_v58, %v1429_v48  ;;  %8763 = vst [vmem:[#allocation2_spill] sm:$0xff] %v6841_v28  ;;  %v1435_v13 = vrot.slane %v398_v2, 2  ;;  %v8764_v38 = vld [vmem:[#allocation5_spill] sm:$0xff]  ;;  %v6865_v48 = vld [vmem:[%s5247_s5 + $0x164] sm:$0x1]  ;;  %v8768_v61 = vld [vmem:[#allocation59_spill] sm:$0xff] }
 0x120   : > { %v6813_v47 = vpop.permute.xlu0 %4482  ;;  %8762 = vst [vmem:[#allocation3_spill] sm:$0xff] %v6838_v6  ;;  %v6847_v32 = vsel %vm484_vm0, %v1827_v35, %v1829_v23  ;;  %v6856_v58 = vsel %vm2100_vm2, %v8764_v38, %v4170_v57  ;;  %v6862_v60 = vunpack.c.h.bf16 %v309_v10  ;;  %8765 = vst [vmem:[#allocation5_spill] sm:$0xff] %v6865_v48  ;;  %v8766_v35 = vld [vmem:[#allocation4_spill] sm:$0xff]  ;;  %v8769_v38 = vld [vmem:[#allocation54_spill] sm:$0xff] }
 0x121   : > { %v6835_v29 = vpop.permute.xlu1 %4497  ;;  %v6869_v2 = vsel %vm2100_vm2, %v8766_v35, %v4169_v9  ;;  %v4811_v10 = vpack.i.bf16 %v6847_v32, %v6844_v51  ;;  %v6881_v34 = vpack.i.bf16 %v8769_v38, %v8768_v61  ;;  %v6884_v9 = vsel %vm821_vm1, %v1431_v31, %v1433_v45  ;;  %v8770_v51 = vld [vmem:[#allocation56_spill] sm:$0xff] }
 0x122   : > { %4772 = vrot.lane.b32.xlu0 %v4771_v20, %s5183_s23  ;;  %v6852_v20 = vsel %vm2100_vm2, %v5255_v5, %v4179_v17  ;;  %v4791_v5 = vpack.i.bf16 %v6841_v28, %v6838_v6  ;;  %v8767_v17 = vld [vmem:[#allocation167_spill] sm:$0xff]  ;;  %v6887_v35 = vsel %vm821_vm1, %v1433_v45, %v1435_v13  ;;  %v4324_v28 = vunpack.i.l.bf16 %v6601_v44 }
 0x123   : > { %4787 = vrot.lane.b32.xlu1 %v6819_v30, %s5181_s7  ;;  %v1831_v32 = vrot.slane %v6862_v60, 1  ;;  %v4325_v6 = vunpack.i.h.bf16 %v6601_v44  ;;  %v4484_v61 = vunpack.i.l.bf16 %v6813_v47  ;;  %v4485_v45 = vunpack.i.h.bf16 %v6813_v47 }
 0x124   : > { %v6858_v8 = vpop.permute.xlu0 %4492 }
 0x125   : > { %v4508_v57 = vpop.permute.xlu1 %4507  ;;  %v6912_v1 = vsel %vm484_vm0, %v1829_v23, %v1831_v32 }
 0x126   : > { %4782 = vrot.lane.b32.xlu0 %v8767_v17, %s5180_s6  ;;  %v4509_v63 = vunpack.i.l.bf16 %v4508_v57  ;;  %v4510_v13 = vunpack.i.h.bf16 %v4508_v57  ;;  %v2166_v57 = vsel %vm2165_vm3, %v2101_v41, %v4324_v28 }
 0x127   : > { %4797 = vrot.lane.b32.xlu1 %v8770_v51, %s5183_s23 }
 0x128   : > { %v4503_v43 = vpop.permute.xlu0 %4502 }
 0x129   : > { %v4505_v31 = vunpack.i.h.bf16 %v4503_v43  ;;  %v4504_v38 = vunpack.i.l.bf16 %v4503_v43  ;;  %v4518_v17 = vpop.permute.xlu1 %4517  ;;  %v8773_v43 = vunpack.c.l.bf16 %v6865_v48 }
 0x12a   : > { %4792 = vrot.lane.b32.xlu0 %v4791_v5, %s5180_s6  ;;  %v4520_v44 = vunpack.i.h.bf16 %v4518_v17  ;;  %v4519_v48 = vunpack.i.l.bf16 %v4518_v17  ;;  %v4490_v17 = vunpack.i.h.bf16 %v6797_v36 }
 0x12b   : > { %v2295_v51 = vsel %vm2100_vm2, %v8771_v39, %v4504_v38  ;;  %v2296_v40 = vsel %vm2100_vm2, %v8772_v53, %v4505_v31  ;;  %v1833_v7 = vrot.slane %v8773_v43, 1  ;;  %4807 = vrot.lane.b32.xlu1 %v4806_v59, %s5181_s7  ;;  %v4500_v39 = vunpack.i.h.bf16 %v6835_v29 }
 0x12c   : > { %v4513_v47 = vpop.permute.xlu0 %4512  ;;  %v2359_v5 = vsel %vm2165_vm3, %v2295_v51, %v4509_v63  ;;  %v2167_v53 = vsel %vm2165_vm3, %v2102_v4, %v4325_v6  ;;  %v2231_v31 = vsel %vm2230_vm4, %v2166_v57, %v4484_v61  ;;  %v2360_v63 = vsel %vm2165_vm3, %v2296_v40, %v4510_v13  ;;  %v8775_v57 = vld [vmem:[#allocation8_spill] sm:$0xff] }
 0x12d   : > { %v4514_v38 = vunpack.i.l.bf16 %v4513_v47  ;;  %v6919_v59 = vpop.permute.xlu1 %4527  ;;  %v2232_v41 = vsel %vm2230_vm4, %v2167_v53, %v4485_v45  ;;  %v2423_v23 = vsel %vm2230_vm4, %v2359_v5, %v4500_v39  ;;  %v6926_v51 = vsel %vm484_vm0, %v1831_v32, %v1833_v7  ;;  %v8774_v7 = vld [vmem:[#allocation12_spill] sm:$0xff] }
 0x12e   : > { %4802 = vrot.lane.b32.xlu0 %v6680_v3, %s5183_s23  ;;  %v4330_v4 = vunpack.i.h.bf16 %v6599_v49  ;;  %v4329_v6 = vunpack.i.l.bf16 %v6599_v49  ;;  %v4529_v61 = vunpack.i.l.bf16 %v6919_v59  ;;  %v2487_v43 = vpack.c.bf16 %v2232_v41, %v2231_v31 }
 0x12f   : > { %v2424_v28 = vsel %vm2230_vm4, %v2360_v63, %v4514_v38  ;;  %4817 = vrot.lane.b32.xlu1 %v6717_v24, %s5183_s23  ;;  %v4489_v5 = vunpack.i.l.bf16 %v6797_v36  ;;  %v2298_v32 = vsel %vm2100_vm2, %v8774_v7, %v4520_v44  ;;  %v2297_v49 = vsel %vm2100_vm2, %v8775_v57, %v4519_v48  ;;  %v8776_v36 = vld [vmem:[#allocation50_spill] sm:$0xff]  ;;  %v8777_v63 = vld [vmem:[#allocation51_spill] sm:$0xff] }
 0x130   : > { %v4523_v3 = vpop.permute.xlu0 %4522  ;;  %v2488_v40 = vpack.c.bf16 %v2424_v28, %v2423_v23  ;;  %v4515_v39 = vunpack.i.h.bf16 %v4513_v47  ;;  %v4851_v31 = vpack.i.bf16 %v6926_v51, %v6912_v1  ;;  %v6946_v41 = vpack.i.bf16 %v8777_v63, %v8776_v36  ;;  %v8787_v51 = vld [vmem:[#allocation134_spill] sm:$0xff] }
 0x131   : > { %v4525_v45 = vunpack.i.h.bf16 %v4523_v3  ;;  %v4524_v13 = vunpack.i.l.bf16 %v4523_v3  ;;  %v4538_v38 = vpop.permute.xlu1 %4537  ;;  %v2168_v47 = vsel %vm2165_vm3, %v6869_v2, %v4329_v6  ;;  %v4285_v6 = vunpack.i.h.bf16 %v6549_v46 }
 0x132   : > { %4812 = vrot.lane.b32.xlu0 %v4811_v10, %s5183_s23  ;;  %2855 = vmatprep.mubr.bf16.mxu0 %v2488_v40  ;;  %v4539_v44 = vunpack.i.l.bf16 %v4538_v38 }
 0x133   : > { %2856 = vmatmul.mubr.bf16.vlgmr.msra.gmra.mxu0 %v2487_v43  ;;  %v2361_v24 = vsel %vm2165_vm3, %v2297_v49, %v4524_v13  ;;  %v2362_v53 = vsel %vm2165_vm3, %v2298_v32, %v4525_v45  ;;  %4827 = vrot.lane.b32.xlu1 %v6881_v34, %s5181_s7  ;;  %v2169_v45 = vsel %vm2165_vm3, %v6856_v58, %v4330_v4  ;;  %v4540_v13 = vunpack.i.h.bf16 %v4538_v38  ;;  %v8778_v43 = vld [vmem:[#allocation55_spill] sm:$0xff] }
 0x134   : > { %v4533_v23 = vpop.permute.xlu0 %4532  ;;  %v2425_v48 = vsel %vm2230_vm4, %v2361_v24, %v4515_v39  ;;  %v2426_v10 = vsel %vm2230_vm4, %v2362_v53, %v4529_v61  ;;  %v2233_v32 = vsel %vm2230_vm4, %v2168_v47, %v4489_v5  ;;  %v2234_v57 = vsel %vm2230_vm4, %v2169_v45, %v4490_v17  ;;  %v8779_v39 = vld [vmem:[#allocation73_spill] sm:$0xff] }
 0x135   : > { %v4535_v28 = vunpack.i.h.bf16 %v4533_v23  ;;  %v4534_v3 = vunpack.i.l.bf16 %v4533_v23  ;;  %v2491_v40 = vpack.c.bf16 %v2426_v10, %v2425_v48  ;;  %v4548_v7 = vpop.permute.xlu1 %4547  ;;  %v4284_v58 = vunpack.i.l.bf16 %v6549_v46 }
 0x136   : > { %4822 = vrot.lane.b32.xlu0 %v8778_v43, %s5180_s6  ;;  %v4335_v4 = vunpack.i.h.bf16 %v6611_v27  ;;  %v4334_v17 = vunpack.i.l.bf16 %v6611_v27  ;;  %v2490_v24 = vpack.c.bf16 %v2234_v57, %v2233_v32  ;;  %v4495_v53 = vunpack.i.h.bf16 %v6858_v8  ;;  %v8783_v43 = vld [vmem:[#allocation68_spill] sm:$0xff]  ;;  %v8784_v32 = vld [vmem:[#allocation69_spill] sm:$0xff] }
 0x137   : > { %v2300_v61 = vsel %vm2100_vm2, %v8693_v19, %v4535_v28  ;;  %v2299_v2 = vsel %vm2100_vm2, %v8687_v52, %v4534_v3  ;;  %2863 = vmatprep.mubr.bf16.mxu0 %v2491_v40  ;;  %4837 = vrot.lane.b32.xlu1 %v8779_v39, %s5183_s23  ;;  %v4530_v19 = vunpack.i.h.bf16 %v6919_v59  ;;  %v4340_v52 = vunpack.i.h.bf16 %v6609_v56  ;;  %v8781_v28 = vld [vmem:[#allocation114_spill] sm:$0xff] }
 0x138   : > { %v4543_v49 = vpop.permute.xlu0 %4542  ;;  %v2363_v5 = vsel %vm2165_vm3, %v2299_v2, %v4539_v44  ;;  %v4494_v46 = vunpack.i.l.bf16 %v6858_v8  ;;  %v8780_v23 = vpack.i.bf16 %v6887_v35, %v6884_v9  ;;  %v2364_v44 = vsel %vm2165_vm3, %v2300_v61, %v4540_v13 }
 0x139   : > { %v4544_v38 = vunpack.i.l.bf16 %v4543_v49  ;;  %v4558_v48 = vpop.permute.xlu1 %4557  ;;  %v4444_v27 = vunpack.i.l.bf16 %v6738_v55  ;;  %v4549_v10 = vunpack.i.l.bf16 %v4548_v7  ;;  %v2427_v59 = vsel %vm2230_vm4, %v2363_v5, %v4530_v19 }
 0x13a   : > { %4832 = vrot.lane.b32.xlu0 %v8780_v23, %s5180_s6  ;;  %v2150_v3 = vsel %vm2100_vm2, %v8781_v28, %v4285_v6  ;;  %v4445_v8 = vunpack.i.h.bf16 %v6738_v55  ;;  %v8782_v45 = vpack.i.bf16 %v6862_v60, %v6782_v21  ;;  %v6992_v57 = vpack.i.bf16 %v8784_v32, %v8783_v43  ;;  %v8785_v55 = vld [vmem:[#allocation109_spill] sm:$0xff] }
 0x13b   : > { %2864 = vmatmul.mubr.bf16.gmra.mxu0 %v2490_v24  ;;  %v2428_v47 = vsel %vm2230_vm4, %v2364_v44, %v4544_v38  ;;  %v4550_v61 = vunpack.i.h.bf16 %v4548_v7  ;;  %v2170_v39 = vsel %vm2165_vm3, %v6823_v22, %v4334_v17  ;;  %v2171_v6 = vsel %vm2165_vm3, %v6809_v33, %v4335_v4 }
 0x13c   : > { %v4553_v40 = vpop.permute.xlu0 %4552  ;;  %4847 = vrot.lane.b32.xlu1 %v8782_v45, %s5181_s7  ;;  %v2494_v13 = vpack.c.bf16 %v2428_v47, %v2427_v59  ;;  %v2149_v5 = vsel %vm2100_vm2, %v8785_v55, %v4284_v58  ;;  %v2235_v24 = vsel %vm2230_vm4, %v2170_v39, %v4494_v46  ;;  %v2236_v7 = vsel %vm2230_vm4, %v2171_v6, %v4495_v53  ;;  %v8786_v45 = vld [vmem:[#allocation133_spill] sm:$0xff] }
 0x13d   : > { %v4554_v2 = vunpack.i.l.bf16 %v4553_v40  ;;  %v4555_v19 = vunpack.i.h.bf16 %v4553_v40  ;;  %v4568_v38 = vpop.permute.xlu1 %4567  ;;  %v4339_v23 = vunpack.i.l.bf16 %v6609_v56  ;;  %v2301_v22 = vsel %vm2100_vm2, %v8694_v12, %v4549_v10  ;;  %v8788_v6 = vld [vmem:[#allocation173_spill] sm:$0xff] }
 0x13e   : > { %4842 = vrot.lane.b32.xlu0 %v6743_v54, %s5183_s23  ;;  %2871 = vmatprep.mubr.bf16.mxu0 %v2494_v13  ;;  %v2173_v33 = vsel %vm2165_vm3, %v6832_v14, %v4340_v52  ;;  %v2214_v58 = vsel %vm2165_vm3, %v2149_v5, %v4444_v27  ;;  %v4560_v4 = vunpack.i.h.bf16 %v4558_v48  ;;  %v4559_v17 = vunpack.i.l.bf16 %v4558_v48 }
 0x13f   : > { %v2365_v54 = vsel %vm2165_vm3, %v2301_v22, %v4554_v2  ;;  %v2215_v53 = vsel %vm2165_vm3, %v2150_v3, %v4445_v8  ;;  %v2302_v56 = vsel %vm2100_vm2, %v8696_v25, %v4550_v61  ;;  %v4545_v46 = vunpack.i.h.bf16 %v4543_v49 }
 0x140   : > { %v4563_v44 = vpop.permute.xlu0 %4562  ;;  %4857 = vrot.lane.b32.xlu1 %v6766_v18, %s5183_s23  ;;  %v2493_v10 = vpack.c.bf16 %v2236_v7, %v2235_v24  ;;  %v4570_v59 = vunpack.i.h.bf16 %v4568_v38  ;;  %v4569_v14 = vunpack.i.l.bf16 %v4568_v38  ;;  %v2366_v18 = vsel %vm2165_vm3, %v2302_v56, %v4555_v19  ;;  %v8789_v56 = vld [vmem:[#allocation216_spill] sm:$0xff] }
 0x141   : > { %v4564_v12 = vunpack.i.l.bf16 %v4563_v44  ;;  %v4565_v52 = vunpack.i.h.bf16 %v4563_v44  ;;  %v4578_v48 = vpop.permute.xlu1 %4577  ;;  %v2429_v3 = vsel %vm2230_vm4, %v2365_v54, %v4545_v46  ;;  %v4499_v49 = vunpack.i.l.bf16 %v6835_v29 }
 0x142   : > { %4852 = vrot.lane.b32.xlu0 %v4851_v31, %s5183_s23  ;;  %v4580_v27 = vunpack.i.h.bf16 %v4578_v48  ;;  %v4579_v47 = vunpack.i.l.bf16 %v4578_v48  ;;  %v2343_v1 = vsel %vm2100_vm2, %v8786_v45, %v4559_v17  ;;  %v2344_v31 = vsel %vm2100_vm2, %v8787_v51, %v4560_v4  ;;  %v8792_v51 = vld [vmem:[#allocation64_spill] sm:$0xff] }
 0x143   : > { %2872 = vmatmul.mubr.bf16.gmra.mxu0 %v2493_v10  ;;  %v2430_v25 = vsel %vm2230_vm4, %v2366_v18, %v4564_v12  ;;  %v2407_v5 = vsel %vm2165_vm3, %v2343_v1, %v4569_v14  ;;  %v2408_v19 = vsel %vm2165_vm3, %v2344_v31, %v4570_v59  ;;  %v2238_v38 = vsel %vm2230_vm4, %v2173_v33, %v4565_v52  ;;  %v5138_v59 = vld [vmem:[%s8063_s1 + $0x80] sm:$0xff]  }
 0x144   : > { %v4573_v8 = vpop.permute.xlu0 %4572  ;;  %4867 = vrot.lane.b32.xlu1 %v6946_v41, %s5181_s7  ;;  %v2497_v40 = vpack.c.bf16 %v2430_v25, %v2429_v3  ;;  %v2279_v2 = vsel %vm2230_vm4, %v2214_v58, %v4579_v47  ;;  %v2280_v39 = vsel %vm2230_vm4, %v2215_v53, %v4580_v27  ;;  %v2172_v22 = vsel %vm2165_vm3, %v6852_v20, %v4339_v23 }
 0x145   : > { %v4575_v13 = vunpack.i.h.bf16 %v4573_v8  ;;  %v4574_v61 = vunpack.i.l.bf16 %v4573_v8  ;;  %v4588_v29 = vpop.permute.xlu1 %4587  ;;  %v2559_v58 = vpack.c.bf16 %v2280_v39, %v2279_v2  ;;  %v2237_v53 = vsel %vm2230_vm4, %v2172_v22, %v4499_v49  ;;  %v8791_v49 = vld [vmem:[#allocation13_spill] sm:$0xff]  ;;  %v8794_v2 = vld [vmem:[#allocation107_spill] sm:$0xff] }
 0x146   : > { %4862 = vrot.lane.b32.xlu0 %v8788_v6, %s5180_s6  ;;  %2879 = vmatprep.mubr.bf16.mxu0 %v2497_v40  ;;  %v4590_v4 = vunpack.i.h.bf16 %v4588_v29  ;;  %v4589_v17 = vunpack.i.l.bf16 %v4588_v29  ;;  %v4185_v46 = vunpack.i.h.bf16 %v8789_v56  ;;  %v2496_v10 = vpack.c.bf16 %v2238_v38, %v2237_v53  ;;  %v8795_v6 = vld [vmem:[#allocation106_spill] sm:$0xff]  ;;  %v8798_v53 = vld [vmem:[#allocation81_spill] sm:$0xff] }
 0x147   : > { %v2471_v24 = vsel %vm2230_vm4, %v2407_v5, %v4574_v61  ;;  %v2472_v7 = vsel %vm2230_vm4, %v2408_v19, %v4575_v13  ;;  %v4184_v20 = vunpack.i.l.bf16 %v8789_v56  ;;  %v4290_v23 = vunpack.i.h.bf16 %v6547_v15  ;;  %v8796_v5 = vld [vmem:[#allocation63_spill] sm:$0xff] }
 0x148   : > { %v4583_v44 = vpop.permute.xlu0 %4582  ;;  %4877 = vrot.lane.b32.xlu1 %v6819_v30, %s5183_s23  ;;  %v2560_v54 = vpack.c.bf16 %v2472_v7, %v2471_v24  ;;  %v4289_v14 = vunpack.i.l.bf16 %v6547_v15  ;;  %v8790_v30 = vld [vmem:[#allocation65_spill] sm:$0xff]  ;;  %v4344_v8 = vunpack.i.l.bf16 %v6618_v37  ;;  %v4345_v45 = vunpack.i.h.bf16 %v6618_v37  ;;  %v8797_v19 = vld [vmem:[#allocation67_spill] sm:$0xff] }
 0x149   : > { %v4585_v33 = vunpack.i.h.bf16 %v4583_v44  ;;  %v4584_v12 = vunpack.i.l.bf16 %v4583_v44  ;;  %v4598_v52 = vpop.permute.xlu1 %4597  ;;  %v4449_v1 = vunpack.i.l.bf16 %v6734_v11  ;;  %v2152_v39 = vsel %vm2100_vm2, %v8794_v2, %v4290_v23 }
 0x14a   : > { %4872 = vrot.lane.b32.xlu0 %v8790_v30, %s5183_s23  ;;  %3047 = vmatprep.mubr.bf16.mxu1 %v2560_v54  ;;  %v4600_v27 = vunpack.i.h.bf16 %v4598_v52  ;;  %v4599_v47 = vunpack.i.l.bf16 %v4598_v52  ;;  %v2151_v29 = vsel %vm2100_vm2, %v8795_v6, %v4289_v14  ;;  %v7079_v38 = vpack.i.bf16 %v8797_v19, %v8796_v5 }
 0x14b   : > { %v2304_v48 = vsel %vm2100_vm2, %v8703_v50, %v4585_v33  ;;  %v2303_v18 = vsel %vm2100_vm2, %v8697_v42, %v4584_v12  ;;  %2880 = vmatmul.mubr.bf16.gmra.mxu0 %v2496_v10  ;;  %3048 = vmatmul.mubr.bf16.vlgmr.msra.gmra.mxu1 %v2559_v58  ;;  %v2110_v50 = vsel %vm2100_vm2, %v8791_v49, %v4185_v46  ;;  %v4450_v37 = vunpack.i.h.bf16 %v6734_v11 }
 0x14c   : > { %v4593_v3 = vpop.permute.xlu0 %4592  ;;  %4887 = vrot.lane.b32.xlu1 %v6992_v57, %s5181_s7  ;;  %v2367_v15 = vsel %vm2165_vm3, %v2303_v18, %v4589_v17  ;;  %v2368_v25 = vsel %vm2165_vm3, %v2304_v48, %v4590_v4  ;;  %4016 = vmatpush3.bf16.msra.mxu1 %v6691_v62  ;;  %v8793_v62 = vld [vmem:[#allocation11_spill] sm:$0xff]  ;;  %v2175_v11 = vsel %vm2165_vm3, %v2110_v50, %v4345_v45 }
 0x14d   : > { %v2431_v42 = vsel %vm2230_vm4, %v2367_v15, %v4599_v47  ;;  %v2432_v40 = vsel %vm2230_vm4, %v2368_v25, %v4600_v27  ;;  %4017 = vmatprep.subr.bf16.mxu1 %v5138_v59  ;;  %v4608_v31 = vpop.permute.xlu1 %4607  ;;  %v2109_v61 = vsel %vm2100_vm2, %v8793_v62, %v4184_v20  ;;  %v4595_v24 = vunpack.i.h.bf16 %v4593_v3  ;;  %v8799_v20 = vld [vmem:[#allocation130_spill] sm:$0xff] }
 0x14e   : > { %4882 = vrot.lane.b32.xlu0 %v8792_v51, %s5180_s6  ;;  %v2500_v13 = vpack.c.bf16 %v2432_v40, %v2431_v42  ;;  %v4594_v7 = vunpack.i.l.bf16 %v4593_v3  ;;  %v2174_v17 = vsel %vm2165_vm3, %v2109_v61, %v4344_v8  ;;  %v4610_v44 = vunpack.i.h.bf16 %v4608_v31  ;;  %v8801_v15 = vld [vmem:[#allocation178_spill] sm:$0xff] }
 0x14f   : > { %v4609_v54 = vunpack.i.l.bf16 %v4608_v31  ;;  %v2216_v46 = vsel %vm2165_vm3, %v2151_v29, %v4449_v1  ;;  %v2346_v23 = vsel %vm2100_vm2, %v8799_v20, %v4595_v24  ;;  %v2217_v48 = vsel %vm2165_vm3, %v2152_v39, %v4450_v37  ;;  %v8803_v62 = vld [vmem:[#allocation78_spill] sm:$0xff]  ;;  %v8804_v39 = vld [vmem:[#allocation215_spill] sm:$0xff] }
 0x150   : > { %v4603_v22 = vpop.permute.xlu0 %4602  ;;  %4897 = vrot.lane.b32.xlu1 %v6881_v34, %s5183_s23  ;;  %2887 = vmatprep.mubr.bf16.mxu0 %v2500_v13  ;;  %v2410_v50 = vsel %vm2165_vm3, %v2346_v23, %v4610_v44  ;;  %v8802_v13 = vld [vmem:[#allocation83_spill] sm:$0xff]  ;;  %v4190_v29 = vunpack.i.h.bf16 %v8804_v39 }
 0x151   : > { %v4605_v58 = vunpack.i.h.bf16 %v4603_v22  ;;  %v4604_v4 = vunpack.i.l.bf16 %v4603_v22  ;;  %4018 = vmatpush3.bf16.msra.mxu1 %v5138_v59  ;;  %v4618_v56 = vpop.permute.xlu1 %4617  ;;  %v8800_v59 = vld [vmem:[#allocation129_spill] sm:$0xff]  ;;  %v7110_v61 = vpack.i.bf16 %v8803_v62, %v8802_v13  ;;  %v4295_v22 = vunpack.i.h.bf16 %v6566_v16  ;;  %v8808_v20 = vld [vmem:[#allocation251_spill] sm:$0xff] }
 0x152   : > { %4892 = vrot.lane.b32.xlu0 %v8798_v53, %s5183_s23  ;;  %v4620_v33 = vunpack.i.h.bf16 %v4618_v56  ;;  %v4619_v12 = vunpack.i.l.bf16 %v4618_v56  ;;  %v2345_v14 = vsel %vm2100_vm2, %v8800_v59, %v4594_v7  ;;  %v4189_v7 = vunpack.i.l.bf16 %v8804_v39  ;;  %v8809_v59 = vld [vmem:[#allocation79_spill] sm:$0xff] }
 0x153   : > { %v2239_v34 = vsel %vm2230_vm4, %v2174_v17, %v4604_v4  ;;  %v2240_v10 = vsel %vm2230_vm4, %v2175_v11, %v4605_v58  ;;  %v2409_v49 = vsel %vm2165_vm3, %v2345_v14, %v4609_v54  ;;  %v4294_v58 = vunpack.i.l.bf16 %v6566_v16  ;;  %v8805_v4 = vld [vmem:[#allocation80_spill] sm:$0xff] }
 0x154   : > { %v4613_v30 = vpop.permute.xlu0 %4612  ;;  %4907 = vrot.lane.b32.xlu1 %v7079_v38, %s5181_s7  ;;  %v2499_v52 = vpack.c.bf16 %v2240_v10, %v2239_v34  ;;  %v2281_v47 = vsel %vm2230_vm4, %v2216_v46, %v4619_v12  ;;  %v2282_v3 = vsel %vm2230_vm4, %v2217_v48, %v4620_v33  ;;  %v8806_v46 = vld [vmem:[#allocation143_spill] sm:$0xff]  ;;  %v4454_v23 = vunpack.i.l.bf16 %v8808_v20 }
 0x155   : > { %v4615_v18 = vunpack.i.h.bf16 %v4613_v30  ;;  %v4614_v27 = vunpack.i.l.bf16 %v4613_v30  ;;  %v4628_v25 = vpop.permute.xlu1 %4627  ;;  %v2562_v40 = vpack.c.bf16 %v2282_v3, %v2281_v47  ;;  %v4350_v33 = vunpack.i.h.bf16 %v8806_v46  ;;  %v8812_v47 = vld [vmem:[#allocation122_spill] sm:$0xff] }
 0x156   : > { %4902 = vrot.lane.b32.xlu0 %v8801_v15, %s5180_s6  ;;  %2888 = vmatmul.mubr.bf16.gmra.mxu0 %v2499_v52  ;;  %v4630_v45 = vunpack.i.h.bf16 %v4628_v25  ;;  %v4629_v1 = vunpack.i.l.bf16 %v4628_v25  ;;  %v4349_v12 = vunpack.i.l.bf16 %v8806_v46  ;;  %v8810_v52 = vld [vmem:[#allocation9_spill] sm:$0xff]  ;;  %v2153_v3 = vsel %vm2100_vm2, %v8812_v47, %v4294_v58  ;;  %v8813_v15 = vld [vmem:[#allocation71_spill] sm:$0xff]  ;;  %v8814_v25 = vld [vmem:[#allocation72_spill] sm:$0xff] }
 0x157   : > { %v2473_v8 = vsel %vm2230_vm4, %v2409_v49, %v4614_v27  ;;  %v2474_v42 = vsel %vm2230_vm4, %v2410_v50, %v4615_v18  ;;  %v2111_v48 = vsel %vm2100_vm2, %v8810_v52, %v4189_v7  ;;  %v8811_v18 = vld [vmem:[#allocation121_spill] sm:$0xff]  ;;  %v7143_v49 = vpack.i.bf16 %v8814_v25, %v8813_v15 }
 0x158   : > { %v4623_v51 = vpop.permute.xlu0 %4622  ;;  %4917 = vrot.lane.b32.xlu1 %v6946_v41, %s5183_s23  ;;  %v2563_v31 = vpack.c.bf16 %v2474_v42, %v2473_v8  ;;  %v2154_v27 = vsel %vm2100_vm2, %v8811_v18, %v4295_v22  ;;  %v4455_v50 = vunpack.i.h.bf16 %v8808_v20  ;;  %v2218_v7 = vsel %vm2165_vm3, %v2153_v3, %v4454_v23  ;;  %v8819_v18 = vld [vmem:[#allocation87_spill] sm:$0xff]  ;;  %v8821_v3 = vld [vmem:[#allocation218_spill] sm:$0xff] }
 0x159   : > { %v4625_v37 = vunpack.i.h.bf16 %v4623_v51  ;;  %v4624_v24 = vunpack.i.l.bf16 %v4623_v51  ;;  %v4638_v41 = vpop.permute.xlu1 %4637  ;;  %v2176_v51 = vsel %vm2165_vm3, %v2111_v48, %v4349_v12 }
 0x15a   : > { %4912 = vrot.lane.b32.xlu0 %v8805_v4, %s5183_s23  ;;  %3055 = vmatprep.mubr.bf16.mxu1 %v2563_v31  ;;  %v4640_v54 = vunpack.i.h.bf16 %v4638_v41  ;;  %v4639_v53 = vunpack.i.l.bf16 %v4638_v41  ;;  %v8816_v41 = vld [vmem:[#allocation145_spill] sm:$0xff] }
 0x15b   : > { %v2306_v17 = vsel %vm2100_vm2, %v8709_v0, %v4625_v37  ;;  %v2305_v44 = vsel %vm2100_vm2, %v8704_v26, %v4624_v24  ;;  %3056 = vmatmul.mubr.bf16.gmra.mxu1 %v2562_v40  ;;  %v8807_v26 = vld [vmem:[#allocation10_spill] sm:$0xff]  ;;  %v8815_v37 = vld [vmem:[#allocation95_spill] sm:$0xff] }
 0x15c   : > { %v4633_v56 = vpop.permute.xlu0 %4632  ;;  %4927 = vrot.lane.b32.xlu1 %v7110_v61, %s5181_s7  ;;  %v2369_v16 = vsel %vm2165_vm3, %v2305_v44, %v4629_v1  ;;  %v2370_v11 = vsel %vm2165_vm3, %v2306_v17, %v4630_v45  ;;  %v2112_v10 = vsel %vm2100_vm2, %v8807_v26, %v4190_v29  ;;  %v8817_v44 = vld [vmem:[#allocation144_spill] sm:$0xff]  ;;  %v8818_v26 = vld [vmem:[#allocation183_spill] sm:$0xff] }
 0x15d   : > { %v2433_v0 = vsel %vm2230_vm4, %v2369_v16, %v4639_v53  ;;  %v2434_v34 = vsel %vm2230_vm4, %v2370_v11, %v4640_v54  ;;  %v4648_v14 = vpop.permute.xlu1 %4647  ;;  %v4635_v8 = vunpack.i.h.bf16 %v4633_v56  ;;  %v4634_v42 = vunpack.i.l.bf16 %v4633_v56 }
 0x15e   : > { %4922 = vrot.lane.b32.xlu0 %v8809_v59, %s5180_s6  ;;  %v2503_v30 = vpack.c.bf16 %v2434_v34, %v2433_v0  ;;  %v2177_v31 = vsel %vm2165_vm3, %v2112_v10, %v4350_v33  ;;  %v4650_v39 = vunpack.i.h.bf16 %v4648_v14  ;;  %v4649_v29 = vunpack.i.l.bf16 %v4648_v14 }
 0x15f   : > { %v2348_v17 = vsel %vm2100_vm2, %v8816_v41, %v4635_v8  ;;  %v2347_v54 = vsel %vm2100_vm2, %v8817_v44, %v4634_v42  ;;  %v2219_v16 = vsel %vm2165_vm3, %v2154_v27, %v4455_v50  ;;  %v8820_v27 = vld [vmem:[#allocation88_spill] sm:$0xff]  ;;  %v4195_v50 = vunpack.i.h.bf16 %v8821_v3 }
 0x160   : > { %v4643_v40 = vpop.permute.xlu0 %4642  ;;  %4937 = vrot.lane.b32.xlu1 %v6992_v57, %s5183_s23  ;;  %2895 = vmatprep.mubr.bf16.mxu0 %v2503_v30  ;;  %v2411_v0 = vsel %vm2165_vm3, %v2347_v54, %v4649_v29  ;;  %v2412_v34 = vsel %vm2165_vm3, %v2348_v17, %v4650_v39  ;;  %v7174_v47 = vpack.i.bf16 %v8820_v27, %v8819_v18  ;;  %v4194_v8 = vunpack.i.l.bf16 %v8821_v3  ;;  %v8824_v29 = vld [vmem:[#allocation90_spill] sm:$0xff] }
 0x161   : > { %v4645_v45 = vunpack.i.h.bf16 %v4643_v40  ;;  %v4644_v1 = vunpack.i.l.bf16 %v4643_v40  ;;  %v4658_v24 = vpop.permute.xlu1 %4657 }
 0x162   : > { %4932 = vrot.lane.b32.xlu0 %v8815_v37, %s5183_s23  ;;  %v4660_v22 = vunpack.i.h.bf16 %v4658_v24  ;;  %v4659_v58 = vunpack.i.l.bf16 %v4658_v24  ;;  %v8825_v37 = vld [vmem:[#allocation38_spill] sm:$0xff] }
 0x163   : > { %v2241_v4 = vsel %vm2230_vm4, %v2176_v51, %v4644_v1  ;;  %v2242_v57 = vsel %vm2230_vm4, %v2177_v31, %v4645_v45  ;;  %v8822_v45 = vld [vmem:[#allocation228_spill] sm:$0xff]  ;;  %v8823_v31 = vld [vmem:[#allocation233_spill] sm:$0xff] }
 0x164   : > { %v4653_v53 = vpop.permute.xlu0 %4652  ;;  %4947 = vrot.lane.b32.xlu1 %v7143_v49, %s5181_s7  ;;  %v2502_v56 = vpack.c.bf16 %v2242_v57, %v2241_v4  ;;  %v2283_v33 = vsel %vm2230_vm4, %v2218_v7, %v4659_v58  ;;  %v2284_v12 = vsel %vm2230_vm4, %v2219_v16, %v4660_v22  ;;  %v4300_v1 = vunpack.i.h.bf16 %v8822_v45  ;;  %v8826_v7 = vld [vmem:[#allocation37_spill] sm:$0xff] }
 0x165   : > { %v4655_v11 = vunpack.i.h.bf16 %v4653_v53  ;;  %v4654_v46 = vunpack.i.l.bf16 %v4653_v53  ;;  %v4668_v10 = vpop.permute.xlu1 %4667  ;;  %v2565_v59 = vpack.c.bf16 %v2284_v12, %v2283_v33  ;;  %v4299_v51 = vunpack.i.l.bf16 %v8822_v45  ;;  %v8829_v33 = vld [vmem:[#allocation89_spill] sm:$0xff] }
 0x166   : > { %4942 = vrot.lane.b32.xlu0 %v8818_v26, %s5180_s6  ;;  %2896 = vmatmul.mubr.bf16.gmra.mxu0 %v2502_v56  ;;  %v4670_v14 = vunpack.i.h.bf16 %v4668_v10  ;;  %v4669_v30 = vunpack.i.l.bf16 %v4668_v10  ;;  %v4354_v39 = vunpack.i.l.bf16 %v8823_v31  ;;  %v4355_v44 = vunpack.i.h.bf16 %v8823_v31  ;;  %v8827_v56 = vld [vmem:[#allocation21_spill] sm:$0xff]  ;;  %v8831_v10 = vld [vmem:[#allocation120_spill] sm:$0xff] }
 0x167   : > { %v2475_v20 = vsel %vm2230_vm4, %v2411_v0, %v4654_v46  ;;  %v2476_v23 = vsel %vm2230_vm4, %v2412_v34, %v4655_v11  ;;  %v2113_v16 = vsel %vm2100_vm2, %v8827_v56, %v4194_v8  ;;  %v8828_v11 = vld [vmem:[#allocation250_spill] sm:$0xff]  ;;  %v8830_v34 = vld [vmem:[#allocation17_spill] sm:$0xff]  ;;  %v8833_v8 = vld [vmem:[#allocation84_spill] sm:$0xff] }
 0x168   : > { %v4663_v52 = vpop.permute.xlu0 %4662  ;;  %4957 = vrot.lane.b32.xlu1 %v7079_v38, %s5183_s23  ;;  %v2566_v48 = vpack.c.bf16 %v2476_v23, %v2475_v20  ;;  %v4459_v46 = vunpack.i.l.bf16 %v8828_v11  ;;  %v2114_v26 = vsel %vm2100_vm2, %v8830_v34, %v4195_v50  ;;  %v2156_v20 = vsel %vm2100_vm2, %v8831_v10, %v4300_v1  ;;  %v8832_v23 = vld [vmem:[#allocation118_spill] sm:$0xff] }
 0x169   : > { %v4665_v42 = vunpack.i.h.bf16 %v4663_v52  ;;  %v4664_v40 = vunpack.i.l.bf16 %v4663_v52  ;;  %v4678_v38 = vpop.permute.xlu1 %4677  ;;  %v2179_v1 = vsel %vm2165_vm3, %v2114_v26, %v4355_v44 }
 0x16a   : > { %4952 = vrot.lane.b32.xlu0 %v8824_v29, %s5183_s23  ;;  %3063 = vmatprep.mubr.bf16.mxu1 %v2566_v48  ;;  %v4680_v58 = vunpack.i.h.bf16 %v4678_v38  ;;  %v4679_v4 = vunpack.i.l.bf16 %v4678_v38 }
 0x16b   : > { %v2308_v24 = vsel %vm2100_vm2, %v8825_v37, %v4665_v42  ;;  %v2307_v22 = vsel %vm2100_vm2, %v8826_v7, %v4664_v40  ;;  %3064 = vmatmul.mubr.bf16.gmra.mxu1 %v2565_v59  ;;  %v2155_v59 = vsel %vm2100_vm2, %v8832_v23, %v4299_v51  ;;  %v8834_v42 = vld [vmem:[#allocation85_spill] sm:$0xff] }
 0x16c   : > { %v4673_v57 = vpop.permute.xlu0 %4672  ;;  %4967 = vrot.lane.b32.xlu1 %v7174_v47, %s5181_s7  ;;  %v2371_v41 = vsel %vm2165_vm3, %v2307_v22, %v4669_v30  ;;  %v2372_v17 = vsel %vm2165_vm3, %v2308_v24, %v4670_v14  ;;  %v2178_v14 = vsel %vm2165_vm3, %v2113_v16, %v4354_v39  ;;  %v4460_v30 = vunpack.i.h.bf16 %v8828_v11  ;;  %v8835_v39 = vld [vmem:[#allocation102_spill] sm:$0xff]  ;;  %v8836_v22 = vld [vmem:[#allocation141_spill] sm:$0xff] }
 0x16d   : > { %v2435_v54 = vsel %vm2230_vm4, %v2371_v41, %v4679_v4  ;;  %v2436_v53 = vsel %vm2230_vm4, %v2372_v17, %v4680_v58  ;;  %v4688_v12 = vpop.permute.xlu1 %4687  ;;  %v4675_v52 = vunpack.i.h.bf16 %v4673_v57  ;;  %v4674_v48 = vunpack.i.l.bf16 %v4673_v57  ;;  %v8837_v4 = vld [vmem:[#allocation138_spill] sm:$0xff] }
 0x16e   : > { %4962 = vrot.lane.b32.xlu0 %v8829_v33, %s5180_s6  ;;  %v2506_v0 = vpack.c.bf16 %v2436_v53, %v2435_v54  ;;  %v7211_v50 = vpack.i.bf16 %v8834_v42, %v8833_v8  ;;  %v4690_v51 = vunpack.i.h.bf16 %v4688_v12  ;;  %v4689_v31 = vunpack.i.l.bf16 %v4688_v12  ;;  %v8838_v33 = vld [vmem:[#allocation188_spill] sm:$0xff] }
 0x16f   : > { %v2220_v38 = vsel %vm2165_vm3, %v2155_v59, %v4459_v46  ;;  %v2350_v58 = vsel %vm2100_vm2, %v8836_v22, %v4675_v52  ;;  %v2349_v57 = vsel %vm2100_vm2, %v8837_v4, %v4674_v48  ;;  %v2221_v44 = vsel %vm2165_vm3, %v2156_v20, %v4460_v30  ;;  %v8840_v30 = vld [vmem:[#allocation103_spill] sm:$0xff]  ;;  %v8841_v48 = vld [vmem:[#allocation217_spill] sm:$0xff] }
 0x170   : > { %v4683_v3 = vpop.permute.xlu0 %4682  ;;  %4977 = vrot.lane.b32.xlu1 %v7110_v61, %s5183_s23  ;;  %2903 = vmatprep.mubr.bf16.mxu0 %v2506_v0  ;;  %v2413_v11 = vsel %vm2165_vm3, %v2349_v57, %v4689_v31  ;;  %v2414_v46 = vsel %vm2165_vm3, %v2350_v58, %v4690_v51  ;;  %v8842_v51 = vld [vmem:[#allocation230_spill] sm:$0xff] }
 0x171   : > { %v4685_v40 = vunpack.i.h.bf16 %v4683_v3  ;;  %v4684_v45 = vunpack.i.l.bf16 %v4683_v3  ;;  %v4698_v29 = vpop.permute.xlu1 %4697  ;;  %v4200_v3 = vunpack.i.h.bf16 %v8841_v48  ;;  %v4305_v31 = vunpack.i.h.bf16 %v8842_v51 }
 0x172   : > { %4972 = vrot.lane.b32.xlu0 %v8835_v39, %s5183_s23  ;;  %v4700_v37 = vunpack.i.h.bf16 %v4698_v29  ;;  %v4699_v24 = vunpack.i.l.bf16 %v4698_v29  ;;  %v4304_v39 = vunpack.i.l.bf16 %v8842_v51  ;;  %v8843_v29 = vld [vmem:[#allocation35_spill] sm:$0xff] }
 0x173   : > { %v2243_v61 = vsel %vm2230_vm4, %v2178_v14, %v4684_v45  ;;  %v2244_v7 = vsel %vm2230_vm4, %v2179_v1, %v4685_v40  ;;  %v8839_v14 = vld [vmem:[#allocation104_spill] sm:$0xff]  ;;  %v4199_v40 = vunpack.i.l.bf16 %v8841_v48 }
 0x174   : > { %v4693_v41 = vpop.permute.xlu0 %4692  ;;  %4987 = vrot.lane.b32.xlu1 %v7211_v50, %s5181_s7  ;;  %v2505_v17 = vpack.c.bf16 %v2244_v7, %v2243_v61  ;;  %v2285_v56 = vsel %vm2230_vm4, %v2220_v38, %v4699_v24  ;;  %v2286_v16 = vsel %vm2230_vm4, %v2221_v44, %v4700_v37  ;;  %v7238_v52 = vpack.i.bf16 %v8840_v30, %v8839_v14  ;;  %v8844_v37 = vld [vmem:[#allocation100_spill] sm:$0xff]  ;;  %v8845_v24 = vld [vmem:[#allocation33_spill] sm:$0xff]  ;;  %v8846_v7 = vld [vmem:[#allocation30_spill] sm:$0xff] }
 0x175   : > { %v4695_v54 = vunpack.i.h.bf16 %v4693_v41  ;;  %v4694_v53 = vunpack.i.l.bf16 %v4693_v41  ;;  %v4708_v12 = vpop.permute.xlu1 %4707  ;;  %v2568_v26 = vpack.c.bf16 %v2286_v16, %v2285_v56  ;;  %v4359_v38 = vunpack.i.l.bf16 %v8843_v29  ;;  %v8847_v56 = vld [vmem:[#allocation14_spill] sm:$0xff] }
 0x176   : > { %4982 = vrot.lane.b32.xlu0 %v8838_v33, %s5180_s6  ;;  %2904 = vmatmul.mubr.bf16.gmra.mxu0 %v2505_v17  ;;  %v4710_v10 = vunpack.i.h.bf16 %v4708_v12  ;;  %v4709_v20 = vunpack.i.l.bf16 %v4708_v12  ;;  %v4360_v44 = vunpack.i.h.bf16 %v8843_v29  ;;  %v2115_v16 = vsel %vm2100_vm2, %v8847_v56, %v4199_v40  ;;  %v8849_v33 = vld [vmem:[#allocation99_spill] sm:$0xff]  ;;  %v8853_v29 = vld [vmem:[#allocation93_spill] sm:$0xff] }
 0x177   : > { %v2477_v0 = vsel %vm2230_vm4, %v2413_v11, %v4694_v53  ;;  %v2478_v34 = vsel %vm2230_vm4, %v2414_v46, %v4695_v54  ;;  %v8848_v11 = vld [vmem:[#allocation252_spill] sm:$0xff]  ;;  %v2180_v48 = vsel %vm2165_vm3, %v2115_v16, %v4359_v38  ;;  %v8855_v38 = vld [vmem:[#allocation115_spill] sm:$0xff] }
 0x178   : > { %v4703_v23 = vpop.permute.xlu0 %4702  ;;  %4997 = vrot.lane.b32.xlu1 %v7143_v49, %s5183_s23  ;;  %v2569_v59 = vpack.c.bf16 %v2478_v34, %v2477_v0  ;;  %v4464_v46 = vunpack.i.l.bf16 %v8848_v11  ;;  %v8850_v34 = vld [vmem:[#allocation15_spill] sm:$0xff]  ;;  %v4465_v40 = vunpack.i.h.bf16 %v8848_v11 }
 0x179   : > { %v4705_v45 = vunpack.i.h.bf16 %v4703_v23  ;;  %v4704_v1 = vunpack.i.l.bf16 %v4703_v23  ;;  %v4718_v49 = vpop.permute.xlu1 %4717  ;;  %v8852_v23 = vld [vmem:[#allocation136_spill] sm:$0xff] }
 0x17a   : > { %4992 = vrot.lane.b32.xlu0 %v8844_v37, %s5183_s23  ;;  %3071 = vmatprep.mubr.bf16.mxu1 %v2569_v59  ;;  %v4720_v58 = vunpack.i.h.bf16 %v4718_v49  ;;  %v4719_v4 = vunpack.i.l.bf16 %v4718_v49  ;;  %v2157_v59 = vsel %vm2100_vm2, %v8852_v23, %v4304_v39  ;;  %v8854_v37 = vld [vmem:[#allocation94_spill] sm:$0xff] }
 0x17b   : > { %v2310_v61 = vsel %vm2100_vm2, %v8845_v24, %v4705_v45  ;;  %v2309_v22 = vsel %vm2100_vm2, %v8846_v7, %v4704_v1  ;;  %3072 = vmatmul.mubr.bf16.gmra.mxu1 %v2568_v26  ;;  %v2116_v26 = vsel %vm2100_vm2, %v8850_v34, %v4200_v3  ;;  %v7275_v3 = vpack.i.bf16 %v8854_v37, %v8853_v29 }
 0x17c   : > { %v4713_v57 = vpop.permute.xlu0 %4712  ;;  %5007 = vrot.lane.b32.xlu1 %v7238_v52, %s5181_s7  ;;  %v2373_v41 = vsel %vm2165_vm3, %v2309_v22, %v4709_v20  ;;  %v2374_v17 = vsel %vm2165_vm3, %v2310_v61, %v4710_v10  ;;  %v8851_v10 = vld [vmem:[#allocation137_spill] sm:$0xff]  ;;  %v2181_v24 = vsel %vm2165_vm3, %v2116_v26, %v4360_v44  ;;  %v2222_v22 = vsel %vm2165_vm3, %v2157_v59, %v4464_v46 }
 0x17d   : > { %v2437_v54 = vsel %vm2230_vm4, %v2373_v41, %v4719_v4  ;;  %v2438_v53 = vsel %vm2230_vm4, %v2374_v17, %v4720_v58  ;;  %v4728_v12 = vpop.permute.xlu1 %4727  ;;  %v2158_v20 = vsel %vm2100_vm2, %v8851_v10, %v4305_v31  ;;  %v4715_v45 = vunpack.i.h.bf16 %v4713_v57  ;;  %v8856_v41 = vld [vmem:[#allocation149_spill] sm:$0xff] }
 0x17e   : > { %5002 = vrot.lane.b32.xlu0 %v8849_v33, %s5180_s6  ;;  %v2509_v0 = vpack.c.bf16 %v2438_v53, %v2437_v54  ;;  %v4714_v1 = vunpack.i.l.bf16 %v4713_v57  ;;  %v4730_v39 = vunpack.i.h.bf16 %v4728_v12  ;;  %v4729_v61 = vunpack.i.l.bf16 %v4728_v12  ;;  %v8857_v54 = vld [vmem:[#allocation150_spill] sm:$0xff]  ;;  %v8858_v26 = vld [vmem:[#allocation193_spill] sm:$0xff] }
 0x17f   : > { %v2352_v17 = vsel %vm2100_vm2, %v8856_v41, %v4715_v45  ;;  %v2223_v16 = vsel %vm2165_vm3, %v2158_v20, %v4465_v40 }
 0x180   : > { %v4723_v51 = vpop.permute.xlu0 %4722  ;;  %5017 = vrot.lane.b32.xlu1 %v7174_v47, %s5183_s23  ;;  %2911 = vmatprep.mubr.bf16.mxu0 %v2509_v0  ;;  %v2351_v44 = vsel %vm2100_vm2, %v8857_v54, %v4714_v1  ;;  %v2416_v34 = vsel %vm2165_vm3, %v2352_v17, %v4730_v39 }
 0x181   : > { %v4725_v49 = vunpack.i.h.bf16 %v4723_v51  ;;  %v4724_v31 = vunpack.i.l.bf16 %v4723_v51  ;;  %v4738_v7 = vpop.permute.xlu1 %4737  ;;  %v2415_v0 = vsel %vm2165_vm3, %v2351_v44, %v4729_v61  ;;  %v7302_v51 = vpack.i.bf16 %v8781_v28, %v8785_v55  ;;  %v8864_v55 = vld [vmem:[#allocation46_spill] sm:$0xff] }
 0x182   : > { %5012 = vrot.lane.b32.xlu0 %v8855_v38, %s5183_s23  ;;  %v4740_v58 = vunpack.i.h.bf16 %v4738_v7  ;;  %v4739_v4 = vunpack.i.l.bf16 %v4738_v7  ;;  %v8860_v38 = vld [vmem:[#allocation229_spill] sm:$0xff] }
 0x183   : > { %v2245_v47 = vsel %vm2230_vm4, %v2180_v48, %v4724_v31  ;;  %v2246_v57 = vsel %vm2230_vm4, %v2181_v24, %v4725_v49  ;;  %v8859_v49 = vld [vmem:[#allocation219_spill] sm:$0xff]  ;;  %v4310_v7 = vunpack.i.h.bf16 %v8860_v38 }
 0x184   : > { %v4733_v53 = vpop.permute.xlu0 %4732  ;;  %5027 = vrot.lane.b32.xlu1 %v7275_v3, %s5181_s7  ;;  %v2508_v56 = vpack.c.bf16 %v2246_v57, %v2245_v47  ;;  %v2287_v33 = vsel %vm2230_vm4, %v2222_v22, %v4739_v4  ;;  %v2288_v12 = vsel %vm2230_vm4, %v2223_v16, %v4740_v58  ;;  %v4205_v31 = vunpack.i.h.bf16 %v8859_v49  ;;  %v8861_v58 = vld [vmem:[#allocation235_spill] sm:$0xff]  ;;  %v8862_v47 = vld [vmem:[#allocation110_spill] sm:$0xff] }
 0x185   : > { %v4735_v11 = vunpack.i.h.bf16 %v4733_v53  ;;  %v4734_v46 = vunpack.i.l.bf16 %v4733_v53  ;;  %v4748_v10 = vpop.permute.xlu1 %4747  ;;  %v2571_v20 = vpack.c.bf16 %v2288_v12, %v2287_v33  ;;  %v4204_v24 = vunpack.i.l.bf16 %v8859_v49  ;;  %v8863_v57 = vld [vmem:[#allocation43_spill] sm:$0xff]  ;;  %v8865_v33 = vld [vmem:[#allocation26_spill] sm:$0xff] }
 0x186   : > { %5022 = vrot.lane.b32.xlu0 %v8858_v26, %s5180_s6  ;;  %2912 = vmatmul.mubr.bf16.gmra.mxu0 %v2508_v56  ;;  %v4750_v48 = vunpack.i.h.bf16 %v4748_v10  ;;  %v4749_v40 = vunpack.i.l.bf16 %v4748_v10  ;;  %v4309_v22 = vunpack.i.l.bf16 %v8860_v38  ;;  %v4364_v4 = vunpack.i.l.bf16 %v8861_v58  ;;  %v8867_v26 = vld [vmem:[#allocation111_spill] sm:$0xff] }
 0x187   : > { %v2479_v23 = vsel %vm2230_vm4, %v2415_v0, %v4734_v46  ;;  %v2480_v59 = vsel %vm2230_vm4, %v2416_v34, %v4735_v11  ;;  %v4365_v16 = vunpack.i.h.bf16 %v8861_v58  ;;  %v2117_v12 = vsel %vm2100_vm2, %v8865_v33, %v4204_v24  ;;  %v8866_v0 = vld [vmem:[#allocation170_spill] sm:$0xff] }
 0x188   : > { %v4743_v45 = vpop.permute.xlu0 %4742  ;;  %5037 = vrot.lane.b32.xlu1 %v7211_v50, %s5183_s23  ;;  %v2572_v1 = vpack.c.bf16 %v2480_v59, %v2479_v23  ;;  %v4469_v34 = vunpack.i.l.bf16 %v8866_v0  ;;  %v8868_v59 = vld [vmem:[#allocation29_spill] sm:$0xff]  ;;  %v2182_v49 = vsel %vm2165_vm3, %v2117_v12, %v4364_v4  ;;  %v4470_v24 = vunpack.i.h.bf16 %v8866_v0  ;;  %v8871_v4 = vld [vmem:[#allocation127_spill] sm:$0xff] }
 0x189   : > { %v4745_v39 = vunpack.i.h.bf16 %v4743_v45  ;;  %v4744_v61 = vunpack.i.l.bf16 %v4743_v45  ;;  %v4758_v50 = vpop.permute.xlu1 %4757  ;;  %v8870_v45 = vld [vmem:[#allocation123_spill] sm:$0xff] }
 0x18a   : > { %5032 = vrot.lane.b32.xlu0 %v8862_v47, %s5183_s23  ;;  %3079 = vmatprep.mubr.bf16.mxu1 %v2572_v1  ;;  %v4760_v17 = vunpack.i.h.bf16 %v4758_v50  ;;  %v4759_v54 = vunpack.i.l.bf16 %v4758_v50  ;;  %v2159_v1 = vsel %vm2100_vm2, %v8870_v45, %v4309_v22 }
 0x18b   : > { %v2312_v28 = vsel %vm2100_vm2, %v8863_v57, %v4745_v39  ;;  %v2311_v41 = vsel %vm2100_vm2, %v8864_v55, %v4744_v61  ;;  %3080 = vmatmul.mubr.bf16.gmra.mxu1 %v2571_v20  ;;  %v2118_v20 = vsel %vm2100_vm2, %v8868_v59, %v4205_v31  ;;  %v7339_v31 = vpack.i.bf16 %v8794_v2, %v8795_v6  ;;  %v8872_v2 = vld [vmem:[#allocation148_spill] sm:$0xff] }
 0x18c   : > { %v4753_v44 = vpop.permute.xlu0 %4752  ;;  %5047 = vrot.lane.b32.xlu1 %v7302_v51, %s5181_s7  ;;  %v2375_v53 = vsel %vm2165_vm3, %v2311_v41, %v4749_v40  ;;  %v2376_v56 = vsel %vm2165_vm3, %v2312_v28, %v4750_v48  ;;  %v8869_v48 = vld [vmem:[#allocation128_spill] sm:$0xff]  ;;  %v2183_v47 = vsel %vm2165_vm3, %v2118_v20, %v4365_v16  ;;  %v2224_v28 = vsel %vm2165_vm3, %v2159_v1, %v4469_v34 }
 0x18d   : > { %v2439_v11 = vsel %vm2230_vm4, %v2375_v53, %v4759_v54  ;;  %v2440_v46 = vsel %vm2230_vm4, %v2376_v56, %v4760_v17  ;;  %v4768_v10 = vpop.permute.xlu1 %4767  ;;  %v2160_v40 = vsel %vm2100_vm2, %v8869_v48, %v4310_v7  ;;  %v4755_v39 = vunpack.i.h.bf16 %v4753_v44  ;;  %v8873_v54 = vld [vmem:[#allocation147_spill] sm:$0xff] }
 0x18e   : > { %5042 = vrot.lane.b32.xlu0 %v8867_v26, %s5180_s6  ;;  %v2512_v23 = vpack.c.bf16 %v2440_v46, %v2439_v11  ;;  %v4754_v61 = vunpack.i.l.bf16 %v4753_v44  ;;  %v4770_v22 = vunpack.i.h.bf16 %v4768_v10  ;;  %v4769_v50 = vunpack.i.l.bf16 %v4768_v10  ;;  %v8874_v26 = vld [vmem:[#allocation198_spill] sm:$0xff] }
 0x18f   : > { %v2354_v6 = vsel %vm2100_vm2, %v8872_v2, %v4755_v39  ;;  %v2225_v16 = vsel %vm2165_vm3, %v2160_v40, %v4470_v24 }
 0x190   : > { %v4763_v38 = vpop.permute.xlu0 %4762  ;;  %5057 = vrot.lane.b32.xlu1 %v7238_v52, %s5183_s23  ;;  %2919 = vmatprep.mubr.bf16.mxu0 %v2512_v23  ;;  %v2353_v44 = vsel %vm2100_vm2, %v8873_v54, %v4754_v61  ;;  %v2418_v34 = vsel %vm2165_vm3, %v2354_v6, %v4770_v22  ;;  %v8877_v22 = vld [vmem:[#allocation119_spill] sm:$0xff] }
 0x191   : > { %v4765_v58 = vunpack.i.h.bf16 %v4763_v38  ;;  %v4764_v7 = vunpack.i.l.bf16 %v4763_v38  ;;  %v4778_v57 = vpop.permute.xlu1 %4777  ;;  %v2417_v0 = vsel %vm2165_vm3, %v2353_v44, %v4769_v50  ;;  %v8881_v6 = vld [vmem:[#allocation227_spill] sm:$0xff] }
 0x192   : > { %5052 = vrot.lane.b32.xlu0 %v8871_v4, %s5183_s23  ;;  %v4780_v55 = vunpack.i.h.bf16 %v4778_v57  ;;  %v4779_v41 = vunpack.i.l.bf16 %v4778_v57  ;;  %v8878_v4 = vld [vmem:[#allocation42_spill] sm:$0xff] }
 0x193   : > { %v2247_v52 = vsel %vm2230_vm4, %v2182_v49, %v4764_v7  ;;  %v2248_v17 = vsel %vm2230_vm4, %v2183_v47, %v4765_v58  ;;  %v8875_v49 = vld [vmem:[#allocation19_spill] sm:$0xff] }
 0x194   : > { %v4773_v53 = vpop.permute.xlu0 %4772  ;;  %5067 = vrot.lane.b32.xlu1 %v7339_v31, %s5181_s7  ;;  %v2511_v56 = vpack.c.bf16 %v2248_v17, %v2247_v52  ;;  %v2289_v33 = vsel %vm2230_vm4, %v2224_v28, %v4779_v41  ;;  %v2290_v12 = vsel %vm2230_vm4, %v2225_v16, %v4780_v55  ;;  %v4210_v24 = vunpack.i.h.bf16 %v8875_v49  ;;  %v8876_v58 = vld [vmem:[#allocation231_spill] sm:$0xff]  ;;  %v8880_v52 = vld [vmem:[#allocation234_spill] sm:$0xff] }
 0x195   : > { %v4775_v11 = vunpack.i.h.bf16 %v4773_v53  ;;  %v4774_v46 = vunpack.i.l.bf16 %v4773_v53  ;;  %v4788_v10 = vpop.permute.xlu1 %4787  ;;  %v2574_v20 = vpack.c.bf16 %v2290_v12, %v2289_v33  ;;  %v4209_v38 = vunpack.i.l.bf16 %v8875_v49  ;;  %v8883_v12 = vld [vmem:[#allocation124_spill] sm:$0xff] }
 0x196   : > { %5062 = vrot.lane.b32.xlu0 %v8874_v26, %s5180_s6  ;;  %2920 = vmatmul.mubr.bf16.gmra.mxu0 %v2511_v56  ;;  %v4790_v48 = vunpack.i.h.bf16 %v4788_v10  ;;  %v4789_v40 = vunpack.i.l.bf16 %v4788_v10  ;;  %v4315_v7 = vunpack.i.h.bf16 %v8876_v58  ;;  %v4314_v47 = vunpack.i.l.bf16 %v8876_v58  ;;  %v8882_v56 = vld [vmem:[#allocation257_spill] sm:$0xff]  ;;  %v8884_v26 = vld [vmem:[#allocation24_spill] sm:$0xff] }
 0x197   : > { %v2481_v23 = vsel %vm2230_vm4, %v2417_v0, %v4774_v46  ;;  %v2482_v59 = vsel %vm2230_vm4, %v2418_v34, %v4775_v11  ;;  %v4369_v17 = vunpack.i.l.bf16 %v8880_v52  ;;  %v4370_v53 = vunpack.i.h.bf16 %v8880_v52 }
 0x198   : > { %v4783_v45 = vpop.permute.xlu0 %4782  ;;  %5077 = vrot.lane.b32.xlu1 %v7275_v3, %s5183_s23  ;;  %v2575_v1 = vpack.c.bf16 %v2482_v59, %v2481_v23  ;;  %v8879_v3 = vld [vmem:[#allocation40_spill] sm:$0xff]  ;;  %v4474_v16 = vunpack.i.l.bf16 %v8882_v56  ;;  %v4475_v33 = vunpack.i.h.bf16 %v8882_v56  ;;  %v2120_v10 = vsel %vm2100_vm2, %v8884_v26, %v4210_v24  ;;  %v8885_v23 = vld [vmem:[#allocation23_spill] sm:$0xff] }
 0x199   : > { %v4785_v39 = vunpack.i.h.bf16 %v4783_v45  ;;  %v4784_v61 = vunpack.i.l.bf16 %v4783_v45  ;;  %v4798_v50 = vpop.permute.xlu1 %4797  ;;  %v2119_v59 = vsel %vm2100_vm2, %v8885_v23, %v4209_v38 }
 0x19a   : > { %5072 = vrot.lane.b32.xlu0 %v8877_v22, %s5183_s23  ;;  %3087 = vmatprep.mubr.bf16.mxu1 %v2575_v1  ;;  %v4800_v55 = vunpack.i.h.bf16 %v4798_v50  ;;  %v4799_v41 = vunpack.i.l.bf16 %v4798_v50  ;;  %v2185_v22 = vsel %vm2165_vm3, %v2120_v10, %v4370_v53 }
 0x19b   : > { %v2314_v57 = vsel %vm2100_vm2, %v8878_v4, %v4785_v39  ;;  %v2313_v28 = vsel %vm2100_vm2, %v8879_v3, %v4784_v61  ;;  %3088 = vmatmul.mubr.bf16.gmra.mxu1 %v2574_v20  ;;  %v8886_v20 = vld [vmem:[#allocation142_spill] sm:$0xff]  ;;  %v2184_v61 = vsel %vm2165_vm3, %v2119_v59, %v4369_v17  ;;  %v8888_v4 = vld [vmem:[#allocation135_spill] sm:$0xff] }
 0x19c   : > { %v4793_v2 = vpop.permute.xlu0 %4792  ;;  %5087 = vrot.lane.b32.xlu1 %v8881_v6, %s5181_s7  ;;  %v2377_v54 = vsel %vm2165_vm3, %v2313_v28, %v4789_v40  ;;  %v2378_v44 = vsel %vm2165_vm3, %v2314_v57, %v4790_v48  ;;  %v2162_v48 = vsel %vm2100_vm2, %v8886_v20, %v4315_v7  ;;  %v8887_v40 = vld [vmem:[#allocation146_spill] sm:$0xff]  ;;  %v8890_v17 = vld [vmem:[#allocation247_spill] sm:$0xff] }
 0x19d   : > { %v2441_v11 = vsel %vm2230_vm4, %v2377_v54, %v4799_v41  ;;  %v2442_v46 = vsel %vm2230_vm4, %v2378_v44, %v4800_v55  ;;  %v4808_v0 = vpop.permute.xlu1 %4807  ;;  %v2161_v45 = vsel %vm2100_vm2, %v8887_v40, %v4314_v47  ;;  %v4795_v1 = vunpack.i.h.bf16 %v4793_v2  ;;  %v8889_v41 = vld [vmem:[#allocation248_spill] sm:$0xff] }
 0x19e   : > { %5082 = vrot.lane.b32.xlu0 %v8883_v12, %s5180_s6  ;;  %v2515_v34 = vpack.c.bf16 %v2442_v46, %v2441_v11  ;;  %v4794_v49 = vunpack.i.l.bf16 %v4793_v2  ;;  %v2226_v38 = vsel %vm2165_vm3, %v2161_v45, %v4474_v16  ;;  %v4810_v50 = vunpack.i.h.bf16 %v4808_v0  ;;  %v8891_v54 = vld [vmem:[#allocation232_spill] sm:$0xff]  ;;  %v8892_v12 = vld [vmem:[#allocation203_spill] sm:$0xff] }
 0x19f   : > { %v4809_v7 = vunpack.i.l.bf16 %v4808_v0  ;;  %v2227_v57 = vsel %vm2165_vm3, %v2162_v48, %v4475_v33  ;;  %v2356_v52 = vsel %vm2100_vm2, %v8889_v41, %v4795_v1  ;;  %v8893_v1 = vld [vmem:[#allocation221_spill] sm:$0xff] }
 0x1a0   : > { %v4803_v39 = vpop.permute.xlu0 %4802  ;;  %5097 = vrot.lane.b32.xlu1 %v7302_v51, %s5183_s23  ;;  %2927 = vmatprep.mubr.bf16.mxu0 %v2515_v34  ;;  %v2355_v2 = vsel %vm2100_vm2, %v8890_v17, %v4794_v49  ;;  %v2420_v33 = vsel %vm2165_vm3, %v2356_v52, %v4810_v50  ;;  %v4215_v49 = vunpack.i.h.bf16 %v8893_v1 }
 0x1a1   : > { %v4805_v58 = vunpack.i.h.bf16 %v4803_v39  ;;  %v4804_v24 = vunpack.i.l.bf16 %v4803_v39  ;;  %v4818_v47 = vpop.permute.xlu1 %4817  ;;  %v2419_v46 = vsel %vm2165_vm3, %v2355_v2, %v4809_v7  ;;  %v4214_v39 = vunpack.i.l.bf16 %v8893_v1 }
 0x1a2   : > { %5092 = vrot.lane.b32.xlu0 %v8888_v4, %s5183_s23  ;;  %v4820_v3 = vunpack.i.h.bf16 %v4818_v47  ;;  %v4819_v28 = vunpack.i.l.bf16 %v4818_v47  ;;  %v8897_v4 = vld [vmem:[#allocation39_spill] sm:$0xff] }
 0x1a3   : > { %v2249_v51 = vsel %vm2230_vm4, %v2184_v61, %v4804_v24  ;;  %v2250_v55 = vsel %vm2230_vm4, %v2185_v22, %v4805_v58  ;;  %v8894_v61 = vld [vmem:[#allocation132_spill] sm:$0xff]  ;;  %v8895_v24 = vld [vmem:[#allocation58_spill] sm:$0xff]  ;;  %v4320_v47 = vunpack.i.h.bf16 %v8897_v4 }
 0x1a4   : > { %v4813_v6 = vpop.permute.xlu0 %4812  ;;  %5107 = vrot.lane.b32.xlu1 %v8891_v54, %s5181_s7  ;;  %v2514_v44 = vpack.c.bf16 %v2250_v55, %v2249_v51  ;;  %v2291_v16 = vsel %vm2230_vm4, %v2226_v38, %v4819_v28  ;;  %v2292_v11 = vsel %vm2230_vm4, %v2227_v57, %v4820_v3  ;;  %v8896_v38 = vld [vmem:[#allocation57_spill] sm:$0xff]  ;;  %v4319_v51 = vunpack.i.l.bf16 %v8897_v4 }
 0x1a5   : > { %v4815_v53 = vunpack.i.h.bf16 %v4813_v6  ;;  %v4814_v56 = vunpack.i.l.bf16 %v4813_v6  ;;  %v4828_v0 = vpop.permute.xlu1 %4827  ;;  %v2577_v10 = vpack.c.bf16 %v2292_v11, %v2291_v16  ;;  %v8898_v55 = vld [vmem:[#allocation237_spill] sm:$0xff]  ;;  %v8899_v6 = vld [vmem:[#allocation60_spill] sm:$0xff] }
 0x1a6   : > { %5102 = vrot.lane.b32.xlu0 %v8892_v12, %s5180_s6  ;;  %2928 = vmatmul.mubr.bf16.gmra.mxu0 %v2514_v44  ;;  %v4830_v23 = vunpack.i.h.bf16 %v4828_v0  ;;  %v4829_v59 = vunpack.i.l.bf16 %v4828_v0  ;;  %v4374_v41 = vunpack.i.l.bf16 %v8898_v55  ;;  %v4375_v2 = vunpack.i.h.bf16 %v8898_v55  ;;  %v8901_v11 = vld [vmem:[#allocation36_spill] sm:$0xff] }
 0x1a7   : > { %v2483_v34 = vsel %vm2230_vm4, %v2419_v46, %v4814_v56  ;;  %v2484_v26 = vsel %vm2230_vm4, %v2420_v33, %v4815_v53  ;;  %v4479_v54 = vunpack.i.l.bf16 %v8899_v6  ;;  %v8900_v56 = vld [vmem:[#allocation34_spill] sm:$0xff]  ;;  %v2121_v46 = vsel %vm2100_vm2, %v8901_v11, %v4214_v39  ;;  %v8902_v33 = vld [vmem:[#allocation140_spill] sm:$0xff] }
 0x1a8   : > { %v4823_v20 = vpop.permute.xlu0 %4822  ;;  %5117 = vrot.lane.b32.xlu1 %v7339_v31, %s5183_s23  ;;  %v2578_v48 = vpack.c.bf16 %v2484_v26, %v2483_v34  ;;  %v2122_v16 = vsel %vm2100_vm2, %v8900_v56, %v4215_v49  ;;  %v2164_v12 = vsel %vm2100_vm2, %v8902_v33, %v4320_v47  ;;  %v4480_v0 = vunpack.i.h.bf16 %v8899_v6  ;;  %v8907_v11 = vld [vmem:[#allocation236_spill] sm:$0xff] }
 0x1a9   : > { %v4825_v40 = vunpack.i.h.bf16 %v4823_v20  ;;  %v4824_v45 = vunpack.i.l.bf16 %v4823_v20  ;;  %v4838_v58 = vpop.permute.xlu1 %4837  ;;  %v2187_v39 = vsel %vm2165_vm3, %v2122_v16, %v4375_v2  ;;  %v4379_v33 = vunpack.i.l.bf16 %v8907_v11 }
 0x1aa   : > { %5112 = vrot.lane.b32.xlu0 %v8894_v61, %s5183_s23  ;;  %3095 = vmatprep.mubr.bf16.mxu1 %v2578_v48  ;;  %v4840_v31 = vunpack.i.h.bf16 %v4838_v58  ;;  %v4839_v7 = vunpack.i.l.bf16 %v4838_v58 }
 0x1ab   : > { %v2316_v22 = vsel %vm2100_vm2, %v8895_v24, %v4825_v40  ;;  %v2315_v50 = vsel %vm2100_vm2, %v8896_v38, %v4824_v45  ;;  %3096 = vmatmul.mubr.bf16.gmra.mxu1 %v2577_v10  ;;  %v2186_v40 = vsel %vm2165_vm3, %v2121_v46, %v4374_v41  ;;  %v4380_v46 = vunpack.i.h.bf16 %v8907_v11 }
 0x1ac   : > { %v4833_v57 = vpop.permute.xlu0 %4832  ;;  %v2379_v3 = vsel %vm2165_vm3, %v2315_v50, %v4829_v59  ;;  %v2380_v28 = vsel %vm2165_vm3, %v2316_v22, %v4830_v23  ;;  %v8903_v23 = vld [vmem:[#allocation139_spill] sm:$0xff]  ;;  %v8904_v50 = vld [vmem:[#allocation254_spill] sm:$0xff] }
 0x1ad   : > { %v2443_v52 = vsel %vm2230_vm4, %v2379_v3, %v4839_v7  ;;  %v2444_v17 = vsel %vm2230_vm4, %v2380_v28, %v4840_v31  ;;  %v4835_v34 = vunpack.i.h.bf16 %v4833_v57  ;;  %v4834_v26 = vunpack.i.l.bf16 %v4833_v57  ;;  %v8905_v7 = vld [vmem:[#allocation253_spill] sm:$0xff] }
 0x1ae   : > { %v4848_v44 = vpop.permute.xlu1 %4847  ;;  %v2518_v53 = vpack.c.bf16 %v2444_v17, %v2443_v52  ;;  %v2163_v59 = vsel %vm2100_vm2, %v8903_v23, %v4319_v51  ;;  %v2229_v3 = vsel %vm2165_vm3, %v2164_v12, %v4480_v0  ;;  %v8906_v52 = vld [vmem:[#allocation220_spill] sm:$0xff] }
 0x1af   : > { %v4850_v45 = vunpack.i.h.bf16 %v4848_v44  ;;  %v4849_v1 = vunpack.i.l.bf16 %v4848_v44  ;;  %v2228_v61 = vsel %vm2165_vm3, %v2163_v59, %v4479_v54  ;;  %v2358_v31 = vsel %vm2100_vm2, %v8904_v50, %v4835_v34  ;;  %v8908_v34 = vld [vmem:[#allocation153_spill] sm:$0xff] }
 0x1b0   : > { %v4843_v10 = vpop.permute.xlu0 %4842  ;;  %2935 = vmatprep.mubr.bf16.mxu0 %v2518_v53  ;;  %v2357_v4 = vsel %vm2100_vm2, %v8905_v7, %v4834_v26  ;;  %v4220_v17 = vunpack.i.h.bf16 %v8906_v52  ;;  %v4219_v2 = vunpack.i.l.bf16 %v8906_v52  ;;  %v8909_v26 = vld [vmem:[#allocation154_spill] sm:$0xff] }
 0x1b1   : > { %v4845_v20 = vunpack.i.h.bf16 %v4843_v10  ;;  %v4844_v48 = vunpack.i.l.bf16 %v4843_v10  ;;  %v2421_v6 = vsel %vm2165_vm3, %v2357_v4, %v4849_v1  ;;  %v2422_v54 = vsel %vm2165_vm3, %v2358_v31, %v4850_v45 }
 0x1b2   : > { %v4858_v49 = vpop.permute.xlu1 %4857  ;;  %v2489_v10 = vpack.c.bf16 %v8909_v26, %v8908_v34 }
 0x1b3   : > { %v4860_v58 = vunpack.i.h.bf16 %v4858_v49  ;;  %v4859_v24 = vunpack.i.l.bf16 %v4858_v49  ;;  %v2251_v22 = vsel %vm2230_vm4, %v2186_v40, %v4844_v48  ;;  %v2252_v38 = vsel %vm2230_vm4, %v2187_v39, %v4845_v20  ;;  %v8910_v20 = vld [vmem:[#allocation32_spill] sm:$0xff]  ;;  %v8911_v40 = vld [vmem:[#allocation31_spill] sm:$0xff] }
 0x1b4   : > { %v4853_v47 = vpop.permute.xlu0 %4852  ;;  %v2517_v57 = vpack.c.bf16 %v2252_v38, %v2251_v22  ;;  %v2124_v48 = vsel %vm2100_vm2, %v8910_v20, %v4220_v17  ;;  %v2123_v45 = vsel %vm2100_vm2, %v8911_v40, %v4219_v2 }
 0x1b5   : > { %v4855_v28 = vunpack.i.h.bf16 %v4853_v47  ;;  %v4854_v51 = vunpack.i.l.bf16 %v4853_v47  ;;  %v2293_v55 = vsel %vm2230_vm4, %v2228_v61, %v4859_v24  ;;  %v2294_v41 = vsel %vm2230_vm4, %v2229_v3, %v4860_v58  ;;  %v8912_v61 = vld [vmem:[#allocation53_spill] sm:$0xff]  ;;  %v8913_v24 = vld [vmem:[#allocation52_spill] sm:$0xff] }
 0x1b6   : > { %2936 = vmatmul.mubr.bf16.gmra.mxu0 %v2517_v57  ;;  %v4868_v44 = vpop.permute.xlu1 %4867  ;;  %v2580_v16 = vpack.c.bf16 %v2294_v41, %v2293_v55  ;;  %v2188_v7 = vsel %vm2165_vm3, %v2123_v45, %v4379_v33  ;;  %v2189_v4 = vsel %vm2165_vm3, %v2124_v48, %v4380_v46  ;;  %v8916_v33 = vld [vmem:[#allocation157_spill] sm:$0xff] }
 0x1b7   : > { %v2485_v53 = vsel %vm2230_vm4, %v2421_v6, %v4854_v51  ;;  %v2486_v56 = vsel %vm2230_vm4, %v2422_v54, %v4855_v28  ;;  %v4870_v1 = vunpack.i.h.bf16 %v4868_v44  ;;  %v4869_v49 = vunpack.i.l.bf16 %v4868_v44  ;;  %v8914_v51 = vld [vmem:[#allocation20_spill] sm:$0xff] }
 0x1b8   : > { %v4863_v12 = vpop.permute.xlu0 %4862  ;;  %v2581_v0 = vpack.c.bf16 %v2486_v56, %v2485_v53  ;;  %v4225_v55 = vunpack.i.h.bf16 %v8914_v51  ;;  %v4224_v41 = vunpack.i.l.bf16 %v8914_v51  ;;  %v8915_v53 = vld [vmem:[#allocation239_spill] sm:$0xff]  ;;  %v8925_v51 = vld [vmem:[#allocation222_spill] sm:$0xff] }
 0x1b9   : > { %v4865_v23 = vunpack.i.h.bf16 %v4863_v12  ;;  %v4864_v59 = vunpack.i.l.bf16 %v4863_v12  ;;  %v4385_v56 = vunpack.i.h.bf16 %v8915_v53  ;;  %v8917_v12 = vld [vmem:[#allocation158_spill] sm:$0xff] }
 0x1ba   : > { %3103 = vmatprep.mubr.bf16.mxu1 %v2581_v0  ;;  %v4878_v39 = vpop.permute.xlu1 %4877  ;;  %v2495_v0 = vpack.c.bf16 %v8917_v12, %v8916_v33 }
 0x1bb   : > { %v2318_v58 = vsel %vm2100_vm2, %v8912_v61, %v4865_v23  ;;  %v2317_v22 = vsel %vm2100_vm2, %v8913_v24, %v4864_v59  ;;  %3104 = vmatmul.mubr.bf16.gmra.mxu1 %v2580_v16  ;;  %v4880_v38 = vunpack.i.h.bf16 %v4878_v39  ;;  %v4879_v50 = vunpack.i.l.bf16 %v4878_v39  ;;  %v8919_v59 = vld [vmem:[#allocation47_spill] sm:$0xff]  ;;  %v8921_v39 = vld [vmem:[#allocation70_spill] sm:$0xff] }
 0x1bc   : > { %v4873_v31 = vpop.permute.xlu0 %4872  ;;  %4019 = vmatprep.mubr.msk.bf16.mxu1 %vm2100_vm2, %v2489_v10  ;;  %v2381_v17 = vsel %vm2165_vm3, %v2317_v22, %v4869_v49  ;;  %v2382_v2 = vsel %vm2165_vm3, %v2318_v58, %v4870_v1  ;;  %v4384_v16 = vunpack.i.l.bf16 %v8915_v53  ;;  %v8918_v10 = vld [vmem:[#allocation49_spill] sm:$0xff]  ;;  %v2125_v20 = vsel %vm2100_vm2, %v8919_v59, %v4224_v41  ;;  %v8920_v1 = vld [vmem:[#allocation66_spill] sm:$0xff]  ;;  %v8922_v58 = vld [vmem:[#allocation152_spill] sm:$0xff] }
 0x1bd   : > { %v4875_v47 = vunpack.i.h.bf16 %v4873_v31  ;;  %v4874_v57 = vunpack.i.l.bf16 %v4873_v31  ;;  %v2253_v3 = vsel %vm2230_vm4, %v2188_v7, %v4879_v50  ;;  %v2254_v28 = vsel %vm2230_vm4, %v2189_v4, %v4880_v38  ;;  %v8923_v24 = vld [vmem:[#allocation151_spill] sm:$0xff] }
 0x1be   : > { %v4888_v52 = vpop.permute.xlu1 %4887  ;;  %v2520_v44 = vpack.c.bf16 %v2254_v28, %v2253_v3  ;;  %v2126_v23 = vsel %vm2100_vm2, %v8918_v10, %v4225_v55  ;;  %v8924_v22 = vpack.c.bf16 %v8922_v58, %v8923_v24  ;;  %v2190_v7 = vsel %vm2165_vm3, %v2125_v20, %v4384_v16  ;;  %v8926_v53 = vld [vmem:[#allocation155_spill] sm:$0xff]  ;;  %v8931_v20 = vld [vmem:[#allocation44_spill] sm:$0xff]  ;;  %v8934_v24 = vld [vmem:[#allocation61_spill] sm:$0xff] }
 0x1bf   : > { %v2445_v6 = vsel %vm2230_vm4, %v2381_v17, %v4874_v57  ;;  %v2446_v54 = vsel %vm2230_vm4, %v2382_v2, %v4875_v47  ;;  %v4890_v48 = vunpack.i.h.bf16 %v4888_v52  ;;  %v4889_v40 = vunpack.i.l.bf16 %v4888_v52 }
 0x1c0   : > { %v4883_v11 = vpop.permute.xlu0 %4882  ;;  %v2521_v46 = vpack.c.bf16 %v2446_v54, %v2445_v6  ;;  %v2191_v4 = vsel %vm2165_vm3, %v2126_v23, %v4385_v56  ;;  %v4230_v55 = vunpack.i.h.bf16 %v8925_v51  ;;  %v4229_v41 = vunpack.i.l.bf16 %v8925_v51  ;;  %v8927_v56 = vld [vmem:[#allocation156_spill] sm:$0xff]  ;;  %v8935_v51 = vld [vmem:[#allocation18_spill] sm:$0xff] }
 0x1c1   : > { %v4885_v34 = vunpack.i.h.bf16 %v4883_v11  ;;  %v4884_v26 = vunpack.i.l.bf16 %v4883_v11  ;;  %v2498_v16 = vpack.c.bf16 %v8927_v56, %v8926_v53  ;;  %v8928_v11 = vld [vmem:[#allocation238_spill] sm:$0xff]  ;;  %v8936_v53 = vld [vmem:[#allocation159_spill] sm:$0xff]  ;;  %v8937_v56 = vld [vmem:[#allocation160_spill] sm:$0xff] }
 0x1c2   : > { %2943 = vmatprep.mubr.bf16.mxu0 %v2521_v46  ;;  %v4898_v45 = vpop.permute.xlu1 %4897  ;;  %v4390_v46 = vunpack.i.h.bf16 %v8928_v11  ;;  %v4389_v33 = vunpack.i.l.bf16 %v8928_v11  ;;  %v8938_v11 = vld [vmem:[#allocation240_spill] sm:$0xff] }
 0x1c3   : > { %v2320_v49 = vsel %vm2100_vm2, %v8920_v1, %v4885_v34  ;;  %v2319_v61 = vsel %vm2100_vm2, %v8921_v39, %v4884_v26  ;;  %2944 = vmatmul.mubr.bf16.gmra.mxu0 %v2520_v44  ;;  %4020 = vmatmul.mubr.msk.bf16.vlgmr.msra.gmra.mxu1 %vm2100_vm2, %v8924_v22  ;;  %v4900_v38 = vunpack.i.h.bf16 %v4898_v45  ;;  %v4899_v50 = vunpack.i.l.bf16 %v4898_v45  ;;  %v8929_v34 = vld [vmem:[#allocation161_spill] sm:$0xff]  ;;  %v8930_v26 = vld [vmem:[#allocation162_spill] sm:$0xff] }
 0x1c4   : > { %v4893_v31 = vpop.permute.xlu0 %4892  ;;  %4023 = vmatprep.mubr.msk.bf16.mxu1 %vm2100_vm2, %v2495_v0  ;;  %v2383_v17 = vsel %vm2165_vm3, %v2319_v61, %v4889_v40  ;;  %v2384_v2 = vsel %vm2165_vm3, %v2320_v49, %v4890_v48  ;;  %v2501_v10 = vpack.c.bf16 %v8930_v26, %v8929_v34  ;;  %v2128_v48 = vsel %vm2100_vm2, %v8931_v20, %v4230_v55  ;;  %v8932_v40 = vld [vmem:[#allocation41_spill] sm:$0xff]  ;;  %v8933_v61 = vld [vmem:[#allocation62_spill] sm:$0xff] }
 0x1c5   : > { %v4895_v47 = vunpack.i.h.bf16 %v4893_v31  ;;  %v4894_v57 = vunpack.i.l.bf16 %v4893_v31  ;;  %v2255_v3 = vsel %vm2230_vm4, %v2190_v7, %v4899_v50  ;;  %v2256_v28 = vsel %vm2230_vm4, %v2191_v4, %v4900_v38  ;;  %v8939_v34 = vld [vmem:[#allocation165_spill] sm:$0xff]  ;;  %v8940_v26 = vld [vmem:[#allocation166_spill] sm:$0xff] }
 0x1c6   : > { %v4908_v52 = vpop.permute.xlu1 %4907  ;;  %v2523_v44 = vpack.c.bf16 %v2256_v28, %v2255_v3  ;;  %v2127_v45 = vsel %vm2100_vm2, %v8932_v40, %v4229_v41  ;;  %v2193_v4 = vsel %vm2165_vm3, %v2128_v48, %v4390_v46  ;;  %v4235_v55 = vunpack.i.h.bf16 %v8935_v51  ;;  %v8941_v20 = vld [vmem:[#allocation54_spill] sm:$0xff]  ;;  %v8942_v40 = vld [vmem:[#allocation59_spill] sm:$0xff] }
 0x1c7   : > { %v2447_v6 = vsel %vm2230_vm4, %v2383_v17, %v4894_v57  ;;  %v2448_v54 = vsel %vm2230_vm4, %v2384_v2, %v4895_v47  ;;  %v4910_v1 = vunpack.i.h.bf16 %v4908_v52  ;;  %v4909_v49 = vunpack.i.l.bf16 %v4908_v52 }
 0x1c8   : > { %v4903_v12 = vpop.permute.xlu0 %4902  ;;  %v2524_v0 = vpack.c.bf16 %v2448_v54, %v2447_v6  ;;  %v2192_v7 = vsel %vm2165_vm3, %v2127_v45, %v4389_v33  ;;  %v4234_v41 = vunpack.i.l.bf16 %v8935_v51  ;;  %v4395_v46 = vunpack.i.h.bf16 %v8938_v11  ;;  %v8945_v51 = vld [vmem:[#allocation16_spill] sm:$0xff] }
 0x1c9   : > { %v4905_v23 = vunpack.i.h.bf16 %v4903_v12  ;;  %v4904_v59 = vunpack.i.l.bf16 %v4903_v12  ;;  %v4394_v33 = vunpack.i.l.bf16 %v8938_v11  ;;  %v2130_v48 = vsel %vm2100_vm2, %v8941_v20, %v4235_v55  ;;  %v8948_v11 = vld [vmem:[#allocation48_spill] sm:$0xff] }
 0x1ca   : > { %2951 = vmatprep.mubr.bf16.mxu0 %v2524_v0  ;;  %v4918_v39 = vpop.permute.xlu1 %4917  ;;  %v2129_v45 = vsel %vm2100_vm2, %v8942_v40, %v4234_v41  ;;  %v4240_v55 = vunpack.i.h.bf16 %v8945_v51  ;;  %v4239_v41 = vunpack.i.l.bf16 %v8945_v51 }
 0x1cb   : > { %v2322_v58 = vsel %vm2100_vm2, %v8933_v61, %v4905_v23  ;;  %v2321_v22 = vsel %vm2100_vm2, %v8934_v24, %v4904_v59  ;;  %2952 = vmatmul.mubr.bf16.gmra.mxu0 %v2523_v44  ;;  %4024 = vmatmul.mubr.msk.bf16.gmra.mxu1 %vm2100_vm2, %v2498_v16  ;;  %v4920_v38 = vunpack.i.h.bf16 %v4918_v39  ;;  %v4919_v50 = vunpack.i.l.bf16 %v4918_v39  ;;  %v8943_v61 = vld [vmem:[#allocation77_spill] sm:$0xff]  ;;  %v8944_v24 = vld [vmem:[#allocation76_spill] sm:$0xff] }
 0x1cc   : > { %v4913_v31 = vpop.permute.xlu0 %4912  ;;  %4027 = vmatprep.mubr.msk.bf16.mxu1 %vm2100_vm2, %v2501_v10  ;;  %v2385_v17 = vsel %vm2165_vm3, %v2321_v22, %v4909_v49  ;;  %v2386_v2 = vsel %vm2165_vm3, %v2322_v58, %v4910_v1  ;;  %v2504_v16 = vpack.c.bf16 %v8937_v56, %v8936_v53  ;;  %v2507_v10 = vpack.c.bf16 %v8940_v26, %v8939_v34  ;;  %v8946_v53 = vld [vmem:[#allocation163_spill] sm:$0xff]  ;;  %v8947_v56 = vld [vmem:[#allocation164_spill] sm:$0xff] }
 0x1cd   : > { %v4915_v47 = vunpack.i.h.bf16 %v4913_v31  ;;  %v4914_v57 = vunpack.i.l.bf16 %v4913_v31  ;;  %v2257_v3 = vsel %vm2230_vm4, %v2192_v7, %v4919_v50  ;;  %v2258_v28 = vsel %vm2230_vm4, %v2193_v4, %v4920_v38  ;;  %v8949_v34 = vld [vmem:[#allocation171_spill] sm:$0xff]  ;;  %v8950_v26 = vld [vmem:[#allocation172_spill] sm:$0xff] }
 0x1ce   : > { %v4928_v52 = vpop.permute.xlu1 %4927  ;;  %v2526_v44 = vpack.c.bf16 %v2258_v28, %v2257_v3  ;;  %v2194_v7 = vsel %vm2165_vm3, %v2129_v45, %v4394_v33  ;;  %v2195_v4 = vsel %vm2165_vm3, %v2130_v48, %v4395_v46  ;;  %v4400_v46 = vunpack.i.h.bf16 %v8948_v11 }
 0x1cf   : > { %v2449_v6 = vsel %vm2230_vm4, %v2385_v17, %v4914_v57  ;;  %v2450_v54 = vsel %vm2230_vm4, %v2386_v2, %v4915_v47  ;;  %v4930_v1 = vunpack.i.h.bf16 %v4928_v52  ;;  %v4929_v49 = vunpack.i.l.bf16 %v4928_v52 }
 0x1d0   : > { %v4923_v12 = vpop.permute.xlu0 %4922  ;;  %v2527_v0 = vpack.c.bf16 %v2450_v54, %v2449_v6  ;;  %v4399_v33 = vunpack.i.l.bf16 %v8948_v11  ;;  %v2132_v20 = vsel %vm2100_vm2, %v8777_v63, %v4240_v55  ;;  %v2131_v48 = vsel %vm2100_vm2, %v8776_v36, %v4239_v41 }
 0x1d1   : > { %v4925_v23 = vunpack.i.h.bf16 %v4923_v12  ;;  %v4924_v59 = vunpack.i.l.bf16 %v4923_v12  ;;  %v2197_v63 = vsel %vm2165_vm3, %v2132_v20, %v4400_v46  ;;  %v8957_v46 = vld [vmem:[#allocation176_spill] sm:$0xff] }
 0x1d2   : > { %2959 = vmatprep.mubr.bf16.mxu0 %v2527_v0  ;;  %v4938_v39 = vpop.permute.xlu1 %4937  ;;  %v2196_v36 = vsel %vm2165_vm3, %v2131_v48, %v4399_v33  ;;  %v8958_v33 = vld [vmem:[#allocation177_spill] sm:$0xff]  ;;  %v8959_v48 = vld [vmem:[#allocation91_spill] sm:$0xff] }
 0x1d3   : > { %v2324_v58 = vsel %vm2100_vm2, %v8943_v61, %v4925_v23  ;;  %v2323_v22 = vsel %vm2100_vm2, %v8944_v24, %v4924_v59  ;;  %2960 = vmatmul.mubr.bf16.gmra.mxu0 %v2526_v44  ;;  %4028 = vmatmul.mubr.msk.bf16.gmra.mxu1 %vm2100_vm2, %v2504_v16  ;;  %v4940_v38 = vunpack.i.h.bf16 %v4938_v39  ;;  %v4939_v50 = vunpack.i.l.bf16 %v4938_v39  ;;  %v8952_v61 = vld [vmem:[#allocation74_spill] sm:$0xff] }
 0x1d4   : > { %v4933_v31 = vpop.permute.xlu0 %4932  ;;  %4031 = vmatprep.mubr.msk.bf16.mxu1 %vm2100_vm2, %v2507_v10  ;;  %v2387_v17 = vsel %vm2165_vm3, %v2323_v22, %v4929_v49  ;;  %v2388_v2 = vsel %vm2165_vm3, %v2324_v58, %v4930_v1  ;;  %v2510_v16 = vpack.c.bf16 %v8947_v56, %v8946_v53  ;;  %v2513_v10 = vpack.c.bf16 %v8950_v26, %v8949_v34  ;;  %v8951_v49 = vld [vmem:[#allocation75_spill] sm:$0xff] }
 0x1d5   : > { %v4935_v47 = vunpack.i.h.bf16 %v4933_v31  ;;  %v4934_v57 = vunpack.i.l.bf16 %v4933_v31  ;;  %v2259_v3 = vsel %vm2230_vm4, %v2194_v7, %v4939_v50  ;;  %v2260_v28 = vsel %vm2230_vm4, %v2195_v4, %v4940_v38 }
 0x1d6   : > { %v4948_v52 = vpop.permute.xlu1 %4947  ;;  %v2529_v44 = vpack.c.bf16 %v2260_v28, %v2259_v3 }
 0x1d7   : > { %v2451_v6 = vsel %vm2230_vm4, %v2387_v17, %v4934_v57  ;;  %v2452_v54 = vsel %vm2230_vm4, %v2388_v2, %v4935_v47  ;;  %v4950_v40 = vunpack.i.h.bf16 %v4948_v52  ;;  %v4949_v45 = vunpack.i.l.bf16 %v4948_v52  ;;  %v8953_v47 = vld [vmem:[#allocation223_spill] sm:$0xff]  ;;  %v8954_v2 = vld [vmem:[#allocation168_spill] sm:$0xff] }
 0x1d8   : > { %v4943_v12 = vpop.permute.xlu0 %4942  ;;  %v2530_v0 = vpack.c.bf16 %v2452_v54, %v2451_v6  ;;  %v4245_v57 = vunpack.i.h.bf16 %v8953_v47  ;;  %v4244_v3 = vunpack.i.l.bf16 %v8953_v47  ;;  %v8955_v6 = vld [vmem:[#allocation169_spill] sm:$0xff] }
 0x1d9   : > { %v4945_v23 = vunpack.i.h.bf16 %v4943_v12  ;;  %v4944_v59 = vunpack.i.l.bf16 %v4943_v12  ;;  %v2516_v54 = vpack.c.bf16 %v8955_v6, %v8954_v2  ;;  %v2519_v12 = vpack.c.bf16 %v8958_v33, %v8957_v46 }
 0x1da   : > { %2967 = vmatprep.mubr.bf16.mxu0 %v2530_v0  ;;  %v4958_v1 = vpop.permute.xlu1 %4957  ;;  %v2134_v26 = vsel %vm2100_vm2, %v8784_v32, %v4245_v57 }
 0x1db   : > { %v2326_v39 = vsel %vm2100_vm2, %v8951_v49, %v4945_v23  ;;  %v2325_v58 = vsel %vm2100_vm2, %v8952_v61, %v4944_v59  ;;  %2968 = vmatmul.mubr.bf16.gmra.mxu0 %v2529_v44  ;;  %4032 = vmatmul.mubr.msk.bf16.gmra.mxu1 %vm2100_vm2, %v2510_v16  ;;  %v4960_v24 = vunpack.i.h.bf16 %v4958_v1  ;;  %v4959_v22 = vunpack.i.l.bf16 %v4958_v1  ;;  %v8956_v44 = vld [vmem:[#allocation242_spill] sm:$0xff] }
 0x1dc   : > { %v4953_v38 = vpop.permute.xlu0 %4952  ;;  %4035 = vmatprep.mubr.msk.bf16.mxu1 %vm2100_vm2, %v2513_v10  ;;  %v2389_v51 = vsel %vm2165_vm3, %v2325_v58, %v4949_v45  ;;  %v2390_v55 = vsel %vm2165_vm3, %v2326_v39, %v4950_v40  ;;  %v4405_v53 = vunpack.i.h.bf16 %v8956_v44  ;;  %v4404_v56 = vunpack.i.l.bf16 %v8956_v44  ;;  %v8960_v45 = vld [vmem:[#allocation92_spill] sm:$0xff]  ;;  %v8966_v44 = vld [vmem:[#allocation182_spill] sm:$0xff] }
 0x1dd   : > { %v4955_v50 = vunpack.i.h.bf16 %v4953_v38  ;;  %v4954_v31 = vunpack.i.l.bf16 %v4953_v38  ;;  %v2261_v7 = vsel %vm2230_vm4, %v2196_v36, %v4959_v22  ;;  %v2262_v4 = vsel %vm2230_vm4, %v2197_v63, %v4960_v24  ;;  %v8961_v36 = vld [vmem:[#allocation28_spill] sm:$0xff] }
 0x1de   : > { %v4968_v28 = vpop.permute.xlu1 %4967  ;;  %v2532_v17 = vpack.c.bf16 %v2262_v4, %v2261_v7  ;;  %v2133_v10 = vsel %vm2100_vm2, %v8783_v43, %v4244_v3  ;;  %v2199_v32 = vsel %vm2165_vm3, %v2134_v26, %v4405_v53  ;;  %v4250_v63 = vunpack.i.h.bf16 %v8961_v36 }
 0x1df   : > { %v2453_v41 = vsel %vm2230_vm4, %v2389_v51, %v4954_v31  ;;  %v2454_v52 = vsel %vm2230_vm4, %v2390_v55, %v4955_v50  ;;  %v4970_v23 = vunpack.i.h.bf16 %v4968_v28  ;;  %v4969_v59 = vunpack.i.l.bf16 %v4968_v28  ;;  %v8962_v28 = vld [vmem:[#allocation174_spill] sm:$0xff]  ;;  %v8963_v51 = vld [vmem:[#allocation175_spill] sm:$0xff] }
 0x1e0   : > { %v4963_v16 = vpop.permute.xlu0 %4962  ;;  %v2533_v11 = vpack.c.bf16 %v2454_v52, %v2453_v41  ;;  %v2198_v43 = vsel %vm2165_vm3, %v2133_v10, %v4404_v56  ;;  %v4249_v50 = vunpack.i.l.bf16 %v8961_v36  ;;  %v2522_v55 = vpack.c.bf16 %v8963_v51, %v8962_v28  ;;  %v8964_v41 = vld [vmem:[#allocation241_spill] sm:$0xff]  ;;  %v8968_v10 = vld [vmem:[#allocation82_spill] sm:$0xff]  ;;  %v8974_v51 = vld [vmem:[#allocation187_spill] sm:$0xff] }
 0x1e1   : > { %v4965_v0 = vunpack.i.h.bf16 %v4963_v16  ;;  %v4964_v34 = vunpack.i.l.bf16 %v4963_v16  ;;  %v4410_v52 = vunpack.i.h.bf16 %v8964_v41  ;;  %v8973_v28 = vld [vmem:[#allocation186_spill] sm:$0xff] }
 0x1e2   : > { %2975 = vmatprep.mubr.bf16.mxu0 %v2533_v11  ;;  %v4978_v20 = vpop.permute.xlu1 %4977  ;;  %v2136_v11 = vsel %vm2100_vm2, %v8797_v19, %v4250_v63  ;;  %v2135_v46 = vsel %vm2100_vm2, %v8796_v5, %v4249_v50  ;;  %v8970_v63 = vld [vmem:[#allocation179_spill] sm:$0xff]  ;;  %v8971_v50 = vld [vmem:[#allocation180_spill] sm:$0xff] }
 0x1e3   : > { %v2328_v40 = vsel %vm2100_vm2, %v8959_v48, %v4965_v0  ;;  %v2327_v1 = vsel %vm2100_vm2, %v8960_v45, %v4964_v34  ;;  %2976 = vmatmul.mubr.bf16.gmra.mxu0 %v2532_v17  ;;  %4036 = vmatmul.mubr.msk.bf16.gmra.mxu1 %vm2100_vm2, %v2516_v54  ;;  %v4980_v49 = vunpack.i.h.bf16 %v4978_v20  ;;  %v4979_v39 = vunpack.i.l.bf16 %v4978_v20  ;;  %v8965_v54 = vld [vmem:[#allocation181_spill] sm:$0xff]  ;;  %v8967_v34 = vld [vmem:[#allocation86_spill] sm:$0xff] }
 0x1e4   : > { %v4973_v61 = vpop.permute.xlu0 %4972  ;;  %4039 = vmatprep.mubr.msk.bf16.mxu1 %vm2100_vm2, %v2519_v12  ;;  %v2391_v7 = vsel %vm2165_vm3, %v2327_v1, %v4969_v59  ;;  %v2392_v4 = vsel %vm2165_vm3, %v2328_v40, %v4970_v23  ;;  %v4409_v17 = vunpack.i.l.bf16 %v8964_v41  ;;  %v2525_v53 = vpack.c.bf16 %v8966_v44, %v8965_v54 }
 0x1e5   : > { %v4975_v58 = vunpack.i.h.bf16 %v4973_v61  ;;  %v4974_v24 = vunpack.i.l.bf16 %v4973_v61  ;;  %v2263_v22 = vsel %vm2230_vm4, %v2198_v43, %v4979_v39  ;;  %v2264_v38 = vsel %vm2230_vm4, %v2199_v32, %v4980_v49  ;;  %v8969_v39 = vld [vmem:[#allocation27_spill] sm:$0xff] }
 0x1e6   : > { %v4988_v31 = vpop.permute.xlu1 %4987  ;;  %v2535_v3 = vpack.c.bf16 %v2264_v38, %v2263_v22  ;;  %v2200_v5 = vsel %vm2165_vm3, %v2135_v46, %v4409_v17  ;;  %v2201_v19 = vsel %vm2165_vm3, %v2136_v11, %v4410_v52  ;;  %v4255_v61 = vunpack.i.h.bf16 %v8969_v39 }
 0x1e7   : > { %v2455_v47 = vsel %vm2230_vm4, %v2391_v7, %v4974_v24  ;;  %v2456_v57 = vsel %vm2230_vm4, %v2392_v4, %v4975_v58  ;;  %v4990_v33 = vunpack.i.h.bf16 %v4988_v31  ;;  %v4989_v12 = vunpack.i.l.bf16 %v4988_v31  ;;  %v8972_v7 = vld [vmem:[#allocation244_spill] sm:$0xff] }
 0x1e8   : > { %v4983_v2 = vpop.permute.xlu0 %4982  ;;  %v2536_v6 = vpack.c.bf16 %v2456_v57, %v2455_v47  ;;  %v4254_v43 = vunpack.i.l.bf16 %v8969_v39  ;;  %v2528_v31 = vpack.c.bf16 %v8971_v50, %v8970_v63  ;;  %v4415_v4 = vunpack.i.h.bf16 %v8972_v7  ;;  %v8981_v50 = vld [vmem:[#allocation191_spill] sm:$0xff] }
 0x1e9   : > { %v4985_v56 = vunpack.i.h.bf16 %v4983_v2  ;;  %v4984_v16 = vunpack.i.l.bf16 %v4983_v2  ;;  %v4414_v47 = vunpack.i.l.bf16 %v8972_v7  ;;  %v2138_v17 = vsel %vm2100_vm2, %v8803_v62, %v4255_v61 }
 0x1ea   : > { %2983 = vmatprep.mubr.bf16.mxu0 %v2536_v6  ;;  %v4998_v0 = vpop.permute.xlu1 %4997  ;;  %v2137_v2 = vsel %vm2100_vm2, %v8802_v13, %v4254_v43  ;;  %v8978_v43 = vld [vmem:[#allocation184_spill] sm:$0xff] }
 0x1eb   : > { %v2330_v26 = vsel %vm2100_vm2, %v8967_v34, %v4985_v56  ;;  %v2329_v23 = vsel %vm2100_vm2, %v8968_v10, %v4984_v16  ;;  %2984 = vmatmul.mubr.bf16.gmra.mxu0 %v2535_v3  ;;  %4040 = vmatmul.mubr.msk.bf16.gmra.mxu1 %vm2100_vm2, %v2522_v55  ;;  %v5000_v59 = vunpack.i.h.bf16 %v4998_v0  ;;  %v4999_v20 = vunpack.i.l.bf16 %v4998_v0  ;;  %v8976_v16 = vld [vmem:[#allocation98_spill] sm:$0xff] }
 0x1ec   : > { %v4993_v48 = vpop.permute.xlu0 %4992  ;;  %4043 = vmatprep.mubr.msk.bf16.mxu1 %vm2100_vm2, %v2525_v53  ;;  %v2393_v58 = vsel %vm2165_vm3, %v2329_v23, %v4989_v12  ;;  %v2394_v24 = vsel %vm2165_vm3, %v2330_v26, %v4990_v33  ;;  %v2531_v55 = vpack.c.bf16 %v8974_v51, %v8973_v28  ;;  %v8975_v53 = vld [vmem:[#allocation101_spill] sm:$0xff]  ;;  %v2202_v13 = vsel %vm2165_vm3, %v2137_v2, %v4414_v47  ;;  %v8984_v2 = vld [vmem:[#allocation96_spill] sm:$0xff] }
 0x1ed   : > { %v4995_v40 = vunpack.i.h.bf16 %v4993_v48  ;;  %v4994_v45 = vunpack.i.l.bf16 %v4993_v48  ;;  %v2265_v1 = vsel %vm2230_vm4, %v2200_v5, %v4999_v20  ;;  %v2266_v49 = vsel %vm2230_vm4, %v2201_v19, %v5000_v59  ;;  %v8977_v20 = vld [vmem:[#allocation224_spill] sm:$0xff] }
 0x1ee   : > { %v5008_v32 = vpop.permute.xlu1 %5007  ;;  %v2538_v36 = vpack.c.bf16 %v2266_v49, %v2265_v1  ;;  %v2203_v0 = vsel %vm2165_vm3, %v2138_v17, %v4415_v4  ;;  %v4260_v48 = vunpack.i.h.bf16 %v8977_v20  ;;  %v4259_v5 = vunpack.i.l.bf16 %v8977_v20 }
 0x1ef   : > { %v2457_v22 = vsel %vm2230_vm4, %v2393_v58, %v4994_v45  ;;  %v2458_v38 = vsel %vm2230_vm4, %v2394_v24, %v4995_v40  ;;  %v5010_v6 = vunpack.i.h.bf16 %v5008_v32  ;;  %v5009_v54 = vunpack.i.l.bf16 %v5008_v32  ;;  %v8979_v32 = vld [vmem:[#allocation185_spill] sm:$0xff]  ;;  %v8980_v24 = vld [vmem:[#allocation243_spill] sm:$0xff] }
 0x1f0   : > { %v5003_v57 = vpop.permute.xlu0 %5002  ;;  %v2539_v3 = vpack.c.bf16 %v2458_v38, %v2457_v22  ;;  %v2534_v58 = vpack.c.bf16 %v8979_v32, %v8978_v43  ;;  %v4420_v22 = vunpack.i.h.bf16 %v8980_v24  ;;  %v4419_v38 = vunpack.i.l.bf16 %v8980_v24  ;;  %v8990_v24 = vld [vmem:[#allocation197_spill] sm:$0xff] }
 0x1f1   : > { %v5005_v41 = vunpack.i.h.bf16 %v5003_v57  ;;  %v5004_v52 = vunpack.i.l.bf16 %v5003_v57  ;;  %v2139_v28 = vsel %vm2100_vm2, %v8813_v15, %v4259_v5 }
 0x1f2   : > { %2991 = vmatprep.mubr.bf16.mxu0 %v2539_v3  ;;  %v5018_v44 = vpop.permute.xlu1 %5017  ;;  %v2140_v3 = vsel %vm2100_vm2, %v8814_v25, %v4260_v48  ;;  %v2204_v15 = vsel %vm2165_vm3, %v2139_v28, %v4419_v38  ;;  %v8992_v28 = vld [vmem:[#allocation112_spill] sm:$0xff] }
 0x1f3   : > { %v2332_v56 = vsel %vm2100_vm2, %v8975_v53, %v5005_v41  ;;  %v2331_v11 = vsel %vm2100_vm2, %v8976_v16, %v5004_v52  ;;  %v7658_v46 = vpop.f32.mrf.mxu0  ;;  %2992 = vmatmul.mubr.bf16.gmra.mxu0 %v2538_v36  ;;  %4044 = vmatmul.mubr.msk.bf16.gmra.mxu1 %vm2100_vm2, %v2528_v31  ;;  %v5020_v33 = vunpack.i.h.bf16 %v5018_v44  ;;  %v5019_v62 = vunpack.i.l.bf16 %v5018_v44  ;;  %v8982_v31 = vld [vmem:[#allocation192_spill] sm:$0xff]  ;;  %v8983_v52 = vld [vmem:[#allocation97_spill] sm:$0xff] }
 0x1f4   : > { %v5013_v12 = vpop.permute.xlu0 %5012  ;;  %4047 = vmatprep.mubr.msk.bf16.mxu1 %vm2100_vm2, %v2531_v55  ;;  %v2395_v40 = vsel %vm2165_vm3, %v2331_v11, %v5009_v54  ;;  %v2396_v45 = vsel %vm2165_vm3, %v2332_v56, %v5010_v6  ;;  %v2537_v7 = vpack.c.bf16 %v8982_v31, %v8981_v50  ;;  %v2205_v56 = vsel %vm2165_vm3, %v2140_v3, %v4420_v22 }
 0x1f5   : > { %v5015_v34 = vunpack.i.h.bf16 %v5013_v12  ;;  %v5014_v26 = vunpack.i.l.bf16 %v5013_v12  ;;  %v2859_v10 = vpop.f32.mrf.mxu0  ;;  %v2267_v23 = vsel %vm2230_vm4, %v2202_v13, %v5019_v62  ;;  %v2268_v59 = vsel %vm2230_vm4, %v2203_v0, %v5020_v33  ;;  %v8985_v13 = vld [vmem:[#allocation225_spill] sm:$0xff] }
 0x1f6   : > { %v5028_v19 = vpop.permute.xlu1 %5027  ;;  %v2541_v61 = vpack.c.bf16 %v2268_v59, %v2267_v23  ;;  %v4265_v0 = vunpack.i.h.bf16 %v8985_v13 }
 0x1f7   : > { %v7670_v1 = vpop.f32.mrf.mxu0  ;;  %v2459_v49 = vsel %vm2230_vm4, %v2395_v40, %v5014_v26  ;;  %v2460_v39 = vsel %vm2230_vm4, %v2396_v45, %v5015_v34  ;;  %v5030_v51 = vunpack.i.h.bf16 %v5028_v19  ;;  %v5029_v55 = vunpack.i.l.bf16 %v5028_v19  ;;  %v8986_v19 = vld [vmem:[#allocation189_spill] sm:$0xff]  ;;  %v8987_v40 = vld [vmem:[#allocation190_spill] sm:$0xff] }
 0x1f8   : > { %v5023_v36 = vpop.permute.xlu0 %5022  ;;  %v2542_v63 = vpack.c.bf16 %v2460_v39, %v2459_v49  ;;  %v4264_v34 = vunpack.i.l.bf16 %v8985_v13  ;;  %v2540_v45 = vpack.c.bf16 %v8987_v40, %v8986_v19  ;;  %v8988_v49 = vld [vmem:[#allocation246_spill] sm:$0xff]  ;;  %v2142_v50 = vsel %vm2100_vm2, %v8820_v27, %v4265_v0 }
 0x1f9   : > { %v5025_v4 = vunpack.i.h.bf16 %v5023_v36  ;;  %v5024_v47 = vunpack.i.l.bf16 %v5023_v36  ;;  %v2862_v57 = vpop.f32.mrf.mxu0  ;;  %v4425_v39 = vunpack.i.h.bf16 %v8988_v49 }
 0x1fa   : > { %2999 = vmatprep.mubr.bf16.mxu0 %v2542_v63  ;;  %v5038_v41 = vpop.permute.xlu1 %5037  ;;  %v2141_v31 = vsel %vm2100_vm2, %v8819_v18, %v4264_v34  ;;  %v8991_v57 = vld [vmem:[#allocation113_spill] sm:$0xff] }
 0x1fb   : > { %v2334_v17 = vsel %vm2100_vm2, %v8983_v52, %v5025_v4  ;;  %v2333_v6 = vsel %vm2100_vm2, %v8984_v2, %v5024_v47  ;;  %v7688_v54 = vpop.f32.mrf.mxu0  ;;  %3000 = vmatmul.mubr.bf16.gmra.mxu0 %v2541_v61  ;;  %4048 = vmatmul.mubr.msk.bf16.gmra.mxu1 %vm2100_vm2, %v2534_v58  ;;  %v5040_v44 = vunpack.i.h.bf16 %v5038_v41  ;;  %v5039_v25 = vunpack.i.l.bf16 %v5038_v41  ;;  %v8989_v58 = vld [vmem:[#allocation196_spill] sm:$0xff] }
 0x1fc   : > { %v5033_v53 = vpop.permute.xlu0 %5032  ;;  %4051 = vmatprep.mubr.msk.bf16.mxu1 %vm2100_vm2, %v2537_v7  ;;  %v2397_v10 = vsel %vm2165_vm3, %v2333_v6, %v5029_v55  ;;  %v2398_v23 = vsel %vm2165_vm3, %v2334_v17, %v5030_v51  ;;  %v4424_v61 = vunpack.i.l.bf16 %v8988_v49  ;;  %v2543_v22 = vpack.c.bf16 %v8990_v24, %v8989_v58  ;;  %v8998_v49 = vld [vmem:[#allocation202_spill] sm:$0xff] }
 0x1fd   : > { %v5035_v16 = vunpack.i.h.bf16 %v5033_v53  ;;  %v5034_v11 = vunpack.i.l.bf16 %v5033_v53  ;;  %v2867_v33 = vpop.f32.mrf.mxu0  ;;  %v2269_v62 = vsel %vm2230_vm4, %v2204_v15, %v5039_v25  ;;  %v2270_v12 = vsel %vm2230_vm4, %v2205_v56, %v5040_v44  ;;  %v8993_v15 = vld [vmem:[#allocation22_spill] sm:$0xff] }
 0x1fe   : > { %v5048_v26 = vpop.permute.xlu1 %5047  ;;  %v2544_v5 = vpack.c.bf16 %v2270_v12, %v2269_v62  ;;  %v2206_v18 = vsel %vm2165_vm3, %v2141_v31, %v4424_v61  ;;  %v2207_v17 = vsel %vm2165_vm3, %v2142_v50, %v4425_v39  ;;  %v4270_v56 = vunpack.i.h.bf16 %v8993_v15  ;;  %v9000_v31 = vld [vmem:[#allocation105_spill] sm:$0xff] }
 0x1ff   : > { %v7700_v59 = vpop.f32.mrf.mxu0  ;;  %v2461_v20 = vsel %vm2230_vm4, %v2397_v10, %v5034_v11  ;;  %v2462_v48 = vsel %vm2230_vm4, %v2398_v23, %v5035_v16  ;;  %v5050_v7 = vunpack.i.h.bf16 %v5048_v26  ;;  %v5049_v4 = vunpack.i.l.bf16 %v5048_v26  ;;  %v8994_v26 = vld [vmem:[#allocation194_spill] sm:$0xff]  ;;  %v8995_v10 = vld [vmem:[#allocation195_spill] sm:$0xff] }
 0x200   : > { %v5043_v43 = vpop.permute.xlu0 %5042  ;;  %v2545_v32 = vpack.c.bf16 %v2462_v48, %v2461_v20  ;;  %v4269_v16 = vunpack.i.l.bf16 %v8993_v15  ;;  %v2546_v23 = vpack.c.bf16 %v8995_v10, %v8994_v26  ;;  %v8996_v20 = vld [vmem:[#allocation245_spill] sm:$0xff]  ;;  %v2144_v58 = vsel %vm2100_vm2, %v8834_v42, %v4270_v56 }
 0x201   : > { %v5045_v38 = vunpack.i.h.bf16 %v5043_v43  ;;  %v5044_v36 = vunpack.i.l.bf16 %v5043_v43  ;;  %v2870_v63 = vpop.f32.mrf.mxu0  ;;  %v4430_v48 = vunpack.i.h.bf16 %v8996_v20  ;;  %v9004_v26 = vld [vmem:[#allocation249_spill] sm:$0xff] }
 0x202   : > { %3007 = vmatprep.mubr.bf16.mxu0 %v2545_v32  ;;  %v5058_v47 = vpop.permute.xlu1 %5057  ;;  %v2143_v24 = vsel %vm2100_vm2, %v8833_v8, %v4269_v16  ;;  %v8999_v63 = vld [vmem:[#allocation108_spill] sm:$0xff]  ;;  %v4435_v10 = vunpack.i.h.bf16 %v9004_v26 }
 0x203   : > { %v2336_v3 = vsel %vm2100_vm2, %v8991_v57, %v5045_v38  ;;  %v2335_v51 = vsel %vm2100_vm2, %v8992_v28, %v5044_v36  ;;  %v7718_v55 = vpop.f32.mrf.mxu0  ;;  %3008 = vmatmul.mubr.bf16.gmra.mxu0 %v2544_v5  ;;  %4052 = vmatmul.mubr.msk.bf16.gmra.mxu1 %vm2100_vm2, %v2540_v45  ;;  %v5060_v41 = vunpack.i.h.bf16 %v5058_v47  ;;  %v5059_v27 = vunpack.i.l.bf16 %v5058_v47  ;;  %v8997_v45 = vld [vmem:[#allocation201_spill] sm:$0xff] }
 0x204   : > { %v5053_v52 = vpop.permute.xlu0 %5052  ;;  %4055 = vmatprep.mubr.msk.bf16.mxu1 %vm2100_vm2, %v2543_v22  ;;  %v2399_v33 = vsel %vm2165_vm3, %v2335_v51, %v5049_v4  ;;  %v2400_v62 = vsel %vm2165_vm3, %v2336_v3, %v5050_v7  ;;  %v4429_v5 = vunpack.i.l.bf16 %v8996_v20  ;;  %v2549_v39 = vpack.c.bf16 %v8998_v49, %v8997_v45 }
 0x205   : > { %v5055_v2 = vunpack.i.h.bf16 %v5053_v52  ;;  %v5054_v6 = vunpack.i.l.bf16 %v5053_v52  ;;  %v2875_v44 = vpop.f32.mrf.mxu0  ;;  %v2271_v25 = vsel %vm2230_vm4, %v2206_v18, %v5059_v27  ;;  %v2272_v53 = vsel %vm2230_vm4, %v2207_v17, %v5060_v41 }
 0x206   : > { %v5068_v11 = vpop.permute.xlu1 %5067  ;;  %v2547_v34 = vpack.c.bf16 %v2272_v53, %v2271_v25  ;;  %v2208_v3 = vsel %vm2165_vm3, %v2143_v24, %v4429_v5  ;;  %v2209_v28 = vsel %vm2165_vm3, %v2144_v58, %v4430_v48  ;;  %v9005_v5 = vld [vmem:[#allocation206_spill] sm:$0xff] }
 0x207   : > { %v7730_v12 = vpop.f32.mrf.mxu0  ;;  %v2463_v13 = vsel %vm2230_vm4, %v2399_v33, %v5054_v6  ;;  %v2464_v0 = vsel %vm2230_vm4, %v2400_v62, %v5055_v2  ;;  %v5070_v22 = vunpack.i.h.bf16 %v5068_v11  ;;  %v5069_v38 = vunpack.i.l.bf16 %v5068_v11  ;;  %v9001_v2 = vld [vmem:[#allocation25_spill] sm:$0xff] }
 0x208   : > { %v5063_v19 = vpop.permute.xlu0 %5062  ;;  %v2548_v40 = vpack.c.bf16 %v2464_v0, %v2463_v13  ;;  %v4275_v6 = vunpack.i.h.bf16 %v9001_v2  ;;  %v4274_v44 = vunpack.i.l.bf16 %v9001_v2  ;;  %v9002_v13 = vld [vmem:[#allocation199_spill] sm:$0xff]  ;;  %v9003_v0 = vld [vmem:[#allocation200_spill] sm:$0xff] }
 0x209   : > { %v5065_v61 = vunpack.i.h.bf16 %v5063_v19  ;;  %v5064_v43 = vunpack.i.l.bf16 %v5063_v19  ;;  %v2878_v32 = vpop.f32.mrf.mxu0  ;;  %v9006_v19 = vld [vmem:[#allocation207_spill] sm:$0xff] }
 0x20a   : > { %3015 = vmatprep.mubr.bf16.mxu0 %v2548_v40  ;;  %v5078_v36 = vpop.permute.xlu1 %5077  ;;  %v2555_v40 = vpack.c.bf16 %v9006_v19, %v9005_v5  ;;  %v2145_v32 = vsel %vm2100_vm2, %v8839_v14, %v4274_v44 }
 0x20b   : > { %v2338_v50 = vsel %vm2100_vm2, %v8999_v63, %v5065_v61  ;;  %v2337_v7 = vsel %vm2100_vm2, %v9000_v31, %v5064_v43  ;;  %v7748_v4 = vpop.f32.mrf.mxu0  ;;  %3016 = vmatmul.mubr.bf16.gmra.mxu0 %v2547_v34  ;;  %v7750_v47 = vpop.f32.mrf.mxu1  ;;  %4056 = vmatmul.mubr.msk.bf16.gmra.mxu1 %vm2100_vm2, %v2546_v23  ;;  %v5080_v42 = vunpack.i.h.bf16 %v5078_v36  ;;  %v5079_v57 = vunpack.i.l.bf16 %v5078_v36  ;;  %v9008_v63 = vld [vmem:[#allocation125_spill] sm:$0xff] }
 0x20c   : > { %v5073_v8 = vpop.permute.xlu0 %5072  ;;  %4059 = vmatprep.mubr.msk.bf16.mxu1 %vm2100_vm2, %v2549_v39  ;;  %v2401_v53 = vsel %vm2165_vm3, %v2337_v7, %v5069_v38  ;;  %v2402_v15 = vsel %vm2165_vm3, %v2338_v50, %v5070_v22  ;;  %v2552_v34 = vpack.c.bf16 %v9003_v0, %v9002_v13  ;;  %v4434_v23 = vunpack.i.l.bf16 %v9004_v26  ;;  %v9007_v38 = vld [vmem:[#allocation126_spill] sm:$0xff] }
 0x20d   : > { %v5075_v51 = vunpack.i.h.bf16 %v5073_v8  ;;  %v5074_v41 = vunpack.i.l.bf16 %v5073_v8  ;;  %v2883_v27 = vpop.f32.mrf.mxu0  ;;  %v3051_v52 = vpop.f32.mrf.mxu1  ;;  %v2273_v18 = vsel %vm2230_vm4, %v2208_v3, %v5079_v57  ;;  %v2274_v17 = vsel %vm2230_vm4, %v2209_v28, %v5080_v42 }
 0x20e   : > { %v5088_v25 = vpop.permute.xlu1 %5087  ;;  %v2550_v62 = vpack.c.bf16 %v2274_v17, %v2273_v18  ;;  %v2146_v43 = vsel %vm2100_vm2, %v8840_v30, %v4275_v6  ;;  %v2210_v14 = vsel %vm2165_vm3, %v2145_v32, %v4434_v23  ;;  %v9014_v23 = vld [vmem:[#allocation210_spill] sm:$0xff] }
 0x20f   : > { %v7762_v56 = vpop.f32.mrf.mxu0  ;;  %v7764_v16 = vpop.f32.mrf.mxu1  ;;  %v2465_v11 = vsel %vm2230_vm4, %v2401_v53, %v5074_v41  ;;  %v2466_v33 = vsel %vm2230_vm4, %v2402_v15, %v5075_v51  ;;  %v5090_v58 = vunpack.i.h.bf16 %v5088_v25  ;;  %v5089_v24 = vunpack.i.l.bf16 %v5088_v25  ;;  %v9009_v51 = vld [vmem:[#allocation226_spill] sm:$0xff]  ;;  %v9010_v53 = vld [vmem:[#allocation204_spill] sm:$0xff]  ;;  %v9011_v15 = vld [vmem:[#allocation205_spill] sm:$0xff] }
 0x210   : > { %v5083_v20 = vpop.permute.xlu0 %5082  ;;  %v2551_v48 = vpack.c.bf16 %v2466_v33, %v2465_v11  ;;  %v2211_v30 = vsel %vm2165_vm3, %v2146_v43, %v4435_v10  ;;  %v4280_v41 = vunpack.i.h.bf16 %v9009_v51  ;;  %v4279_v27 = vunpack.i.l.bf16 %v9009_v51  ;;  %v9012_v33 = vld [vmem:[#allocation45_spill] sm:$0xff]  ;;  %v9013_v10 = vld [vmem:[#allocation131_spill] sm:$0xff] }
 0x211   : > { %v5085_v45 = vunpack.i.h.bf16 %v5083_v20  ;;  %v5084_v49 = vunpack.i.l.bf16 %v5083_v20  ;;  %v2886_v39 = vpop.f32.mrf.mxu0  ;;  %v3054_v61 = vpop.f32.mrf.mxu1  ;;  %v2558_v11 = vpack.c.bf16 %v9011_v15, %v9010_v53  ;;  %v4439_v13 = vunpack.i.l.bf16 %v9012_v33  ;;  %v9015_v43 = vld [vmem:[#allocation117_spill] sm:$0xff] }
 0x212   : > { %3023 = vmatprep.mubr.bf16.mxu0 %v2551_v48  ;;  %v5098_v22 = vpop.permute.xlu1 %5097  ;;  %v2561_v20 = vpack.c.bf16 %v9014_v23, %v9013_v10  ;;  %v2148_v19 = vsel %vm2100_vm2, %v8854_v37, %v4280_v41  ;;  %v9025_v10 = vld [vmem:[#allocation256_spill] sm:$0xff] }
 0x213   : > { %v2340_v36 = vsel %vm2100_vm2, %v9007_v38, %v5085_v45  ;;  %v2339_v50 = vsel %vm2100_vm2, %v9008_v63, %v5084_v49  ;;  %3024 = vmatmul.mubr.bf16.gmra.mxu0 %v2550_v62  ;;  %4060 = vmatmul.mubr.msk.bf16.gmra.mxu1 %vm2100_vm2, %v2552_v34  ;;  %v5100_v31 = vunpack.i.h.bf16 %v5098_v22  ;;  %v5099_v7 = vunpack.i.l.bf16 %v5098_v22 }
 0x214   : > { %v5093_v42 = vpop.permute.xlu0 %5092  ;;  %4063 = vmatprep.mubr.msk.bf16.mxu1 %vm2100_vm2, %v2555_v40  ;;  %v2403_v17 = vsel %vm2165_vm3, %v2339_v50, %v5089_v24  ;;  %v2404_v2 = vsel %vm2165_vm3, %v2340_v36, %v5090_v58  ;;  %v4440_v62 = vunpack.i.h.bf16 %v9012_v33  ;;  %v2147_v40 = vsel %vm2100_vm2, %v8853_v29, %v4279_v27  ;;  %v9016_v58 = vld [vmem:[#allocation116_spill] sm:$0xff] }
 0x215   : > { %v5095_v57 = vunpack.i.h.bf16 %v5093_v42  ;;  %v5094_v8 = vunpack.i.l.bf16 %v5093_v42  ;;  %v2275_v3 = vsel %vm2230_vm4, %v2210_v14, %v5099_v7  ;;  %v2276_v28 = vsel %vm2230_vm4, %v2211_v30, %v5100_v31  ;;  %v9017_v27 = vld [vmem:[#allocation208_spill] sm:$0xff] }
 0x216   : > { %v7790_v52 = vpop.f32.mrf.mxu0  ;;  %v5108_v18 = vpop.permute.xlu1 %5107  ;;  %v2553_v25 = vpack.c.bf16 %v2276_v28, %v2275_v3  ;;  %v2212_v63 = vsel %vm2165_vm3, %v2147_v40, %v4439_v13  ;;  %v2213_v50 = vsel %vm2165_vm3, %v2148_v19, %v4440_v62  ;;  %v9022_v33 = vld [vmem:[#allocation212_spill] sm:$0xff]  ;;  %v2027_v23 = vrot.slane %v9025_v10, 2 }
 0x217   : > { %v2467_v6 = vsel %vm2230_vm4, %v2403_v17, %v5094_v8  ;;  %v2468_v44 = vsel %vm2230_vm4, %v2404_v2, %v5095_v57  ;;  %v5110_v45 = vunpack.i.h.bf16 %v5108_v18  ;;  %v5109_v49 = vunpack.i.l.bf16 %v5108_v18  ;;  %v9018_v18 = vld [vmem:[#allocation209_spill] sm:$0xff] }
 0x218   : > { %v5103_v0 = vpop.permute.xlu0 %5102  ;;  %v2891_v34 = vpop.f32.mrf.mxu0  ;;  %v2554_v26 = vpack.c.bf16 %v2468_v44, %v2467_v6  ;;  %v2564_v17 = vpack.c.bf16 %v9018_v18, %v9017_v27  ;;  %v9019_v6 = vld [vmem:[#allocation213_spill] sm:$0xff]  ;;  %v9020_v44 = vld [vmem:[#allocation214_spill] sm:$0xff] }
 0x219   : > { %v5105_v48 = vunpack.i.h.bf16 %v5103_v0  ;;  %v5104_v5 = vunpack.i.l.bf16 %v5103_v0  ;;  %v9023_v0 = vld [vmem:[#allocation3_spill] sm:$0xff]  ;;  %v9024_v34 = vld [vmem:[#allocation2_spill] sm:$0xff] }
 0x21a   : > { %v7806_v39 = vpop.f32.mrf.mxu0  ;;  %3031 = vmatprep.mubr.bf16.mxu0 %v2554_v26  ;;  %v5118_v61 = vpop.permute.xlu1 %5117  ;;  %v2573_v26 = vpack.c.bf16 %v9024_v34, %v9023_v0 }
 0x21b   : > { %v2342_v32 = vsel %vm2100_vm2, %v9015_v43, %v5105_v48  ;;  %v2341_v24 = vsel %vm2100_vm2, %v9016_v58, %v5104_v5  ;;  %3032 = vmatmul.mubr.bf16.gmra.mxu0 %v2553_v25  ;;  %v7812_v22 = vpop.f32.mrf.mxu1  ;;  %4064 = vmatmul.mubr.msk.bf16.gmra.mxu1 %vm2100_vm2, %v2558_v11  ;;  %v5120_v37 = vunpack.i.h.bf16 %v5118_v61  ;;  %v5119_v38 = vunpack.i.l.bf16 %v5118_v61  ;;  %v9021_v11 = vld [vmem:[#allocation211_spill] sm:$0xff] }
 0x21c   : > { %v5113_v29 = vpop.permute.xlu0 %5112  ;;  %v2894_v36 = vpop.f32.mrf.mxu0  ;;  %4067 = vmatprep.mubr.msk.bf16.mxu1 %vm2100_vm2, %v2561_v20  ;;  %v2405_v57 = vsel %vm2165_vm3, %v2341_v24, %v5109_v49  ;;  %v2406_v8 = vsel %vm2165_vm3, %v2342_v32, %v5110_v45  ;;  %v2567_v25 = vpack.c.bf16 %v9020_v44, %v9019_v6  ;;  %v2570_v62 = vpack.c.bf16 %v9022_v33, %v9021_v11  ;;  %v9026_v20 = vld [vmem:[#allocation255_spill] sm:$0xff] }
 0x21d   : > { %v5115_v31 = vunpack.i.h.bf16 %v5113_v29  ;;  %v5114_v7 = vunpack.i.l.bf16 %v5113_v29  ;;  %v3059_v42 = vpop.f32.mrf.mxu1  ;;  %v2277_v14 = vsel %vm2230_vm4, %v2212_v63, %v5119_v38  ;;  %v2278_v30 = vsel %vm2230_vm4, %v2213_v50, %v5120_v37  ;;  %v9027_v37 = vld [vmem:[#allocation5_spill] sm:$0xff] }
 0x21e   : > { %v2556_v41 = vpack.c.bf16 %v2278_v30, %v2277_v14  ;;  %v2028_v48 = vrot.slane %v9026_v20, 2  ;;  %v2030_v5 = vrot.slane %v6782_v21, 2  ;;  %v2576_v58 = vpack.c.bf16 %v6887_v35, %v6884_v9 }
 0x21f   : > { %v7822_v3 = vpop.f32.mrf.mxu1  ;;  %v2469_v28 = vsel %vm2230_vm4, %v2405_v57, %v5114_v7  ;;  %v2470_v51 = vsel %vm2230_vm4, %v2406_v8, %v5115_v31  ;;  %v2032_v24 = vrot.slane %v6862_v60, 2  ;;  %v9028_v38 = vunpack.c.l.bf16 %v9027_v37 }
 0x220   : > { %v2557_v2 = vpack.c.bf16 %v2470_v51, %v2469_v28  ;;  %v2029_v61 = vsel %vm821_vm1, %v2027_v23, %v2028_v48  ;;  %v2031_v43 = vsel %vm821_vm1, %v2028_v48, %v2030_v5 }
 0x221   : > { %v3062_v53 = vpop.f32.mrf.mxu1  ;;  %v2579_v21 = vpack.c.bf16 %v2031_v43, %v2029_v61  ;;  %v2034_v29 = vrot.slane %v9028_v38, 2  ;;  %v2033_v63 = vsel %vm821_vm1, %v2030_v5, %v2032_v24 }
 0x222   : > { %3039 = vmatprep.mubr.bf16.mxu0 %v2557_v2 }
 0x223   : > { %3040 = vmatmul.mubr.bf16.gmra.mxu0 %v2556_v41  ;;  %4068 = vmatmul.mubr.msk.bf16.gmra.mxu1 %vm2100_vm2, %v2564_v17  ;;  %v2035_v50 = vsel %vm821_vm1, %v2032_v24, %v2034_v29 }
 0x224   : > { %4071 = vmatprep.mubr.msk.bf16.mxu1 %vm2100_vm2, %v2567_v25  ;;  %v2582_v7 = vpack.c.bf16 %v2035_v50, %v2033_v63 }
 0x226   : > { %v7832_v15 = vpop.f32.mrf.mxu0 }
 0x228   : > { %v2899_v13 = vpop.f32.mrf.mxu0 }
 0x22a   : > { %v7841_v19 = vpop.f32.mrf.mxu0 }
 0x22b   : > { %v7843_v40 = vpop.f32.mrf.mxu1  ;;  %4072 = vmatmul.mubr.msk.bf16.gmra.mxu1 %vm2100_vm2, %v2570_v62 }
 0x22c   : > { %v2902_v45 = vpop.f32.mrf.mxu0  ;;  %4075 = vmatprep.mubr.msk.bf16.mxu1 %vm2100_vm2, %v2573_v26 }
 0x22d   : > { %v3067_v49 = vpop.f32.mrf.mxu1 }
 0x22f   : > { %v7849_v32 = vpop.f32.mrf.mxu1 }
 0x231   : > { %v3070_v36 = vpop.f32.mrf.mxu1 }
 0x233   : > { %4076 = vmatmul.mubr.msk.bf16.gmra.mxu1 %vm2100_vm2, %v2576_v58 }
 0x234   : > { %4079 = vmatprep.mubr.msk.bf16.mxu1 %vm2100_vm2, %v2579_v21 }
 0x236   : > { %v7860_v31 = vpop.f32.mrf.mxu0 }
 0x238   : > { %v2907_v42 = vpop.f32.mrf.mxu0 }
 0x23a   : > { %v7862_v9 = vpop.f32.mrf.mxu0 }
 0x23b   : > { %v7864_v35 = vpop.f32.mrf.mxu1  ;;  %4080 = vmatmul.mubr.msk.bf16.gmra.mxu1 %vm2100_vm2, %v2582_v7 }
 0x23c   : > { %v2910_v60 = vpop.f32.mrf.mxu0 }
 0x23d   : > { %v3075_v14 = vpop.f32.mrf.mxu1 }
 0x23f   : > { %v7867_v30 = vpop.f32.mrf.mxu1 }
 0x241   : > { %v3078_v57 = vpop.f32.mrf.mxu1 }
 0x246   : > { %v7869_v8 = vpop.f32.mrf.mxu0 }
 0x248   : > { %v2915_v28 = vpop.f32.mrf.mxu0 }
 0x24a   : > { %v7871_v51 = vpop.f32.mrf.mxu0 }
 0x24b   : > { %v7873_v41 = vpop.f32.mrf.mxu1 }
 0x24c   : > { %v2918_v27 = vpop.f32.mrf.mxu0 }
 0x24d   : > { %v3083_v18 = vpop.f32.mrf.mxu1 }
 0x24f   : > { %v7875_v17 = vpop.f32.mrf.mxu1 }
 0x251   : > { %v3086_v2 = vpop.f32.mrf.mxu1 }
 0x256   : > { %v7877_v6 = vpop.f32.mrf.mxu0 }
 0x258   : > { %v2923_v44 = vpop.f32.mrf.mxu0 }
 0x25a   : > { %v7879_v25 = vpop.f32.mrf.mxu0 }
 0x25b   : > { %v7881_v53 = vpop.f32.mrf.mxu1 }
 0x25c   : > { %v2926_v11 = vpop.f32.mrf.mxu0 }
 0x25d   : > { %v3091_v33 = vpop.f32.mrf.mxu1 }
 0x25f   : > { %v7883_v62 = vpop.f32.mrf.mxu1 }
 0x261   : > { %v3094_v13 = vpop.f32.mrf.mxu1 }
 0x266   : > { %v7885_v0 = vpop.f32.mrf.mxu0 }
 0x268   : > { %v2931_v34 = vpop.f32.mrf.mxu0 }
 0x26a   : > { %v7887_v26 = vpop.f32.mrf.mxu0 }
 0x26b   : > { %v7889_v10 = vpop.f32.mrf.mxu1 }
 0x26c   : > { %v2934_v23 = vpop.f32.mrf.mxu0 }
 0x26d   : > { %v3099_v20 = vpop.f32.mrf.mxu1 }
 0x26f   : > { %v7891_v48 = vpop.f32.mrf.mxu1 }
 0x271   : > { %v3102_v5 = vpop.f32.mrf.mxu1 }
 0x276   : > { %v7893_v45 = vpop.f32.mrf.mxu0 }
 0x278   : > { %v2939_v49 = vpop.f32.mrf.mxu0 }
 0x27a   : > { %v7895_v61 = vpop.f32.mrf.mxu0 }
 0x27b   : > { %v7897_v43 = vpop.f32.mrf.mxu1 }
 0x27c   : > { %v2942_v58 = vpop.f32.mrf.mxu0 }
 0x27d   : > { %v3107_v21 = vpop.f32.mrf.mxu1 }
 0x27f   : > { %v7899_v24 = vpop.f32.mrf.mxu1 }
 0x281   : > { %v3110_v37 = vpop.f32.mrf.mxu1 }
 0x283   : > { %v7901_v38 = vpop.f32.mrf.mxu0  ;;  %v4021_v29 = vpop.f32.mrf.mxu1 }
 0x284   : > { %v3155_v36 = vadd.f32 %v4021_v29, %v7688_v54 }
 0x285   : > { %v2947_v63 = vpop.f32.mrf.mxu0  ;;  %v3146_v50 = vpop.f32.mrf.mxu1 }
 0x286   : > { %3403 = vst [vmem:[%s5237_s26 + $0x10] sm:$0xff] %v3155_v36  ;;  %v3147_v7 = vadd.f32 %v3146_v50, %v7658_v46  ;;  %v3536_v34 = vmul.f32 %v3155_v36, %v3155_v36 }
 0x287   : > { %v7906_v42 = vpop.f32.mrf.mxu0  ;;  %v4022_v60 = vpop.f32.mrf.mxu1 }
 0x288   : > { %3401 = vst [vmem:[%s5237_s26] sm:$0xff] %v3147_v7  ;;  %v3158_v14 = vadd.f32 %v4022_v60, %v7700_v59  ;;  %v3534_v2 = vmul.f32 %v3147_v7, %v3147_v7 }
 0x289   : > { %v2950_v57 = vpop.f32.mrf.mxu0  ;;  %v3149_v28 = vpop.f32.mrf.mxu1 }
 0x28a   : > { %3404 = vst [vmem:[%s5237_s26 + $0x18] sm:$0xff] %v3158_v14  ;;  %v3150_v27 = vadd.f32 %v3149_v28, %v7670_v1  ;;  %v3537_v49 = vmul.f32 %v3158_v14, %v3158_v14 }
 0x28b   : > { %v7912_v18 = vpop.f32.mrf.mxu0  ;;  %v4025_v54 = vpop.f32.mrf.mxu1 }
 0x28c   : > { %3402 = vst [vmem:[%s5237_s26 + $0x8] sm:$0xff] %v3150_v27  ;;  %v3465_v44 = vadd.f32 %v3150_v27, %v3147_v7  ;;  %v3535_v46 = vmul.f32 %v3150_v27, %v3150_v27  ;;  %v3171_v11 = vadd.f32 %v4025_v54, %v7748_v4 }
 0x28d   : > { %v2955_v33 = vpop.f32.mrf.mxu0  ;;  %v3162_v13 = vpop.f32.mrf.mxu1 }
 0x28e   : > { %v3466_v59 = vadd.f32 %v3465_v44, %v3155_v36  ;;  %v3598_v23 = vadd.f32 %v3535_v46, %v3534_v2  ;;  %3407 = vst [vmem:[%s5237_s26 + $0x30] sm:$0xff] %v3171_v11  ;;  %v3163_v20 = vadd.f32 %v3162_v13, %v7718_v55  ;;  %v3540_v2 = vmul.f32 %v3171_v11, %v3171_v11 }
 0x28f   : > { %v7918_v1 = vpop.f32.mrf.mxu0  ;;  %v4026_v5 = vpop.f32.mrf.mxu1 }
 0x290   : > { %v3599_v58 = vadd.f32 %v3598_v23, %v3536_v34  ;;  %3405 = vst [vmem:[%s5237_s26 + $0x20] sm:$0xff] %v3163_v20  ;;  %v3467_v21 = vadd.f32 %v3466_v59, %v3158_v14  ;;  %v3174_v37 = vadd.f32 %v4026_v5, %v7762_v56  ;;  %v3538_v50 = vmul.f32 %v3163_v20, %v3163_v20 }
 0x291   : > { %v2958_v4 = vpop.f32.mrf.mxu0  ;;  %v3165_v29 = vpop.f32.mrf.mxu1 }
 0x292   : > { %v3468_v63 = vadd.f32 %v3467_v21, %v3163_v20  ;;  %v3600_v36 = vadd.f32 %v3599_v58, %v3537_v49  ;;  %3408 = vst [vmem:[%s5237_s26 + $0x38] sm:$0xff] %v3174_v37  ;;  %v3166_v7 = vadd.f32 %v3165_v29, %v7730_v12  ;;  %v3541_v34 = vmul.f32 %v3174_v37, %v3174_v37 }
 0x293   : > { %v7924_v55 = vpop.f32.mrf.mxu0  ;;  %v4029_v60 = vpop.f32.mrf.mxu1 }
 0x294   : > { %v3601_v57 = vadd.f32 %v3600_v36, %v3538_v50  ;;  %3406 = vst [vmem:[%s5237_s26 + $0x28] sm:$0xff] %v3166_v7  ;;  %v3469_v28 = vadd.f32 %v3468_v63, %v3166_v7  ;;  %v3539_v27 = vmul.f32 %v3166_v7, %v3166_v7  ;;  %v3187_v14 = vadd.f32 %v4029_v60, %v7832_v15 }
 0x295   : > { %v2963_v56 = vpop.f32.mrf.mxu0  ;;  %v3178_v54 = vpop.f32.mrf.mxu1 }
 0x296   : > { %v3470_v44 = vadd.f32 %v3469_v28, %v3171_v11  ;;  %v3602_v46 = vadd.f32 %v3601_v57, %v3539_v27  ;;  %3411 = vst [vmem:[%s5237_s26 + $0x50] sm:$0xff] %v3187_v14  ;;  %v3179_v33 = vadd.f32 %v3178_v54, %v7790_v52  ;;  %v3544_v7 = vmul.f32 %v3187_v14, %v3187_v14 }
 0x297   : > { %v7930_v12 = vpop.f32.mrf.mxu0  ;;  %v4030_v13 = vpop.f32.mrf.mxu1 }
 0x298   : > { %v3603_v59 = vadd.f32 %v3602_v46, %v3540_v2  ;;  %3409 = vst [vmem:[%s5237_s26 + $0x40] sm:$0xff] %v3179_v33  ;;  %v3471_v23 = vadd.f32 %v3470_v44, %v3174_v37  ;;  %v3190_v20 = vadd.f32 %v4030_v13, %v7841_v19  ;;  %v3542_v58 = vmul.f32 %v3179_v33, %v3179_v33 }
 0x299   : > { %v2966_v15 = vpop.f32.mrf.mxu0  ;;  %v3181_v5 = vpop.f32.mrf.mxu1 }
 0x29a   : > { %v3472_v49 = vadd.f32 %v3471_v23, %v3179_v33  ;;  %v3604_v11 = vadd.f32 %v3603_v59, %v3541_v34  ;;  %3412 = vst [vmem:[%s5237_s26 + $0x58] sm:$0xff] %v3190_v20  ;;  %v3182_v21 = vadd.f32 %v3181_v5, %v7806_v39  ;;  %v3545_v56 = vmul.f32 %v3190_v20, %v3190_v20 }
 0x29b   : > { %v7936_v52 = vpop.f32.mrf.mxu0  ;;  %v4033_v4 = vpop.f32.mrf.mxu1 }
 0x29c   : > { %v3605_v29 = vadd.f32 %v3604_v11, %v3542_v58  ;;  %3410 = vst [vmem:[%s5237_s26 + $0x48] sm:$0xff] %v3182_v21  ;;  %v3473_v63 = vadd.f32 %v3472_v49, %v3182_v21  ;;  %v3543_v50 = vmul.f32 %v3182_v21, %v3182_v21  ;;  %v3203_v37 = vadd.f32 %v4033_v4, %v7869_v8 }
 0x29d   : > { %v2971_v19 = vpop.f32.mrf.mxu0  ;;  %v3194_v36 = vpop.f32.mrf.mxu1 }
 0x29e   : > { %v3474_v60 = vadd.f32 %v3473_v63, %v3187_v14  ;;  %v3606_v57 = vadd.f32 %v3605_v29, %v3543_v50  ;;  %3415 = vst [vmem:[%s5237_s26 + $0x70] sm:$0xff] %v3203_v37  ;;  %v3195_v28 = vadd.f32 %v3194_v36, %v7860_v31  ;;  %v3548_v58 = vmul.f32 %v3203_v37, %v3203_v37 }
 0x29f   : > { %v7942_v39 = vpop.f32.mrf.mxu0  ;;  %v4034_v27 = vpop.f32.mrf.mxu1 }
 0x2a0   : > { %v3607_v54 = vadd.f32 %v3606_v57, %v3544_v7  ;;  %3413 = vst [vmem:[%s5237_s26 + $0x60] sm:$0xff] %v3195_v28  ;;  %v3475_v2 = vadd.f32 %v3474_v60, %v3190_v20  ;;  %v3206_v44 = vadd.f32 %v4034_v27, %v7871_v51  ;;  %v3546_v13 = vmul.f32 %v3195_v28, %v3195_v28 }
 0x2a1   : > { %v2974_v8 = vpop.f32.mrf.mxu0  ;;  %v3197_v46 = vpop.f32.mrf.mxu1 }
 0x2a2   : > { %v3476_v33 = vadd.f32 %v3475_v2, %v3195_v28  ;;  %v3608_v14 = vadd.f32 %v3607_v54, %v3545_v56  ;;  %3416 = vst [vmem:[%s5237_s26 + $0x78] sm:$0xff] %v3206_v44  ;;  %v3198_v34 = vadd.f32 %v3197_v46, %v7862_v9  ;;  %v3549_v63 = vmul.f32 %v3206_v44, %v3206_v44 }
 0x2a3   : > { %v7948_v31 = vpop.f32.mrf.mxu0  ;;  %v4037_v59 = vpop.f32.mrf.mxu1 }
 0x2a4   : > { %v3609_v23 = vadd.f32 %v3608_v14, %v3546_v13  ;;  %3414 = vst [vmem:[%s5237_s26 + $0x68] sm:$0xff] %v3198_v34  ;;  %v3477_v15 = vadd.f32 %v3476_v33, %v3198_v34  ;;  %v3547_v5 = vmul.f32 %v3198_v34, %v3198_v34  ;;  %v3219_v20 = vadd.f32 %v4037_v59, %v7885_v0 }
 0x2a5   : > { %v2979_v51 = vpop.f32.mrf.mxu0  ;;  %v3210_v49 = vpop.f32.mrf.mxu1 }
 0x2a6   : > { %v3478_v11 = vadd.f32 %v3477_v15, %v3203_v37  ;;  %v3610_v21 = vadd.f32 %v3609_v23, %v3547_v5  ;;  %3419 = vst [vmem:[%s5237_s26 + $0x90] sm:$0xff] %v3219_v20  ;;  %v3211_v4 = vadd.f32 %v3210_v49, %v7877_v6  ;;  %v3552_v46 = vmul.f32 %v3219_v20, %v3219_v20 }
 0x2a7   : > { %v7954_v9 = vpop.f32.mrf.mxu0  ;;  %v4038_v29 = vpop.f32.mrf.mxu1 }
 0x2a8   : > { %v3611_v50 = vadd.f32 %v3610_v21, %v3548_v58  ;;  %3417 = vst [vmem:[%s5237_s26 + $0x80] sm:$0xff] %v3211_v4  ;;  %v3479_v19 = vadd.f32 %v3478_v11, %v3206_v44  ;;  %v3222_v36 = vadd.f32 %v4038_v29, %v7887_v26  ;;  %v3550_v57 = vmul.f32 %v3211_v4, %v3211_v4 }
 0x2a9   : > { %v2982_v0 = vpop.f32.mrf.mxu0  ;;  %v3213_v7 = vpop.f32.mrf.mxu1 }
 0x2aa   : > { %v3480_v60 = vadd.f32 %v3479_v19, %v3211_v4  ;;  %v3612_v37 = vadd.f32 %v3611_v50, %v3549_v63  ;;  %3420 = vst [vmem:[%s5237_s26 + $0x98] sm:$0xff] %v3222_v36  ;;  %v3214_v28 = vadd.f32 %v3213_v7, %v7879_v25  ;;  %v3553_v59 = vmul.f32 %v3222_v36, %v3222_v36 }
 0x2ab   : > { %v7960_v6 = vpop.f32.mrf.mxu0  ;;  %v4041_v27 = vpop.f32.mrf.mxu1 }
 0x2ac   : > { %v3613_v56 = vadd.f32 %v3612_v37, %v3550_v57  ;;  %3418 = vst [vmem:[%s5237_s26 + $0x88] sm:$0xff] %v3214_v28  ;;  %v3481_v54 = vadd.f32 %v3480_v60, %v3214_v28  ;;  %v3551_v2 = vmul.f32 %v3214_v28, %v3214_v28  ;;  %v3235_v44 = vadd.f32 %v4041_v27, %v7901_v38 }
 0x2ad   : > { %v2987_v26 = vpop.f32.mrf.mxu0  ;;  %v3226_v8 = vpop.f32.mrf.mxu1 }
 0x2ae   : > { %v3482_v33 = vadd.f32 %v3481_v54, %v3219_v20  ;;  %v3614_v13 = vadd.f32 %v3613_v56, %v3551_v2  ;;  %3423 = vst [vmem:[%s5237_s26 + $0xb0] sm:$0xff] %v3235_v44  ;;  %v3227_v14 = vadd.f32 %v3226_v8, %v7893_v45 }
 0x2af   : > { %v7966_v25 = vpop.f32.mrf.mxu0  ;;  %v4042_v34 = vpop.f32.mrf.mxu1 }
 0x2b0   : > { %v3615_v23 = vadd.f32 %v3614_v13, %v3552_v46  ;;  %3421 = vst [vmem:[%s5237_s26 + $0xa0] sm:$0xff] %v3227_v14  ;;  %v3483_v15 = vadd.f32 %v3482_v33, %v3222_v36  ;;  %v3238_v5 = vadd.f32 %v4042_v34, %v7906_v42  ;;  %v3554_v58 = vmul.f32 %v3227_v14, %v3227_v14 }
 0x2b1   : > { %v2990_v38 = vpop.f32.mrf.mxu0  ;;  %v3229_v51 = vpop.f32.mrf.mxu1  ;;  %v3556_v36 = vmul.f32 %v3235_v44, %v3235_v44 }
 0x2b2   : > { %v3484_v49 = vadd.f32 %v3483_v15, %v3227_v14  ;;  %v3616_v20 = vadd.f32 %v3615_v23, %v3553_v59  ;;  %3424 = vst [vmem:[%s5237_s26 + $0xb8] sm:$0xff] %v3238_v5  ;;  %v3230_v11 = vadd.f32 %v3229_v51, %v7895_v61  ;;  %v3557_v37 = vmul.f32 %v3238_v5, %v3238_v5 }
 0x2b3   : > { %v2993_v45 = vpop.f32.mrf.mxu0  ;;  %v4045_v21 = vpop.f32.mrf.mxu1 }
 0x2b4   : > { %v3617_v4 = vadd.f32 %v3616_v20, %v3554_v58  ;;  %3422 = vst [vmem:[%s5237_s26 + $0xa8] sm:$0xff] %v3230_v11  ;;  %v3485_v29 = vadd.f32 %v3484_v49, %v3230_v11  ;;  %v3555_v63 = vmul.f32 %v3230_v11, %v3230_v11  ;;  %v3251_v50 = vadd.f32 %v4045_v21, %v7924_v55 }
 0x2b5   : > { %v2995_v19 = vpop.f32.mrf.mxu0  ;;  %v3242_v42 = vpop.f32.mrf.mxu1 }
 0x2b6   : > { %v3486_v0 = vadd.f32 %v3485_v29, %v3235_v44  ;;  %v3618_v7 = vadd.f32 %v3617_v4, %v3555_v63  ;;  %3427 = vst [vmem:[%s5237_s26 + $0xd0] sm:$0xff] %v3251_v50  ;;  %v3243_v60 = vadd.f32 %v3242_v42, %v7912_v18  ;;  %v3560_v23 = vmul.f32 %v3251_v50, %v3251_v50 }
 0x2b7   : > { %v2996_v57 = vpop.f32.mrf.mxu0  ;;  %v4046_v61 = vpop.f32.mrf.mxu1 }
 0x2b8   : > { %v3619_v28 = vadd.f32 %v3618_v7, %v3556_v36  ;;  %3425 = vst [vmem:[%s5237_s26 + $0xc0] sm:$0xff] %v3243_v60  ;;  %v3487_v27 = vadd.f32 %v3486_v0, %v3238_v5  ;;  %v3254_v56 = vadd.f32 %v4046_v61, %v7930_v12  ;;  %v3558_v26 = vmul.f32 %v3243_v60, %v3243_v60 }
 0x2b9   : > { %v2998_v54 = vpop.f32.mrf.mxu0  ;;  %v3245_v55 = vpop.f32.mrf.mxu1 }
 0x2ba   : > { %v3488_v2 = vadd.f32 %v3487_v27, %v3243_v60  ;;  %v3620_v44 = vadd.f32 %v3619_v28, %v3557_v37  ;;  %3428 = vst [vmem:[%s5237_s26 + $0xd8] sm:$0xff] %v3254_v56  ;;  %v3246_v8 = vadd.f32 %v3245_v55, %v7918_v1  ;;  %v3561_v49 = vmul.f32 %v3254_v56, %v3254_v56 }
 0x2bb   : > { %v7980_v46 = vpop.f32.mrf.mxu0  ;;  %v4049_v18 = vpop.f32.mrf.mxu1 }
 0x2bc   : > { %v3621_v33 = vadd.f32 %v3620_v44, %v3558_v26  ;;  %3426 = vst [vmem:[%s5237_s26 + $0xc8] sm:$0xff] %v3246_v8  ;;  %v3489_v13 = vadd.f32 %v3488_v2, %v3246_v8  ;;  %v3559_v14 = vmul.f32 %v3246_v8, %v3246_v8  ;;  %v3267_v34 = vadd.f32 %v4049_v18, %v7948_v31 }
 0x2bd   : > { %v3003_v12 = vpop.f32.mrf.mxu0  ;;  %v3258_v59 = vpop.f32.mrf.mxu1 }
 0x2be   : > { %v3490_v15 = vadd.f32 %v3489_v13, %v3251_v50  ;;  %v3622_v5 = vadd.f32 %v3621_v33, %v3559_v14  ;;  %3431 = vst [vmem:[%s5237_s26 + $0xf0] sm:$0xff] %v3267_v34  ;;  %v3259_v38 = vadd.f32 %v3258_v59, %v7936_v52 }
 0x2bf   : > { %v7986_v1 = vpop.f32.mrf.mxu0  ;;  %v4050_v51 = vpop.f32.mrf.mxu1 }
 0x2c0   : > { %v3623_v58 = vadd.f32 %v3622_v5, %v3560_v23  ;;  %3429 = vst [vmem:[%s5237_s26 + $0xe0] sm:$0xff] %v3259_v38  ;;  %v3491_v20 = vadd.f32 %v3490_v15, %v3254_v56  ;;  %v3270_v11 = vadd.f32 %v4050_v51, %v7954_v9  ;;  %v3562_v29 = vmul.f32 %v3259_v38, %v3259_v38 }
 0x2c1   : > { %v3006_v31 = vpop.f32.mrf.mxu0  ;;  %v3261_v21 = vpop.f32.mrf.mxu1  ;;  %v3564_v9 = vmul.f32 %v3267_v34, %v3267_v34 }
 0x2c2   : > { %v3492_v4 = vadd.f32 %v3491_v20, %v3259_v38  ;;  %v3624_v63 = vadd.f32 %v3623_v58, %v3561_v49  ;;  %3432 = vst [vmem:[%s5237_s26 + $0xf8] sm:$0xff] %v3270_v11  ;;  %v3262_v50 = vadd.f32 %v3261_v21, %v7942_v39  ;;  %v3565_v39 = vmul.f32 %v3270_v11, %v3270_v11 }
 0x2c3   : > { %v3009_v52 = vpop.f32.mrf.mxu0  ;;  %v4053_v19 = vpop.f32.mrf.mxu1 }
 0x2c4   : > { %v3625_v42 = vadd.f32 %v3624_v63, %v3562_v29  ;;  %3430 = vst [vmem:[%s5237_s26 + $0xe8] sm:$0xff] %v3262_v50  ;;  %v3493_v36 = vadd.f32 %v3492_v4, %v3262_v50  ;;  %v3563_v0 = vmul.f32 %v3262_v50, %v3262_v50  ;;  %v3283_v7 = vadd.f32 %v4053_v19, %v2993_v45 }
 0x2c5   : > { %v3011_v60 = vpop.f32.mrf.mxu0  ;;  %v3274_v61 = vpop.f32.mrf.mxu1 }
 0x2c6   : > { %v3494_v37 = vadd.f32 %v3493_v36, %v3267_v34  ;;  %v3626_v28 = vadd.f32 %v3625_v42, %v3563_v0  ;;  %3435 = vst [vmem:[%s5237_s26 + $0x110] sm:$0xff] %v3283_v7  ;;  %v3275_v27 = vadd.f32 %v3274_v61, %v7960_v6 }
 0x2c7   : > { %v3012_v56 = vpop.f32.mrf.mxu0  ;;  %v4054_v54 = vpop.f32.mrf.mxu1 }
 0x2c8   : > { %v3627_v55 = vadd.f32 %v3626_v28, %v3564_v9  ;;  %3433 = vst [vmem:[%s5237_s26 + $0x100] sm:$0xff] %v3275_v27  ;;  %v3495_v2 = vadd.f32 %v3494_v37, %v3270_v11  ;;  %v3286_v26 = vadd.f32 %v4054_v54, %v2996_v57  ;;  %v3566_v18 = vmul.f32 %v3275_v27, %v3275_v27 }
 0x2c9   : > { %v3014_v44 = vpop.f32.mrf.mxu0  ;;  %v3277_v8 = vpop.f32.mrf.mxu1  ;;  %v3568_v57 = vmul.f32 %v3283_v7, %v3283_v7 }
 0x2ca   : > { %v3496_v45 = vadd.f32 %v3495_v2, %v3275_v27  ;;  %v3628_v33 = vadd.f32 %v3627_v55, %v3565_v39  ;;  %3436 = vst [vmem:[%s5237_s26 + $0x118] sm:$0xff] %v3286_v26  ;;  %v3278_v13 = vadd.f32 %v3277_v8, %v7966_v25  ;;  %v3569_v25 = vmul.f32 %v3286_v26, %v3286_v26 }
 0x2cb   : > { %v3017_v14 = vpop.f32.mrf.mxu0  ;;  %v4057_v34 = vpop.f32.mrf.mxu1 }
 0x2cc   : > { %v3629_v6 = vadd.f32 %v3628_v33, %v3566_v18  ;;  %3434 = vst [vmem:[%s5237_s26 + $0x108] sm:$0xff] %v3278_v13  ;;  %v3497_v12 = vadd.f32 %v3496_v45, %v3278_v13  ;;  %v3567_v59 = vmul.f32 %v3278_v13, %v3278_v13  ;;  %v3299_v23 = vadd.f32 %v4057_v34, %v3009_v52 }
 0x2cd   : > { %v3019_v15 = vpop.f32.mrf.mxu0  ;;  %v3290_v5 = vpop.f32.mrf.mxu1 }
 0x2ce   : > { %v3498_v38 = vadd.f32 %v3497_v12, %v3283_v7  ;;  %v3630_v51 = vadd.f32 %v3629_v6, %v3567_v59  ;;  %3439 = vst [vmem:[%s5237_s26 + $0x130] sm:$0xff] %v3299_v23  ;;  %v3291_v49 = vadd.f32 %v3290_v5, %v7980_v46  ;;  %v3572_v37 = vmul.f32 %v3299_v23, %v3299_v23 }
 0x2cf   : > { %v3020_v58 = vpop.f32.mrf.mxu0  ;;  %v4058_v20 = vpop.f32.mrf.mxu1 }
 0x2d0   : > { %v3631_v11 = vadd.f32 %v3630_v51, %v3568_v57  ;;  %3437 = vst [vmem:[%s5237_s26 + $0x120] sm:$0xff] %v3291_v49  ;;  %v3499_v31 = vadd.f32 %v3498_v38, %v3286_v26  ;;  %v3302_v21 = vadd.f32 %v4058_v20, %v3012_v56  ;;  %v3570_v50 = vmul.f32 %v3291_v49, %v3291_v49 }
 0x2d1   : > { %v3022_v4 = vpop.f32.mrf.mxu0  ;;  %v3293_v29 = vpop.f32.mrf.mxu1 }
 0x2d2   : > { %v3500_v63 = vadd.f32 %v3499_v31, %v3291_v49  ;;  %v3632_v52 = vadd.f32 %v3631_v11, %v3569_v25  ;;  %3440 = vst [vmem:[%s5237_s26 + $0x138] sm:$0xff] %v3302_v21  ;;  %v3294_v19 = vadd.f32 %v3293_v29, %v7986_v1  ;;  %v3573_v1 = vmul.f32 %v3302_v21, %v3302_v21 }
 0x2d3   : > { %v3025_v42 = vpop.f32.mrf.mxu0  ;;  %v4061_v36 = vpop.f32.mrf.mxu1 }
 0x2d4   : > { %v3633_v46 = vadd.f32 %v3632_v52, %v3570_v50  ;;  %3438 = vst [vmem:[%s5237_s26 + $0x128] sm:$0xff] %v3294_v19  ;;  %v3501_v0 = vadd.f32 %v3500_v63, %v3294_v19  ;;  %v3571_v7 = vmul.f32 %v3294_v19, %v3294_v19  ;;  %v3315_v60 = vadd.f32 %v4061_v36, %v3025_v42 }
 0x2d5   : > { %v3027_v61 = vpop.f32.mrf.mxu0  ;;  %v3306_v9 = vpop.f32.mrf.mxu1 }
 0x2d6   : > { %v3502_v28 = vadd.f32 %v3501_v0, %v3299_v23  ;;  %v3634_v27 = vadd.f32 %v3633_v46, %v3571_v7  ;;  %3443 = vst [vmem:[%s5237_s26 + $0x150] sm:$0xff] %v3315_v60  ;;  %v3307_v56 = vadd.f32 %v3306_v9, %v3017_v14  ;;  %v3576_v5 = vmul.f32 %v3315_v60, %v3315_v60 }
 0x2d7   : > { %v3028_v54 = vpop.f32.mrf.mxu0  ;;  %v4062_v39 = vpop.f32.mrf.mxu1 }
 0x2d8   : > { %v3635_v55 = vadd.f32 %v3634_v27, %v3572_v37  ;;  %3441 = vst [vmem:[%s5237_s26 + $0x140] sm:$0xff] %v3307_v56  ;;  %v3503_v2 = vadd.f32 %v3502_v28, %v3302_v21  ;;  %v3318_v26 = vadd.f32 %v4062_v39, %v3028_v54  ;;  %v3574_v18 = vmul.f32 %v3307_v56, %v3307_v56 }
 0x2d9   : > { %v3030_v44 = vpop.f32.mrf.mxu0  ;;  %v3309_v8 = vpop.f32.mrf.mxu1 }
 0x2da   : > { %v3504_v45 = vadd.f32 %v3503_v2, %v3307_v56  ;;  %v3636_v33 = vadd.f32 %v3635_v55, %v3573_v1  ;;  %3444 = vst [vmem:[%s5237_s26 + $0x158] sm:$0xff] %v3318_v26  ;;  %v3310_v13 = vadd.f32 %v3309_v8, %v3020_v58  ;;  %v3577_v25 = vmul.f32 %v3318_v26, %v3318_v26 }
 0x2db   : > { %v3033_v34 = vpop.f32.mrf.mxu0  ;;  %v4065_v6 = vpop.f32.mrf.mxu1 }
 0x2dc   : > { %v3637_v12 = vadd.f32 %v3636_v33, %v3574_v18  ;;  %3442 = vst [vmem:[%s5237_s26 + $0x148] sm:$0xff] %v3310_v13  ;;  %v3505_v14 = vadd.f32 %v3504_v45, %v3310_v13  ;;  %v3575_v59 = vmul.f32 %v3310_v13, %v3310_v13 }
 0x2dd   : > { %v3035_v23 = vpop.f32.mrf.mxu0  ;;  %v3322_v15 = vpop.f32.mrf.mxu1 }
 0x2de   : > { %v3506_v57 = vadd.f32 %v3505_v14, %v3315_v60  ;;  %v3638_v38 = vadd.f32 %v3637_v12, %v3575_v59  ;;  %v3323_v51 = vadd.f32 %v3322_v15, %v3033_v34 }
 0x2df   : > { %v3036_v49 = vpop.f32.mrf.mxu0  ;;  %v4066_v20 = vpop.f32.mrf.mxu1 }
 0x2e0   : > { %v3639_v11 = vadd.f32 %v3638_v38, %v3576_v5  ;;  %3445 = vst [vmem:[%s5237_s26 + $0x160] sm:$0xff] %v3323_v51  ;;  %v3507_v58 = vadd.f32 %v3506_v57, %v3318_v26  ;;  %v3578_v29 = vmul.f32 %v3323_v51, %v3323_v51 }
 0x2e1   : > { %v3038_v31 = vpop.f32.mrf.mxu0  ;;  %v3325_v21 = vpop.f32.mrf.mxu1 }
 0x2e2   : > { %v3508_v4 = vadd.f32 %v3507_v58, %v3323_v51  ;;  %v3640_v63 = vadd.f32 %v3639_v11, %v3577_v25  ;;  %v3326_v50 = vadd.f32 %v3325_v21, %v3036_v49 }
 0x2e3   : > { %v3041_v52 = vpop.f32.mrf.mxu0  ;;  %v4069_v19 = vpop.f32.mrf.mxu1 }
 0x2e4   : > { %v3641_v42 = vadd.f32 %v3640_v63, %v3578_v29  ;;  %3446 = vst [vmem:[%s5237_s26 + $0x168] sm:$0xff] %v3326_v50  ;;  %v3509_v36 = vadd.f32 %v3508_v4, %v3326_v50  ;;  %v3579_v46 = vmul.f32 %v3326_v50, %v3326_v50  ;;  %v3331_v0 = vadd.f32 %v4065_v6, %v3041_v52 }
 0x2e5   : > { %v3347_v7 = vadd.f32 %v4069_v19, %v7812_v22  ;;  %v3043_v60 = vpop.f32.mrf.mxu0  ;;  %v3338_v61 = vpop.f32.mrf.mxu1 }
 0x2e6   : > { %v3642_v9 = vadd.f32 %v3641_v42, %v3579_v46  ;;  %3447 = vst [vmem:[%s5237_s26 + $0x170] sm:$0xff] %v3331_v0  ;;  %v3580_v37 = vmul.f32 %v3331_v0, %v3331_v0  ;;  %v3339_v28 = vadd.f32 %v3338_v61, %v7750_v47  ;;  %v3510_v54 = vadd.f32 %v3509_v36, %v3331_v0 }
 0x2e7   : > { %3451 = vst [vmem:[%s5237_s26 + $0x190] sm:$0xff] %v3347_v7  ;;  %v3044_v27 = vpop.f32.mrf.mxu0  ;;  %v4070_v56 = vpop.f32.mrf.mxu1  ;;  %v3584_v23 = vmul.f32 %v3347_v7, %v3347_v7 }
 0x2e8   : > { %3449 = vst [vmem:[%s5237_s26 + $0x180] sm:$0xff] %v3339_v28  ;;  %v3334_v39 = vadd.f32 %v4066_v20, %v3044_v27  ;;  %v3350_v1 = vadd.f32 %v4070_v56, %v7822_v3  ;;  %v3643_v2 = vadd.f32 %v3642_v9, %v3580_v37  ;;  %v3582_v45 = vmul.f32 %v3339_v28, %v3339_v28 }
 0x2e9   : > { %v3046_v55 = vpop.f32.mrf.mxu0  ;;  %v3341_v22 = vpop.f32.mrf.mxu1 }
 0x2ea   : > { %3448 = vst [vmem:[%s5237_s26 + $0x178] sm:$0xff] %v3334_v39  ;;  %v3511_v26 = vadd.f32 %v3510_v54, %v3334_v39  ;;  %v3581_v44 = vmul.f32 %v3334_v39, %v3334_v39  ;;  %3452 = vst [vmem:[%s5237_s26 + $0x198] sm:$0xff] %v3350_v1  ;;  %v3342_v8 = vadd.f32 %v3341_v22, %v7764_v16 }
 0x2eb   : > { %v4073_v47 = vpop.f32.mrf.mxu1  ;;  %v3585_v38 = vmul.f32 %v3350_v1, %v3350_v1 }
 0x2ec   : > { %v3644_v18 = vadd.f32 %v3643_v2, %v3581_v44  ;;  %3450 = vst [vmem:[%s5237_s26 + $0x188] sm:$0xff] %v3342_v8  ;;  %v3512_v33 = vadd.f32 %v3511_v26, %v3339_v28  ;;  %v3363_v13 = vadd.f32 %v4073_v47, %v7864_v35  ;;  %v3583_v6 = vmul.f32 %v3342_v8, %v3342_v8 }
 0x2ed   : > { %v3354_v34 = vpop.f32.mrf.mxu1 }
 0x2ee   : > { %v3513_v3 = vadd.f32 %v3512_v33, %v3342_v8  ;;  %v3645_v12 = vadd.f32 %v3644_v18, %v3582_v45  ;;  %3455 = vst [vmem:[%s5237_s26 + $0x1b0] sm:$0xff] %v3363_v13  ;;  %v3355_v14 = vadd.f32 %v3354_v34, %v7843_v40  ;;  %v3588_v50 = vmul.f32 %v3363_v13, %v3363_v13 }
 0x2ef   : > { %v4074_v59 = vpop.f32.mrf.mxu1 }
 0x2f0   : > { %v3514_v16 = vadd.f32 %v3513_v3, %v3347_v7  ;;  %v3646_v15 = vadd.f32 %v3645_v12, %v3583_v6  ;;  %3453 = vst [vmem:[%s5237_s26 + $0x1a0] sm:$0xff] %v3355_v14  ;;  %v3366_v5 = vadd.f32 %v4074_v59, %v7867_v30  ;;  %v3586_v40 = vmul.f32 %v3355_v14, %v3355_v14 }
 0x2f1   : > { %v3357_v57 = vpop.f32.mrf.mxu1 }
 0x2f2   : > { %v3647_v35 = vadd.f32 %v3646_v15, %v3584_v23  ;;  %v3515_v51 = vadd.f32 %v3514_v16, %v3350_v1  ;;  %3456 = vst [vmem:[%s5237_s26 + $0x1b8] sm:$0xff] %v3366_v5  ;;  %v3358_v49 = vadd.f32 %v3357_v57, %v7849_v32  ;;  %v3589_v36 = vmul.f32 %v3366_v5, %v3366_v5 }
 0x2f3   : > { %v4077_v20 = vpop.f32.mrf.mxu1 }
 0x2f4   : > { %v3516_v25 = vadd.f32 %v3515_v51, %v3355_v14  ;;  %v3648_v11 = vadd.f32 %v3647_v35, %v3585_v38  ;;  %3454 = vst [vmem:[%s5237_s26 + $0x1a8] sm:$0xff] %v3358_v49  ;;  %v3379_v58 = vadd.f32 %v4077_v20, %v7881_v53  ;;  %v3587_v4 = vmul.f32 %v3358_v49, %v3358_v49 }
 0x2f5   : > { %v3370_v31 = vpop.f32.mrf.mxu1 }
 0x2f6   : > { %v3649_v21 = vadd.f32 %v3648_v11, %v3586_v40  ;;  %v3517_v30 = vadd.f32 %v3516_v25, %v3358_v49  ;;  %3459 = vst [vmem:[%s5237_s26 + $0x1d0] sm:$0xff] %v3379_v58  ;;  %v3371_v29 = vadd.f32 %v3370_v31, %v7873_v41  ;;  %v3592_v39 = vmul.f32 %v3379_v58, %v3379_v58  ;;  %v3671_v25 = vld [vmem:[%s5242_s29] sm:$0xff] }
 0x2f7   : > { %v4078_v63 = vpop.f32.mrf.mxu1 }
 0x2f8   : > { %v3518_v32 = vadd.f32 %v3517_v30, %v3363_v13  ;;  %v3650_v52 = vadd.f32 %v3649_v21, %v3587_v4  ;;  %3457 = vst [vmem:[%s5237_s26 + $0x1c0] sm:$0xff] %v3371_v29  ;;  %v3382_v19 = vadd.f32 %v4078_v63, %v7883_v62  ;;  %v3590_v41 = vmul.f32 %v3371_v29, %v3371_v29 }
 0x2f9   : > { %v3373_v42 = vpop.f32.mrf.mxu1 }
 0x2fa   : > { %v3651_v53 = vadd.f32 %v3650_v52, %v3588_v50  ;;  %v3519_v46 = vadd.f32 %v3518_v32, %v3366_v5  ;;  %3460 = vst [vmem:[%s5237_s26 + $0x1d8] sm:$0xff] %v3382_v19  ;;  %v3374_v0 = vadd.f32 %v3373_v42, %v7875_v17  ;;  %v3593_v2 = vmul.f32 %v3382_v19, %v3382_v19 }
 0x2fb   : > { %v4081_v7 = vpop.f32.mrf.mxu1 }
 0x2fc   : > { %v3520_v60 = vadd.f32 %v3519_v46, %v3371_v29  ;;  %v3652_v61 = vadd.f32 %v3651_v53, %v3589_v36  ;;  %3458 = vst [vmem:[%s5237_s26 + $0x1c8] sm:$0xff] %v3374_v0  ;;  %v3395_v9 = vadd.f32 %v4081_v7, %v7897_v43  ;;  %v3591_v27 = vmul.f32 %v3374_v0, %v3374_v0 }
 0x2fd   : > { %v3386_v37 = vpop.f32.mrf.mxu1 }
 0x2fe   : > { %v3653_v28 = vadd.f32 %v3652_v61, %v3590_v41  ;;  %v3521_v62 = vadd.f32 %v3520_v60, %v3374_v0  ;;  %3463 = vst [vmem:[%s5237_s26 + $0x1f0] sm:$0xff] %v3395_v9  ;;  %v3387_v56 = vadd.f32 %v3386_v37, %v7889_v10  ;;  %v3596_v13 = vmul.f32 %v3395_v9, %v3395_v9 }
 0x2ff   : > { %v4082_v54 = vpop.f32.mrf.mxu1 }
 0x300   : > { %v3522_v17 = vadd.f32 %v3521_v62, %v3379_v58  ;;  %v3654_v1 = vadd.f32 %v3653_v28, %v3591_v27  ;;  %3461 = vst [vmem:[%s5237_s26 + $0x1e0] sm:$0xff] %v3387_v56  ;;  %v3398_v55 = vadd.f32 %v4082_v54, %v7899_v24  ;;  %v3594_v47 = vmul.f32 %v3387_v56, %v3387_v56 }
 0x301   : > { %v3389_v22 = vpop.f32.mrf.mxu1 }
 0x302   : > { %v3655_v26 = vadd.f32 %v3654_v1, %v3592_v39  ;;  %v3523_v43 = vadd.f32 %v3522_v17, %v3382_v19  ;;  %3464 = vst [vmem:[%s5237_s26 + $0x1f8] sm:$0xff] %v3398_v55  ;;  %v3390_v44 = vadd.f32 %v3389_v22, %v7891_v48  ;;  %v3597_v6 = vmul.f32 %v3398_v55, %v3398_v55 }
 0x304   : > { %v3524_v8 = vadd.f32 %v3523_v43, %v3387_v56  ;;  %v3656_v45 = vadd.f32 %v3655_v26, %v3593_v2  ;;  %3462 = vst [vmem:[%s5237_s26 + $0x1e8] sm:$0xff] %v3390_v44  ;;  %v3595_v33 = vmul.f32 %v3390_v44, %v3390_v44 }
 0x306   : > { %v3657_v10 = vadd.f32 %v3656_v45, %v3594_v47  ;;  %v3525_v18 = vadd.f32 %v3524_v8, %v3390_v44 }
 0x308   : > { %v3526_v34 = vadd.f32 %v3525_v18, %v3395_v9  ;;  %v3658_v3 = vadd.f32 %v3657_v10, %v3595_v33 }
 0x30a   : > { %v3527_v12 = vadd.f32 %v3526_v34, %v3398_v55  ;;  %v3659_v24 = vadd.f32 %v3658_v3, %v3596_v13 }
 0x30c   : > { %v3528_v14 = vrot.slane %v3527_v12, 4  ;;  %v3660_v59 = vadd.f32 %v3659_v24, %v3597_v6 }
 0x30e   : > { %v3529_v23 = vadd.f32 %v3528_v14, %v3527_v12  ;;  %v3661_v16 = vrot.slane %v3660_v59, 4 }
 0x310   : > { %v3530_v48 = vrot.slane %v3529_v23, 2  ;;  %v3662_v15 = vadd.f32 %v3661_v16, %v3660_v59 }
 0x312   : > { %v3531_v5 = vadd.f32 %v3530_v48, %v3529_v23  ;;  %v3663_v57 = vrot.slane %v3662_v15, 2 }
 0x314   : > { %v3532_v38 = vrot.slane %v3531_v5, 1  ;;  %v3664_v35 = vadd.f32 %v3663_v57, %v3662_v15 }
 0x316   : > { %v3665_v51 = vrot.slane %v3664_v35, 1  ;;  %v3533_v49 = vadd.f32 %v3532_v38, %v3531_v5 }
 0x318   : > { %v3666_v20 = vadd.f32 %v3665_v51, %v3664_v35 }
 0x31a   : > { %v3668_v40 = vsel %vm3667_vm5, %v3533_v49, %v3666_v20 }
 0x31b   : > { %v3670_v11 = vsel %vm3669_vm6, %v3668_v40, 0.0 }
 0x31c   : > { %v3672_v58 = vadd.f32 %v3671_v25, %v3670_v11 }
 0x31e   : > { %3673 = vst [vmem:[%s5242_s29] sm:$0xff] %v3672_v58 }
 0x31f PF: > { %s14_s16 = sadd.s32 1, %s5177_s16   ;;  %s9029_s12 = smov %s5169_s14 }
 0x320   : > { %p11_p8 = scmp.ge.s32.totalorder %s14_s16, 6   ;;  %s9030_s13 = smov %s5173_s15 }
 0x321   : > { %s9031_s14 = smov %s9034_s17  ;;  %s9032_s15 = smov %s9038_s18 }
 0x322   :  { %13 = sbr.rel (!%p11_p8) target bundleno = 3 (0x3), region = 74 }

</bundles_post_ra>
